<compile_context>
chip_gen: v6e
topology: v6e:2x2x1
jax: 0.10.0
libtpu: 0.0.40
codegen_flags: <defaults>
</compile_context>

<pallas_src>
import functools

import jax
import jax.numpy as jnp
from jax import lax
from jax.experimental import pallas as pl
from jax.experimental.pallas import tpu as pltpu

NEG_SLOPE = 0.01  # F.leaky_relu / nn.LeakyReLU(negative_slope=0.01)


def _leaky(x):
    return jnp.where(x > 0, x, NEG_SLOPE * x)


# ----------------------------------------------------------------------------
# Fused kernel: one program == one image
# ----------------------------------------------------------------------------
def fused_residual_block_kernel(xpad_ref, mlo_ref, mhi_ref,
                                w1_ref, b1_ref, w2_ref, b2_ref,
                                wfc1_ref, wfc2_ref,
                                o_ref, y1pad_ref,
                                *, H, W, C, pad):
    # xpad_ref : (1, 2*pad + H*W, C) f32  row-halo-padded, NHWC-flattened image
    # mlo_ref  : (H*W, C) f32             1.0 where column j >= 1     else 0.0
    # mhi_ref  : (H*W, C) f32             1.0 where column j <= W - 2 else 0.0
    # w1_ref   : (9, C, C) bf16           conv1 taps, k = dy*3 + dx, (Cin, Cout)
    # b1_ref   : (1, C) f32
    # w2_ref   : (9, C, C) bf16           conv2 taps
    # b2_ref   : (1, C) f32
    # wfc1_ref : (C, Cr) f32              SE fc1 (transposed to in x out)
    # wfc2_ref : (Cr, C) f32              SE fc2 (transposed to in x out)
    # o_ref    : (1, H*W, C) f32
    # y1pad_ref: (2*pad + H*W, C) f32     VMEM halo buffer for leaky(conv1(x))
    HW = H * W
    f32 = jnp.float32

    xpad = xpad_ref[0]                                    # (2*pad + HW, C) f32
    # column-wrap masks, indexed by dx in {0, 1, 2}
    col_mask = (mlo_ref[...], None, mhi_ref[...])

    def conv3x3(src_pad, w_ref, b_ref):
        # src_pad: (2*pad + HW, C) f32, zero outside rows [pad, pad + HW)
        acc = jnp.zeros((HW, C), f32)
        for dy in range(3):
            for dx in range(3):
                start = pad + (dy - 1) * W + (dx - 1)
                tap = src_pad[start:start + HW, :]        # row-shifted view
                m = col_mask[dx]
                if m is not None:
                    tap = tap * m                         # zero column wrap-around
                acc += jnp.dot(tap.astype(jnp.bfloat16), w_ref[dy * 3 + dx],
                               preferred_element_type=f32)
        return acc + b_ref[...]

    # ---- conv1 + leaky_relu ----
    y1 = _leaky(conv3x3(xpad, w1_ref, b1_ref))            # (HW, C) f32

    # ---- stage y1 in a zero halo buffer (VMEM only; never written to HBM) ----
    y1pad_ref[...] = jnp.zeros(y1pad_ref.shape, y1pad_ref.dtype)
    y1pad_ref[pad:pad + HW, :] = y1                       # aligned (pad % 8 == 0)

    # ---- conv2 ----
    y2 = conv3x3(y1pad_ref[...], w2_ref, b2_ref)          # (HW, C) f32

    # ---- SE: global avg pool -> fc1 -> leaky -> fc2 -> sigmoid ----
    pooled = jnp.mean(y2, axis=0, keepdims=True)          # (1, C)
    h = _leaky(jnp.dot(pooled, wfc1_ref[...], preferred_element_type=f32))
    s = jnp.dot(h, wfc2_ref[...], preferred_element_type=f32)
    se = pl.reciprocal(1.0 + jnp.exp(-s), approx=True)    # sigmoid, (1, C)

    # ---- channel scale + residual ----
    residual = xpad[pad:pad + HW, :]                      # aligned slice
    o_ref[0] = y2 * se + residual


# ----------------------------------------------------------------------------
# Wrapper (NCHW in / NCHW out, PyTorch-compatible semantics)
# ----------------------------------------------------------------------------
def residual_block_pallas(x_nchw, params):
    w1_taps, b1, w2_taps, b2, wfc1_t, wfc2_t = params
    N, C, H, W = x_nchw.shape
    assert w1_taps.shape == (9, C, C), "residual add requires dim_in == dim_out"
    HW = H * W
    Cr = wfc1_t.shape[1]
    pad = ((W + 1 + 7) // 8) * 8            # halo rows (>= W+1), multiple of 8
    Mrows = HW + 2 * pad

    # NCHW -> flattened NHWC rows, with a zero row-halo of `pad` rows each side.
    x_rows = jnp.transpose(x_nchw, (0, 2, 3, 1)).reshape(N, HW, C).astype(jnp.float32)
    x_halo = jnp.pad(x_rows, ((0, 0), (pad, pad), (0, 0)))

    # Column-wrap masks depend only on static geometry; built once on host.
    jcol = jnp.arange(HW, dtype=jnp.int32) % W
    mlo = jnp.broadcast_to((jcol >= 1)[:, None], (HW, C)).astype(jnp.float32)
    mhi = jnp.broadcast_to((jcol <= W - 2)[:, None], (HW, C)).astype(jnp.float32)

    kernel = functools.partial(fused_residual_block_kernel, H=H, W=W, C=C, pad=pad)
    const2 = lambda *_: (0, 0)
    const3 = lambda *_: (0, 0, 0)

    out_rows = pl.pallas_call(
        kernel,
        out_shape=jax.ShapeDtypeStruct((N, HW, C), jnp.float32),
        grid=(N,),
        in_specs=[
            pl.BlockSpec((1, Mrows, C), lambda b: (b, 0, 0)),   # halo'd image rows
            pl.BlockSpec((HW, C), const2),                      # mlo
            pl.BlockSpec((HW, C), const2),                      # mhi
            pl.BlockSpec((9, C, C), const3),                    # conv1 taps (bf16)
            pl.BlockSpec((1, C), const2),                       # b1
            pl.BlockSpec((9, C, C), const3),                    # conv2 taps (bf16)
            pl.BlockSpec((1, C), const2),                       # b2
            pl.BlockSpec((C, Cr), const2),                      # SE fc1^T
            pl.BlockSpec((Cr, C), const2),                      # SE fc2^T
        ],
        out_specs=pl.BlockSpec((1, HW, C), lambda b: (b, 0, 0)),
        scratch_shapes=[pltpu.VMEM((Mrows, C), jnp.float32)],
        compiler_params=pltpu.CompilerParams(
            dimension_semantics=("parallel",)),
    )(x_halo, mlo, mhi,
      w1_taps.astype(jnp.bfloat16), b1.reshape(1, C),
      w2_taps.astype(jnp.bfloat16), b2.reshape(1, C),
      wfc1_t, wfc2_t)

    return jnp.transpose(out_rows.reshape(N, H, W, C), (0, 3, 1, 2))


# ----------------------------------------------------------------------------
# Pure-JAX reference (mirrors the PyTorch forward exactly, full f32)
# ----------------------------------------------------------------------------
def reference_forward(x, w1_oihw, b1, w2_oihw, b2, wfc1_pt, wfc2_pt):
    dn = ('NCHW', 'OIHW', 'NCHW')
    y = lax.conv_general_dilated(x, w1_oihw, (1, 1), ((1, 1), (1, 1)),
                                 dimension_numbers=dn) + b1[None, :, None, None]
    y = _leaky(y)
    y2 = lax.conv_general_dilated(y, w2_oihw, (1, 1), ((1, 1), (1, 1)),
                                  dimension_numbers=dn) + b2[None, :, None, None]
    pooled = jnp.mean(y2, axis=(2, 3))                    # (N, C)
    h = _leaky(pooled @ wfc1_pt.T)
    se = jax.nn.sigmoid(h @ wfc2_pt.T)                    # (N, C)
    return y2 * se[:, :, None, None] + x


# ----------------------------------------------------------------------------
# Main
# ----------------------------------------------------------------------------
if __name__ == "__main__":
    N, C, H, W = 2, 32, 16, 16          # dim_in == dim_out (required by residual add)
    reduction = 16
    Cr = C // reduction                  # 2

    key = jax.random.PRNGKey(0)
    k = jax.random.split(key, 8)

    x = jax.random.normal(k[0], (N, C, H, W), jnp.float32)

    # PyTorch-shaped parameters (deterministic synthetic init)
    w1_oihw = 0.05 * jax.random.normal(k[1], (C, C, 3, 3), jnp.float32)
    b1 = 0.05 * jax.random.normal(k[2], (C,), jnp.float32)
    w2_oihw = 0.05 * jax.random.normal(k[3], (C, C, 3, 3), jnp.float32)
    b2 = 0.05 * jax.random.normal(k[4], (C,), jnp.float32)
    wfc1_pt = 0.5 * jax.random.normal(k[5], (Cr, C), jnp.float32)   # nn.Linear(C, Cr)
    wfc2_pt = 0.5 * jax.random.normal(k[6], (C, Cr), jnp.float32)   # nn.Linear(Cr, C)

    # Kernel-layout parameters: conv weights -> (9 taps, Cin, Cout), k = dy*3 + dx
    w1_taps = jnp.transpose(w1_oihw, (2, 3, 1, 0)).reshape(9, C, C)
    w2_taps = jnp.transpose(w2_oihw, (2, 3, 1, 0)).reshape(9, C, C)
    params = (w1_taps, b1, w2_taps, b2, wfc1_pt.T, wfc2_pt.T)

    out = jax.block_until_ready(residual_block_pallas(x, params))
    ref = jax.block_until_ready(
        reference_forward(x, w1_oihw, b1, w2_oihw, b2, wfc1_pt, wfc2_pt))

    assert out.shape == (N, C, H, W)
    max_diff = jnp.max(jnp.abs(out - ref))
    # MXU inputs are bf16 (f32 accumulation), so compare at bf16-level tolerance.
    assert jnp.allclose(out, ref, rtol=2e-2, atol=2e-2), f"max abs diff = {max_diff}"

    print("KERNEL_OK")
</pallas_src>

<mosaic_0001>
module attributes {stable_mosaic.version = 11 : i64} {
  func.func @fused_residual_block_kernel(%arg0: i32, %arg1: memref<1x304x32xf32, #tpu.memory_space<vmem>>, %arg2: memref<256x32xf32, #tpu.memory_space<vmem>>, %arg3: memref<256x32xf32, #tpu.memory_space<vmem>>, %arg4: memref<9x32x32xbf16, #tpu.memory_space<vmem>>, %arg5: memref<1x32xf32, #tpu.memory_space<vmem>>, %arg6: memref<9x32x32xbf16, #tpu.memory_space<vmem>>, %arg7: memref<1x32xf32, #tpu.memory_space<vmem>>, %arg8: memref<32x2xf32, #tpu.memory_space<vmem>>, %arg9: memref<2x32xf32, #tpu.memory_space<vmem>>, %arg10: memref<1x256x32xf32, #tpu.memory_space<vmem>>, %arg11: memref<304x32xf32, #tpu.memory_space<vmem>>) attributes {dimension_semantics = [#tpu.dimension_semantics<parallel>], iteration_bounds = array<i64: 2>, scalar_prefetch = 0 : i64, scratch_operands = 1 : i64, tpu.core_type = #tpu.core_type<tc>, window_params = [{transform_indices = @transform_0, window_bounds = array<i64: 1, 304, 32>}, {pipeline_mode = #tpu.pipeline_mode<synchronous>, transform_indices = @transform_1, window_bounds = array<i64: 256, 32>}, {pipeline_mode = #tpu.pipeline_mode<synchronous>, transform_indices = @transform_2, window_bounds = array<i64: 256, 32>}, {pipeline_mode = #tpu.pipeline_mode<synchronous>, transform_indices = @transform_3, window_bounds = array<i64: 9, 32, 32>}, {pipeline_mode = #tpu.pipeline_mode<synchronous>, transform_indices = @transform_4, window_bounds = array<i64: 1, 32>}, {pipeline_mode = #tpu.pipeline_mode<synchronous>, transform_indices = @transform_5, window_bounds = array<i64: 9, 32, 32>}, {pipeline_mode = #tpu.pipeline_mode<synchronous>, transform_indices = @transform_6, window_bounds = array<i64: 1, 32>}, {pipeline_mode = #tpu.pipeline_mode<synchronous>, transform_indices = @transform_7, window_bounds = array<i64: 32, 2>}, {pipeline_mode = #tpu.pipeline_mode<synchronous>, transform_indices = @transform_8, window_bounds = array<i64: 2, 32>}, {transform_indices = @transform_9, window_bounds = array<i64: 1, 256, 32>}]} {
    %c0 = arith.constant 0 : index
    %c0_0 = arith.constant 0 : index
    %c0_1 = arith.constant 0 : index
    %0 = vector.load %arg1[%c0, %c0_0, %c0_1] : memref<1x304x32xf32, #tpu.memory_space<vmem>>, vector<1x304x32xf32>
    %1 = vector.shape_cast %0 : vector<1x304x32xf32> to vector<304x32xf32>
    %c0_2 = arith.constant 0 : index
    %c0_3 = arith.constant 0 : index
    %2 = vector.load %arg2[%c0_2, %c0_3] : memref<256x32xf32, #tpu.memory_space<vmem>>, vector<256x32xf32>
    %c0_4 = arith.constant 0 : index
    %c0_5 = arith.constant 0 : index
    %3 = vector.load %arg3[%c0_4, %c0_5] : memref<256x32xf32, #tpu.memory_space<vmem>>, vector<256x32xf32>
    %cst = arith.constant 0.000000e+00 : f32
    %4 = vector.broadcast %cst : f32 to vector<256x32xf32>
    %5 = vector.extract_strided_slice %1 {offsets = [7, 0], sizes = [256, 32], strides = [1, 1]} : vector<304x32xf32> to vector<256x32xf32>
    %6 = arith.mulf %5, %2 : vector<256x32xf32>
    %7 = arith.truncf %6 : vector<256x32xf32> to vector<256x32xbf16>
    %c0_6 = arith.constant 0 : index
    %c0_7 = arith.constant 0 : index
    %c0_8 = arith.constant 0 : index
    %8 = vector.load %arg4[%c0_6, %c0_7, %c0_8] : memref<9x32x32xbf16, #tpu.memory_space<vmem>>, vector<1x32x32xbf16>
    %9 = vector.shape_cast %8 : vector<1x32x32xbf16> to vector<32x32xbf16>
    %cst_9 = arith.constant dense<0.000000e+00> : vector<256x32xf32>
    %10 = tpu.matmul %7, %9, %cst_9 {dimension_numbers = #tpu.dot_dimension_numbers<[1], [0], [0], [1], [0, 0, 1, 1], [], []>} : vector<256x32xbf16>, vector<32x32xbf16>, vector<256x32xf32> -> vector<256x32xf32>
    %11 = arith.addf %4, %10 : vector<256x32xf32>
    %12 = vector.extract_strided_slice %1 {offsets = [8, 0], sizes = [256, 32], strides = [1, 1]} : vector<304x32xf32> to vector<256x32xf32>
    %13 = arith.truncf %12 : vector<256x32xf32> to vector<256x32xbf16>
    %c1 = arith.constant 1 : index
    %c0_10 = arith.constant 0 : index
    %c0_11 = arith.constant 0 : index
    %14 = vector.load %arg4[%c1, %c0_10, %c0_11] : memref<9x32x32xbf16, #tpu.memory_space<vmem>>, vector<1x32x32xbf16>
    %15 = vector.shape_cast %14 : vector<1x32x32xbf16> to vector<32x32xbf16>
    %cst_12 = arith.constant dense<0.000000e+00> : vector<256x32xf32>
    %16 = tpu.matmul %13, %15, %cst_12 {dimension_numbers = #tpu.dot_dimension_numbers<[1], [0], [0], [1], [0, 0, 1, 1], [], []>} : vector<256x32xbf16>, vector<32x32xbf16>, vector<256x32xf32> -> vector<256x32xf32>
    %17 = arith.addf %11, %16 : vector<256x32xf32>
    %18 = vector.extract_strided_slice %1 {offsets = [9, 0], sizes = [256, 32], strides = [1, 1]} : vector<304x32xf32> to vector<256x32xf32>
    %19 = arith.mulf %18, %3 : vector<256x32xf32>
    %20 = arith.truncf %19 : vector<256x32xf32> to vector<256x32xbf16>
    %c2 = arith.constant 2 : index
    %c0_13 = arith.constant 0 : index
    %c0_14 = arith.constant 0 : index
    %21 = vector.load %arg4[%c2, %c0_13, %c0_14] : memref<9x32x32xbf16, #tpu.memory_space<vmem>>, vector<1x32x32xbf16>
    %22 = vector.shape_cast %21 : vector<1x32x32xbf16> to vector<32x32xbf16>
    %cst_15 = arith.constant dense<0.000000e+00> : vector<256x32xf32>
    %23 = tpu.matmul %20, %22, %cst_15 {dimension_numbers = #tpu.dot_dimension_numbers<[1], [0], [0], [1], [0, 0, 1, 1], [], []>} : vector<256x32xbf16>, vector<32x32xbf16>, vector<256x32xf32> -> vector<256x32xf32>
    %24 = arith.addf %17, %23 : vector<256x32xf32>
    %25 = vector.extract_strided_slice %1 {offsets = [23, 0], sizes = [256, 32], strides = [1, 1]} : vector<304x32xf32> to vector<256x32xf32>
    %26 = arith.mulf %25, %2 : vector<256x32xf32>
    %27 = arith.truncf %26 : vector<256x32xf32> to vector<256x32xbf16>
    %c3 = arith.constant 3 : index
    %c0_16 = arith.constant 0 : index
    %c0_17 = arith.constant 0 : index
    %28 = vector.load %arg4[%c3, %c0_16, %c0_17] : memref<9x32x32xbf16, #tpu.memory_space<vmem>>, vector<1x32x32xbf16>
    %29 = vector.shape_cast %28 : vector<1x32x32xbf16> to vector<32x32xbf16>
    %cst_18 = arith.constant dense<0.000000e+00> : vector<256x32xf32>
    %30 = tpu.matmul %27, %29, %cst_18 {dimension_numbers = #tpu.dot_dimension_numbers<[1], [0], [0], [1], [0, 0, 1, 1], [], []>} : vector<256x32xbf16>, vector<32x32xbf16>, vector<256x32xf32> -> vector<256x32xf32>
    %31 = arith.addf %24, %30 : vector<256x32xf32>
    %32 = vector.extract_strided_slice %1 {offsets = [24, 0], sizes = [256, 32], strides = [1, 1]} : vector<304x32xf32> to vector<256x32xf32>
    %33 = arith.truncf %32 : vector<256x32xf32> to vector<256x32xbf16>
    %c4 = arith.constant 4 : index
    %c0_19 = arith.constant 0 : index
    %c0_20 = arith.constant 0 : index
    %34 = vector.load %arg4[%c4, %c0_19, %c0_20] : memref<9x32x32xbf16, #tpu.memory_space<vmem>>, vector<1x32x32xbf16>
    %35 = vector.shape_cast %34 : vector<1x32x32xbf16> to vector<32x32xbf16>
    %cst_21 = arith.constant dense<0.000000e+00> : vector<256x32xf32>
    %36 = tpu.matmul %33, %35, %cst_21 {dimension_numbers = #tpu.dot_dimension_numbers<[1], [0], [0], [1], [0, 0, 1, 1], [], []>} : vector<256x32xbf16>, vector<32x32xbf16>, vector<256x32xf32> -> vector<256x32xf32>
    %37 = arith.addf %31, %36 : vector<256x32xf32>
    %38 = vector.extract_strided_slice %1 {offsets = [25, 0], sizes = [256, 32], strides = [1, 1]} : vector<304x32xf32> to vector<256x32xf32>
    %39 = arith.mulf %38, %3 : vector<256x32xf32>
    %40 = arith.truncf %39 : vector<256x32xf32> to vector<256x32xbf16>
    %c5 = arith.constant 5 : index
    %c0_22 = arith.constant 0 : index
    %c0_23 = arith.constant 0 : index
    %41 = vector.load %arg4[%c5, %c0_22, %c0_23] : memref<9x32x32xbf16, #tpu.memory_space<vmem>>, vector<1x32x32xbf16>
    %42 = vector.shape_cast %41 : vector<1x32x32xbf16> to vector<32x32xbf16>
    %cst_24 = arith.constant dense<0.000000e+00> : vector<256x32xf32>
    %43 = tpu.matmul %40, %42, %cst_24 {dimension_numbers = #tpu.dot_dimension_numbers<[1], [0], [0], [1], [0, 0, 1, 1], [], []>} : vector<256x32xbf16>, vector<32x32xbf16>, vector<256x32xf32> -> vector<256x32xf32>
    %44 = arith.addf %37, %43 : vector<256x32xf32>
    %45 = vector.extract_strided_slice %1 {offsets = [39, 0], sizes = [256, 32], strides = [1, 1]} : vector<304x32xf32> to vector<256x32xf32>
    %46 = arith.mulf %45, %2 : vector<256x32xf32>
    %47 = arith.truncf %46 : vector<256x32xf32> to vector<256x32xbf16>
    %c6 = arith.constant 6 : index
    %c0_25 = arith.constant 0 : index
    %c0_26 = arith.constant 0 : index
    %48 = vector.load %arg4[%c6, %c0_25, %c0_26] : memref<9x32x32xbf16, #tpu.memory_space<vmem>>, vector<1x32x32xbf16>
    %49 = vector.shape_cast %48 : vector<1x32x32xbf16> to vector<32x32xbf16>
    %cst_27 = arith.constant dense<0.000000e+00> : vector<256x32xf32>
    %50 = tpu.matmul %47, %49, %cst_27 {dimension_numbers = #tpu.dot_dimension_numbers<[1], [0], [0], [1], [0, 0, 1, 1], [], []>} : vector<256x32xbf16>, vector<32x32xbf16>, vector<256x32xf32> -> vector<256x32xf32>
    %51 = arith.addf %44, %50 : vector<256x32xf32>
    %52 = vector.extract_strided_slice %1 {offsets = [40, 0], sizes = [256, 32], strides = [1, 1]} : vector<304x32xf32> to vector<256x32xf32>
    %53 = arith.truncf %52 : vector<256x32xf32> to vector<256x32xbf16>
    %c7 = arith.constant 7 : index
    %c0_28 = arith.constant 0 : index
    %c0_29 = arith.constant 0 : index
    %54 = vector.load %arg4[%c7, %c0_28, %c0_29] : memref<9x32x32xbf16, #tpu.memory_space<vmem>>, vector<1x32x32xbf16>
    %55 = vector.shape_cast %54 : vector<1x32x32xbf16> to vector<32x32xbf16>
    %cst_30 = arith.constant dense<0.000000e+00> : vector<256x32xf32>
    %56 = tpu.matmul %53, %55, %cst_30 {dimension_numbers = #tpu.dot_dimension_numbers<[1], [0], [0], [1], [0, 0, 1, 1], [], []>} : vector<256x32xbf16>, vector<32x32xbf16>, vector<256x32xf32> -> vector<256x32xf32>
    %57 = arith.addf %51, %56 : vector<256x32xf32>
    %58 = vector.extract_strided_slice %1 {offsets = [41, 0], sizes = [256, 32], strides = [1, 1]} : vector<304x32xf32> to vector<256x32xf32>
    %59 = arith.mulf %58, %3 : vector<256x32xf32>
    %60 = arith.truncf %59 : vector<256x32xf32> to vector<256x32xbf16>
    %c8 = arith.constant 8 : index
    %c0_31 = arith.constant 0 : index
    %c0_32 = arith.constant 0 : index
    %61 = vector.load %arg4[%c8, %c0_31, %c0_32] : memref<9x32x32xbf16, #tpu.memory_space<vmem>>, vector<1x32x32xbf16>
    %62 = vector.shape_cast %61 : vector<1x32x32xbf16> to vector<32x32xbf16>
    %cst_33 = arith.constant dense<0.000000e+00> : vector<256x32xf32>
    %63 = tpu.matmul %60, %62, %cst_33 {dimension_numbers = #tpu.dot_dimension_numbers<[1], [0], [0], [1], [0, 0, 1, 1], [], []>} : vector<256x32xbf16>, vector<32x32xbf16>, vector<256x32xf32> -> vector<256x32xf32>
    %64 = arith.addf %57, %63 : vector<256x32xf32>
    %c0_34 = arith.constant 0 : index
    %c0_35 = arith.constant 0 : index
    %65 = vector.load %arg5[%c0_34, %c0_35] : memref<1x32xf32, #tpu.memory_space<vmem>>, vector<1x32xf32>
    %66 = vector.broadcast %65 : vector<1x32xf32> to vector<256x32xf32>
    %67 = arith.addf %64, %66 : vector<256x32xf32>
    %cst_36 = arith.constant 0.000000e+00 : f32
    %68 = vector.broadcast %cst_36 : f32 to vector<256x32xf32>
    %69 = arith.cmpf ogt, %67, %68 : vector<256x32xf32>
    %cst_37 = arith.constant 0.00999999977 : f32
    %70 = vector.broadcast %cst_37 : f32 to vector<256x32xf32>
    %71 = arith.mulf %70, %67 : vector<256x32xf32>
    %72 = arith.select %69, %67, %71 : vector<256x32xi1>, vector<256x32xf32>
    %cst_38 = arith.constant 0.000000e+00 : f32
    %73 = vector.broadcast %cst_38 : f32 to vector<304x32xf32>
    %c0_39 = arith.constant 0 : index
    %c0_40 = arith.constant 0 : index
    %74 = vector.load %arg11[%c0_39, %c0_40] : memref<304x32xf32, #tpu.memory_space<vmem>>, vector<304x32xf32>
    tpu.vector_store %arg11[%c0_39, %c0_40], %73 {strides = array<i32>} : memref<304x32xf32, #tpu.memory_space<vmem>>, vector<304x32xf32>,
    %c24 = arith.constant 24 : index
    %c0_41 = arith.constant 0 : index
    %75 = vector.load %arg11[%c24, %c0_41] : memref<304x32xf32, #tpu.memory_space<vmem>>, vector<256x32xf32>
    tpu.vector_store %arg11[%c24, %c0_41], %72 {strides = array<i32>} : memref<304x32xf32, #tpu.memory_space<vmem>>, vector<256x32xf32>,
    %c0_42 = arith.constant 0 : index
    %c0_43 = arith.constant 0 : index
    %76 = vector.load %arg11[%c0_42, %c0_43] : memref<304x32xf32, #tpu.memory_space<vmem>>, vector<304x32xf32>
    %cst_44 = arith.constant 0.000000e+00 : f32
    %77 = vector.broadcast %cst_44 : f32 to vector<256x32xf32>
    %78 = vector.extract_strided_slice %76 {offsets = [7, 0], sizes = [256, 32], strides = [1, 1]} : vector<304x32xf32> to vector<256x32xf32>
    %79 = arith.mulf %78, %2 : vector<256x32xf32>
    %80 = arith.truncf %79 : vector<256x32xf32> to vector<256x32xbf16>
    %c0_45 = arith.constant 0 : index
    %c0_46 = arith.constant 0 : index
    %c0_47 = arith.constant 0 : index
    %81 = vector.load %arg6[%c0_45, %c0_46, %c0_47] : memref<9x32x32xbf16, #tpu.memory_space<vmem>>, vector<1x32x32xbf16>
    %82 = vector.shape_cast %81 : vector<1x32x32xbf16> to vector<32x32xbf16>
    %cst_48 = arith.constant dense<0.000000e+00> : vector<256x32xf32>
    %83 = tpu.matmul %80, %82, %cst_48 {dimension_numbers = #tpu.dot_dimension_numbers<[1], [0], [0], [1], [0, 0, 1, 1], [], []>} : vector<256x32xbf16>, vector<32x32xbf16>, vector<256x32xf32> -> vector<256x32xf32>
    %84 = arith.addf %77, %83 : vector<256x32xf32>
    %85 = vector.extract_strided_slice %76 {offsets = [8, 0], sizes = [256, 32], strides = [1, 1]} : vector<304x32xf32> to vector<256x32xf32>
    %86 = arith.truncf %85 : vector<256x32xf32> to vector<256x32xbf16>
    %c1_49 = arith.constant 1 : index
    %c0_50 = arith.constant 0 : index
    %c0_51 = arith.constant 0 : index
    %87 = vector.load %arg6[%c1_49, %c0_50, %c0_51] : memref<9x32x32xbf16, #tpu.memory_space<vmem>>, vector<1x32x32xbf16>
    %88 = vector.shape_cast %87 : vector<1x32x32xbf16> to vector<32x32xbf16>
    %cst_52 = arith.constant dense<0.000000e+00> : vector<256x32xf32>
    %89 = tpu.matmul %86, %88, %cst_52 {dimension_numbers = #tpu.dot_dimension_numbers<[1], [0], [0], [1], [0, 0, 1, 1], [], []>} : vector<256x32xbf16>, vector<32x32xbf16>, vector<256x32xf32> -> vector<256x32xf32>
    %90 = arith.addf %84, %89 : vector<256x32xf32>
    %91 = vector.extract_strided_slice %76 {offsets = [9, 0], sizes = [256, 32], strides = [1, 1]} : vector<304x32xf32> to vector<256x32xf32>
    %92 = arith.mulf %91, %3 : vector<256x32xf32>
    %93 = arith.truncf %92 : vector<256x32xf32> to vector<256x32xbf16>
    %c2_53 = arith.constant 2 : index
    %c0_54 = arith.constant 0 : index
    %c0_55 = arith.constant 0 : index
    %94 = vector.load %arg6[%c2_53, %c0_54, %c0_55] : memref<9x32x32xbf16, #tpu.memory_space<vmem>>, vector<1x32x32xbf16>
    %95 = vector.shape_cast %94 : vector<1x32x32xbf16> to vector<32x32xbf16>
    %cst_56 = arith.constant dense<0.000000e+00> : vector<256x32xf32>
    %96 = tpu.matmul %93, %95, %cst_56 {dimension_numbers = #tpu.dot_dimension_numbers<[1], [0], [0], [1], [0, 0, 1, 1], [], []>} : vector<256x32xbf16>, vector<32x32xbf16>, vector<256x32xf32> -> vector<256x32xf32>
    %97 = arith.addf %90, %96 : vector<256x32xf32>
    %98 = vector.extract_strided_slice %76 {offsets = [23, 0], sizes = [256, 32], strides = [1, 1]} : vector<304x32xf32> to vector<256x32xf32>
    %99 = arith.mulf %98, %2 : vector<256x32xf32>
    %100 = arith.truncf %99 : vector<256x32xf32> to vector<256x32xbf16>
    %c3_57 = arith.constant 3 : index
    %c0_58 = arith.constant 0 : index
    %c0_59 = arith.constant 0 : index
    %101 = vector.load %arg6[%c3_57, %c0_58, %c0_59] : memref<9x32x32xbf16, #tpu.memory_space<vmem>>, vector<1x32x32xbf16>
    %102 = vector.shape_cast %101 : vector<1x32x32xbf16> to vector<32x32xbf16>
    %cst_60 = arith.constant dense<0.000000e+00> : vector<256x32xf32>
    %103 = tpu.matmul %100, %102, %cst_60 {dimension_numbers = #tpu.dot_dimension_numbers<[1], [0], [0], [1], [0, 0, 1, 1], [], []>} : vector<256x32xbf16>, vector<32x32xbf16>, vector<256x32xf32> -> vector<256x32xf32>
    %104 = arith.addf %97, %103 : vector<256x32xf32>
    %105 = vector.extract_strided_slice %76 {offsets = [24, 0], sizes = [256, 32], strides = [1, 1]} : vector<304x32xf32> to vector<256x32xf32>
    %106 = arith.truncf %105 : vector<256x32xf32> to vector<256x32xbf16>
    %c4_61 = arith.constant 4 : index
    %c0_62 = arith.constant 0 : index
    %c0_63 = arith.constant 0 : index
    %107 = vector.load %arg6[%c4_61, %c0_62, %c0_63] : memref<9x32x32xbf16, #tpu.memory_space<vmem>>, vector<1x32x32xbf16>
    %108 = vector.shape_cast %107 : vector<1x32x32xbf16> to vector<32x32xbf16>
    %cst_64 = arith.constant dense<0.000000e+00> : vector<256x32xf32>
    %109 = tpu.matmul %106, %108, %cst_64 {dimension_numbers = #tpu.dot_dimension_numbers<[1], [0], [0], [1], [0, 0, 1, 1], [], []>} : vector<256x32xbf16>, vector<32x32xbf16>, vector<256x32xf32> -> vector<256x32xf32>
    %110 = arith.addf %104, %109 : vector<256x32xf32>
    %111 = vector.extract_strided_slice %76 {offsets = [25, 0], sizes = [256, 32], strides = [1, 1]} : vector<304x32xf32> to vector<256x32xf32>
    %112 = arith.mulf %111, %3 : vector<256x32xf32>
    %113 = arith.truncf %112 : vector<256x32xf32> to vector<256x32xbf16>
    %c5_65 = arith.constant 5 : index
    %c0_66 = arith.constant 0 : index
    %c0_67 = arith.constant 0 : index
    %114 = vector.load %arg6[%c5_65, %c0_66, %c0_67] : memref<9x32x32xbf16, #tpu.memory_space<vmem>>, vector<1x32x32xbf16>
    %115 = vector.shape_cast %114 : vector<1x32x32xbf16> to vector<32x32xbf16>
    %cst_68 = arith.constant dense<0.000000e+00> : vector<256x32xf32>
    %116 = tpu.matmul %113, %115, %cst_68 {dimension_numbers = #tpu.dot_dimension_numbers<[1], [0], [0], [1], [0, 0, 1, 1], [], []>} : vector<256x32xbf16>, vector<32x32xbf16>, vector<256x32xf32> -> vector<256x32xf32>
    %117 = arith.addf %110, %116 : vector<256x32xf32>
    %118 = vector.extract_strided_slice %76 {offsets = [39, 0], sizes = [256, 32], strides = [1, 1]} : vector<304x32xf32> to vector<256x32xf32>
    %119 = arith.mulf %118, %2 : vector<256x32xf32>
    %120 = arith.truncf %119 : vector<256x32xf32> to vector<256x32xbf16>
    %c6_69 = arith.constant 6 : index
    %c0_70 = arith.constant 0 : index
    %c0_71 = arith.constant 0 : index
    %121 = vector.load %arg6[%c6_69, %c0_70, %c0_71] : memref<9x32x32xbf16, #tpu.memory_space<vmem>>, vector<1x32x32xbf16>
    %122 = vector.shape_cast %121 : vector<1x32x32xbf16> to vector<32x32xbf16>
    %cst_72 = arith.constant dense<0.000000e+00> : vector<256x32xf32>
    %123 = tpu.matmul %120, %122, %cst_72 {dimension_numbers = #tpu.dot_dimension_numbers<[1], [0], [0], [1], [0, 0, 1, 1], [], []>} : vector<256x32xbf16>, vector<32x32xbf16>, vector<256x32xf32> -> vector<256x32xf32>
    %124 = arith.addf %117, %123 : vector<256x32xf32>
    %125 = vector.extract_strided_slice %76 {offsets = [40, 0], sizes = [256, 32], strides = [1, 1]} : vector<304x32xf32> to vector<256x32xf32>
    %126 = arith.truncf %125 : vector<256x32xf32> to vector<256x32xbf16>
    %c7_73 = arith.constant 7 : index
    %c0_74 = arith.constant 0 : index
    %c0_75 = arith.constant 0 : index
    %127 = vector.load %arg6[%c7_73, %c0_74, %c0_75] : memref<9x32x32xbf16, #tpu.memory_space<vmem>>, vector<1x32x32xbf16>
    %128 = vector.shape_cast %127 : vector<1x32x32xbf16> to vector<32x32xbf16>
    %cst_76 = arith.constant dense<0.000000e+00> : vector<256x32xf32>
    %129 = tpu.matmul %126, %128, %cst_76 {dimension_numbers = #tpu.dot_dimension_numbers<[1], [0], [0], [1], [0, 0, 1, 1], [], []>} : vector<256x32xbf16>, vector<32x32xbf16>, vector<256x32xf32> -> vector<256x32xf32>
    %130 = arith.addf %124, %129 : vector<256x32xf32>
    %131 = vector.extract_strided_slice %76 {offsets = [41, 0], sizes = [256, 32], strides = [1, 1]} : vector<304x32xf32> to vector<256x32xf32>
    %132 = arith.mulf %131, %3 : vector<256x32xf32>
    %133 = arith.truncf %132 : vector<256x32xf32> to vector<256x32xbf16>
    %c8_77 = arith.constant 8 : index
    %c0_78 = arith.constant 0 : index
    %c0_79 = arith.constant 0 : index
    %134 = vector.load %arg6[%c8_77, %c0_78, %c0_79] : memref<9x32x32xbf16, #tpu.memory_space<vmem>>, vector<1x32x32xbf16>
    %135 = vector.shape_cast %134 : vector<1x32x32xbf16> to vector<32x32xbf16>
    %cst_80 = arith.constant dense<0.000000e+00> : vector<256x32xf32>
    %136 = tpu.matmul %133, %135, %cst_80 {dimension_numbers = #tpu.dot_dimension_numbers<[1], [0], [0], [1], [0, 0, 1, 1], [], []>} : vector<256x32xbf16>, vector<32x32xbf16>, vector<256x32xf32> -> vector<256x32xf32>
    %137 = arith.addf %130, %136 : vector<256x32xf32>
    %c0_81 = arith.constant 0 : index
    %c0_82 = arith.constant 0 : index
    %138 = vector.load %arg7[%c0_81, %c0_82] : memref<1x32xf32, #tpu.memory_space<vmem>>, vector<1x32xf32>
    %139 = vector.broadcast %138 : vector<1x32xf32> to vector<256x32xf32>
    %140 = arith.addf %137, %139 : vector<256x32xf32>
    %cst_83 = arith.constant dense<0.000000e+00> : vector<32xf32>
    %141 = vector.multi_reduction <add>, %140, %cst_83 [0] : vector<256x32xf32> to vector<32xf32>
    %142 = vector.shape_cast %141 : vector<32xf32> to vector<1x32xf32>
    %cst_84 = arith.constant 2.560000e+02 : f32
    %143 = vector.broadcast %cst_84 : f32 to vector<1x32xf32>
    %144 = arith.divf %142, %143 : vector<1x32xf32>
    %c0_85 = arith.constant 0 : index
    %c0_86 = arith.constant 0 : index
    %145 = vector.load %arg8[%c0_85, %c0_86] : memref<32x2xf32, #tpu.memory_space<vmem>>, vector<32x2xf32>
    %cst_87 = arith.constant dense<0.000000e+00> : vector<1x2xf32>
    %146 = tpu.matmul %144, %145, %cst_87 {dimension_numbers = #tpu.dot_dimension_numbers<[1], [0], [0], [1], [0, 0, 1, 1], [], []>} : vector<1x32xf32>, vector<32x2xf32>, vector<1x2xf32> -> vector<1x2xf32>
    %cst_88 = arith.constant 0.000000e+00 : f32
    %147 = vector.broadcast %cst_88 : f32 to vector<1x2xf32>
    %148 = arith.cmpf ogt, %146, %147 : vector<1x2xf32>
    %cst_89 = arith.constant 0.00999999977 : f32
    %149 = vector.broadcast %cst_89 : f32 to vector<1x2xf32>
    %150 = arith.mulf %149, %146 : vector<1x2xf32>
    %151 = arith.select %148, %146, %150 : vector<1x2xi1>, vector<1x2xf32>
    %c0_90 = arith.constant 0 : index
    %c0_91 = arith.constant 0 : index
    %152 = vector.load %arg9[%c0_90, %c0_91] : memref<2x32xf32, #tpu.memory_space<vmem>>, vector<2x32xf32>
    %cst_92 = arith.constant dense<0.000000e+00> : vector<1x32xf32>
    %153 = tpu.matmul %151, %152, %cst_92 {dimension_numbers = #tpu.dot_dimension_numbers<[1], [0], [0], [1], [0, 0, 1, 1], [], []>} : vector<1x2xf32>, vector<2x32xf32>, vector<1x32xf32> -> vector<1x32xf32>
    %cst_93 = arith.constant 0.000000e+00 : f32
    %154 = vector.broadcast %cst_93 : f32 to vector<1x32xf32>
    %155 = arith.subf %154, %153 : vector<1x32xf32>
    %156 = math.exp %155 : vector<1x32xf32>
    %cst_94 = arith.constant 1.000000e+00 : f32
    %157 = vector.broadcast %cst_94 : f32 to vector<1x32xf32>
    %158 = arith.addf %157, %156 : vector<1x32xf32>
    %159 = tpu.reciprocal %158 {approx = true} : vector<1x32xf32> -> vector<1x32xf32>
    %160 = vector.extract_strided_slice %1 {offsets = [24, 0], sizes = [256, 32], strides = [1, 1]} : vector<304x32xf32> to vector<256x32xf32>
    %161 = vector.broadcast %159 : vector<1x32xf32> to vector<256x32xf32>
    %162 = arith.mulf %140, %161 : vector<256x32xf32>
    %163 = arith.addf %162, %160 : vector<256x32xf32>
    %c0_95 = arith.constant 0 : index
    %c0_96 = arith.constant 0 : index
    %c0_97 = arith.constant 0 : index
    %164 = vector.load %arg10[%c0_95, %c0_96, %c0_97] : memref<1x256x32xf32, #tpu.memory_space<vmem>>, vector<1x256x32xf32>
    %165 = vector.shape_cast %164 : vector<1x256x32xf32> to vector<256x32xf32>
    %166 = vector.shape_cast %163 : vector<256x32xf32> to vector<1x256x32xf32>
    tpu.vector_store %arg10[%c0_95, %c0_96, %c0_97], %166 {strides = array<i32>} : memref<1x256x32xf32, #tpu.memory_space<vmem>>, vector<1x256x32xf32>,
    return
  }
  func.func @transform_0(%arg0: i32) -> (i32, i32, i32) {
    %c0_i32 = arith.constant 0 : i32
    %c0_i32_0 = arith.constant 0 : i32
    %c0_i32_1 = arith.constant 0 : i32
    return %arg0, %c0_i32, %c0_i32_0 : i32, i32, i32
  }
  func.func @transform_1(%arg0: i32) -> (i32, i32) {
    %c0_i32 = arith.constant 0 : i32
    %c0_i32_0 = arith.constant 0 : i32
    %c0_i32_1 = arith.constant 0 : i32
    return %c0_i32, %c0_i32_0 : i32, i32
  }
  func.func @transform_2(%arg0: i32) -> (i32, i32) {
    %c0_i32 = arith.constant 0 : i32
    %c0_i32_0 = arith.constant 0 : i32
    %c0_i32_1 = arith.constant 0 : i32
    return %c0_i32, %c0_i32_0 : i32, i32
  }
  func.func @transform_3(%arg0: i32) -> (i32, i32, i32) {
    %c0_i32 = arith.constant 0 : i32
    %c0_i32_0 = arith.constant 0 : i32
    %c0_i32_1 = arith.constant 0 : i32
    %c0_i32_2 = arith.constant 0 : i32
    return %c0_i32, %c0_i32_0, %c0_i32_1 : i32, i32, i32
  }
  func.func @transform_4(%arg0: i32) -> (i32, i32) {
    %c0_i32 = arith.constant 0 : i32
    %c0_i32_0 = arith.constant 0 : i32
    %c0_i32_1 = arith.constant 0 : i32
    return %c0_i32, %c0_i32_0 : i32, i32
  }
  func.func @transform_5(%arg0: i32) -> (i32, i32, i32) {
    %c0_i32 = arith.constant 0 : i32
    %c0_i32_0 = arith.constant 0 : i32
    %c0_i32_1 = arith.constant 0 : i32
    %c0_i32_2 = arith.constant 0 : i32
    return %c0_i32, %c0_i32_0, %c0_i32_1 : i32, i32, i32
  }
  func.func @transform_6(%arg0: i32) -> (i32, i32) {
    %c0_i32 = arith.constant 0 : i32
    %c0_i32_0 = arith.constant 0 : i32
    %c0_i32_1 = arith.constant 0 : i32
    return %c0_i32, %c0_i32_0 : i32, i32
  }
  func.func @transform_7(%arg0: i32) -> (i32, i32) {
    %c0_i32 = arith.constant 0 : i32
    %c0_i32_0 = arith.constant 0 : i32
    %c0_i32_1 = arith.constant 0 : i32
    return %c0_i32, %c0_i32_0 : i32, i32
  }
  func.func @transform_8(%arg0: i32) -> (i32, i32) {
    %c0_i32 = arith.constant 0 : i32
    %c0_i32_0 = arith.constant 0 : i32
    %c0_i32_1 = arith.constant 0 : i32
    return %c0_i32, %c0_i32_0 : i32, i32
  }
  func.func @transform_9(%arg0: i32) -> (i32, i32, i32) {
    %c0_i32 = arith.constant 0 : i32
    %c0_i32_0 = arith.constant 0 : i32
    %c0_i32_1 = arith.constant 0 : i32
    return %arg0, %c0_i32, %c0_i32_0 : i32, i32, i32
  }
}

</mosaic_0001>

<bundles_post_ra>
// kernel: tpu_custom_call.1
= control target key start
LH: loop header
LB: loop body
LE: loop exit
PB: predicated region body
PF: predicated region fallthrough
CT: control target
= control target key end

     0   :  { %s9668_s30 = smov 0   ;;  %s14130_s0 = inlined_call_operand.vmem [shape: f32[2,304,32], index: 0, kind: input, shape index: {}]   ;;  %s14131_s1 = inlined_call_operand.vmem [shape: f32[256,32], index: 1, kind: input, shape index: {}]   ;;  %s14132_s2 = inlined_call_operand.vmem [shape: f32[256,32], index: 2, kind: input, shape index: {}]   ;;  %s14133_s3 = inlined_call_operand.vmem [shape: bf16[9,32,32], index: 3, kind: input, shape index: {}]   ;;  %s14134_s4 = inlined_call_operand.vmem [shape: f32[1,32], index: 4, kind: input, shape index: {}]   ;;  %s14135_s5 = inlined_call_operand.vmem [shape: bf16[9,32,32], index: 5, kind: input, shape index: {}]   ;;  %s14136_s6 = inlined_call_operand.vmem [shape: f32[1,32], index: 6, kind: input, shape index: {}]   ;;  %s14137_s7 = inlined_call_operand.vmem [shape: f32[32,2], index: 7, kind: input, shape index: {}]   ;;  %s14138_s8 = inlined_call_operand.vmem [shape: f32[2,32], index: 8, kind: input, shape index: {}]   ;;  %s14139_s9 = inlined_call_operand.vmem [shape: f32[2,256,32], index: 9, kind: output, shape index: {}]  }
   0x1 LB: > { %s8043_s10 = sadd.s32 4294967295, %s9614_s30   ;;  %p8047_p0 = scmp.ge.s32.totalorder %s9614_s30, 1  ;;  %s9614_s30 = sphi %s9668_s30, %s19_s30  }
   0x2   : > { %p287_p1 = scmp.lt.s32.totalorder %s9614_s30, 3 }
   0x4   : > { %p288_p2 = pnand %p8047_p0, %p287_p1 }
   0x6   : > { %291 = sbr.rel (%p288_p2) target bundleno = 1510 (0x5e6), region = 56 }
   0xb   : > { %v9453_v0 = vld [vmem:[%s14133_s3 + $0x18] sm:$0xff]   ;;  %p323_p3 = scmp.lt.s32.totalorder %s8043_s10, 1  ;;  %v9454_v1 = vld [vmem:[%s14133_s3 + $0x10] sm:$0xff]   ;;  %v372_v2 = vld [vmem:[%s14131_s1] sm:$0xff]  ;;  %vm468_vm0 = vcmask 1046528   ;;  %vm1268_vm1 = vcmask 1040384  }
   0xc   : > { %8778 = vmatprep.subr.bf16.mxu0 %v9453_v0  ;;  %v373_v3 = vld [vmem:[%s14131_s1 + $0x8] sm:$0xff]  ;;  %v9693_v4 = vld [vmem:[%s14131_s1 + $0x10] sm:$0xff]  ;;  %v404_v5 = vld [vmem:[%s14132_s2] sm:$0xff]  ;;  %v9703_v7 = vrot.slane %v372_v2, 1  ;;  %vm652_vm2 = vcmask 261120  }
   0xd   : > { %s15136_s10 = smov (!%p323_p3, %s8043_s10), 1  ;;  %8779 = vmatpush3.bf16.msra.mxu0 %v9453_v0  ;;  %v9701_v6 = vld [vmem:[%s14132_s2 + $0x8] sm:$0xff]  ;;  %v470_v8 = vrot.slane %v373_v3, 1  ;;  %v472_v9 = vrot.slane %v9693_v4, 1  ;;  %v9707_v10 = vrot.slane %v404_v5, 7  ;;  %v9457_v26 = vld [vmem:[%s14133_s3] sm:$0xff]  }
   0xe   : > { %14420 = vst [vmem:[#allocation3_spill] sm:$0xff] %v9703_v7  ;;  %8780 = vmatprep.subr.bf16.mxu0 %v9454_v1  ;;  %s9442_s25 = smul.u32 304, %s15136_s10  ;;  %v14140_v11 = vrot.slane %v9701_v6, 7  ;;  %v9455_v12 = vld [vmem:[%s14133_s3 + $0x28] sm:$0xff]   ;;  %v375_v38 = vld [vmem:[%s14131_s1 + $0x18] sm:$0xff]  ;;  %v376_v39 = vld [vmem:[%s14131_s1 + $0x20] sm:$0xff] }
   0xf   : > { %14421 = vst [vmem:[#allocation4_spill] sm:$0xff] %v9707_v10  ;;  %v9715_v13 = vsel %vm468_vm0, %v9703_v7, %v470_v8  ;;  %v9718_v14 = vsel %vm468_vm0, %v470_v8, %v472_v9  ;;  %v9456_v16 = vld [vmem:[%s14133_s3 + $0x8] sm:$0xff]   ;;  %v474_v43 = vrot.slane %v375_v38, 1  ;;  %v476_v49 = vrot.slane %v376_v39, 1  ;;  %v378_v57 = vld [vmem:[%s14131_s1 + $0x30] sm:$0xff]  ;;  %v379_v58 = vld [vmem:[%s14131_s1 + $0x38] sm:$0xff] }
  0x10   : > { %14422 = vst [vmem:[#allocation5_spill] sm:$0xff] %v9715_v13  ;;  %14423 = vst [vmem:[#allocation6_spill] sm:$0xff] %v9718_v14  ;;  %s9723_s11 = scalar_lea.vmem %s14130_s0, %s9442_s25  ;;  %v9729_v15 = vsel %vm1268_vm1, %v9707_v10, %v14140_v11  ;;  %8814 = vmatprep.subr.bf16.mxu1 %v9456_v16  ;;  %v377_v44 = vld [vmem:[%s14131_s1 + $0x28] sm:$0xff]  ;;  %vm862_vm3 = vsmask.f32 4352  ;;  %v380_v59 = vld [vmem:[%s14131_s1 + $0x40] sm:$0xff] }
  0x11   : > { %14424 = vst [vmem:[#allocation7_spill] sm:$0xff] %v9729_v15  ;;  %8781 = vmatpush3.bf16.msra.mxu0 %v9454_v1  ;;  %v334_v17 = vld [vmem:[%s9723_s11] sm:$0xff]  ;;  %v335_v18 = vld [vmem:[%s9723_s11 + $0x8] sm:$0xff]  ;;  %v336_v19 = vld [vmem:[%s9723_s11 + $0x10] sm:$0xff]  ;;  %8815 = vmatpush3.bf16.msra.mxu1 %v9456_v16  ;;  %v478_v50 = vrot.slane %v377_v44, 1  ;;  %v9810_v54 = vsel %vm468_vm0, %v472_v9, %v474_v43  ;;  %v9832_v63 = vsel %vm468_vm0, %v474_v43, %v476_v49  ;;  %v480_v4 = vrot.slane %v378_v57, 1 }
  0x12   : > { %v9738_v20 = vld [vmem:[%s9723_s11 + $0x18] sm:$0xff]  ;;  %v565_v21 = vmul.f32 %v9703_v7, %v334_v17  ;;  %v566_v22 = vmul.f32 %v9715_v13, %v335_v18  ;;  %v567_v23 = vmul.f32 %v9718_v14, %v336_v19  ;;  %v619_v24 = vpack.c.bf16 %v336_v19, %v335_v18  ;;  %v9744_v25 = vld [vmem:[%s9723_s11 + $0x20] sm:$0xff]  ;;  %8850 = vmatprep.subr.bf16.mxu0 %v9455_v12  ;;  %v9755_v31 = vld [vmem:[%s9723_s11 + $0x28] sm:$0xff]  ;;  %s8446_s12 = sshll.u32 %s15136_s10, 8 }
  0x13   : > { %v1365_v27 = vmul.f32 %v9707_v10, %v335_v18  ;;  %v1366_v28 = vmul.f32 %v9729_v15, %v336_v19  ;;  %v1806_v29 = vmul.f32 %v9703_v7, %v336_v19  ;;  %v1807_v30 = vmul.f32 %v9715_v13, %v9738_v20  ;;  %v9758_v32 = vld [vmem:[%s9723_s11 + $0x30] sm:$0xff]  ;;  %v9761_v33 = vld [vmem:[%s9723_s11 + $0x38] sm:$0xff]  ;;  %v9773_v37 = vld [vmem:[%s9723_s11 + $0x40] sm:$0xff]  ;;  %8816 = vmatprep.subr.bf16.mxu1 %v9457_v26  ;;  %s14005_s14 = scalar_lea.vmem %s14139_s9, %s8446_s12 }
  0x14   : > { %v598_v34 = vpack.c.bf16 %v566_v22, %v565_v21  ;;  %8782 = vmatprep.mubr.msk.bf16.mxu0 %vm652_vm2, %v619_v24  ;;  %v9766_v35 = vpack.c.bf16 %v9744_v25, %v9738_v20  ;;  %v9770_v36 = vpack.c.bf16 %v9758_v32, %v9755_v31  ;;  %v9787_v42 = vpack.c.bf16 %v9773_v37, %v9761_v33  ;;  %v9793_v45 = vld [vmem:[%s9723_s11 + $0x48] sm:$0xff]  ;;  %v9796_v46 = vld [vmem:[%s9723_s11 + $0x50] sm:$0xff]  ;;  %v9801_v51 = vld [vmem:[%s9723_s11 + $0x58] sm:$0xff] }
  0x15   : > { %v9781_v40 = vpack.c.bf16 %v1366_v28, %v1365_v27  ;;  %v9783_v41 = vpack.c.bf16 %v1807_v30, %v1806_v29  ;;  %v9804_v52 = vld [vmem:[%s9723_s11 + $0x60] sm:$0xff]  ;;  %14428 = vst [vmem:[#allocation11_spill] sm:$0xff] %v9810_v54  ;;  %v9814_v55 = vpack.c.bf16 %v9796_v46, %v9793_v45  ;;  %8817 = vmatpush3.bf16.msra.mxu1 %v9457_v26  ;;  %14431 = vst [vmem:[#allocation14_spill] sm:$0xff] %v9832_v63  ;;  %v381_v0 = vld [vmem:[%s14131_s1 + $0x48] sm:$0xff]  ;;  %vm1420_vm4 = vsmask.f32 7424 }
  0x16   : > { %14425 = vst [vmem:[#allocation8_spill] sm:$0xff] %v9766_v35  ;;  %14426 = vst [vmem:[#allocation9_spill] sm:$0xff] %v9770_v36  ;;  %8783 = vmatmul.mubr.msk.bf16.vlgmr.msra.gmra.mxu0 %vm652_vm2, %v9766_v35  ;;  %v864_v47 = vshrl.u32 %v598_v34, 16  ;;  %v867_v48 = vshll.u32 %v598_v34, 16  ;;  %v9818_v56 = vpack.c.bf16 %v9804_v52, %v9801_v51  ;;  %v568_v60 = vmul.f32 %v9810_v54, %v9738_v20  ;;  %v9838_v1 = vld [vmem:[%s9723_s11 + $0x70] sm:$0xff]  ;;  %v9848_v17 = vld [vmem:[%s9723_s11 + $0x68] sm:$0xff] }
  0x17   : > { %14427 = vst [vmem:[#allocation10_spill] sm:$0xff] %v9787_v42  ;;  %8851 = vmatpush3.bf16.msra.mxu0 %v9455_v12  ;;  %8786 = vmatprep.mubr.msk.bf16.mxu0 %vm652_vm2, %v9770_v36  ;;  %14429 = vst [vmem:[#allocation12_spill] sm:$0xff] %v9814_v55  ;;  %v9841_v2 = vsel %vm468_vm0, %v476_v49, %v478_v50  ;;  %v569_v3 = vmul.f32 %v9832_v63, %v9744_v25  ;;  %v482_v5 = vrot.slane %v379_v58, 1  ;;  %v9851_v18 = vld [vmem:[%s9723_s11 + $0x78] sm:$0xff]  ;;  %v9854_v19 = vld [vmem:[%s9723_s11 + $0x80] sm:$0xff] }
  0x18   : > { %14430 = vst [vmem:[#allocation13_spill] sm:$0xff] %v9818_v56  ;;  %v866_v61 = vrot.slane %v864_v47, 3  ;;  %v869_v62 = vrot.slane %v867_v48, 4  ;;  %14432 = vst [vmem:[#allocation15_spill] sm:$0xff] %v9841_v2  ;;  %v599_v8 = vpack.c.bf16 %v568_v60, %v567_v23  ;;  %v570_v12 = vmul.f32 %v9841_v2, %v9755_v31  ;;  %v382_v30 = vld [vmem:[%s14131_s1 + $0x50] sm:$0xff]  ;;  %v383_v34 = vld [vmem:[%s14131_s1 + $0x58] sm:$0xff] }
  0x19   : > { %v484_v16 = vrot.slane %v380_v59, 1  ;;  %v9857_v21 = vsel %vm468_vm0, %v478_v50, %v480_v4  ;;  %v9860_v22 = vsel %vm468_vm0, %v480_v4, %v482_v5  ;;  %v486_v24 = vrot.slane %v381_v0, 1  ;;  %v9458_v47 = vld [vmem:[%s14133_s3 + $0x20] sm:$0xff]  }
  0x1a   : > { %v870_v9 = vor.u32 %v869_v62, %v866_v61  ;;  %14433 = vst [vmem:[#allocation16_spill] sm:$0xff] %v9857_v21  ;;  %14434 = vst [vmem:[#allocation17_spill] sm:$0xff] %v9860_v22  ;;  %v9864_v23 = vpack.c.bf16 %v9838_v1, %v9848_v17  ;;  %v872_v26 = vshrl.u32 %v599_v8, 16  ;;  %v875_v27 = vshll.u32 %v599_v8, 16  ;;  %8852 = vmatprep.subr.bf16.mxu0 %v9458_v47 }
  0x1b   : > { %v600_v28 = vpack.c.bf16 %v570_v12, %v569_v3  ;;  %v571_v29 = vmul.f32 %v9857_v21, %v9758_v32  ;;  %v572_v38 = vmul.f32 %v9860_v22, %v9761_v33  ;;  %v9877_v39 = vsel %vm468_vm0, %v482_v5, %v484_v16  ;;  %8853 = vmatpush3.bf16.msra.mxu0 %v9458_v47 }
  0x1c   : > { %14435 = vst [vmem:[#allocation18_spill] sm:$0xff] %v9864_v23  ;;  %14436 = vst [vmem:[#allocation19_spill] sm:$0xff] %v9877_v39  ;;  %v9880_v43 = vsel %vm468_vm0, %v484_v16, %v486_v24  ;;  %v9884_v44 = vpack.c.bf16 %v9854_v19, %v9851_v18  ;;  %v874_v48 = vrot.slane %v872_v26, 3  ;;  %v877_v49 = vrot.slane %v875_v27, 4  ;;  %v384_v26 = vld [vmem:[%s14131_s1 + $0x60] sm:$0xff]  ;;  %v385_v27 = vld [vmem:[%s14131_s1 + $0x68] sm:$0xff] }
  0x1d   : > { %14437 = vst [vmem:[#allocation20_spill] sm:$0xff] %v9880_v43  ;;  %v881_v50 = vshrl.u32 %v600_v28, 16  ;;  %v884_v57 = vshll.u32 %v600_v28, 16  ;;  %v601_v58 = vpack.c.bf16 %v572_v38, %v571_v29  ;;  %v573_v59 = vmul.f32 %v9877_v39, %v9773_v37 }
  0x1e   : > { %14438 = vst [vmem:[#allocation21_spill] sm:$0xff] %v9884_v44  ;;  %8787 = vmatmul.mubr.msk.bf16.gmra.mxu0 %vm652_vm2, %v9787_v42  ;;  %v574_v60 = vmul.f32 %v9880_v43, %v9793_v45  ;;  %v488_v61 = vrot.slane %v382_v30, 1  ;;  %v878_v62 = vor.u32 %v877_v49, %v874_v48  ;;  %v490_v4 = vrot.slane %v383_v34, 1 }
  0x1f   : > { %8790 = vmatprep.mubr.msk.bf16.mxu0 %vm652_vm2, %v9814_v55  ;;  %v883_v0 = vrot.slane %v881_v50, 3  ;;  %v886_v3 = vrot.slane %v884_v57, 4  ;;  %v890_v5 = vshrl.u32 %v601_v58, 16  ;;  %v893_v8 = vshll.u32 %v601_v58, 16  ;;  %v9917_v50 = vld [vmem:[%s9723_s11 + $0x98] sm:$0xff]  ;;  %v9920_v57 = vld [vmem:[%s9723_s11 + $0xa0] sm:$0xff] }
  0x20   : > { %v602_v12 = vpack.c.bf16 %v574_v60, %v573_v59  ;;  %v9898_v16 = vsel %vm468_vm0, %v486_v24, %v488_v61  ;;  %v879_v28 = vsel %vm862_vm3, %v870_v9, %v878_v62  ;;  %v9908_v30 = vsel %vm468_vm0, %v488_v61, %v490_v4  ;;  %v9913_v24 = vld [vmem:[%s9723_s11 + $0x90] sm:$0xff]  ;;  %14442 = vst [vmem:[#allocation25_spill] sm:$0xff] %v9917_v50  ;;  %v9926_v61 = vld [vmem:[%s9723_s11 + $0x88] sm:$0xff]  ;;  %v9976_v55 = vld [vmem:[%s9723_s11 + $0xb8] sm:$0xff] }
  0x21   : > { %14439 = vst [vmem:[#allocation22_spill] sm:$0xff] %v9898_v16  ;;  %v887_v29 = vor.u32 %v886_v3, %v883_v0  ;;  %14440 = vst [vmem:[#allocation23_spill] sm:$0xff] %v9908_v30  ;;  %v575_v34 = vmul.f32 %v9898_v16, %v9796_v46  ;;  %8818 = vmatprep.mubr.msk.bf16.mxu1 %vm652_vm2, %v879_v28  ;;  %v892_v38 = vrot.slane %v890_v5, 3  ;;  %v895_v47 = vrot.slane %v893_v8, 4 }
  0x22   : > { %14441 = vst [vmem:[#allocation24_spill] sm:$0xff] %v9913_v24  ;;  %v899_v48 = vshrl.u32 %v602_v12, 16  ;;  %v902_v49 = vshll.u32 %v602_v12, 16  ;;  %14443 = vst [vmem:[#allocation26_spill] sm:$0xff] %v9920_v57  ;;  %v576_v58 = vmul.f32 %v9908_v30, %v9801_v51  ;;  %v492_v59 = vrot.slane %v384_v26, 1  ;;  %v387_v12 = vld [vmem:[%s14131_s1 + $0x78] sm:$0xff] }
  0x23   : > { %v888_v9 = vsel %vm862_vm3, %v878_v62, %v887_v29  ;;  %v494_v60 = vrot.slane %v385_v27, 1  ;;  %14444 = vst [vmem:[#allocation27_spill] sm:$0xff] %v9926_v61  ;;  %v896_v0 = vor.u32 %v895_v47, %v892_v38  ;;  %v9931_v8 = vpack.c.bf16 %v9913_v24, %v9926_v61  ;;  %v386_v62 = vld [vmem:[%s14131_s1 + $0x70] sm:$0xff]  ;;  %v388_v47 = vld [vmem:[%s14131_s1 + $0x80] sm:$0xff]  ;;  %14451 = vst [vmem:[#allocation34_spill] sm:$0xff] %v9976_v55 }
  0x24   : > { %8819 = vmatmul.mubr.msk.bf16.vlgmr.msra.gmra.mxu1 %vm652_vm2, %v888_v9  ;;  %v901_v3 = vrot.slane %v899_v48, 3  ;;  %v904_v5 = vrot.slane %v902_v49, 4  ;;  %v603_v26 = vpack.c.bf16 %v576_v58, %v575_v34  ;;  %v9942_v27 = vsel %vm468_vm0, %v490_v4, %v492_v59  ;;  %v389_v48 = vld [vmem:[%s14131_s1 + $0x88] sm:$0xff] }
  0x25   : > { %14445 = vst [vmem:[#allocation28_spill] sm:$0xff] %v9931_v8  ;;  %14446 = vst [vmem:[#allocation29_spill] sm:$0xff] %v9942_v27  ;;  %v9945_v28 = vsel %vm468_vm0, %v492_v59, %v494_v60  ;;  %v9949_v38 = vpack.c.bf16 %v9920_v57, %v9917_v50  ;;  %v897_v34 = vsel %vm862_vm3, %v887_v29, %v896_v0  ;;  %v496_v53 = vrot.slane %v386_v62, 1  ;;  %v9459_v29 = vld [vmem:[%s14133_s3 + $0x38] sm:$0xff]  }
  0x26   : > { %8791 = vmatmul.mubr.msk.bf16.gmra.mxu0 %vm652_vm2, %v9818_v56  ;;  %14447 = vst [vmem:[#allocation30_spill] sm:$0xff] %v9945_v28  ;;  %v905_v4 = vor.u32 %v904_v5, %v901_v3  ;;  %v577_v49 = vmul.f32 %v9942_v27, %v9804_v52  ;;  %v578_v9 = vmul.f32 %v9945_v28, %v9848_v17  ;;  %v908_v58 = vshrl.u32 %v603_v26, 16  ;;  %v9973_v56 = vld [vmem:[%s9723_s11 + $0xb0] sm:$0xff]  ;;  %v10041_v28 = vld [vmem:[%s9723_s11 + $0xc8] sm:$0xff] }
  0x27   : > { %14448 = vst [vmem:[#allocation31_spill] sm:$0xff] %v9949_v38  ;;  %8794 = vmatprep.mubr.msk.bf16.mxu0 %vm652_vm2, %v9864_v23  ;;  %8822 = vmatprep.mubr.msk.bf16.mxu1 %vm652_vm2, %v897_v34  ;;  %v911_v59 = vshll.u32 %v603_v26, 16  ;;  %v498_v11 = vrot.slane %v387_v12, 1  ;;  %v500_v13 = vrot.slane %v388_v47, 1  ;;  %v502_v7 = vrot.slane %v389_v48, 1  ;;  %v9970_v23 = vld [vmem:[%s9723_s11 + $0xa8] sm:$0xff] }
  0x28   : > { %v906_v3 = vsel %vm862_vm3, %v896_v0, %v905_v4  ;;  %v604_v5 = vpack.c.bf16 %v578_v9, %v577_v49  ;;  %14449 = vst [vmem:[#allocation32_spill] sm:$0xff] %v9970_v23  ;;  %14450 = vst [vmem:[#allocation33_spill] sm:$0xff] %v9973_v56  ;;  %v910_v34 = vrot.slane %v908_v58, 3  ;;  %v9979_v62 = vsel %vm468_vm0, %v494_v60, %v496_v53  ;;  %v9985_v26 = vld [vmem:[%s9723_s11 + $0xc0] sm:$0xff]  ;;  %v390_v0 = vld [vmem:[%s14131_s1 + $0x90] sm:$0xff] }
  0x29   : > { %v913_v42 = vrot.slane %v911_v59, 4  ;;  %14452 = vst [vmem:[#allocation35_spill] sm:$0xff] %v9979_v62  ;;  %v9982_v12 = vsel %vm468_vm0, %v496_v53, %v498_v11  ;;  %8886 = vmatprep.subr.bf16.mxu1 %v9459_v29  ;;  %v579_v49 = vmul.f32 %v9979_v62, %v9838_v1  ;;  %v9997_v53 = vld [vmem:[%s14133_s3 + $0x48] sm:$0xff]   ;;  %v9461_v60 = vld [vmem:[%s14133_s3 + $0x30] sm:$0xff]   ;;  %v10003_v59 = vsel %vm468_vm0, %v498_v11, %v500_v13 }
  0x2a   : > { %14453 = vst [vmem:[#allocation36_spill] sm:$0xff] %v9982_v12  ;;  %v917_v47 = vshrl.u32 %v604_v5, 16  ;;  %v920_v48 = vshll.u32 %v604_v5, 16  ;;  %v580_v9 = vmul.f32 %v9982_v12, %v9851_v18  ;;  %8887 = vmatpush3.bf16.msra.mxu1 %v9459_v29  ;;  %14454 = vst [vmem:[#allocation37_spill] sm:$0xff] %v10003_v59  ;;  %v10006_v5 = vsel %vm468_vm0, %v500_v13, %v502_v7  ;;  %v391_v29 = vld [vmem:[%s14131_s1 + $0x98] sm:$0xff]  ;;  %v392_v13 = vld [vmem:[%s14131_s1 + $0xa0] sm:$0xff] }
  0x2b   : > { %v914_v58 = vor.u32 %v913_v42, %v910_v34  ;;  %14455 = vst [vmem:[#allocation38_spill] sm:$0xff] %v10006_v5  ;;  %v10010_v36 = vpack.c.bf16 %v9973_v56, %v9970_v23  ;;  %v581_v11 = vmul.f32 %v10003_v59, %v9854_v19  ;;  %v393_v42 = vld [vmem:[%s14131_s1 + $0xa8] sm:$0xff]  ;;  %8922 = vmatprep.subr.bf16.mxu0 %v9997_v53  ;;  %v508_v12 = vrot.slane %v392_v13, 1 }
  0x2c   : > { %8823 = vmatmul.mubr.msk.bf16.gmra.mxu1 %vm652_vm2, %v906_v3  ;;  %v919_v35 = vrot.slane %v917_v47, 3  ;;  %v922_v15 = vrot.slane %v920_v48, 4  ;;  %v605_v10 = vpack.c.bf16 %v580_v9, %v579_v49  ;;  %v582_v34 = vmul.f32 %v10006_v5, %v9926_v61  ;;  %8888 = vmatprep.subr.bf16.mxu1 %v9461_v60 }
  0x2d   : > { %14456 = vst [vmem:[#allocation39_spill] sm:$0xff] %v10010_v36  ;;  %v915_v3 = vsel %vm862_vm3, %v905_v4, %v914_v58  ;;  %v10032_v47 = vpack.c.bf16 %v9985_v26, %v9976_v55  ;;  %v504_v48 = vrot.slane %v390_v0, 1  ;;  %v510_v62 = vrot.slane %v393_v42, 1  ;;  %v10044_v0 = vld [vmem:[%s9723_s11 + $0xd0] sm:$0xff] }
  0x2e   : > { %8795 = vmatmul.mubr.msk.bf16.gmra.mxu0 %vm652_vm2, %v9884_v44  ;;  %8826 = vmatprep.mubr.msk.bf16.mxu1 %vm652_vm2, %v915_v3  ;;  %v923_v49 = vor.u32 %v922_v15, %v919_v35  ;;  %v926_v9 = vshrl.u32 %v605_v10, 16  ;;  %v929_v4 = vshll.u32 %v605_v10, 16  ;;  %v506_v44 = vrot.slane %v391_v29, 1  ;;  %v10051_v10 = vld [vmem:[%s9723_s11 + $0xd8] sm:$0xff]  ;;  %v10054_v29 = vld [vmem:[%s9723_s11 + $0xe0] sm:$0xff] }
  0x2f   : > { %14457 = vst [vmem:[#allocation40_spill] sm:$0xff] %v10032_v47  ;;  %8798 = vmatprep.mubr.msk.bf16.mxu0 %vm652_vm2, %v9931_v8  ;;  %v606_v59 = vpack.c.bf16 %v582_v34, %v581_v11  ;;  %v10038_v5 = vsel %vm468_vm0, %v502_v7, %v504_v48  ;;  %8889 = vmatpush3.bf16.msra.mxu1 %v9461_v60  ;;  %v394_v7 = vld [vmem:[%s14131_s1 + $0xb0] sm:$0xff] }
  0x30   : > { %14458 = vst [vmem:[#allocation41_spill] sm:$0xff] %v10038_v5  ;;  %v924_v15 = vsel %vm862_vm3, %v914_v58, %v923_v49  ;;  %v928_v35 = vrot.slane %v926_v9, 3  ;;  %v931_v3 = vrot.slane %v929_v4, 4  ;;  %v10048_v8 = vsel %vm468_vm0, %v504_v48, %v506_v44 }
  0x31   : > { %14459 = vst [vmem:[#allocation42_spill] sm:$0xff] %v10048_v8  ;;  %v935_v11 = vshrl.u32 %v606_v59, 16  ;;  %v938_v13 = vshll.u32 %v606_v59, 16  ;;  %v583_v60 = vmul.f32 %v10038_v5, %v9913_v24  ;;  %v584_v58 = vmul.f32 %v10048_v8, %v9917_v50  ;;  %v395_v59 = vld [vmem:[%s14131_s1 + $0xb8] sm:$0xff]  ;;  %v10096_v8 = vld [vmem:[%s9723_s11 + $0xf0] sm:$0xff]  ;;  %v10104_v50 = vld [vmem:[%s9723_s11 + $0xe8] sm:$0xff] }
  0x32   : > { %v932_v42 = vor.u32 %v931_v3, %v928_v35  ;;  %v10064_v34 = vsel %vm468_vm0, %v506_v44, %v508_v12  ;;  %v10067_v48 = vsel %vm468_vm0, %v508_v12, %v510_v62  ;;  %v10071_v9 = vpack.c.bf16 %v10044_v0, %v10041_v28  ;;  %v396_v44 = vld [vmem:[%s14131_s1 + $0xc0] sm:$0xff]  ;;  %v397_v12 = vld [vmem:[%s14131_s1 + $0xc8] sm:$0xff] }
  0x33   : > { %14460 = vst [vmem:[#allocation43_spill] sm:$0xff] %v10064_v34  ;;  %14461 = vst [vmem:[#allocation44_spill] sm:$0xff] %v10067_v48  ;;  %v937_v4 = vrot.slane %v935_v11, 3  ;;  %v940_v5 = vrot.slane %v938_v13, 4  ;;  %v607_v27 = vpack.c.bf16 %v584_v58, %v583_v60  ;;  %v585_v35 = vmul.f32 %v10064_v34, %v9920_v57 }
  0x34   : > { %14462 = vst [vmem:[#allocation45_spill] sm:$0xff] %v10071_v9  ;;  %8827 = vmatmul.mubr.msk.bf16.gmra.mxu1 %vm652_vm2, %v924_v15  ;;  %v933_v3 = vsel %vm862_vm3, %v923_v49, %v932_v42  ;;  %v586_v11 = vmul.f32 %v10067_v48, %v9970_v23  ;;  %v10090_v13 = vpack.c.bf16 %v10054_v29, %v10051_v10  ;;  %v512_v60 = vrot.slane %v394_v7, 1 }
  0x35   : > { %8830 = vmatprep.mubr.msk.bf16.mxu1 %vm652_vm2, %v933_v3  ;;  %v941_v58 = vor.u32 %v940_v5, %v937_v4  ;;  %v944_v15 = vshrl.u32 %v607_v27, 16  ;;  %v947_v34 = vshll.u32 %v607_v27, 16  ;;  %v514_v49 = vrot.slane %v395_v59, 1  ;;  %v10110_v3 = vld [vmem:[%s9723_s11 + $0x100] sm:$0xff]  ;;  %v398_v27 = vld [vmem:[%s14131_s1 + $0xd0] sm:$0xff] }
  0x36   : > { %14463 = vst [vmem:[#allocation46_spill] sm:$0xff] %v10090_v13  ;;  %8799 = vmatmul.mubr.msk.bf16.gmra.mxu0 %vm652_vm2, %v9949_v38  ;;  %v608_v48 = vpack.c.bf16 %v586_v11, %v585_v35  ;;  %v10101_v23 = vsel %vm468_vm0, %v510_v62, %v512_v60  ;;  %v516_v57 = vrot.slane %v396_v44, 1  ;;  %v518_v7 = vrot.slane %v397_v12, 1  ;;  %v10107_v38 = vld [vmem:[%s9723_s11 + $0xf8] sm:$0xff] }
  0x37   : > { %8802 = vmatprep.mubr.msk.bf16.mxu0 %vm652_vm2, %v10010_v36  ;;  %14464 = vst [vmem:[#allocation47_spill] sm:$0xff] %v10101_v23  ;;  %v942_v5 = vsel %vm862_vm3, %v932_v42, %v941_v58  ;;  %v946_v59 = vrot.slane %v944_v15, 3  ;;  %v949_v4 = vrot.slane %v947_v34, 4  ;;  %v10117_v35 = vsel %vm468_vm0, %v512_v60, %v514_v49  ;;  %v399_v62 = vld [vmem:[%s14131_s1 + $0xd8] sm:$0xff]  ;;  %v400_v34 = vld [vmem:[%s14131_s1 + $0xe0] sm:$0xff]  ;;  %v10137_v60 = vld [vmem:[%s14131_s1 + $0xe8] sm:$0xff] }
  0x38   : > { %14465 = vst [vmem:[#allocation48_spill] sm:$0xff] %v10117_v35  ;;  %v10125_v44 = vld [vmem:[%s14133_s3 + $0x58] sm:$0xff]   ;;  %v953_v12 = vshrl.u32 %v608_v48, 16  ;;  %v956_v11 = vshll.u32 %v608_v48, 16  ;;  %v587_v36 = vmul.f32 %v10101_v23, %v9973_v56  ;;  %v588_v42 = vmul.f32 %v10117_v35, %v9976_v55 }
  0x39   : > { %v950_v15 = vor.u32 %v949_v4, %v946_v59  ;;  %v10140_v24 = vsel %vm468_vm0, %v514_v49, %v516_v57  ;;  %v10143_v48 = vsel %vm468_vm0, %v516_v57, %v518_v7  ;;  %v10147_v23 = vpack.c.bf16 %v10096_v8, %v10104_v50  ;;  %8958 = vmatprep.subr.bf16.mxu1 %v10125_v44 }
  0x3a   : > { %14466 = vst [vmem:[#allocation49_spill] sm:$0xff] %v10140_v24  ;;  %14467 = vst [vmem:[#allocation50_spill] sm:$0xff] %v10143_v48  ;;  %v955_v35 = vrot.slane %v953_v12, 3  ;;  %v958_v55 = vrot.slane %v956_v11, 4  ;;  %v609_v56 = vpack.c.bf16 %v588_v42, %v587_v36  ;;  %v589_v30 = vmul.f32 %v10140_v24, %v9985_v26  ;;  %v406_v36 = vld [vmem:[%s14132_s2 + $0x10] sm:$0xff] }
  0x3b   : > { %14468 = vst [vmem:[#allocation51_spill] sm:$0xff] %v10147_v23  ;;  %v951_v59 = vsel %vm862_vm3, %v941_v58, %v950_v15  ;;  %v590_v49 = vmul.f32 %v10143_v48, %v10041_v28  ;;  %v10157_v57 = vpack.c.bf16 %v10110_v3, %v10107_v38  ;;  %v520_v4 = vrot.slane %v398_v27, 1 }
  0x3c   : > { %8831 = vmatmul.mubr.msk.bf16.gmra.mxu1 %vm652_vm2, %v942_v5  ;;  %v959_v16 = vor.u32 %v958_v55, %v955_v35  ;;  %v962_v61 = vshrl.u32 %v609_v56, 16  ;;  %v965_v12 = vshll.u32 %v609_v56, 16  ;;  %v522_v11 = vrot.slane %v399_v62, 1  ;;  %v10173_v55 = vld [vmem:[%s14132_s2 + $0x18] sm:$0xff] }
  0x3d   : > { %14469 = vst [vmem:[#allocation52_spill] sm:$0xff] %v10157_v57  ;;  %8834 = vmatprep.mubr.msk.bf16.mxu1 %vm652_vm2, %v951_v59  ;;  %v610_v58 = vpack.c.bf16 %v590_v49, %v589_v30  ;;  %v10167_v42 = vsel %vm468_vm0, %v518_v7, %v520_v4  ;;  %v524_v27 = vrot.slane %v400_v34, 1  ;;  %v526_v5 = vrot.slane %v10137_v60, 1 }
  0x3e   : > { %8803 = vmatmul.mubr.msk.bf16.gmra.mxu0 %vm652_vm2, %v10032_v47  ;;  %14470 = vst [vmem:[#allocation53_spill] sm:$0xff] %v10167_v42  ;;  %v960_v56 = vsel %vm862_vm3, %v950_v15, %v959_v16  ;;  %v964_v35 = vrot.slane %v962_v61, 3  ;;  %v967_v62 = vrot.slane %v965_v12, 4  ;;  %v10179_v30 = vsel %vm468_vm0, %v520_v4, %v522_v11 }
  0x3f   : > { %8806 = vmatprep.mubr.msk.bf16.mxu0 %vm652_vm2, %v10071_v9  ;;  %14471 = vst [vmem:[#allocation54_spill] sm:$0xff] %v10179_v30  ;;  %v971_v7 = vshrl.u32 %v610_v58, 16  ;;  %v974_v59 = vshll.u32 %v610_v58, 16  ;;  %v591_v34 = vmul.f32 %v10167_v42, %v10044_v0  ;;  %v592_v60 = vmul.f32 %v10179_v30, %v10051_v10  ;;  %v402_v42 = vld [vmem:[%s14131_s1 + $0xf0] sm:$0xff] }
  0x40   : > { %v968_v49 = vor.u32 %v967_v62, %v964_v35  ;;  %v10186_v47 = vsel %vm468_vm0, %v522_v11, %v524_v27  ;;  %v10189_v15 = vsel %vm468_vm0, %v524_v27, %v526_v5  ;;  %v1272_v61 = vrot.slane %v406_v36, 7  ;;  %v403_v62 = vld [vmem:[%s14131_s1 + $0xf8] sm:$0xff] }
  0x41   : > { %14472 = vst [vmem:[#allocation55_spill] sm:$0xff] %v10186_v47  ;;  %14473 = vst [vmem:[#allocation56_spill] sm:$0xff] %v10189_v15  ;;  %v973_v12 = vrot.slane %v971_v7, 3  ;;  %v976_v9 = vrot.slane %v974_v59, 4  ;;  %v611_v4 = vpack.c.bf16 %v592_v60, %v591_v34  ;;  %v593_v58 = vmul.f32 %v10186_v47, %v10054_v29 }
  0x42   : > { %v969_v30 = vsel %vm862_vm3, %v959_v16, %v968_v49  ;;  %v594_v11 = vmul.f32 %v10189_v15, %v10104_v50  ;;  %v14474_v35 = vrot.slane %v9701_v6, 7  ;;  %v1274_v36 = vrot.slane %v10173_v55, 7 }
  0x43   : > { %v977_v7 = vor.u32 %v976_v9, %v973_v12  ;;  %v980_v59 = vshrl.u32 %v611_v4, 16  ;;  %v983_v34 = vshll.u32 %v611_v4, 16  ;;  %v14477_v55 = vshll.u32 %v9781_v40, 16  ;;  %v408_v9 = vld [vmem:[%s14132_s2 + $0x20] sm:$0xff]  ;;  %v409_v12 = vld [vmem:[%s14132_s2 + $0x28] sm:$0xff] }
  0x44   : > { %v10202_v27 = vsel %vm1268_vm1, %v14474_v35, %v1272_v61  ;;  %8835 = vmatmul.mubr.msk.bf16.gmra.mxu1 %vm652_vm2, %v960_v56  ;;  %v612_v60 = vpack.c.bf16 %v594_v11, %v593_v58  ;;  %v10212_v6 = vsel %vm1268_vm1, %v1272_v61, %v1274_v36  ;;  %v1422_v35 = vshrl.u32 %v9781_v40, 16 }
  0x45   : > { %14475 = vst [vmem:[#allocation57_spill] sm:$0xff] %v10202_v27  ;;  %v1367_v16 = vmul.f32 %v10202_v27, %v9738_v20  ;;  %14476 = vst [vmem:[#allocation58_spill] sm:$0xff] %v10212_v6  ;;  %v1426_v15 = vrot.slane %v14477_v55, 1  ;;  %8838 = vmatprep.mubr.msk.bf16.mxu1 %vm652_vm2, %v969_v30  ;;  %v978_v20 = vsel %vm862_vm3, %v968_v49, %v977_v7  ;;  %v982_v56 = vrot.slane %v980_v59, 3  ;;  %v410_v30 = vld [vmem:[%s14132_s2 + $0x30] sm:$0xff] }
  0x46   : > { %8807 = vmatmul.mubr.msk.bf16.gmra.mxu0 %vm652_vm2, %v10090_v13  ;;  %v985_v61 = vrot.slane %v983_v34, 4  ;;  %v1368_v40 = vmul.f32 %v10212_v6, %v9744_v25  ;;  %v989_v4 = vshrl.u32 %v612_v60, 16  ;;  %v992_v58 = vshll.u32 %v612_v60, 16 }
  0x47   : > { %8810 = vmatprep.mubr.msk.bf16.mxu0 %vm652_vm2, %v10147_v23  ;;  %v1427_v11 = vor.u32 %v1426_v15, %v1422_v35  ;;  %v528_v55 = vrot.slane %v402_v42, 1  ;;  %v10231_v48 = vrot.slane %v403_v62, 1  ;;  %v1276_v13 = vrot.slane %v408_v9, 7  ;;  %v411_v15 = vld [vmem:[%s14132_s2 + $0x38] sm:$0xff] }
  0x48   : > { %v986_v27 = vor.u32 %v985_v61, %v982_v56  ;;  %v1399_v47 = vpack.c.bf16 %v1368_v40, %v1367_v16  ;;  %v991_v49 = vrot.slane %v989_v4, 3  ;;  %v994_v59 = vrot.slane %v992_v58, 4 }
  0x49   : > { %14478 = vst [vmem:[#allocation59_spill] sm:$0xff] %v10231_v48  ;;  %v10237_v34 = vsel %vm468_vm0, %v526_v5, %v528_v55  ;;  %v1278_v6 = vrot.slane %v409_v12, 7  ;;  %v10245_v60 = vsel %vm468_vm0, %v528_v55, %v10231_v48  ;;  %v10252_v12 = vsel %vm1268_vm1, %v1274_v36, %v1276_v13 }
  0x4a   : > { %14479 = vst [vmem:[#allocation60_spill] sm:$0xff] %v10237_v34  ;;  %v987_v42 = vsel %vm862_vm3, %v977_v7, %v986_v27  ;;  %v1429_v16 = vshll.u32 %v1399_v47, 16  ;;  %v1433_v62 = vshrl.u32 %v1399_v47, 16  ;;  %14480 = vst [vmem:[#allocation61_spill] sm:$0xff] %v10245_v60  ;;  %v995_v35 = vor.u32 %v994_v59, %v991_v49 }
  0x4b   : > { %v595_v9 = vmul.f32 %v10237_v34, %v10096_v8  ;;  %v596_v5 = vmul.f32 %v10245_v60, %v10107_v38  ;;  %14481 = vst [vmem:[#allocation62_spill] sm:$0xff] %v10252_v12  ;;  %v10255_v61 = vsel %vm1268_vm1, %v1276_v13, %v1278_v6  ;;  %v1369_v47 = vmul.f32 %v10252_v12, %v9755_v31  ;;  %v412_v13 = vld [vmem:[%s14132_s2 + $0x40] sm:$0xff] }
  0x4c   : > { %v1431_v56 = vrot.slane %v1429_v16, 1  ;;  %14482 = vst [vmem:[#allocation63_spill] sm:$0xff] %v10255_v61  ;;  %v597_v7 = vmul.f32 %v10231_v48, %v10110_v3  ;;  %8839 = vmatmul.mubr.msk.bf16.gmra.mxu1 %vm652_vm2, %v978_v20  ;;  %v996_v40 = vsel %vm862_vm3, %v986_v27, %v995_v35  ;;  %v1370_v58 = vmul.f32 %v10255_v61, %v9758_v32  ;;  %v10275_v27 = vld [vmem:[%s14132_s2 + $0x48] sm:$0xff] }
  0x4d   : > { %v613_v4 = vpack.c.bf16 %v596_v5, %v595_v9  ;;  %v1280_v36 = vrot.slane %v410_v30, 7  ;;  %8842 = vmatprep.mubr.msk.bf16.mxu1 %vm652_vm2, %v987_v42  ;;  %v1282_v59 = vrot.slane %v411_v15, 7 }
  0x4e   : > { %8811 = vmatmul.mubr.msk.bf16.gmra.mxu0 %vm652_vm2, %v10157_v57  ;;  %v1432_v55 = vsel %vm1420_vm4, %v1427_v11, %v1431_v56  ;;  %v1435_v49 = vor.u32 %v1433_v62, %v1431_v56  ;;  %v614_v20 = vpack.c.bf16 %v597_v7, %v597_v7  ;;  %v1400_v9 = vpack.c.bf16 %v1370_v58, %v1369_v47 }
  0x4f   : > { %8854 = vmatprep.mubr.msk.bf16.mxu0 %vm652_vm2, %v1432_v55  ;;  %v998_v30 = vshrl.u32 %v613_v4, 16  ;;  %v1001_v16 = vshll.u32 %v613_v4, 16  ;;  %v10279_v5 = vsel %vm1268_vm1, %v1278_v6, %v1280_v36  ;;  %v10282_v11 = vsel %vm1268_vm1, %v1280_v36, %v1282_v59 }
  0x50   : > { %14483 = vst [vmem:[#allocation64_spill] sm:$0xff] %v10279_v5  ;;  %v1007_v57 = vshrl.u32 %v614_v20, 16  ;;  %v1010_v42 = vshll.u32 %v614_v20, 16  ;;  %14484 = vst [vmem:[#allocation65_spill] sm:$0xff] %v10282_v11  ;;  %v1371_v15 = vmul.f32 %v10279_v5, %v9761_v33  ;;  %v1437_v7 = vshll.u32 %v1400_v9, 16 }
  0x51   : > { %v1000_v62 = vrot.slane %v998_v30, 3  ;;  %v1003_v56 = vrot.slane %v1001_v16, 4  ;;  %v1372_v55 = vmul.f32 %v10282_v11, %v9773_v37  ;;  %v1441_v47 = vshrl.u32 %v1400_v9, 16 }
  0x52   : > { %v1009_v23 = vrot.slane %v1007_v57, 3  ;;  %v1012_v4 = vrot.slane %v1010_v42, 4  ;;  %v1284_v58 = vrot.slane %v412_v13, 7  ;;  %v1439_v61 = vrot.slane %v1437_v7, 1  ;;  %v9462_v57 = vld [vmem:[%s14133_s3 + $0x40] sm:$0xff]  }
  0x53   : > { %v1004_v6 = vor.u32 %v1003_v56, %v1000_v62  ;;  %v1401_v12 = vpack.c.bf16 %v1372_v55, %v1371_v15  ;;  %v1286_v20 = vrot.slane %v10275_v27, 7  ;;  %v1808_v30 = vmul.f32 %v9718_v14, %v9744_v25  ;;  %v10328_v55 = vld [vmem:[%s14133_s3 + $0x68] sm:$0xff]  }
  0x54   : > { %v1013_v36 = vor.u32 %v1012_v4, %v1009_v23  ;;  %v10290_v48 = vsel %vm1268_vm1, %v1282_v59, %v1284_v58  ;;  %v1809_v16 = vmul.f32 %v9810_v54, %v9755_v31  ;;  %8843 = vmatmul.mubr.msk.bf16.gmra.mxu1 %vm652_vm2, %v996_v40  ;;  %v1440_v27 = vsel %vm1420_vm4, %v1435_v49, %v1439_v61  ;;  %v414_v59 = vld [vmem:[%s14132_s2 + $0x50] sm:$0xff] }
  0x55   : > { %14485 = vst [vmem:[#allocation66_spill] sm:$0xff] %v10290_v48  ;;  %v1005_v13 = vsel %vm862_vm3, %v995_v35, %v1004_v6  ;;  %v1443_v23 = vor.u32 %v1441_v47, %v1439_v61  ;;  %v1445_v9 = vshll.u32 %v1401_v12, 16  ;;  %v10309_v31 = vsel %vm1268_vm1, %v1284_v58, %v1286_v20 }
  0x56   : > { %8846 = vmatprep.mubr.msk.bf16.mxu1 %vm652_vm2, %v1005_v13  ;;  %8855 = vmatmul.mubr.msk.bf16.vlgmr.msra.gmra.mxu0 %vm652_vm2, %v1440_v27  ;;  %v1014_v25 = vsel %vm862_vm3, %v1004_v6, %v1013_v36  ;;  %14486 = vst [vmem:[#allocation67_spill] sm:$0xff] %v10309_v31  ;;  %v1373_v35 = vmul.f32 %v10290_v48, %v9793_v45  ;;  %v1449_v40 = vshrl.u32 %v1401_v12, 16  ;;  %v1862_v15 = vshrl.u32 %v9783_v41, 16  ;;  %v415_v12 = vld [vmem:[%s14132_s2 + $0x58] sm:$0xff] }
  0x57   : > { %8923 = vmatpush3.bf16.msra.mxu0 %v9997_v53  ;;  %v1447_v61 = vrot.slane %v1445_v9, 1  ;;  %v1374_v49 = vmul.f32 %v10309_v31, %v9796_v46  ;;  %v1840_v42 = vpack.c.bf16 %v1809_v16, %v1808_v30  ;;  %v1865_v62 = vshll.u32 %v9783_v41, 16  ;;  %v416_v9 = vld [vmem:[%s14132_s2 + $0x60] sm:$0xff] }
  0x58   : > { %v1810_v56 = vmul.f32 %v9832_v63, %v9758_v32  ;;  %v1811_v7 = vmul.f32 %v9841_v2, %v9761_v33  ;;  %v1288_v53 = vrot.slane %v414_v59, 7  ;;  %8924 = vmatprep.subr.bf16.mxu0 %v9462_v57  ;;  %v1864_v58 = vrot.slane %v1862_v15, 3 }
  0x59   : > { %v1448_v4 = vsel %vm1420_vm4, %v1443_v23, %v1447_v61  ;;  %v1402_v41 = vpack.c.bf16 %v1374_v49, %v1373_v35  ;;  %v1451_v47 = vor.u32 %v1449_v40, %v1447_v61  ;;  %v1867_v32 = vrot.slane %v1865_v62, 4  ;;  %v417_v61 = vld [vmem:[%s14132_s2 + $0x68] sm:$0xff] }
  0x5a   : > { %8858 = vmatprep.mubr.msk.bf16.mxu0 %vm652_vm2, %v1448_v4  ;;  %v1870_v33 = vshrl.u32 %v1840_v42, 16  ;;  %v1873_v6 = vshll.u32 %v1840_v42, 16  ;;  %v1841_v36 = vpack.c.bf16 %v1811_v7, %v1810_v56  ;;  %v10333_v16 = vsel %vm1268_vm1, %v1286_v20, %v1288_v53 }
  0x5b   : > { %v1453_v30 = vshll.u32 %v1402_v41, 16  ;;  %14487 = vst [vmem:[#allocation68_spill] sm:$0xff] %v10333_v16  ;;  %v1290_v13 = vrot.slane %v415_v12, 7  ;;  %v1457_v27 = vshrl.u32 %v1402_v41, 16  ;;  %8925 = vmatpush3.bf16.msra.mxu0 %v9462_v57  ;;  %v1868_v23 = vor.u32 %v1867_v32, %v1864_v58 }
  0x5c   : > { %v1872_v59 = vrot.slane %v1870_v33, 3  ;;  %v1875_v35 = vrot.slane %v1873_v6, 4  ;;  %v1879_v40 = vshrl.u32 %v1841_v36, 16  ;;  %8994 = vmatprep.subr.bf16.mxu0 %v10328_v55  ;;  %8847 = vmatmul.mubr.msk.bf16.gmra.mxu1 %vm652_vm2, %v1014_v25  ;;  %v1882_v49 = vshll.u32 %v1841_v36, 16 }
  0x5d   : > { %v1455_v20 = vrot.slane %v1453_v30, 1  ;;  %v10344_v42 = vsel %vm1268_vm1, %v1288_v53, %v1290_v13  ;;  %v1375_v57 = vmul.f32 %v10333_v16, %v9801_v51  ;;  %v1292_v7 = vrot.slane %v416_v9, 7 }
  0x5e   : > { %14488 = vst [vmem:[#allocation69_spill] sm:$0xff] %v10344_v42  ;;  %v1876_v15 = vor.u32 %v1875_v35, %v1872_v59  ;;  %v1881_v62 = vrot.slane %v1879_v40, 3  ;;  %v1376_v56 = vmul.f32 %v10344_v42, %v9804_v52  ;;  %v1884_v4 = vrot.slane %v1882_v49, 4  ;;  %v418_v52 = vld [vmem:[%s14132_s2 + $0x70] sm:$0xff] }
  0x5f   : > { %v1456_v12 = vsel %vm1420_vm4, %v1451_v47, %v1455_v20  ;;  %v1459_v41 = vor.u32 %v1457_v27, %v1455_v20  ;;  %v1294_v58 = vrot.slane %v417_v61, 7  ;;  %v10354_v32 = vsel %vm1268_vm1, %v1290_v13, %v1292_v7  ;;  %v420_v13 = vld [vmem:[%s14132_s2 + $0x80] sm:$0xff]  ;;  %v9465_v20 = vld [vmem:[%s14133_s3 + $0x50] sm:$0xff]  }
  0x60   : > { %8859 = vmatmul.mubr.msk.bf16.gmra.mxu0 %vm652_vm2, %v1456_v12  ;;  %v1877_v25 = vsel %vm862_vm3, %v1868_v23, %v1876_v15  ;;  %v1403_v53 = vpack.c.bf16 %v1376_v56, %v1375_v57  ;;  %14489 = vst [vmem:[#allocation70_spill] sm:$0xff] %v10354_v32  ;;  %v1812_v33 = vmul.f32 %v9857_v21, %v9773_v37  ;;  %v419_v37 = vld [vmem:[%s14132_s2 + $0x78] sm:$0xff]  ;;  %v1296_v61 = vrot.slane %v418_v52, 7 }
  0x61   : > { %8890 = vmatprep.mubr.msk.bf16.mxu1 %vm652_vm2, %v1877_v25  ;;  %v1885_v47 = vor.u32 %v1884_v4, %v1881_v62  ;;  %v10363_v6 = vsel %vm1268_vm1, %v1292_v7, %v1294_v58  ;;  %v1377_v36 = vmul.f32 %v10354_v32, %v9848_v17  ;;  %v1813_v30 = vmul.f32 %v9860_v22, %v9793_v45 }
  0x62   : > { %14490 = vst [vmem:[#allocation71_spill] sm:$0xff] %v10363_v6  ;;  %v1461_v27 = vshll.u32 %v1403_v53, 16  ;;  %v1378_v9 = vmul.f32 %v10363_v6, %v9838_v1  ;;  %v1465_v23 = vshrl.u32 %v1403_v53, 16  ;;  %v1814_v59 = vmul.f32 %v9877_v39, %v9796_v46 }
  0x63   : > { %v1886_v35 = vsel %vm862_vm3, %v1876_v15, %v1885_v47  ;;  %v1842_v40 = vpack.c.bf16 %v1813_v30, %v1812_v33  ;;  %v1815_v45 = vmul.f32 %v9880_v43, %v9801_v51  ;;  %v1298_v62 = vrot.slane %v419_v37, 7 }
  0x64   : > { %v1463_v49 = vrot.slane %v1461_v27, 1  ;;  %v1404_v57 = vpack.c.bf16 %v1378_v9, %v1377_v36  ;;  %v1300_v56 = vrot.slane %v420_v13, 7  ;;  %8891 = vmatmul.mubr.msk.bf16.vlgmr.msra.gmra.mxu1 %vm652_vm2, %v1886_v35  ;;  %v10387_v15 = vsel %vm1268_vm1, %v1294_v58, %v1296_v61  ;;  %v421_v58 = vld [vmem:[%s14132_s2 + $0x88] sm:$0xff]  ;;  %v10405_v13 = vld [vmem:[%s14133_s3 + $0x78] sm:$0xff]  }
  0x65   : > { %v1888_v1 = vshrl.u32 %v1842_v40, 16  ;;  %v1891_v7 = vshll.u32 %v1842_v40, 16  ;;  %v1843_v46 = vpack.c.bf16 %v1815_v45, %v1814_v59  ;;  %14491 = vst [vmem:[#allocation72_spill] sm:$0xff] %v10387_v15  ;;  %v10391_v25 = vsel %vm1268_vm1, %v1296_v61, %v1298_v62  ;;  %8959 = vmatpush3.bf16.msra.mxu1 %v10125_v44 }
  0x66   : > { %v1464_v12 = vsel %vm1420_vm4, %v1459_v41, %v1463_v49  ;;  %v1467_v51 = vor.u32 %v1465_v23, %v1463_v49  ;;  %v1469_v4 = vshll.u32 %v1404_v57, 16  ;;  %14492 = vst [vmem:[#allocation73_spill] sm:$0xff] %v10391_v25  ;;  %8960 = vmatprep.subr.bf16.mxu1 %v9465_v20  ;;  %v1379_v41 = vmul.f32 %v10387_v15, %v9851_v18  ;;  %v14494_v49 = vld [vmem:[#allocation27_spill] sm:$0xff] }
  0x67   : > { %8862 = vmatprep.mubr.msk.bf16.mxu0 %vm652_vm2, %v1464_v12  ;;  %v1890_v53 = vrot.slane %v1888_v1, 3  ;;  %v1893_v33 = vrot.slane %v1891_v7, 4  ;;  %v1897_v52 = vshrl.u32 %v1843_v46, 16  ;;  %v1900_v36 = vshll.u32 %v1843_v46, 16  ;;  %v10416_v1 = vld [vmem:[%s9723_s11 + $0x60] sm:$0xff]  ;;  %v14495_v7 = vld [vmem:[#allocation22_spill] sm:$0xff] }
  0x68   : > { %v1471_v30 = vrot.slane %v1469_v4, 1  ;;  %v1380_v37 = vmul.f32 %v10391_v25, %v9854_v19  ;;  %v1473_v44 = vshrl.u32 %v1404_v57, 16  ;;  %v10408_v59 = vsel %vm1268_vm1, %v1298_v62, %v1300_v56  ;;  %v422_v46 = vld [vmem:[%s14132_s2 + $0x90] sm:$0xff] }
  0x69   : > { %v1894_v27 = vor.u32 %v1893_v33, %v1890_v53  ;;  %v1899_v9 = vrot.slane %v1897_v52, 3  ;;  %v1902_v23 = vrot.slane %v1900_v36, 4  ;;  %14493 = vst [vmem:[#allocation74_spill] sm:$0xff] %v10408_v59  ;;  %v1302_v45 = vrot.slane %v421_v58, 7  ;;  %8961 = vmatpush3.bf16.msra.mxu1 %v9465_v20  ;;  %v423_v20 = vld [vmem:[%s14132_s2 + $0x98] sm:$0xff]  ;;  %v14497_v4 = vld [vmem:[#allocation23_spill] sm:$0xff] }
  0x6a   : > { %v1472_v35 = vsel %vm1420_vm4, %v1467_v51, %v1471_v30  ;;  %v1405_v40 = vpack.c.bf16 %v1380_v37, %v1379_v41  ;;  %v1475_v18 = vor.u32 %v1473_v44, %v1471_v30  ;;  %v1381_v57 = vmul.f32 %v10408_v59, %v14494_v49  ;;  %v424_v33 = vld [vmem:[%s14132_s2 + $0xa0] sm:$0xff]  ;;  %v10438_v52 = vld [vmem:[%s14132_s2 + $0xa8] sm:$0xff]  ;;  %9030 = vmatprep.subr.bf16.mxu1 %v10405_v13  ;;  %v14498_v58 = vld [vmem:[#allocation24_spill] sm:$0xff] }
  0x6b   : > { %8863 = vmatmul.mubr.msk.bf16.gmra.mxu0 %vm652_vm2, %v1472_v35  ;;  %v1895_v19 = vsel %vm862_vm3, %v1885_v47, %v1894_v27  ;;  %v1903_v61 = vor.u32 %v1902_v23, %v1899_v9  ;;  %v1816_v62 = vmul.f32 %v10416_v1, %v14495_v7  ;;  %v10428_v12 = vsel %vm1268_vm1, %v1300_v56, %v1302_v45  ;;  %v10445_v30 = vld [vmem:[%s9723_s11 + $0x70] sm:$0xff]  ;;  %v14499_v41 = vld [vmem:[#allocation29_spill] sm:$0xff]  ;;  %v10450_v37 = vld [vmem:[%s9723_s11 + $0x78] sm:$0xff] }
  0x6c   : > { %8894 = vmatprep.mubr.msk.bf16.mxu1 %vm652_vm2, %v1895_v19  ;;  %v1477_v47 = vshll.u32 %v1405_v40, 16  ;;  %14496 = vst [vmem:[#allocation27_spill] sm:$0xff] %v10428_v12  ;;  %v1481_v51 = vshrl.u32 %v1405_v40, 16  ;;  %v1817_v53 = vmul.f32 %v14497_v4, %v9848_v17  ;;  %v1382_v56 = vmul.f32 %v10428_v12, %v14498_v58  ;;  %v14500_v44 = vld [vmem:[#allocation30_spill] sm:$0xff] }
  0x6d   : > { %v1904_v36 = vsel %vm862_vm3, %v1894_v27, %v1903_v61  ;;  %v1818_v17 = vmul.f32 %v10445_v30, %v14499_v41  ;;  %v1819_v9 = vmul.f32 %v10450_v37, %v14500_v44  ;;  %v1304_v40 = vrot.slane %v422_v46, 7 }
  0x6e   : > { %8895 = vmatmul.mubr.msk.bf16.gmra.mxu1 %vm652_vm2, %v1904_v36  ;;  %v1479_v23 = vrot.slane %v1477_v47, 1  ;;  %v1844_v35 = vpack.c.bf16 %v1817_v53, %v1816_v62  ;;  %v1306_v19 = vrot.slane %v423_v20, 7  ;;  %v1406_v27 = vpack.c.bf16 %v1382_v56, %v1381_v57  ;;  %v14503_v20 = vld [vmem:[#allocation25_spill] sm:$0xff] }
  0x6f   : > { %v1845_v4 = vpack.c.bf16 %v1819_v9, %v1818_v17  ;;  %v1308_v7 = vrot.slane %v424_v33, 7  ;;  %v1310_v58 = vrot.slane %v10438_v52, 7  ;;  %v10459_v47 = vsel %vm1268_vm1, %v1302_v45, %v1304_v40  ;;  %v14504_v52 = vld [vmem:[#allocation26_spill] sm:$0xff] }
  0x70   : > { %v1480_v43 = vsel %vm1420_vm4, %v1475_v18, %v1479_v23  ;;  %v1483_v39 = vor.u32 %v1481_v51, %v1479_v23  ;;  %v1906_v41 = vshrl.u32 %v1844_v35, 16  ;;  %v1909_v22 = vshll.u32 %v1844_v35, 16  ;;  %14501 = vst [vmem:[#allocation24_spill] sm:$0xff] %v10459_v47  ;;  %v14508_v23 = vld [vmem:[#allocation33_spill] sm:$0xff] }
  0x71   : > { %8866 = vmatprep.mubr.msk.bf16.mxu0 %vm652_vm2, %v1480_v43  ;;  %v1485_v21 = vshll.u32 %v1406_v27, 16  ;;  %v1915_v44 = vshrl.u32 %v1845_v4, 16  ;;  %v1918_v2 = vshll.u32 %v1845_v4, 16  ;;  %v10462_v57 = vsel %vm1268_vm1, %v1304_v40, %v1306_v19  ;;  %v10487_v35 = vld [vmem:[%s9723_s11 + $0x80] sm:$0xff]  ;;  %v14509_v40 = vld [vmem:[#allocation35_spill] sm:$0xff] }
  0x72   : > { %v1908_v62 = vrot.slane %v1906_v41, 3  ;;  %v1911_v46 = vrot.slane %v1909_v22, 4  ;;  %14502 = vst [vmem:[#allocation75_spill] sm:$0xff] %v10462_v57  ;;  %v1383_v53 = vmul.f32 %v10459_v47, %v14503_v20  ;;  %v1384_v43 = vmul.f32 %v10462_v57, %v14504_v52  ;;  %v14511_v52 = vld [vmem:[#allocation37_spill] sm:$0xff] }
  0x73   : > { %v1487_v18 = vrot.slane %v1485_v21, 1  ;;  %v1917_v51 = vrot.slane %v1915_v44, 3  ;;  %v1920_v33 = vrot.slane %v1918_v2, 4  ;;  %v1489_v4 = vshrl.u32 %v1406_v27, 16  ;;  %v14507_v21 = vld [vmem:[#allocation32_spill] sm:$0xff]  ;;  %v426_v2 = vld [vmem:[%s14132_s2 + $0xb0] sm:$0xff] }
  0x74   : > { %v1912_v36 = vor.u32 %v1911_v46, %v1908_v62  ;;  %v10469_v45 = vsel %vm1268_vm1, %v1306_v19, %v1308_v7  ;;  %v10472_v22 = vsel %vm1268_vm1, %v1308_v7, %v1310_v58  ;;  %v1407_v17 = vpack.c.bf16 %v1384_v43, %v1383_v53  ;;  %v427_v27 = vld [vmem:[%s14132_s2 + $0xb8] sm:$0xff]  ;;  %v428_v62 = vld [vmem:[%s14132_s2 + $0xc0] sm:$0xff] }
  0x75   : > { %14505 = vst [vmem:[#allocation25_spill] sm:$0xff] %v10469_v45  ;;  %14506 = vst [vmem:[#allocation26_spill] sm:$0xff] %v10472_v22  ;;  %v1488_v56 = vsel %vm1420_vm4, %v1483_v39, %v1487_v18  ;;  %v10475_v41 = vor.u32 %v1920_v33, %v1917_v51  ;;  %v1385_v44 = vmul.f32 %v10469_v45, %v14507_v21  ;;  %v14510_v53 = vld [vmem:[#allocation36_spill] sm:$0xff]  ;;  %v10504_v33 = vld [vmem:[%s9723_s11 + $0x90] sm:$0xff] }
  0x76   : > { %8867 = vmatmul.mubr.msk.bf16.gmra.mxu0 %vm652_vm2, %v1488_v56  ;;  %v1913_v9 = vsel %vm862_vm3, %v1903_v61, %v1912_v36  ;;  %v1491_v7 = vor.u32 %v1489_v4, %v1487_v18  ;;  %v1386_v39 = vmul.f32 %v10472_v22, %v14508_v23  ;;  %v1820_v19 = vmul.f32 %v10487_v35, %v14509_v40  ;;  %v10509_v4 = vld [vmem:[%s9723_s11 + $0x98] sm:$0xff]  ;;  %v14512_v56 = vld [vmem:[#allocation38_spill] sm:$0xff] }
  0x77   : > { %8898 = vmatprep.mubr.msk.bf16.mxu1 %vm652_vm2, %v1913_v9  ;;  %v1922_v61 = vsel %vm862_vm3, %v1912_v36, %v10475_v41  ;;  %v1493_v46 = vshll.u32 %v1407_v17, 16  ;;  %v1497_v20 = vshrl.u32 %v1407_v17, 16  ;;  %v1821_v18 = vmul.f32 %v14510_v53, %v14494_v49 }
  0x78   : > { %8899 = vmatmul.mubr.msk.bf16.gmra.mxu1 %vm652_vm2, %v1922_v61  ;;  %v1408_v51 = vpack.c.bf16 %v1386_v39, %v1385_v44  ;;  %v1822_v43 = vmul.f32 %v10504_v33, %v14511_v52  ;;  %v1823_v21 = vmul.f32 %v10509_v4, %v14512_v56  ;;  %v1312_v9 = vrot.slane %v426_v2, 7 }
  0x79   : > { %v1495_v36 = vrot.slane %v1493_v46, 1  ;;  %v1846_v23 = vpack.c.bf16 %v1821_v18, %v1820_v19  ;;  %v1314_v17 = vrot.slane %v427_v27, 7  ;;  %v1316_v40 = vrot.slane %v428_v62, 7  ;;  %v429_v27 = vld [vmem:[%s14132_s2 + $0xc8] sm:$0xff] }
  0x7a   : > { %v1501_v63 = vshll.u32 %v1408_v51, 16  ;;  %v1847_v49 = vpack.c.bf16 %v1823_v21, %v1822_v43  ;;  %v10514_v61 = vsel %vm1268_vm1, %v1310_v58, %v1312_v9  ;;  %v1505_v44 = vshrl.u32 %v1408_v51, 16  ;;  %v14515_v46 = vld [vmem:[#allocation34_spill] sm:$0xff] }
  0x7b   : > { %14513 = vst [vmem:[#allocation32_spill] sm:$0xff] %v10514_v61  ;;  %v1496_v39 = vsel %vm1420_vm4, %v1491_v7, %v1495_v36  ;;  %v1499_v53 = vor.u32 %v1497_v20, %v1495_v36  ;;  %v1924_v52 = vshrl.u32 %v1846_v23, 16  ;;  %v1927_v54 = vshll.u32 %v1846_v23, 16 }
  0x7c   : > { %8870 = vmatprep.mubr.msk.bf16.mxu0 %vm652_vm2, %v1496_v39  ;;  %v1503_v14 = vrot.slane %v1501_v63, 1  ;;  %v1933_v56 = vshrl.u32 %v1847_v49, 16  ;;  %v1936_v2 = vshll.u32 %v1847_v49, 16  ;;  %v10519_v19 = vsel %vm1268_vm1, %v1312_v9, %v1314_v17  ;;  %v10536_v49 = vld [vmem:[%s9723_s11 + $0xa0] sm:$0xff] }
  0x7d   : > { %14514 = vst [vmem:[#allocation33_spill] sm:$0xff] %v10519_v19  ;;  %v1926_v58 = vrot.slane %v1924_v52, 3  ;;  %v1929_v62 = vrot.slane %v1927_v54, 4  ;;  %v1387_v7 = vmul.f32 %v10514_v61, %v14515_v46  ;;  %v1388_v20 = vmul.f32 %v10519_v19, %v9985_v26  ;;  %v14517_v26 = vld [vmem:[#allocation41_spill] sm:$0xff] }
  0x7e   : > { %v1504_v63 = vsel %vm1420_vm4, %v1499_v53, %v1503_v14  ;;  %v1935_v18 = vrot.slane %v1933_v56, 3  ;;  %v1938_v51 = vrot.slane %v1936_v2, 4  ;;  %v1507_v43 = vor.u32 %v1505_v44, %v1503_v14  ;;  %v10541_v56 = vld [vmem:[%s9723_s11 + $0xa8] sm:$0xff] }
  0x7f   : > { %8871 = vmatmul.mubr.msk.bf16.gmra.mxu0 %vm652_vm2, %v1504_v63  ;;  %v1930_v21 = vor.u32 %v1929_v62, %v1926_v58  ;;  %v1409_v9 = vpack.c.bf16 %v1388_v20, %v1387_v7  ;;  %v10531_v36 = vsel %vm1268_vm1, %v1314_v17, %v1316_v40  ;;  %v1318_v54 = vrot.slane %v429_v27, 7  ;;  %v14518_v14 = vld [vmem:[#allocation42_spill] sm:$0xff]  ;;  %v430_v17 = vld [vmem:[%s14132_s2 + $0xd0] sm:$0xff]  ;;  %v432_v62 = vld [vmem:[%s14132_s2 + $0xe0] sm:$0xff] }
  0x80   : > { %14516 = vst [vmem:[#allocation34_spill] sm:$0xff] %v10531_v36  ;;  %v1939_v52 = vor.u32 %v1938_v51, %v1935_v18  ;;  %v1389_v23 = vmul.f32 %v10531_v36, %v10041_v28  ;;  %v1824_v53 = vmul.f32 %v10536_v49, %v14517_v26  ;;  %v1825_v44 = vmul.f32 %v10541_v56, %v14518_v14  ;;  %v431_v28 = vld [vmem:[%s14132_s2 + $0xd8] sm:$0xff]  ;;  %v10564_v63 = vld [vmem:[%s9723_s11 + $0xb0] sm:$0xff] }
  0x81   : > { %v1931_v39 = vsel %vm862_vm3, %v10475_v41, %v1930_v21  ;;  %v1509_v2 = vshll.u32 %v1409_v9, 16  ;;  %v10554_v27 = vsel %vm1268_vm1, %v1316_v40, %v1318_v54  ;;  %v1513_v58 = vshrl.u32 %v1409_v9, 16  ;;  %v14520_v41 = vld [vmem:[#allocation43_spill] sm:$0xff]  ;;  %v10570_v51 = vld [vmem:[%s9723_s11 + $0xb8] sm:$0xff] }
  0x82   : > { %14519 = vst [vmem:[#allocation76_spill] sm:$0xff] %v10554_v27  ;;  %8902 = vmatprep.mubr.msk.bf16.mxu1 %vm652_vm2, %v1931_v39  ;;  %v1940_v46 = vsel %vm862_vm3, %v1930_v21, %v1939_v52  ;;  %v1390_v7 = vmul.f32 %v10554_v27, %v10044_v0  ;;  %v1848_v20 = vpack.c.bf16 %v1825_v44, %v1824_v53  ;;  %v14521_v9 = vld [vmem:[#allocation44_spill] sm:$0xff]  ;;  %v1320_v39 = vrot.slane %v430_v17, 7 }
  0x83   : > { %v1826_v18 = vmul.f32 %v10564_v63, %v14520_v41  ;;  %8903 = vmatmul.mubr.msk.bf16.gmra.mxu1 %vm652_vm2, %v1940_v46  ;;  %v1511_v40 = vrot.slane %v1509_v2, 1  ;;  %v1827_v14 = vmul.f32 %v10570_v51, %v14521_v9  ;;  %v1322_v26 = vrot.slane %v431_v28, 7 }
  0x84   : > { %v1410_v21 = vpack.c.bf16 %v1390_v7, %v1389_v23  ;;  %v1942_v36 = vshrl.u32 %v1848_v20, 16  ;;  %v1945_v19 = vshll.u32 %v1848_v20, 16  ;;  %v1324_v0 = vrot.slane %v432_v62, 7  ;;  %v433_v23 = vld [vmem:[%s14132_s2 + $0xe8] sm:$0xff] }
  0x85   : > { %v1512_v53 = vsel %vm1420_vm4, %v1507_v43, %v1511_v40  ;;  %v1515_v44 = vor.u32 %v1513_v58, %v1511_v40  ;;  %v1849_v27 = vpack.c.bf16 %v1827_v14, %v1826_v18  ;;  %v10576_v41 = vsel %vm1268_vm1, %v1318_v54, %v1320_v39 }
  0x86   : > { %14522 = vst [vmem:[#allocation77_spill] sm:$0xff] %v10576_v41  ;;  %8874 = vmatprep.mubr.msk.bf16.mxu0 %vm652_vm2, %v1512_v53  ;;  %v1517_v2 = vshll.u32 %v1410_v21, 16  ;;  %v1944_v46 = vrot.slane %v1942_v36, 3  ;;  %v1947_v61 = vrot.slane %v1945_v19, 4  ;;  %v10580_v9 = vsel %vm1268_vm1, %v1320_v39, %v1322_v26  ;;  %v435_v53 = vld [vmem:[%s14132_s2 + $0xf8] sm:$0xff] }
  0x87   : > { %14523 = vst [vmem:[#allocation78_spill] sm:$0xff] %v10580_v9  ;;  %v1951_v17 = vshrl.u32 %v1849_v27, 16  ;;  %v1954_v28 = vshll.u32 %v1849_v27, 16  ;;  %v1391_v43 = vmul.f32 %v10576_v41, %v10051_v10  ;;  %v1392_v54 = vmul.f32 %v10580_v9, %v10054_v29 }
  0x88   : > { %v1519_v14 = vrot.slane %v1517_v2, 1  ;;  %v1948_v58 = vor.u32 %v1947_v61, %v1944_v46  ;;  %v1521_v62 = vshrl.u32 %v1410_v21, 16  ;;  %v10590_v19 = vsel %vm1268_vm1, %v1322_v26, %v1324_v0  ;;  %v434_v61 = vld [vmem:[%s14132_s2 + $0xf0] sm:$0xff] }
  0x89   : > { %14524 = vst [vmem:[#allocation79_spill] sm:$0xff] %v10590_v19  ;;  %v1953_v36 = vrot.slane %v1951_v17, 3  ;;  %v1956_v7 = vrot.slane %v1954_v28, 4  ;;  %v1411_v20 = vpack.c.bf16 %v1392_v54, %v1391_v43  ;;  %v1326_v18 = vrot.slane %v433_v23, 7  ;;  %v14526_v2 = vld [vmem:[#allocation47_spill] sm:$0xff]  ;;  %v10615_v23 = vld [vmem:[%s9723_s11 + $0xc8] sm:$0xff] }
  0x8a   : > { %v1520_v27 = vsel %vm1420_vm4, %v1515_v44, %v1519_v14  ;;  %v1949_v40 = vsel %vm862_vm3, %v1939_v52, %v1948_v58  ;;  %v1523_v10 = vor.u32 %v1521_v62, %v1519_v14  ;;  %v1393_v29 = vmul.f32 %v10590_v19, %v10104_v50  ;;  %v10610_v44 = vld [vmem:[%s9723_s11 + $0xc0] sm:$0xff]  ;;  %v14527_v17 = vld [vmem:[#allocation48_spill] sm:$0xff]  ;;  %v10620_v28 = vld [vmem:[%s9723_s11 + $0xd0] sm:$0xff] }
  0x8b   : > { %8875 = vmatmul.mubr.msk.bf16.gmra.mxu0 %vm652_vm2, %v1520_v27  ;;  %8906 = vmatprep.mubr.msk.bf16.mxu1 %vm652_vm2, %v1949_v40  ;;  %v1957_v26 = vor.u32 %v1956_v7, %v1953_v36  ;;  %v1525_v39 = vshll.u32 %v1411_v20, 16  ;;  %v10602_v21 = vsel %vm1268_vm1, %v1324_v0, %v1326_v18  ;;  %v1529_v52 = vshrl.u32 %v1411_v20, 16  ;;  %v14528_v62 = vld [vmem:[#allocation50_spill] sm:$0xff] }
  0x8c   : > { %14525 = vst [vmem:[#allocation80_spill] sm:$0xff] %v10602_v21  ;;  %v1394_v50 = vmul.f32 %v10602_v21, %v10096_v8  ;;  %v1828_v46 = vmul.f32 %v10610_v44, %v14526_v2  ;;  %v1829_v0 = vmul.f32 %v10615_v23, %v14527_v17  ;;  %v1830_v43 = vmul.f32 %v10620_v28, %v10140_v24  ;;  %v10626_v8 = vld [vmem:[%s9723_s11 + $0xd8] sm:$0xff]  ;;  %v10634_v17 = vld [vmem:[%s9723_s11 + $0xe0] sm:$0xff] }
  0x8d   : > { %v1958_v54 = vsel %vm862_vm3, %v1948_v58, %v1957_v26  ;;  %v1527_v14 = vrot.slane %v1525_v39, 1  ;;  %v1831_v36 = vmul.f32 %v10626_v8, %v14528_v62  ;;  %v1328_v7 = vrot.slane %v434_v61, 7  ;;  %v14530_v2 = vld [vmem:[#allocation53_spill] sm:$0xff] }
  0x8e   : > { %8907 = vmatmul.mubr.msk.bf16.gmra.mxu1 %vm652_vm2, %v1958_v54  ;;  %v1412_v20 = vpack.c.bf16 %v1394_v50, %v1393_v29  ;;  %v1850_v27 = vpack.c.bf16 %v1829_v0, %v1828_v46  ;;  %v10631_v40 = vrot.slane %v435_v53, 7  ;;  %v1832_v24 = vmul.f32 %v10634_v17, %v14530_v2  ;;  %v10648_v50 = vld [vmem:[%s9723_s11 + $0x108] sm:$0xff] }
  0x8f   : > { %v1528_v58 = vsel %vm1420_vm4, %v1523_v10, %v1527_v14  ;;  %v1531_v39 = vor.u32 %v1529_v52, %v1527_v14  ;;  %v1851_v21 = vpack.c.bf16 %v1831_v36, %v1830_v43  ;;  %v10640_v19 = vsel %vm1268_vm1, %v1326_v18, %v1328_v7  ;;  %14533 = vst [vmem:[#allocation84_spill] sm:$0xff] %v10648_v50 }
  0x90   : > { %14529 = vst [vmem:[#allocation81_spill] sm:$0xff] %v10631_v40  ;;  %14531 = vst [vmem:[#allocation82_spill] sm:$0xff] %v10640_v19  ;;  %8878 = vmatprep.mubr.msk.bf16.mxu0 %vm652_vm2, %v1528_v58  ;;  %v1533_v61 = vshll.u32 %v1412_v20, 16  ;;  %v1960_v54 = vshrl.u32 %v1850_v27, 16  ;;  %v1963_v29 = vshll.u32 %v1850_v27, 16  ;;  %v10645_v53 = vsel %vm1268_vm1, %v1328_v7, %v10631_v40 }
  0x91   : > { %14532 = vst [vmem:[#allocation83_spill] sm:$0xff] %v10645_v53  ;;  %v1969_v46 = vshrl.u32 %v1851_v21, 16  ;;  %v1972_v0 = vshll.u32 %v1851_v21, 16  ;;  %v1395_v10 = vmul.f32 %v10640_v19, %v10107_v38  ;;  %v1396_v18 = vmul.f32 %v10645_v53, %v10110_v3  ;;  %v10658_v19 = vld [vmem:[%s9723_s11 + $0xe8] sm:$0xff] }
  0x92   : > { %v1535_v52 = vrot.slane %v1533_v61, 1  ;;  %v1962_v43 = vrot.slane %v1960_v54, 3  ;;  %v1965_v14 = vrot.slane %v1963_v29, 4  ;;  %v1537_v36 = vshrl.u32 %v1412_v20, 16  ;;  %v14534_v3 = vld [vmem:[#allocation54_spill] sm:$0xff] }
  0x93   : > { %v1971_v27 = vrot.slane %v1969_v46, 3  ;;  %v1974_v58 = vrot.slane %v1972_v0, 4  ;;  %v1413_v7 = vpack.c.bf16 %v1396_v18, %v1395_v10  ;;  %v1397_v2 = vmul.f32 %v10631_v40, %v10648_v50  ;;  %v10665_v18 = vld [vmem:[%s9723_s11 + $0xf0] sm:$0xff] }
  0x94   : > { %v1536_v21 = vsel %vm1420_vm4, %v1531_v39, %v1535_v52  ;;  %v1966_v62 = vor.u32 %v1965_v14, %v1962_v43  ;;  %v1539_v38 = vor.u32 %v1537_v36, %v1535_v52  ;;  %v1833_v61 = vmul.f32 %v10658_v19, %v14534_v3  ;;  %v14535_v39 = vld [vmem:[#allocation55_spill] sm:$0xff]  ;;  %v10670_v43 = vld [vmem:[%s9723_s11 + $0xf8] sm:$0xff] }
  0x95   : > { %8879 = vmatmul.mubr.msk.bf16.gmra.mxu0 %vm652_vm2, %v1536_v21  ;;  %v1975_v20 = vor.u32 %v1974_v58, %v1971_v27  ;;  %v1541_v54 = vshll.u32 %v1413_v7, 16  ;;  %v1414_v29 = vpack.c.bf16 %v1397_v2, %v1397_v2  ;;  %v1545_v46 = vshrl.u32 %v1413_v7, 16  ;;  %v14536_v14 = vld [vmem:[#allocation56_spill] sm:$0xff]  ;;  %v10675_v3 = vld [vmem:[%s9723_s11 + $0x110] sm:$0xff] }
  0x96   : > { %v1967_v0 = vsel %vm862_vm3, %v1957_v26, %v1966_v62  ;;  %v1852_v10 = vpack.c.bf16 %v1833_v61, %v1832_v24  ;;  %v1834_v52 = vmul.f32 %v10665_v18, %v14535_v39  ;;  %v1835_v36 = vmul.f32 %v10670_v43, %v14536_v14  ;;  %14537 = vst [vmem:[#allocation85_spill] sm:$0xff] %v10675_v3  ;;  %v10680_v26 = vld [vmem:[%s9723_s11 + $0x100] sm:$0xff] }
  0x97   : > { %8910 = vmatprep.mubr.msk.bf16.mxu1 %vm652_vm2, %v1967_v0  ;;  %v1976_v2 = vsel %vm862_vm3, %v1966_v62, %v1975_v20  ;;  %v1543_v27 = vrot.slane %v1541_v54, 1  ;;  %v1549_v58 = vshll.u32 %v1414_v29, 16  ;;  %14538 = vst [vmem:[#allocation86_spill] sm:$0xff] %v10680_v26  ;;  %v1836_v24 = vmul.f32 %v10680_v26, %v10237_v34  ;;  %v14539_v54 = vld [vmem:[#allocation59_spill] sm:$0xff]  ;;  %v10695_v26 = vld [vmem:[%s9723_s11 + $0x20] sm:$0xff] }
  0x98   : > { %8911 = vmatmul.mubr.msk.bf16.gmra.mxu1 %vm652_vm2, %v1976_v2  ;;  %v1978_v7 = vshrl.u32 %v1852_v10, 16  ;;  %v1981_v21 = vshll.u32 %v1852_v10, 16  ;;  %v1853_v61 = vpack.c.bf16 %v1835_v36, %v1834_v52  ;;  %v1837_v14 = vmul.f32 %v10245_v60, %v10648_v50  ;;  %v9512_v60 = vld [vmem:[%s9723_s11 + $0x18] sm:$0xff] }
  0x99   : > { %v1544_v0 = vsel %vm1420_vm4, %v1539_v38, %v1543_v27  ;;  %v1547_v39 = vor.u32 %v1545_v46, %v1543_v27  ;;  %v1551_v62 = vrot.slane %v1549_v58, 1  ;;  %v1838_v29 = vmul.f32 %v14539_v54, %v10675_v3  ;;  %v14540_v50 = vld [vmem:[#allocation4_spill] sm:$0xff]  ;;  %v14541_v54 = vld [vmem:[#allocation7_spill] sm:$0xff] }
  0x9a   : > { %8882 = vmatprep.mubr.msk.bf16.mxu0 %vm652_vm2, %v1544_v0  ;;  %v1980_v34 = vrot.slane %v1978_v7, 3  ;;  %v1983_v40 = vrot.slane %v1981_v21, 4  ;;  %v1987_v2 = vshrl.u32 %v1853_v61, 16  ;;  %v1990_v53 = vshll.u32 %v1853_v61, 16 }
  0x9b   : > { %v1552_v10 = vsel %vm1420_vm4, %v1547_v39, %v1551_v62  ;;  %v1854_v52 = vpack.c.bf16 %v1837_v14, %v1836_v24  ;;  %v1855_v36 = vpack.c.bf16 %v1838_v29, %v1838_v29  ;;  %v2480_v38 = vmul.f32 %v9512_v60, %v14540_v50  ;;  %v14542_v60 = vld [vmem:[#allocation8_spill] sm:$0xff]  ;;  %v10709_v62 = vld [vmem:[%s9723_s11 + $0x30] sm:$0xff]  ;;  %v14546_v29 = vld [vmem:[#allocation58_spill] sm:$0xff] }
  0x9c   : > { %v1984_v46 = vor.u32 %v1983_v40, %v1980_v34  ;;  %v1989_v27 = vrot.slane %v1987_v2, 3  ;;  %v1992_v58 = vrot.slane %v1990_v53, 4  ;;  %v2481_v7 = vmul.f32 %v10695_v26, %v14541_v54  ;;  %v10704_v34 = vld [vmem:[%s9723_s11 + $0x28] sm:$0xff]  ;;  %v14544_v40 = vld [vmem:[#allocation57_spill] sm:$0xff]  ;;  %14545 = vst [vmem:[#allocation87_spill] sm:$0xff] %v10709_v62  ;;  %v10716_v54 = vld [vmem:[%s9723_s11 + $0x38] sm:$0xff] }
  0x9d   : > { %8883 = vmatmul.mubr.msk.bf16.gmra.mxu0 %vm652_vm2, %v1552_v10  ;;  %v1996_v21 = vshrl.u32 %v1854_v52, 16  ;;  %v1999_v61 = vshll.u32 %v1854_v52, 16  ;;  %v2005_v39 = vshrl.u32 %v1855_v36, 16  ;;  %v2008_v14 = vshll.u32 %v1855_v36, 16  ;;  %14543 = vst [vmem:[#allocation8_spill] sm:$0xff] %v10704_v34  ;;  %14547 = vst [vmem:[#allocation88_spill] sm:$0xff] %v10716_v54 }
  0x9e   : > { %v1985_v24 = vsel %vm862_vm3, %v1975_v20, %v1984_v46  ;;  %v1993_v0 = vor.u32 %v1992_v58, %v1989_v27  ;;  %8926 = vmatprep.mubr.msk.bf16.mxu0 %vm652_vm2, %v14542_v60  ;;  %v2482_v53 = vmul.f32 %v10704_v34, %v14544_v40  ;;  %v2483_v2 = vmul.f32 %v10709_v62, %v14546_v29  ;;  %v14548_v40 = vld [vmem:[#allocation62_spill] sm:$0xff]  ;;  %v10722_v29 = vld [vmem:[%s9723_s11 + $0x40] sm:$0xff] }
  0x9f   : > { %8914 = vmatprep.mubr.msk.bf16.mxu1 %vm652_vm2, %v1985_v24  ;;  %v1998_v10 = vrot.slane %v1996_v21, 3  ;;  %v2001_v20 = vrot.slane %v1999_v61, 4  ;;  %v2007_v52 = vrot.slane %v2005_v39, 3  ;;  %v2010_v36 = vrot.slane %v2008_v14, 4  ;;  %14549 = vst [vmem:[#allocation89_spill] sm:$0xff] %v10722_v29  ;;  %v14550_v24 = vld [vmem:[#allocation63_spill] sm:$0xff] }
  0xa0   : > { %v1994_v27 = vsel %vm862_vm3, %v1984_v46, %v1993_v0  ;;  %v2513_v58 = vpack.c.bf16 %v2481_v7, %v2480_v38  ;;  %v2514_v60 = vpack.c.bf16 %v2483_v2, %v2482_v53  ;;  %v2484_v50 = vmul.f32 %v10716_v54, %v14548_v40  ;;  %v10727_v61 = vld [vmem:[%s9723_s11 + $0x48] sm:$0xff] }
  0xa1   : > { %8915 = vmatmul.mubr.msk.bf16.gmra.mxu1 %vm652_vm2, %v1994_v27  ;;  %v2002_v3 = vor.u32 %v2001_v20, %v1998_v10  ;;  %v2485_v21 = vmul.f32 %v10722_v29, %v14550_v24  ;;  %14551 = vst [vmem:[#allocation90_spill] sm:$0xff] %v10727_v61  ;;  %v2486_v38 = vmul.f32 %v10727_v61, %v10279_v5  ;;  %v10733_v27 = vld [vmem:[%s9723_s11 + $0x50] sm:$0xff]  ;;  %v9466_v20 = vld [vmem:[%s14133_s3 + $0x60] sm:$0xff]  }
  0xa2   : > { %v2011_v46 = vor.u32 %v2010_v36, %v2007_v52  ;;  %v2536_v7 = vshrl.u32 %v2513_v58, 16  ;;  %v2538_v39 = vshll.u32 %v2513_v58, 16  ;;  %v2543_v14 = vshll.u32 %v2514_v60, 16  ;;  %14552 = vst [vmem:[#allocation91_spill] sm:$0xff] %v10733_v27  ;;  %v14553_v36 = vld [vmem:[#allocation9_spill] sm:$0xff] }
  0xa3   : > { %v2003_v53 = vsel %vm862_vm3, %v1993_v0, %v2002_v3  ;;  %v2515_v2 = vpack.c.bf16 %v2485_v21, %v2484_v50  ;;  %v2487_v10 = vmul.f32 %v10733_v27, %v10282_v11  ;;  %v10744_v50 = vld [vmem:[%s9723_s11 + $0x58] sm:$0xff]  ;;  %v2489_v11 = vmul.f32 %v10416_v1, %v10309_v31 }
  0xa4   : > { %8918 = vmatprep.mubr.msk.bf16.mxu1 %vm652_vm2, %v2003_v53  ;;  %v2540_v5 = vrot.slane %v2538_v39, 1  ;;  %v2545_v52 = vrot.slane %v2543_v14, 1  ;;  %v2488_v21 = vmul.f32 %v10744_v50, %v10290_v48  ;;  %v2012_v24 = vsel %vm862_vm3, %v2002_v3, %v2011_v46  ;;  %v14554_v53 = vld [vmem:[#allocation10_spill] sm:$0xff] }
  0xa5   : > { %8927 = vmatmul.mubr.msk.bf16.vlgmr.msra.gmra.mxu0 %vm652_vm2, %v14553_v36  ;;  %v2551_v58 = vshll.u32 %v2515_v2, 16  ;;  %v2516_v0 = vpack.c.bf16 %v2487_v10, %v2486_v38  ;;  %v2547_v14 = vshrl.u32 %v2514_v60, 16  ;;  %v2555_v40 = vshrl.u32 %v2515_v2, 16  ;;  %v10755_v38 = vld [vmem:[%s9723_s11 + $0x68] sm:$0xff] }
  0xa6   : > { %8995 = vmatpush3.bf16.msra.mxu0 %v10328_v55  ;;  %8930 = vmatprep.mubr.msk.bf16.mxu0 %vm652_vm2, %v14554_v53  ;;  %v2541_v39 = vor.u32 %v2540_v5, %v2536_v7  ;;  %v2490_v10 = vmul.f32 %v10755_v38, %v10333_v16  ;;  %v2491_v48 = vmul.f32 %v10445_v30, %v10344_v42  ;;  %v10764_v55 = vld [vmem:[%s14133_s3 + $0x88] sm:$0xff]   ;;  %v14555_v16 = vld [vmem:[#allocation12_spill] sm:$0xff] }
  0xa7   : > { %v2559_v36 = vshll.u32 %v2516_v0, 16  ;;  %8996 = vmatprep.subr.bf16.mxu0 %v9466_v20  ;;  %v2553_v5 = vrot.slane %v2551_v58, 1  ;;  %v2517_v60 = vpack.c.bf16 %v2489_v11, %v2488_v21  ;;  %v2549_v46 = vor.u32 %v2547_v14, %v2545_v52 }
  0xa8   : > { %v2546_v3 = vsel %vm1420_vm4, %v2541_v39, %v2545_v52  ;;  %v2518_v42 = vpack.c.bf16 %v2491_v48, %v2490_v10  ;;  %v2492_v39 = vmul.f32 %v10450_v37, %v10354_v32  ;;  %v14556_v52 = vld [vmem:[#allocation13_spill] sm:$0xff]  ;;  %v9469_v10 = vld [vmem:[%s14133_s3 + $0x70] sm:$0xff]  }
  0xa9   : > { %8919 = vmatmul.mubr.msk.bf16.gmra.mxu1 %vm652_vm2, %v2012_v24  ;;  %v2557_v7 = vor.u32 %v2555_v40, %v2553_v5  ;;  %v2561_v2 = vrot.slane %v2559_v36, 1  ;;  %v2567_v31 = vshll.u32 %v2517_v60, 16  ;;  %v2493_v24 = vmul.f32 %v10487_v35, %v10363_v6 }
  0xaa   : > { %8962 = vmatprep.mubr.msk.bf16.mxu1 %vm652_vm2, %v2546_v3  ;;  %8997 = vmatpush3.bf16.msra.mxu0 %v9466_v20  ;;  %v2554_v11 = vsel %vm1420_vm4, %v2549_v46, %v2553_v5  ;;  %v2563_v40 = vshrl.u32 %v2516_v0, 16  ;;  %v10780_v20 = vld [vmem:[%s9723_s11 + $0x88] sm:$0xff]  ;;  %v2495_v36 = vmul.f32 %v10504_v33, %v10391_v25  ;;  %v2571_v21 = vshrl.u32 %v2517_v60, 16 }
  0xab   : > { %9066 = vmatprep.subr.bf16.mxu0 %v10764_v55  ;;  %v2494_v48 = vmul.f32 %v10780_v20, %v10387_v15  ;;  %v2562_v58 = vsel %vm1420_vm4, %v2557_v7, %v2561_v2  ;;  %v2575_v14 = vshll.u32 %v2518_v42, 16  ;;  %v2569_v3 = vrot.slane %v2567_v31, 1  ;;  %v14557_v7 = vld [vmem:[#allocation18_spill] sm:$0xff] }
  0xac   : > { %v2519_v0 = vpack.c.bf16 %v2493_v24, %v2492_v39  ;;  %v2565_v5 = vor.u32 %v2563_v40, %v2561_v2  ;;  %v2496_v25 = vmul.f32 %v10509_v4, %v10408_v59  ;;  %v2497_v31 = vmul.f32 %v10536_v49, %v10428_v12  ;;  %v14558_v24 = vld [vmem:[#allocation21_spill] sm:$0xff]  ;;  %v14564_v12 = vld [vmem:[#allocation76_spill] sm:$0xff] }
  0xad   : > { %8931 = vmatmul.mubr.msk.bf16.gmra.mxu0 %vm652_vm2, %v14555_v16  ;;  %v2520_v46 = vpack.c.bf16 %v2495_v36, %v2494_v48  ;;  %v2573_v15 = vor.u32 %v2571_v21, %v2569_v3  ;;  %v2577_v6 = vrot.slane %v2575_v14, 1  ;;  %v2579_v2 = vshrl.u32 %v2518_v42, 16 }
  0xae   : > { %8934 = vmatprep.mubr.msk.bf16.mxu0 %vm652_vm2, %v14556_v52  ;;  %v2583_v60 = vshll.u32 %v2519_v0, 16  ;;  %v2570_v39 = vsel %vm1420_vm4, %v2565_v5, %v2569_v3  ;;  %v2587_v40 = vshrl.u32 %v2519_v0, 16  ;;  %v2498_v48 = vmul.f32 %v10541_v56, %v10459_v47  ;;  %v14559_v47 = vld [vmem:[#allocation28_spill] sm:$0xff] }
  0xaf   : > { %v2499_v36 = vmul.f32 %v10564_v63, %v10462_v57  ;;  %v2521_v21 = vpack.c.bf16 %v2497_v31, %v2496_v25  ;;  %v2581_v14 = vor.u32 %v2579_v2, %v2577_v6  ;;  %v2501_v0 = vmul.f32 %v10610_v44, %v10472_v22  ;;  %v14560_v57 = vld [vmem:[#allocation32_spill] sm:$0xff]  ;;  %v14561_v25 = vld [vmem:[#allocation33_spill] sm:$0xff] }
  0xb0   : > { %v2503_v31 = vmul.f32 %v10620_v28, %v14561_v25  ;;  %v2595_v2 = vshrl.u32 %v2520_v46, 16  ;;  %v2505_v25 = vmul.f32 %v10634_v17, %v14564_v12 }
  0xb1   : > { %8963 = vmatmul.mubr.msk.bf16.vlgmr.msra.gmra.mxu1 %vm652_vm2, %v2554_v11  ;;  %v2591_v11 = vshll.u32 %v2520_v46, 16  ;;  %v2522_v5 = vpack.c.bf16 %v2499_v36, %v2498_v48 }
  0xb2   : > { %8966 = vmatprep.mubr.msk.bf16.mxu1 %vm652_vm2, %v2562_v58  ;;  %9031 = vmatpush3.bf16.msra.mxu1 %v10405_v13  ;;  %v2578_v13 = vsel %vm1420_vm4, %v2573_v15, %v2577_v6  ;;  %v2585_v58 = vrot.slane %v2583_v60, 1  ;;  %v2500_v15 = vmul.f32 %v10570_v51, %v10469_v45  ;;  %v2502_v60 = vmul.f32 %v10615_v23, %v14560_v57  ;;  %v14563_v45 = vld [vmem:[#allocation34_spill] sm:$0xff] }
  0xb3   : > { %9032 = vmatprep.subr.bf16.mxu1 %v9469_v10  ;;  %v2593_v3 = vrot.slane %v2591_v11, 1  ;;  %v2504_v57 = vmul.f32 %v10626_v8, %v14563_v45 }
  0xb4   : > { %v2589_v42 = vor.u32 %v2587_v40, %v2585_v58  ;;  %v2586_v6 = vsel %vm1420_vm4, %v2581_v14, %v2585_v58  ;;  %v2607_v40 = vshll.u32 %v2522_v5, 16  ;;  %v2523_v48 = vpack.c.bf16 %v2501_v0, %v2500_v15  ;;  %v14565_v0 = vld [vmem:[#allocation39_spill] sm:$0xff] }
  0xb5   : > { %8935 = vmatmul.mubr.msk.bf16.gmra.mxu0 %vm652_vm2, %v14557_v7  ;;  %v2524_v22 = vpack.c.bf16 %v2503_v31, %v2502_v60  ;;  %v2597_v58 = vor.u32 %v2595_v2, %v2593_v3  ;;  %v2507_v15 = vmul.f32 %v10665_v18, %v10580_v9  ;;  %v2525_v31 = vpack.c.bf16 %v2505_v25, %v2504_v57  ;;  %v14568_v2 = vld [vmem:[#allocation5_spill] sm:$0xff] }
  0xb6   : > { %8938 = vmatprep.mubr.msk.bf16.mxu0 %vm652_vm2, %v14558_v24  ;;  %9033 = vmatpush3.bf16.msra.mxu1 %v9469_v10  ;;  %v2599_v10 = vshll.u32 %v2521_v21, 16  ;;  %v2594_v11 = vsel %vm1420_vm4, %v2589_v42, %v2593_v3  ;;  %v2609_v46 = vrot.slane %v2607_v40, 1  ;;  %v2615_v59 = vshll.u32 %v2523_v48, 16  ;;  %v14567_v3 = vld [vmem:[#allocation3_spill] sm:$0xff] }
  0xb7   : > { %v2611_v42 = vshrl.u32 %v2522_v5, 16  ;;  %v2623_v60 = vshll.u32 %v2524_v22, 16  ;;  %v2920_v5 = vmul.f32 %v10695_v26, %v14567_v3  ;;  %v2631_v26 = vshll.u32 %v2525_v31, 16 }
  0xb8   : > { %v2601_v36 = vrot.slane %v2599_v10, 1  ;;  %v2619_v10 = vshrl.u32 %v2523_v48, 16  ;;  %v2617_v9 = vrot.slane %v2615_v59, 1  ;;  %v14570_v48 = vld [vmem:[#allocation11_spill] sm:$0xff] }
  0xb9   : > { %8967 = vmatmul.mubr.msk.bf16.gmra.mxu1 %vm652_vm2, %v2570_v39  ;;  %v14562_v39 = vld [vmem:[#allocation31_spill] sm:$0xff]  ;;  %v2923_v57 = vmul.f32 %v10716_v54, %v14570_v48  ;;  %v2613_v25 = vor.u32 %v2611_v42, %v2609_v46  ;;  %v2625_v45 = vrot.slane %v2623_v60, 1  ;;  %v14572_v42 = vld [vmem:[#allocation80_spill] sm:$0xff]  ;;  %v2633_v60 = vrot.slane %v2631_v26, 1 }
  0xba   : > { %8970 = vmatprep.mubr.msk.bf16.mxu1 %vm652_vm2, %v2578_v13  ;;  %v2603_v13 = vshrl.u32 %v2521_v21, 16  ;;  %v2506_v21 = vmul.f32 %v10658_v19, %v10576_v41  ;;  %v14569_v41 = vld [vmem:[#allocation6_spill] sm:$0xff]  ;;  %v14578_v48 = vld [vmem:[#allocation83_spill] sm:$0xff]  ;;  %v14582_v54 = vld [vmem:[#allocation16_spill] sm:$0xff] }
  0xbb   : > { %v2922_v12 = vmul.f32 %v10709_v62, %v14569_v41  ;;  %v2618_v41 = vsel %vm1420_vm4, %v2613_v25, %v2617_v9  ;;  %v14580_v25 = vld [vmem:[#allocation14_spill] sm:$0xff] }
  0xbc   : > { %v2605_v14 = vor.u32 %v2603_v13, %v2601_v36  ;;  %v2921_v13 = vmul.f32 %v10704_v34, %v14568_v2  ;;  %v2627_v2 = vshrl.u32 %v2524_v22, 16  ;;  %v14576_v22 = vld [vmem:[#allocation82_spill] sm:$0xff] }
  0xbd   : > { %8939 = vmatmul.mubr.msk.bf16.gmra.mxu0 %vm652_vm2, %v14559_v47  ;;  %v2954_v32 = vpack.c.bf16 %v2923_v57, %v2922_v12  ;;  %v14579_v57 = vld [vmem:[#allocation46_spill] sm:$0xff] }
  0xbe   : > { %8942 = vmatprep.mubr.msk.bf16.mxu0 %vm652_vm2, %v14562_v39  ;;  %v2610_v40 = vsel %vm1420_vm4, %v2605_v14, %v2609_v46  ;;  %v2953_v3 = vpack.c.bf16 %v2921_v13, %v2920_v5  ;;  %v14571_v14 = vld [vmem:[#allocation79_spill] sm:$0xff]  ;;  %v14575_v5 = vld [vmem:[#allocation84_spill] sm:$0xff]  ;;  %v2629_v39 = vor.u32 %v2627_v2, %v2625_v45 }
  0xbf   : > { %v2508_v59 = vmul.f32 %v10670_v43, %v14571_v14  ;;  %v2510_v13 = vmul.f32 %v14576_v22, %v14575_v5  ;;  %v14581_v14 = vld [vmem:[#allocation15_spill] sm:$0xff]  ;;  %v2987_v26 = vshll.u32 %v2954_v32, 16  ;;  %v2926_v22 = vmul.f32 %v10733_v27, %v14582_v54 }
  0xc1   : > { %8971 = vmatmul.mubr.msk.bf16.gmra.mxu1 %vm652_vm2, %v2586_v6  ;;  %v2602_v6 = vsel %vm1420_vm4, %v2597_v58, %v2601_v36  ;;  %v10847_v36 = vpack.c.bf16 %v2507_v15, %v2506_v21  ;;  %v2621_v58 = vor.u32 %v2619_v10, %v2617_v9  ;;  %v14573_v21 = vld [vmem:[#allocation86_spill] sm:$0xff]  ;;  %v2976_v9 = vshrl.u32 %v2953_v3, 16 }
  0xc2   : > { %8974 = vmatprep.mubr.msk.bf16.mxu1 %vm652_vm2, %v2594_v11  ;;  %v14566_v11 = vld [vmem:[#allocation40_spill] sm:$0xff]  ;;  %v2509_v15 = vmul.f32 %v14573_v21, %v14572_v42  ;;  %v2924_v42 = vmul.f32 %v10722_v29, %v14580_v25  ;;  %v2989_v29 = vrot.slane %v2987_v26, 4 }
  0xc3   : > { %v2639_v46 = vshll.u32 %v10847_v36, 16  ;;  %v2626_v10 = vsel %vm1420_vm4, %v2621_v58, %v2625_v45  ;;  %v2984_v58 = vshrl.u32 %v2954_v32, 16  ;;  %v10878_v25 = vld [vmem:[%s9723_s11 + $0x118] sm:$0xff]  ;;  %v2643_v32 = vshrl.u32 %v10847_v36, 16 }
  0xc4   : > { %v2634_v45 = vsel %vm1420_vm4, %v2629_v39, %v2633_v60 }
  0xc5   : > { %8943 = vmatmul.mubr.msk.bf16.gmra.mxu0 %vm652_vm2, %v14565_v0  ;;  %v14583_v0 = vld [vmem:[#allocation17_spill] sm:$0xff]  ;;  %v2641_v34 = vrot.slane %v2639_v46, 1  ;;  %v2986_v27 = vrot.slane %v2984_v58, 3  ;;  %v14585_v46 = vld [vmem:[#allocation51_spill] sm:$0xff] }
  0xc6   : > { %8946 = vmatprep.mubr.msk.bf16.mxu0 %vm652_vm2, %v14566_v11  ;;  %v2635_v11 = vshrl.u32 %v2525_v31, 16  ;;  %v2979_v31 = vshll.u32 %v2953_v3, 16 }
  0xc7   : > { %v2990_v58 = vor.u32 %v2989_v29, %v2986_v27 }
  0xc8   : > { %v2637_v62 = vor.u32 %v2635_v11, %v2633_v60  ;;  %v2981_v54 = vrot.slane %v2979_v31, 4 }
  0xc9   : > { %8975 = vmatmul.mubr.msk.bf16.gmra.mxu1 %vm652_vm2, %v2602_v6  ;;  %v14574_v6 = vld [vmem:[#allocation45_spill] sm:$0xff] }
  0xca   : > { %8978 = vmatprep.mubr.msk.bf16.mxu1 %vm652_vm2, %v2610_v40  ;;  %v14577_v40 = vld [vmem:[#allocation85_spill] sm:$0xff]  ;;  %v2642_v11 = vsel %vm1420_vm4, %v2637_v62, %v2641_v34 }
  0xcb   : > { %v2511_v12 = vmul.f32 %v14578_v48, %v14577_v40  ;;  %v2927_v48 = vmul.f32 %v10744_v50, %v14583_v0 }
  0xcd   : > { %8947 = vmatmul.mubr.msk.bf16.gmra.mxu0 %vm652_vm2, %v14574_v6  ;;  %v2925_v6 = vmul.f32 %v10727_v61, %v14581_v14  ;;  %v10875_v3 = vpack.c.bf16 %v2511_v12, %v2510_v13  ;;  %v2978_v14 = vrot.slane %v2976_v9, 3  ;;  %v2956_v0 = vpack.c.bf16 %v2927_v48, %v2926_v22  ;;  %v14588_v22 = vld [vmem:[#allocation52_spill] sm:$0xff]  ;;  %v14589_v13 = vld [vmem:[#allocation22_spill] sm:$0xff]  ;;  %v14590_v9 = vld [vmem:[#allocation23_spill] sm:$0xff] }
  0xce   : > { %8950 = vmatprep.mubr.msk.bf16.mxu0 %vm652_vm2, %v14579_v57  ;;  %v2527_v57 = vpack.c.bf16 %v2509_v15, %v2508_v59  ;;  %v2930_v12 = vmul.f32 %v10445_v30, %v14589_v13 }
  0xcf   : > { %v2955_v61 = vpack.c.bf16 %v2925_v6, %v2924_v42  ;;  %v2655_v36 = vshll.u32 %v10875_v3, 16  ;;  %v14587_v6 = vld [vmem:[#allocation20_spill] sm:$0xff]  ;;  %v2982_v31 = vor.u32 %v2981_v54, %v2978_v14  ;;  %v3002_v26 = vshrl.u32 %v2956_v0, 16 }
  0xd0   : > { %v2647_v2 = vshll.u32 %v2527_v57, 16  ;;  %v2651_v15 = vshrl.u32 %v2527_v57, 16  ;;  %v2929_v48 = vmul.f32 %v10755_v38, %v14587_v6  ;;  %v2931_v57 = vmul.f32 %v10450_v37, %v14590_v9 }
  0xd1   : > { %8979 = vmatmul.mubr.msk.bf16.gmra.mxu1 %vm652_vm2, %v2618_v41  ;;  %v14584_v41 = vld [vmem:[#allocation81_spill] sm:$0xff]  ;;  %v2993_v39 = vshrl.u32 %v2955_v61, 16  ;;  %v2996_v60 = vshll.u32 %v2955_v61, 16  ;;  %v2645_v61 = vor.u32 %v2643_v32, %v2641_v34  ;;  %v2657_v14 = vrot.slane %v2655_v36, 1 }
  0xd2   : > { %8982 = vmatprep.mubr.msk.bf16.mxu1 %vm652_vm2, %v2626_v10  ;;  %v2512_v59 = vmul.f32 %v14584_v41, %v10878_v25  ;;  %v14586_v10 = vld [vmem:[#allocation19_spill] sm:$0xff]  ;;  %v2958_v27 = vpack.c.bf16 %v2931_v57, %v2930_v12 }
  0xd3   : > { %v2928_v42 = vmul.f32 %v10416_v1, %v14586_v10  ;;  %v3005_v1 = vshll.u32 %v2956_v0, 16  ;;  %v2649_v10 = vrot.slane %v2647_v2, 1  ;;  %v2995_v37 = vrot.slane %v2993_v39, 3 }
  0xd4   : > { %v2529_v41 = vpack.c.bf16 %v2512_v59, %v2512_v59  ;;  %v2998_v54 = vrot.slane %v2996_v60, 4  ;;  %v2991_v0 = vsel %vm862_vm3, %v2982_v31, %v2990_v58  ;;  %v3004_v2 = vrot.slane %v3002_v26, 3  ;;  %v14593_v31 = vld [vmem:[#allocation35_spill] sm:$0xff]  ;;  %v14594_v26 = vld [vmem:[#allocation36_spill] sm:$0xff] }
  0xd5   : > { %8951 = vmatmul.mubr.msk.bf16.gmra.mxu0 %vm652_vm2, %v14585_v46  ;;  %v2957_v46 = vpack.c.bf16 %v2929_v48, %v2928_v42  ;;  %v2653_v30 = vor.u32 %v2651_v15, %v2649_v10  ;;  %v3007_v59 = vrot.slane %v3005_v1, 4  ;;  %v2650_v34 = vsel %vm1420_vm4, %v2645_v61, %v2649_v10  ;;  %v14592_v42 = vld [vmem:[#allocation30_spill] sm:$0xff] }
  0xd6   : > { %8954 = vmatprep.mubr.msk.bf16.mxu0 %vm652_vm2, %v14588_v22  ;;  %v10895_v62 = vpop.f32.mrf.mxu0  ;;  %v10906_v22 = vpack.c.bf16 %v14577_v40, %v14575_v5  ;;  %v2663_v9 = vshll.u32 %v2529_v41, 16  ;;  %v2933_v48 = vmul.f32 %v10780_v20, %v14592_v42  ;;  %v2999_v36 = vor.u32 %v2998_v54, %v2995_v37 }
  0xd7   : > { %v3011_v32 = vshrl.u32 %v2957_v46, 16  ;;  %v3020_v41 = vshrl.u32 %v2958_v27, 16  ;;  %v3023_v60 = vshll.u32 %v2958_v27, 16  ;;  %v2658_v12 = vsel %vm1420_vm4, %v2653_v30, %v2657_v14 }
  0xd8   : > { %v10901_v6 = vpop.f32.mrf.mxu0  ;;  %v3008_v57 = vor.u32 %v3007_v59, %v3004_v2  ;;  %v2934_v10 = vmul.f32 %v10504_v33, %v14593_v31  ;;  %v2665_v61 = vrot.slane %v2663_v9, 1  ;;  %v9470_v9 = vld [vmem:[%s14133_s3 + $0x80] sm:$0xff]  }
  0xd9   : > { %8983 = vmatmul.mubr.msk.bf16.gmra.mxu1 %vm652_vm2, %v2634_v45  ;;  %v2659_v45 = vshrl.u32 %v10875_v3, 16  ;;  %v3014_v3 = vshll.u32 %v2957_v46, 16  ;;  %v3013_v37 = vrot.slane %v3011_v32, 3  ;;  %v3000_v46 = vsel %vm862_vm3, %v2990_v58, %v2999_v36  ;;  %v14595_v32 = vld [vmem:[#allocation37_spill] sm:$0xff] }
  0xda   : > { %8986 = vmatprep.mubr.msk.bf16.mxu1 %vm652_vm2, %v2642_v11  ;;  %v10909_v29 = vpop.f32.mrf.mxu0  ;;  %v14591_v11 = vld [vmem:[#allocation29_spill] sm:$0xff]  ;;  %v3025_v33 = vrot.slane %v3023_v60, 4  ;;  %v3009_v2 = vsel %vm862_vm3, %v2999_v36, %v3008_v57 }
  0xdb   : > { %v2932_v15 = vmul.f32 %v10487_v35, %v14591_v11  ;;  %v2935_v35 = vmul.f32 %v10509_v4, %v14594_v26  ;;  %v2661_v1 = vor.u32 %v2659_v45, %v2657_v14  ;;  %v3016_v30 = vrot.slane %v3014_v3, 4  ;;  %v14627_v26 = vld [vmem:[#allocation91_spill] sm:$0xff] }
  0xdc   : > { %v10913_v13 = vpop.f32.mrf.mxu0 }
  0xdd   : > { %8955 = vmatmul.mubr.msk.bf16.gmra.mxu0 %vm652_vm2, %v10906_v22  ;;  %v2959_v54 = vpack.c.bf16 %v2933_v48, %v2932_v15  ;;  %v2960_v4 = vpack.c.bf16 %v2935_v35, %v2934_v10  ;;  %v2666_v14 = vsel %vm1420_vm4, %v2661_v1, %v2665_v61  ;;  %v2936_v15 = vmul.f32 %v10536_v49, %v14595_v32  ;;  %v14596_v48 = vld [vmem:[#allocation38_spill] sm:$0xff]  ;;  %v14597_v61 = vld [vmem:[#allocation41_spill] sm:$0xff] }
  0xde   : > { %8998 = vmatprep.mubr.msk.bf16.mxu0 %vm652_vm2, %v2991_v0  ;;  %v10923_v39 = vpop.f32.mrf.mxu0  ;;  %v3022_v0 = vrot.slane %v3020_v41, 3  ;;  %v2937_v36 = vmul.f32 %v10541_v56, %v14596_v48  ;;  %v3017_v3 = vor.u32 %v3016_v30, %v3013_v37  ;;  %v2938_v49 = vmul.f32 %v10564_v63, %v14597_v61 }
  0xdf   : > { %v3029_v58 = vshrl.u32 %v2959_v54, 16  ;;  %v3038_v35 = vshrl.u32 %v2960_v4, 16  ;;  %v3041_v1 = vshll.u32 %v2960_v4, 16 }
  0xe0   : > { %v10930_v42 = vpop.f32.mrf.mxu0  ;;  %v3026_v60 = vor.u32 %v3025_v33, %v3022_v0  ;;  %v2961_v0 = vpack.c.bf16 %v2937_v36, %v2936_v15  ;;  %v3018_v33 = vsel %vm862_vm3, %v3008_v57, %v3017_v3  ;;  %v14600_v36 = vld [vmem:[#allocation43_spill] sm:$0xff] }
  0xe1   : > { %8987 = vmatmul.mubr.msk.bf16.gmra.mxu1 %vm652_vm2, %v2650_v34  ;;  %v3032_v34 = vshll.u32 %v2959_v54, 16  ;;  %v14598_v54 = vld [vmem:[#allocation42_spill] sm:$0xff] }
  0xe2   : > { %8990 = vmatprep.mubr.msk.bf16.mxu1 %vm652_vm2, %v2658_v12  ;;  %v10935_v27 = vpop.f32.mrf.mxu0  ;;  %v2939_v56 = vmul.f32 %v10570_v51, %v14598_v54  ;;  %v3027_v4 = vsel %vm862_vm3, %v3017_v3, %v3026_v60  ;;  %v14622_v54 = vld [vmem:[#allocation89_spill] sm:$0xff] }
  0xe3   : > { %v3034_v30 = vrot.slane %v3032_v34, 4 }
  0xe4   : > { %v10942_v59 = vpop.f32.mrf.mxu0  ;;  %v8820_v45 = vpop.f32.mrf.mxu1 }
  0xe5   : > { %8999 = vmatmul.mubr.msk.bf16.vlgmr.msra.gmra.mxu0 %vm652_vm2, %v3000_v46  ;;  %v10952_v41 = vadd.f32 %v8820_v45, %v10895_v62  ;;  %v3031_v46 = vrot.slane %v3029_v58, 3  ;;  %v3040_v45 = vrot.slane %v3038_v35, 3  ;;  %v3050_v35 = vshll.u32 %v2961_v0, 16 }
  0xe6   : > { %9067 = vmatpush3.bf16.msra.mxu0 %v10764_v55  ;;  %9002 = vmatprep.mubr.msk.bf16.mxu0 %vm652_vm2, %v3009_v2  ;;  %v10954_v12 = vpop.f32.mrf.mxu0  ;;  %v1109_v10 = vpop.f32.mrf.mxu1  ;;  %v14599_v2 = vld [vmem:[#allocation9_spill] sm:$0xff] }
  0xe7   : > { %9068 = vmatprep.subr.bf16.mxu0 %v9470_v9  ;;  %v10961_v55 = vadd.f32 %v1109_v10, %v10901_v6  ;;  %v2962_v10 = vpack.c.bf16 %v2939_v56, %v2938_v49  ;;  %v3035_v57 = vor.u32 %v3034_v30, %v3031_v46  ;;  %v14603_v56 = vld [vmem:[#allocation48_spill] sm:$0xff] }
  0xe8   : > { %v10963_v37 = vpop.f32.mrf.mxu0  ;;  %v8821_v62 = vpop.f32.mrf.mxu1  ;;  %v2943_v46 = vmul.f32 %v10626_v8, %v14603_v56 }
  0xe9   : > { %8991 = vmatmul.mubr.msk.bf16.gmra.mxu1 %vm652_vm2, %v2666_v14  ;;  %v10970_v63 = vadd.f32 %v8821_v62, %v10909_v29  ;;  %v3043_v14 = vrot.slane %v3041_v1, 4  ;;  %v3047_v29 = vshrl.u32 %v2961_v0, 16  ;;  %v2940_v62 = vmul.f32 %v10610_v44, %v14600_v36  ;;  %v14602_v1 = vld [vmem:[#allocation47_spill] sm:$0xff] }
  0xea   : > { %9034 = vmatprep.mubr.msk.bf16.mxu1 %vm652_vm2, %v14599_v2  ;;  %v10972_v51 = vpop.f32.mrf.mxu0  ;;  %9069 = vmatpush3.bf16.msra.mxu0 %v9470_v9  ;;  %v1112_v6 = vpop.f32.mrf.mxu1  ;;  %v14601_v9 = vld [vmem:[#allocation44_spill] sm:$0xff]  ;;  %v2942_v49 = vmul.f32 %v10620_v28, %v14602_v1  ;;  %v3056_v44 = vshrl.u32 %v2962_v10, 16  ;;  %v14606_v1 = vld [vmem:[#allocation53_spill] sm:$0xff]  ;;  %v14618_v36 = vld [vmem:[#allocation39_spill] sm:$0xff] }
  0xeb   : > { %v10976_v58 = vadd.f32 %v1112_v6, %v10913_v13  ;;  %v2941_v2 = vmul.f32 %v10615_v23, %v14601_v9  ;;  %v3059_v6 = vshll.u32 %v2962_v10, 16  ;;  %v3049_v8 = vrot.slane %v3047_v29, 3  ;;  %v14604_v29 = vld [vmem:[#allocation49_spill] sm:$0xff]  ;;  %v14607_v9 = vld [vmem:[#allocation54_spill] sm:$0xff] }
  0xec   : > { %v10978_v34 = vpop.f32.mrf.mxu0  ;;  %v8824_v15 = vpop.f32.mrf.mxu1  ;;  %v3058_v56 = vrot.slane %v3056_v44, 3 }
  0xed   : > { %9003 = vmatmul.mubr.msk.bf16.gmra.mxu0 %vm652_vm2, %v3018_v33  ;;  %v10987_v3 = vadd.f32 %v8824_v15, %v10923_v39  ;;  %v3044_v33 = vor.u32 %v3043_v14, %v3040_v45  ;;  %v3036_v39 = vsel %vm862_vm3, %v3026_v60, %v3035_v57  ;;  %v2963_v15 = vpack.c.bf16 %v2941_v2, %v2940_v62 }
  0xee   : > { %9006 = vmatprep.mubr.msk.bf16.mxu0 %vm652_vm2, %v3027_v4  ;;  %v10989_v13 = vpop.f32.mrf.mxu0  ;;  %v1125_v30 = vpop.f32.mrf.mxu1  ;;  %v3052_v45 = vrot.slane %v3050_v35, 4  ;;  %v2944_v35 = vmul.f32 %v10634_v17, %v14604_v29  ;;  %v2947_v17 = vmul.f32 %v10670_v43, %v14607_v9 }
  0xef   : > { %v10996_v23 = vadd.f32 %v1125_v30, %v10930_v42  ;;  %v2964_v42 = vpack.c.bf16 %v2943_v46, %v2942_v49  ;;  %v3045_v30 = vsel %vm862_vm3, %v3035_v57, %v3044_v33  ;;  %v3068_v2 = vshll.u32 %v2963_v15, 16 }
  0xf0   : > { %v10998_v4 = vpop.f32.mrf.mxu0  ;;  %v8825_v0 = vpop.f32.mrf.mxu1  ;;  %v3053_v57 = vor.u32 %v3052_v45, %v3049_v8 }
  0xf1   : > { %9035 = vmatmul.mubr.msk.bf16.vlgmr.msra.gmra.mxu1 %vm652_vm2, %v14554_v53  ;;  %v11006_v28 = vadd.f32 %v8825_v0, %v10935_v27  ;;  %v3061_v53 = vrot.slane %v3059_v6, 4  ;;  %v3065_v27 = vshrl.u32 %v2963_v15, 16  ;;  %v14605_v0 = vld [vmem:[#allocation50_spill] sm:$0xff]  ;;  %v3074_v44 = vshrl.u32 %v2964_v42, 16 }
  0xf2   : > { %9038 = vmatprep.mubr.msk.bf16.mxu1 %vm652_vm2, %v14555_v16  ;;  %v11008_v14 = vpop.f32.mrf.mxu0  ;;  %v1128_v10 = vpop.f32.mrf.mxu1  ;;  %v2945_v49 = vmul.f32 %v10658_v19, %v14605_v0  ;;  %v3077_v6 = vshll.u32 %v2964_v42, 16  ;;  %v2946_v15 = vmul.f32 %v10665_v18, %v14606_v1  ;;  %v3070_v45 = vrot.slane %v3068_v2, 4 }
  0xf3   : > { %v11012_v60 = vadd.f32 %v1128_v10, %v10942_v59  ;;  %v3062_v10 = vor.u32 %v3061_v53, %v3058_v56  ;;  %v3067_v8 = vrot.slane %v3065_v27, 3  ;;  %v3054_v56 = vsel %vm862_vm3, %v3044_v33, %v3053_v57 }
  0xf4   : > { %v11014_v62 = vpop.f32.mrf.mxu0  ;;  %v8828_v16 = vpop.f32.mrf.mxu1  ;;  %v2965_v42 = vpack.c.bf16 %v2945_v49, %v2944_v35  ;;  %v3079_v53 = vrot.slane %v3077_v6, 4 }
  0xf5   : > { %9007 = vmatmul.mubr.msk.bf16.gmra.mxu0 %vm652_vm2, %v3036_v39  ;;  %v11023_v46 = vadd.f32 %v8828_v16, %v10954_v12 }
  0xf6   : > { %9010 = vmatprep.mubr.msk.bf16.mxu0 %vm652_vm2, %v3045_v30  ;;  %v11025_v59 = vpop.f32.mrf.mxu0  ;;  %v1141_v39 = vpop.f32.mrf.mxu1  ;;  %v3086_v35 = vshll.u32 %v2965_v42, 16 }
  0xf7   : > { %v11032_v19 = vadd.f32 %v1141_v39, %v10963_v37  ;;  %v3076_v37 = vrot.slane %v3074_v44, 3  ;;  %v3063_v39 = vsel %vm862_vm3, %v3053_v57, %v3062_v10  ;;  %v14609_v44 = vld [vmem:[#allocation56_spill] sm:$0xff]  ;;  %v3071_v57 = vor.u32 %v3070_v45, %v3067_v8 }
  0xf8   : > { %v11034_v30 = vpop.f32.mrf.mxu0  ;;  %v8829_v12 = vpop.f32.mrf.mxu1  ;;  %v2949_v6 = vmul.f32 %v14609_v44, %v14575_v5 }
  0xf9   : > { %9039 = vmatmul.mubr.msk.bf16.gmra.mxu1 %vm652_vm2, %v14556_v52  ;;  %v11042_v18 = vadd.f32 %v8829_v12, %v10972_v51  ;;  %v2966_v52 = vpack.c.bf16 %v2947_v17, %v2946_v15  ;;  %v14608_v51 = vld [vmem:[#allocation55_spill] sm:$0xff] }
  0xfa   : > { %9042 = vmatprep.mubr.msk.bf16.mxu1 %vm652_vm2, %v14557_v7  ;;  %v11044_v43 = vpop.f32.mrf.mxu0  ;;  %v1144_v16 = vpop.f32.mrf.mxu1  ;;  %v3083_v7 = vshrl.u32 %v2965_v42, 16  ;;  %v2948_v49 = vmul.f32 %v14573_v21, %v14608_v51  ;;  %v14610_v42 = vld [vmem:[#allocation60_spill] sm:$0xff]  ;;  %v14611_v21 = vld [vmem:[#allocation61_spill] sm:$0xff] }
  0xfb   : > { %v11048_v27 = vadd.f32 %v1144_v16, %v10978_v34  ;;  %v3080_v34 = vor.u32 %v3079_v53, %v3076_v37  ;;  %v3095_v16 = vshll.u32 %v2966_v52, 16  ;;  %v2950_v9 = vmul.f32 %v14610_v42, %v14577_v40 }
  0xfc   : > { %v11050_v2 = vpop.f32.mrf.mxu0  ;;  %v8832_v33 = vpop.f32.mrf.mxu1  ;;  %v2951_v51 = vmul.f32 %v14611_v21, %v10878_v25  ;;  %v3085_v45 = vrot.slane %v3083_v7, 3  ;;  %v3088_v37 = vrot.slane %v3086_v35, 4  ;;  %v2967_v53 = vpack.c.bf16 %v2949_v6, %v2948_v49 }
  0xfd   : > { %9011 = vmatmul.mubr.msk.bf16.gmra.mxu0 %vm652_vm2, %v3054_v56  ;;  %v11059_v15 = vadd.f32 %v8832_v33, %v10989_v13  ;;  %v3092_v56 = vshrl.u32 %v2966_v52, 16  ;;  %v3097_v21 = vrot.slane %v3095_v16, 4  ;;  %v14615_v16 = vld [vmem:[#allocation7_spill] sm:$0xff] }
  0xfe   : > { %9014 = vmatprep.mubr.msk.bf16.mxu0 %vm652_vm2, %v3063_v39  ;;  %v11061_v17 = vpop.f32.mrf.mxu0  ;;  %v1157_v12 = vpop.f32.mrf.mxu1  ;;  %v3072_v39 = vsel %vm862_vm3, %v3062_v10, %v3071_v57  ;;  %v2968_v7 = vpack.c.bf16 %v2951_v51, %v2950_v9  ;;  %v3101_v49 = vshrl.u32 %v2967_v53, 16  ;;  %v3104_v6 = vshll.u32 %v2967_v53, 16  ;;  %v14614_v51 = vld [vmem:[#allocation8_spill] sm:$0xff] }
  0xff   : > { %v11068_v5 = vadd.f32 %v1157_v12, %v10998_v4  ;;  %v11083_v4 = vld [vmem:[%s9723_s11 + $0x120] sm:$0xff]  ;;  %v3081_v12 = vsel %vm862_vm3, %v3071_v57, %v3080_v34 }
 0x100   : > { %v11070_v8 = vpop.f32.mrf.mxu0  ;;  %v8833_v13 = vpop.f32.mrf.mxu1  ;;  %v3110_v44 = vshrl.u32 %v2968_v7, 16  ;;  %v3113_v53 = vshll.u32 %v2968_v7, 16  ;;  %v3103_v0 = vrot.slane %v3101_v49, 3  ;;  %v14620_v7 = vld [vmem:[#allocation88_spill] sm:$0xff] }
 0x101   : > { %9043 = vmatmul.mubr.msk.bf16.gmra.mxu1 %vm652_vm2, %v14558_v24  ;;  %v11078_v40 = vadd.f32 %v8833_v13, %v11008_v14  ;;  %v3094_v24 = vrot.slane %v3092_v56, 3  ;;  %v14612_v13 = vld [vmem:[#allocation59_spill] sm:$0xff] }
 0x102   : > { %9046 = vmatprep.mubr.msk.bf16.mxu1 %vm652_vm2, %v14559_v47  ;;  %v11080_v52 = vpop.f32.mrf.mxu0  ;;  %v1160_v33 = vpop.f32.mrf.mxu1  ;;  %v3089_v47 = vor.u32 %v3088_v37, %v3085_v45  ;;  %v2952_v42 = vmul.f32 %v14612_v13, %v11083_v4 }
 0x103   : > { %v11087_v35 = vadd.f32 %v1160_v33, %v11014_v62  ;;  %v14613_v62 = vld [vmem:[#allocation4_spill] sm:$0xff]  ;;  %v14616_v33 = vld [vmem:[#allocation87_spill] sm:$0xff]  ;;  %v3098_v37 = vor.u32 %v3097_v21, %v3094_v24 }
 0x104   : > { %v11089_v10 = vpop.f32.mrf.mxu0  ;;  %v8836_v14 = vpop.f32.mrf.mxu1  ;;  %v3594_v56 = vmul.f32 %v14614_v51, %v14613_v62  ;;  %v3106_v51 = vrot.slane %v3104_v6, 4  ;;  %v2969_v29 = vpack.c.bf16 %v2952_v42, %v2952_v42  ;;  %v3112_v42 = vrot.slane %v3110_v44, 3 }
 0x105   : > { %9015 = vmatmul.mubr.msk.bf16.gmra.mxu0 %vm652_vm2, %v3072_v39  ;;  %v11096_v57 = vadd.f32 %v8836_v14, %v11025_v59  ;;  %v3595_v39 = vmul.f32 %v14616_v33, %v14615_v16  ;;  %v3090_v59 = vsel %vm862_vm3, %v3080_v34, %v3089_v47  ;;  %v3099_v49 = vsel %vm862_vm3, %v3089_v47, %v3098_v37 }
 0x106   : > { %9018 = vmatprep.mubr.msk.bf16.mxu0 %vm652_vm2, %v3081_v12  ;;  %v11098_v9 = vpop.f32.mrf.mxu0  ;;  %v1173_v45 = vpop.f32.mrf.mxu1  ;;  %v14617_v12 = vld [vmem:[#allocation31_spill] sm:$0xff]  ;;  %v3115_v6 = vrot.slane %v3113_v53, 4  ;;  %v3122_v32 = vshll.u32 %v2969_v29, 16 }
 0x107   : > { %v11105_v1 = vadd.f32 %v1173_v45, %v11034_v30  ;;  %v14619_v30 = vld [vmem:[#allocation57_spill] sm:$0xff]  ;;  %v14621_v45 = vld [vmem:[#allocation58_spill] sm:$0xff]  ;;  %v3627_v61 = vpack.c.bf16 %v3595_v39, %v3594_v56 }
 0x108   : > { %v11107_v13 = vpop.f32.mrf.mxu0  ;;  %v8837_v14 = vpop.f32.mrf.mxu1  ;;  %v3596_v33 = vmul.f32 %v14620_v7, %v14619_v30  ;;  %v3116_v44 = vor.u32 %v3115_v6, %v3112_v42  ;;  %v3124_v42 = vrot.slane %v3122_v32, 4  ;;  %v14629_v6 = vld [vmem:[#allocation45_spill] sm:$0xff] }
 0x109   : > { %9047 = vmatmul.mubr.msk.bf16.gmra.mxu1 %vm652_vm2, %v14617_v12  ;;  %v11115_v21 = vadd.f32 %v8837_v14, %v11044_v43  ;;  %v3597_v12 = vmul.f32 %v14622_v54, %v14621_v45  ;;  %v3119_v14 = vshrl.u32 %v2969_v29, 16  ;;  %v3652_v39 = vshll.u32 %v3627_v61, 16  ;;  %v14626_v29 = vld [vmem:[#allocation63_spill] sm:$0xff]  ;;  %v14631_v32 = vld [vmem:[#allocation65_spill] sm:$0xff] }
 0x10a   : > { %9050 = vmatprep.mubr.msk.bf16.mxu1 %vm652_vm2, %v14618_v36  ;;  %v11117_v24 = vpop.f32.mrf.mxu0  ;;  %v11123_v34 = vpop.f32.mrf.mxu1  ;;  %v3107_v36 = vor.u32 %v3106_v51, %v3103_v0  ;;  %v14624_v0 = vld [vmem:[#allocation62_spill] sm:$0xff] }
 0x10b   : > { %v3628_v56 = vpack.c.bf16 %v3597_v12, %v3596_v33  ;;  %v3654_v31 = vrot.slane %v3652_v39, 1 }
 0x10c   : > { %v11126_v48 = vpop.f32.mrf.mxu0  ;;  %v8840_v43 = vpop.f32.mrf.mxu1  ;;  %v3108_v33 = vsel %vm862_vm3, %v3098_v37, %v3107_v36 }
 0x10d   : > { %14623 = vst [vmem:[#allocation10_spill] sm:$0xff] %v11126_v48  ;;  %9019 = vmatmul.mubr.msk.bf16.gmra.mxu0 %vm652_vm2, %v3090_v59  ;;  %v11131_v7 = vadd.f32 %v8840_v43, %v11061_v17  ;;  %v14625_v59 = vld [vmem:[#allocation90_spill] sm:$0xff]  ;;  %v14628_v17 = vld [vmem:[#allocation40_spill] sm:$0xff]  ;;  %v3121_v43 = vrot.slane %v3119_v14, 3  ;;  %v3657_v11 = vshll.u32 %v3628_v56, 16  ;;  %v9523_v14 = vld [vmem:[%s9723_s11 + $0x60] sm:$0xff] }
 0x10e   : > { %9022 = vmatprep.mubr.msk.bf16.mxu0 %vm652_vm2, %v3099_v49  ;;  %v11133_v54 = vpop.f32.mrf.mxu0  ;;  %v1189_v47 = vpop.f32.mrf.mxu1  ;;  %v3598_v51 = vmul.f32 %v14625_v59, %v14624_v0  ;;  %v3599_v49 = vmul.f32 %v14627_v26, %v14626_v29  ;;  %v3650_v59 = vshrl.u32 %v3627_v61, 16  ;;  %v14630_v29 = vld [vmem:[#allocation64_spill] sm:$0xff]  ;;  %v3601_v30 = vmul.f32 %v9523_v14, %v14631_v32 }
 0x10f   : > { %v11136_v53 = vadd.f32 %v1189_v47, %v11070_v8  ;;  %v3600_v37 = vmul.f32 %v10744_v50, %v14630_v29  ;;  %v3125_v61 = vor.u32 %v3124_v42, %v3121_v43  ;;  %v14632_v43 = vld [vmem:[#allocation46_spill] sm:$0xff] }
 0x110   : > { %v11138_v45 = vpop.f32.mrf.mxu0  ;;  %v8841_v12 = vpop.f32.mrf.mxu1 }
 0x111   : > { %9051 = vmatmul.mubr.msk.bf16.gmra.mxu1 %vm652_vm2, %v14628_v17  ;;  %v11150_v8 = vadd.f32 %v8841_v12, %v11080_v52  ;;  %v3117_v17 = vsel %vm862_vm3, %v3107_v36, %v3116_v44  ;;  %v3655_v36 = vor.u32 %v3654_v31, %v3650_v59  ;;  %v3659_v12 = vrot.slane %v3657_v11, 1  ;;  %v14633_v31 = vld [vmem:[#allocation66_spill] sm:$0xff] }
 0x112   : > { %9054 = vmatprep.mubr.msk.bf16.mxu1 %vm652_vm2, %v14629_v6  ;;  %v11152_v47 = vpop.f32.mrf.mxu0  ;;  %v11154_v26 = vpop.f32.mrf.mxu1  ;;  %v3629_v6 = vpack.c.bf16 %v3599_v49, %v3598_v51  ;;  %v11171_v14 = vpack.c.bf16 %v3601_v30, %v3600_v37  ;;  %v3661_v49 = vshrl.u32 %v3628_v56, 16  ;;  %v14634_v30 = vld [vmem:[#allocation67_spill] sm:$0xff] }
 0x113   : > { %v14635_v56 = vld [vmem:[#allocation51_spill] sm:$0xff]  ;;  %v3660_v37 = vsel %vm1420_vm4, %v3655_v36, %v3659_v12 }
 0x114   : > { %v11161_v0 = vpop.f32.mrf.mxu0  ;;  %v8844_v52 = vpop.f32.mrf.mxu1 }
 0x115   : > { %9023 = vmatmul.mubr.msk.bf16.gmra.mxu0 %vm652_vm2, %v3108_v33  ;;  %v11166_v39 = vadd.f32 %v8844_v52, %v11098_v9  ;;  %v3665_v33 = vshll.u32 %v3629_v6, 16 }
 0x116   : > { %9026 = vmatprep.mubr.msk.bf16.mxu0 %vm652_vm2, %v3117_v17  ;;  %v8856_v48 = vpop.f32.mrf.mxu0  ;;  %v1205_v50 = vpop.f32.mrf.mxu1 }
 0x117   : > { %v11169_v29 = vadd.f32 %v8856_v48, %v10952_v41  ;;  %v11174_v51 = vadd.f32 %v1205_v50, %v11107_v13  ;;  %v3602_v48 = vmul.f32 %v10755_v38, %v14633_v31  ;;  %v9524_v41 = vld [vmem:[%s9723_s11 + $0x70] sm:$0xff]  ;;  %v3126_v13 = vsel %vm862_vm3, %v3116_v44, %v3125_v61  ;;  %v9526_v61 = vld [vmem:[%s9723_s11 + $0x80] sm:$0xff] }
 0x118   : > { %v1647_v17 = vpop.f32.mrf.mxu0  ;;  %v8845_v9 = vpop.f32.mrf.mxu1  ;;  %v3603_v42 = vmul.f32 %v9524_v41, %v14634_v30  ;;  %v3669_v50 = vshrl.u32 %v3629_v6, 16  ;;  %v3673_v38 = vshll.u32 %v11171_v14, 16  ;;  %v14636_v41 = vld [vmem:[#allocation68_spill] sm:$0xff]  ;;  %v14637_v30 = vld [vmem:[#allocation69_spill] sm:$0xff]  ;;  %v3663_v31 = vor.u32 %v3661_v49, %v3659_v12 }
 0x119   : > { %9055 = vmatmul.mubr.msk.bf16.gmra.mxu1 %vm652_vm2, %v14632_v43  ;;  %v11179_v11 = vadd.f32 %v1647_v17, %v10961_v55  ;;  %v11189_v59 = vadd.f32 %v8845_v9, %v11117_v24  ;;  %v9525_v43 = vld [vmem:[%s9723_s11 + $0x78] sm:$0xff]  ;;  %v3667_v24 = vrot.slane %v3665_v33, 1 }
 0x11a   : > { %9058 = vmatprep.mubr.msk.bf16.mxu1 %vm652_vm2, %v14635_v56  ;;  %v8857_v52 = vpop.f32.mrf.mxu0  ;;  %v11192_v55 = vpop.f32.mrf.mxu1  ;;  %v3604_v44 = vmul.f32 %v9525_v43, %v14636_v41  ;;  %v3605_v56 = vmul.f32 %v9526_v61, %v14637_v30  ;;  %v3675_v32 = vrot.slane %v3673_v38, 1  ;;  %v14638_v33 = vld [vmem:[#allocation52_spill] sm:$0xff]  ;;  %v14640_v38 = vld [vmem:[#allocation71_spill] sm:$0xff] }
 0x11b   : > { %v11195_v17 = vadd.f32 %v8857_v52, %v10970_v63  ;;  %v3631_v63 = vpack.c.bf16 %v3603_v42, %v3602_v48  ;;  %v3671_v41 = vor.u32 %v3669_v50, %v3667_v24  ;;  %v3668_v12 = vsel %vm1420_vm4, %v3663_v31, %v3667_v24  ;;  %v9527_v50 = vld [vmem:[%s9723_s11 + $0x90] sm:$0xff] }
 0x11c   : > { %v1650_v9 = vpop.f32.mrf.mxu0  ;;  %v8848_v36 = vpop.f32.mrf.mxu1  ;;  %v11210_v61 = vpack.c.bf16 %v3605_v56, %v3604_v44  ;;  %v3607_v44 = vmul.f32 %v9527_v50, %v14640_v38  ;;  %v3677_v31 = vshrl.u32 %v11171_v14, 16  ;;  %v14642_v50 = vld [vmem:[#allocation73_spill] sm:$0xff]  ;;  %v3380_v14 = vpack.c.bf16 %v11083_v4, %v10878_v25 }
 0x11d   : > { %9027 = vmatmul.mubr.msk.bf16.gmra.mxu0 %vm652_vm2, %v3126_v13  ;;  %v11204_v6 = vadd.f32 %v1650_v9, %v10976_v58  ;;  %v11208_v52 = vadd.f32 %v8848_v36, %v11133_v54  ;;  %v3681_v54 = vshll.u32 %v3631_v63, 16  ;;  %v14639_v13 = vld [vmem:[#allocation70_spill] sm:$0xff]  ;;  %v3685_v24 = vshrl.u32 %v3631_v63, 16  ;;  %v14641_v9 = vld [vmem:[#allocation72_spill] sm:$0xff] }
 0x11e   : > { %9070 = vmatprep.mubr.msk.bf16.mxu0 %vm652_vm2, %v3660_v37  ;;  %v1221_v43 = vpop.f32.mrf.mxu1  ;;  %v3606_v37 = vmul.f32 %v10780_v20, %v14639_v13  ;;  %v3676_v20 = vsel %vm1420_vm4, %v3671_v41, %v3675_v32 }
 0x11f   : > { %v11214_v49 = vadd.f32 %v1221_v43, %v11138_v45  ;;  %v3683_v63 = vrot.slane %v3681_v54, 1 }
 0x120   : > { %v8860_v58 = vpop.f32.mrf.mxu0  ;;  %v8849_v48 = vpop.f32.mrf.mxu1 }
 0x121   : > { %9059 = vmatmul.mubr.msk.bf16.gmra.mxu1 %vm652_vm2, %v14638_v33  ;;  %v11219_v42 = vadd.f32 %v8860_v58, %v10987_v3  ;;  %v11228_v45 = vadd.f32 %v8849_v48, %v11152_v47  ;;  %v9528_v3 = vld [vmem:[%s9723_s11 + $0x98] sm:$0xff]  ;;  %v3689_v33 = vshll.u32 %v11210_v61, 16  ;;  %v3687_v38 = vor.u32 %v3685_v24, %v3683_v63 }
 0x122   : > { %9062 = vmatprep.mubr.msk.bf16.mxu1 %vm652_vm2, %v10906_v22  ;;  %v1663_v56 = vpop.f32.mrf.mxu0  ;;  %v3608_v36 = vmul.f32 %v9528_v3, %v14641_v9  ;;  %v11233_v43 = vpop.f32.mrf.mxu1  ;;  %v9529_v22 = vld [vmem:[%s9723_s11 + $0xa0] sm:$0xff] }
 0x123   : > { %v11237_v58 = vadd.f32 %v1663_v56, %v10996_v23  ;;  %v3609_v47 = vmul.f32 %v9529_v22, %v14642_v50  ;;  %v3633_v23 = vpack.c.bf16 %v3607_v44, %v3606_v37  ;;  %v3679_v56 = vor.u32 %v3677_v31, %v3675_v32  ;;  %v9530_v37 = vld [vmem:[%s9723_s11 + $0xa8] sm:$0xff]  ;;  %v9531_v31 = vld [vmem:[%s9723_s11 + $0xb0] sm:$0xff] }
 0x124   : > { %v8861_v48 = vpop.f32.mrf.mxu0  ;;  %v8892_v3 = vpop.f32.mrf.mxu1  ;;  %v3691_v54 = vrot.slane %v3689_v33, 1  ;;  %v14644_v32 = vld [vmem:[#allocation74_spill] sm:$0xff] }
 0x125   : > { %9071 = vmatmul.mubr.msk.bf16.vlgmr.msra.gmra.mxu0 %vm652_vm2, %v3668_v12  ;;  %v11246_v41 = vadd.f32 %v8861_v48, %v11006_v28  ;;  %v11250_v9 = vadd.f32 %v8892_v3, %v11169_v29  ;;  %v3634_v13 = vpack.c.bf16 %v3609_v47, %v3608_v36  ;;  %v3610_v44 = vmul.f32 %v9530_v37, %v14644_v32  ;;  %v9532_v36 = vld [vmem:[%s9723_s11 + $0xb8] sm:$0xff]  ;;  %v9533_v47 = vld [vmem:[%s9723_s11 + $0xc0] sm:$0xff] }
 0x126   : > { %9074 = vmatprep.mubr.msk.bf16.mxu0 %vm652_vm2, %v3676_v20  ;;  %v1666_v22 = vpop.f32.mrf.mxu0  ;;  %v2107_v50 = vpop.f32.mrf.mxu1  ;;  %v14645_v20 = vld [vmem:[#allocation27_spill] sm:$0xff]  ;;  %v3693_v3 = vshrl.u32 %v11210_v61, 16  ;;  %v3684_v24 = vsel %vm1420_vm4, %v3679_v56, %v3683_v63 }
 0x127   : > { %v11253_v12 = vadd.f32 %v1666_v22, %v11012_v60  ;;  %v11256_v28 = vadd.f32 %v2107_v50, %v11179_v11  ;;  %v3611_v29 = vmul.f32 %v9531_v31, %v14645_v20  ;;  %v3697_v60 = vshll.u32 %v3633_v23, 16  ;;  %v14646_v11 = vld [vmem:[#allocation24_spill] sm:$0xff]  ;;  %v14647_v22 = vld [vmem:[#allocation75_spill] sm:$0xff] }
 0x128   : > { %v8893_v48 = vpop.f32.mrf.mxu1  ;;  %v3612_v50 = vmul.f32 %v9532_v36, %v14646_v11  ;;  %v3613_v37 = vmul.f32 %v9533_v47, %v14647_v22  ;;  %v3692_v31 = vsel %vm1420_vm4, %v3687_v38, %v3691_v54  ;;  %v3701_v20 = vshrl.u32 %v3633_v23, 16  ;;  %v14650_v22 = vld [vmem:[#allocation26_spill] sm:$0xff] }
 0x129   : > { %14643 = vst [vmem:[#allocation12_spill] sm:$0xff] %v11253_v12  ;;  %9063 = vmatmul.mubr.msk.bf16.gmra.mxu1 %vm652_vm2, %v3380_v14  ;;  %v11266_v33 = vadd.f32 %v8893_v48, %v11195_v17  ;;  %v3705_v30 = vshll.u32 %v3634_v13, 16  ;;  %v3635_v12 = vpack.c.bf16 %v3611_v29, %v3610_v44  ;;  %v3695_v17 = vor.u32 %v3693_v3, %v3691_v54 }
 0x12a   : > { %v11272_v32 = vpop.f32.mrf.mxu1  ;;  %v3699_v63 = vrot.slane %v3697_v60, 1  ;;  %v11279_v47 = vpack.c.bf16 %v3613_v37, %v3612_v50  ;;  %v9534_v60 = vld [vmem:[%s9723_s11 + $0xc8] sm:$0xff] }
 0x12b   : > { %14648 = vst [vmem:[#allocation13_spill] sm:$0xff] %v11272_v32  ;;  %v8864_v14 = vpop.f32.mrf.mxu0  ;;  %v3707_v44 = vrot.slane %v3705_v30, 1  ;;  %v3713_v3 = vshll.u32 %v3635_v12, 16  ;;  %v14651_v30 = vld [vmem:[#allocation32_spill] sm:$0xff]  ;;  %v14653_v32 = vld [vmem:[#allocation33_spill] sm:$0xff] }
 0x12c   : > { %v1784_v61 = vadd.f32 %v8864_v14, %v11023_v46  ;;  %v3703_v23 = vor.u32 %v3701_v20, %v3699_v63  ;;  %v9535_v14 = vld [vmem:[%s9723_s11 + $0xd0] sm:$0xff]  ;;  %v3700_v50 = vsel %vm1420_vm4, %v3695_v17, %v3699_v63  ;;  %v9536_v20 = vld [vmem:[%s9723_s11 + $0xd8] sm:$0xff] }
 0x12d   : > { %9075 = vmatmul.mubr.msk.bf16.gmra.mxu0 %vm652_vm2, %v3684_v24  ;;  %v1679_v56 = vpop.f32.mrf.mxu0  ;;  %v14649_v24 = vld [vmem:[#allocation25_spill] sm:$0xff] }
 0x12e   : > { %9078 = vmatprep.mubr.msk.bf16.mxu0 %vm652_vm2, %v3692_v31  ;;  %v8896_v48 = vpop.f32.mrf.mxu1  ;;  %v1782_v36 = vadd.f32 %v1679_v56, %v11032_v19  ;;  %v3614_v31 = vmul.f32 %v9534_v60, %v14649_v24  ;;  %v3615_v19 = vmul.f32 %v9535_v14, %v14650_v22  ;;  %v3709_v56 = vshrl.u32 %v3634_v13, 16  ;;  %v9537_v24 = vld [vmem:[%s9723_s11 + $0xe0] sm:$0xff] }
 0x12f   : > { %v11282_v38 = vadd.f32 %v8896_v48, %v11219_v42  ;;  %v8865_v46 = vpop.f32.mrf.mxu0  ;;  %v3616_v48 = vmul.f32 %v9536_v20, %v14651_v30  ;;  %v3721_v60 = vshll.u32 %v11279_v47, 16  ;;  %v3617_v14 = vmul.f32 %v9537_v24, %v14653_v32 }
 0x130   : > { %v2123_v29 = vpop.f32.mrf.mxu1  ;;  %v1785_v54 = vadd.f32 %v8865_v46, %v11042_v18  ;;  %v3717_v46 = vshrl.u32 %v3635_v12, 16  ;;  %v3715_v13 = vrot.slane %v3713_v3, 1  ;;  %v3725_v32 = vshrl.u32 %v11279_v47, 16 }
 0x131   : > { %v11291_v37 = vadd.f32 %v2123_v29, %v11237_v58  ;;  %v1682_v42 = vpop.f32.mrf.mxu0  ;;  %v3708_v58 = vsel %vm1420_vm4, %v3703_v23, %v3707_v44  ;;  %v3637_v29 = vpack.c.bf16 %v3615_v19, %v3614_v31  ;;  %v3723_v20 = vrot.slane %v3721_v60, 1  ;;  %v9538_v19 = vld [vmem:[%s9723_s11 + $0xe8] sm:$0xff]  ;;  %v14655_v60 = vld [vmem:[#allocation76_spill] sm:$0xff] }
 0x132   : > { %v8897_v11 = vpop.f32.mrf.mxu1  ;;  %v11296_v18 = vadd.f32 %v1682_v42, %v11048_v27  ;;  %v3711_v27 = vor.u32 %v3709_v56, %v3707_v44  ;;  %v3719_v42 = vor.u32 %v3717_v46, %v3715_v13  ;;  %v11309_v24 = vpack.c.bf16 %v3617_v14, %v3616_v48  ;;  %v9539_v46 = vld [vmem:[%s9723_s11 + $0xf0] sm:$0xff] }
 0x133   : > { %v11302_v17 = vadd.f32 %v8897_v11, %v11246_v41  ;;  %v3729_v3 = vshll.u32 %v3637_v29, 16  ;;  %v3619_v48 = vmul.f32 %v9539_v46, %v14655_v60  ;;  %v3733_v47 = vshrl.u32 %v3637_v29, 16 }
 0x134   : > { %14652 = vst [vmem:[#allocation18_spill] sm:$0xff] %v11296_v18  ;;  %v11305_v63 = vpop.f32.mrf.mxu1  ;;  %v3716_v14 = vsel %vm1420_vm4, %v3711_v27, %v3715_v13  ;;  %v3737_v30 = vshll.u32 %v11309_v24, 16 }
 0x135   : > { %9079 = vmatmul.mubr.msk.bf16.gmra.mxu0 %vm652_vm2, %v3700_v50  ;;  %v14654_v50 = vld [vmem:[#allocation34_spill] sm:$0xff] }
 0x136   : > { %9082 = vmatprep.mubr.msk.bf16.mxu0 %vm652_vm2, %v3708_v58  ;;  %v8868_v12 = vpop.f32.mrf.mxu0  ;;  %v3618_v56 = vmul.f32 %v9538_v19, %v14654_v50  ;;  %v9541_v19 = vld [vmem:[%s9723_s11 + $0x100] sm:$0xff]  ;;  %v14657_v50 = vld [vmem:[#allocation78_spill] sm:$0xff] }
 0x137   : > { %v1788_v41 = vadd.f32 %v8868_v12, %v11059_v15  ;;  %v3724_v12 = vsel %vm1420_vm4, %v3719_v42, %v3723_v20  ;;  %v3621_v18 = vmul.f32 %v9541_v19, %v14657_v50 }
 0x138   : > { %v8900_v11 = vpop.f32.mrf.mxu1  ;;  %v1695_v23 = vpop.f32.mrf.mxu0  ;;  %v3639_v27 = vpack.c.bf16 %v3619_v48, %v3618_v56 }
 0x139   : > { %v11313_v31 = vadd.f32 %v8900_v11, %v1784_v61  ;;  %v1786_v44 = vadd.f32 %v1695_v23, %v11068_v5  ;;  %v9540_v5 = vld [vmem:[%s9723_s11 + $0xf8] sm:$0xff]  ;;  %v14656_v23 = vld [vmem:[#allocation77_spill] sm:$0xff] }
 0x13a   : > { %v2139_v15 = vpop.f32.mrf.mxu1  ;;  %v8869_v58 = vpop.f32.mrf.mxu0  ;;  %v3620_v22 = vmul.f32 %v9540_v5, %v14656_v23  ;;  %v3739_v5 = vrot.slane %v3737_v30, 1  ;;  %v3749_v30 = vshrl.u32 %v3639_v27, 16  ;;  %v14661_v23 = vld [vmem:[#allocation82_spill] sm:$0xff] }
 0x13b   : > { %v11323_v61 = vadd.f32 %v2139_v15, %v1782_v36  ;;  %v1789_v11 = vadd.f32 %v8869_v58, %v11078_v40  ;;  %v3731_v36 = vrot.slane %v3729_v3, 1  ;;  %v3727_v40 = vor.u32 %v3725_v32, %v3723_v20  ;;  %v14659_v3 = vld [vmem:[#allocation79_spill] sm:$0xff]  ;;  %v14660_v20 = vld [vmem:[#allocation80_spill] sm:$0xff] }
 0x13c   : > { %v8901_v46 = vpop.f32.mrf.mxu1  ;;  %v1698_v60 = vpop.f32.mrf.mxu0  ;;  %v3640_v19 = vpack.c.bf16 %v3621_v18, %v3620_v22  ;;  %v9543_v32 = vld [vmem:[%s9723_s11 + $0x110] sm:$0xff]  ;;  %v3741_v22 = vshrl.u32 %v11309_v24, 16 }
 0x13d   : > { %9083 = vmatmul.mubr.msk.bf16.gmra.mxu0 %vm652_vm2, %v3716_v14  ;;  %v11331_v13 = vadd.f32 %v8901_v46, %v1785_v54  ;;  %v11334_v29 = vadd.f32 %v1698_v60, %v11087_v35  ;;  %v3735_v58 = vor.u32 %v3733_v47, %v3731_v36  ;;  %v9471_v54 = vld [vmem:[%s14135_s5 + $0x18] sm:$0xff]   ;;  %v3745_v60 = vshll.u32 %v3639_v27, 16  ;;  %v9542_v46 = vld [vmem:[%s9723_s11 + $0x108] sm:$0xff] }
 0x13e   : > { %9086 = vmatprep.mubr.msk.bf16.mxu0 %vm652_vm2, %v3724_v12  ;;  %v11337_v42 = vpop.f32.mrf.mxu1  ;;  %v3622_v56 = vmul.f32 %v9542_v46, %v14659_v3  ;;  %v3623_v48 = vmul.f32 %v9543_v32, %v14660_v20  ;;  %v3732_v12 = vsel %vm1420_vm4, %v3727_v40, %v3731_v36  ;;  %9102 = vmatprep.subr.bf16.mxu1 %v9471_v54  ;;  %v3753_v50 = vshll.u32 %v3640_v19, 16  ;;  %v14662_v46 = vld [vmem:[#allocation83_spill] sm:$0xff] }
 0x13f   : > { %14658 = vst [vmem:[#allocation21_spill] sm:$0xff] %v11334_v29  ;;  %v8872_v15 = vpop.f32.mrf.mxu0  ;;  %v3624_v29 = vmul.f32 %v14661_v23, %v10878_v25  ;;  %v3625_v3 = vmul.f32 %v14662_v46, %v11083_v4  ;;  %9103 = vmatpush3.bf16.msra.mxu1 %v9471_v54  ;;  %v3747_v27 = vrot.slane %v3745_v60, 1 }
 0x140   : > { %v1792_v14 = vadd.f32 %v8872_v15, %v11096_v57  ;;  %v3740_v15 = vsel %vm1420_vm4, %v3735_v58, %v3739_v5  ;;  %v3641_v40 = vpack.c.bf16 %v3623_v48, %v3622_v56  ;;  %v3743_v58 = vor.u32 %v3741_v22, %v3739_v5 }
 0x141   : > { %v1711_v35 = vpop.f32.mrf.mxu0  ;;  %v3751_v4 = vor.u32 %v3749_v30, %v3747_v27  ;;  %v3755_v46 = vrot.slane %v3753_v50, 1  ;;  %v3642_v54 = vpack.c.bf16 %v3625_v3, %v3624_v29  ;;  %v3757_v56 = vshrl.u32 %v3640_v19, 16 }
 0x142   : > { %v1790_v47 = vadd.f32 %v1711_v35, %v11105_v1  ;;  %v3748_v60 = vsel %vm1420_vm4, %v3743_v58, %v3747_v27  ;;  %v3765_v22 = vshrl.u32 %v3641_v40, 16 }
 0x143   : > { %v8904_v57 = vpop.f32.mrf.mxu1  ;;  %v8873_v18 = vpop.f32.mrf.mxu0 }
 0x144   : > { %v11355_v36 = vadd.f32 %v8904_v57, %v1788_v41  ;;  %v1793_v1 = vadd.f32 %v8873_v18, %v11115_v21  ;;  %v371_v41 = vld [vmem:[%s9723_s11 + $0x128] sm:$0xff]  ;;  %v3761_v21 = vshll.u32 %v3641_v40, 16 }
 0x145   : > { %9087 = vmatmul.mubr.msk.bf16.gmra.mxu0 %vm652_vm2, %v3732_v12  ;;  %v2155_v24 = vpop.f32.mrf.mxu1  ;;  %v11362_v32 = vpop.f32.mrf.mxu0  ;;  %v3756_v12 = vsel %vm1420_vm4, %v3751_v4, %v3755_v46 }
 0x146   : > { %v11359_v35 = vadd.f32 %v2155_v24, %v1786_v44  ;;  %9090 = vmatprep.mubr.msk.bf16.mxu0 %vm652_vm2, %v3740_v15  ;;  %v14663_v44 = vld [vmem:[#allocation81_spill] sm:$0xff]  ;;  %v3769_v15 = vshll.u32 %v3642_v54, 16  ;;  %v3759_v24 = vor.u32 %v3757_v56, %v3755_v46 }
 0x147   : > { %v8905_v25 = vpop.f32.mrf.mxu1  ;;  %v3626_v48 = vmul.f32 %v14663_v44, %v371_v41 }
 0x148   : > { %v11365_v57 = vadd.f32 %v8905_v25, %v1789_v11  ;;  %v3763_v11 = vrot.slane %v3761_v21, 1  ;;  %v3771_v4 = vrot.slane %v3769_v15, 1 }
 0x149   : > { %v11367_v18 = vpop.f32.mrf.mxu1  ;;  %v3643_v19 = vpack.c.bf16 %v3626_v48, %v3626_v48 }
 0x14a   : > { %v3767_v25 = vor.u32 %v3765_v22, %v3763_v11 }
 0x14b   : > { %v8876_v5 = vpop.f32.mrf.mxu0  ;;  %v3777_v46 = vshll.u32 %v3643_v19, 16 }
 0x14c   : > { %v1796_v30 = vadd.f32 %v8876_v5, %v11131_v7  ;;  %v3764_v5 = vsel %vm1420_vm4, %v3759_v24, %v3763_v11 }
 0x14d   : > { %9091 = vmatmul.mubr.msk.bf16.gmra.mxu0 %vm652_vm2, %v3748_v60  ;;  %v1727_v50 = vpop.f32.mrf.mxu0  ;;  %v3779_v22 = vrot.slane %v3777_v46, 1 }
 0x14e   : > { %v8908_v29 = vpop.f32.mrf.mxu1  ;;  %v1794_v3 = vadd.f32 %v1727_v50, %v11136_v53  ;;  %9094 = vmatprep.mubr.msk.bf16.mxu0 %vm652_vm2, %v3756_v12  ;;  %v3773_v53 = vshrl.u32 %v3642_v54, 16 }
 0x14f   : > { %v11376_v27 = vadd.f32 %v8908_v29, %v1792_v14  ;;  %v8877_v58 = vpop.f32.mrf.mxu0  ;;  %v3772_v14 = vsel %vm1420_vm4, %v3767_v25, %v3771_v4 }
 0x150   : > { %v2171_v40 = vpop.f32.mrf.mxu1  ;;  %v1797_v41 = vadd.f32 %v8877_v58, %v11150_v8 }
 0x151   : > { %v11379_v7 = vadd.f32 %v2171_v40, %v1790_v47  ;;  %v11381_v60 = vpop.f32.mrf.mxu0  ;;  %v3775_v47 = vor.u32 %v3773_v53, %v3771_v4 }
 0x152   : > { %v8909_v21 = vpop.f32.mrf.mxu1 }
 0x153   : > { %v11384_v56 = vadd.f32 %v8909_v21, %v1793_v1  ;;  %v3780_v19 = vsel %vm1420_vm4, %v3775_v47, %v3779_v22 }
 0x154   : > { %v11387_v48 = vpop.f32.mrf.mxu1 }
 0x155   : > { %v8880_v12 = vpop.f32.mrf.mxu0  ;;  %9095 = vmatmul.mubr.msk.bf16.gmra.mxu0 %vm652_vm2, %v3764_v5 }
 0x156   : > { %v1800_v8 = vadd.f32 %v8880_v12, %v11166_v39  ;;  %9098 = vmatprep.mubr.msk.bf16.mxu0 %vm652_vm2, %v3772_v14 }
 0x157   : > { %v1743_v15 = vpop.f32.mrf.mxu0 }
 0x158   : > { %v8912_v50 = vpop.f32.mrf.mxu1  ;;  %v1798_v54 = vadd.f32 %v1743_v15, %v11174_v51 }
 0x159   : > { %v11393_v11 = vadd.f32 %v8912_v50, %v1796_v30  ;;  %v8881_v1 = vpop.f32.mrf.mxu0 }
 0x15a   : > { %v2187_v29 = vpop.f32.mrf.mxu1  ;;  %v1801_v24 = vadd.f32 %v8881_v1, %v11189_v59  ;;  %v9472_v59 = vld [vmem:[%s14135_s5 + $0x10] sm:$0xff]  }
 0x15b   : > { %v11397_v58 = vadd.f32 %v2187_v29, %v1794_v3  ;;  %v11399_v25 = vpop.f32.mrf.mxu0  ;;  %9104 = vmatprep.subr.bf16.mxu1 %v9472_v59 }
 0x15c   : > { %v8913_v39 = vpop.f32.mrf.mxu1  ;;  %9105 = vmatpush3.bf16.msra.mxu1 %v9472_v59  ;;  %v14322_v59 = vmov 0.0  }
 0x15d   : > { %v11401_v4 = vadd.f32 %v8913_v39, %v1797_v41  ;;  %v8884_v40 = vpop.f32.mrf.mxu0  ;;  %9099 = vmatmul.mubr.msk.bf16.gmra.mxu0 %vm652_vm2, %v3780_v19  ;;  %4174 = vst.msk [vmem:[#allocation2 + $0x28] sm:$0xff] %vm652_vm2, %v14322_v59  ;;  %4169 = vst.msk [vmem:[#allocation2] sm:$0xff] %vm652_vm2, %v14322_v59 }
 0x15e   : > { %v11404_v21 = vpop.f32.mrf.mxu1  ;;  %v1804_v51 = vadd.f32 %v8884_v40, %v11208_v52  ;;  %4170 = vst.msk [vmem:[#allocation2 + $0x8] sm:$0xff] %vm652_vm2, %v14322_v59  ;;  %4171 = vst.msk [vmem:[#allocation2 + $0x10] sm:$0xff] %vm652_vm2, %v14322_v59 }
 0x15f   : > { %v1759_v30 = vpop.f32.mrf.mxu0  ;;  %4172 = vst.msk [vmem:[#allocation2 + $0x18] sm:$0xff] %vm652_vm2, %v14322_v59  ;;  %4173 = vst.msk [vmem:[#allocation2 + $0x20] sm:$0xff] %vm652_vm2, %v14322_v59 }
 0x160   : > { %v1802_v5 = vadd.f32 %v1759_v30, %v11214_v49  ;;  %4175 = vst.msk [vmem:[#allocation2 + $0x30] sm:$0xff] %vm652_vm2, %v14322_v59  ;;  %4176 = vst.msk [vmem:[#allocation2 + $0x38] sm:$0xff] %vm652_vm2, %v14322_v59 }
 0x161   : > { %v8916_v3 = vpop.f32.mrf.mxu1  ;;  %v8885_v53 = vpop.f32.mrf.mxu0  ;;  %4177 = vst.msk [vmem:[#allocation2 + $0x40] sm:$0xff] %vm652_vm2, %v14322_v59  ;;  %4178 = vst.msk [vmem:[#allocation2 + $0x48] sm:$0xff] %vm652_vm2, %v14322_v59 }
 0x162   : > { %v11411_v46 = vadd.f32 %v8916_v3, %v1800_v8  ;;  %v1805_v41 = vadd.f32 %v8885_v53, %v11228_v45  ;;  %4179 = vst.msk [vmem:[#allocation2 + $0x50] sm:$0xff] %vm652_vm2, %v14322_v59  ;;  %4180 = vst.msk [vmem:[#allocation2 + $0x58] sm:$0xff] %vm652_vm2, %v14322_v59 }
 0x163   : > { %v2203_v14 = vpop.f32.mrf.mxu1  ;;  %v11414_v12 = vpop.f32.mrf.mxu0  ;;  %4181 = vst.msk [vmem:[#allocation2 + $0x60] sm:$0xff] %vm652_vm2, %v14322_v59  ;;  %4182 = vst.msk [vmem:[#allocation2 + $0x68] sm:$0xff] %vm652_vm2, %v14322_v59 }
 0x164   : > { %v11416_v47 = vadd.f32 %v2203_v14, %v1798_v54  ;;  %4183 = vst.msk [vmem:[#allocation2 + $0x70] sm:$0xff] %vm652_vm2, %v14322_v59  ;;  %4184 = vst.msk [vmem:[#allocation2 + $0x78] sm:$0xff] %vm652_vm2, %v14322_v59 }
 0x165   : > { %v8917_v52 = vpop.f32.mrf.mxu1  ;;  %v8928_v22 = vpop.f32.mrf.mxu0  ;;  %4185 = vst.msk [vmem:[#allocation2 + $0x80] sm:$0xff] %vm652_vm2, %v14322_v59  ;;  %4186 = vst.msk [vmem:[#allocation2 + $0x88] sm:$0xff] %vm652_vm2, %v14322_v59 }
 0x166   : > { %v11418_v49 = vadd.f32 %v8917_v52, %v1801_v24  ;;  %v11421_v15 = vadd.f32 %v8928_v22, %v11250_v9  ;;  %4187 = vst.msk [vmem:[#allocation2 + $0x90] sm:$0xff] %vm652_vm2, %v14322_v59  ;;  %4188 = vst.msk [vmem:[#allocation2 + $0x98] sm:$0xff] %vm652_vm2, %v14322_v59 }
 0x167   : > { %v11423_v50 = vpop.f32.mrf.mxu1  ;;  %v2321_v8 = vpop.f32.mrf.mxu0  ;;  %4189 = vst.msk [vmem:[#allocation2 + $0xa0] sm:$0xff] %vm652_vm2, %v14322_v59  ;;  %4190 = vst.msk [vmem:[#allocation2 + $0xa8] sm:$0xff] %vm652_vm2, %v14322_v59 }
 0x168   : > { %v11426_v1 = vadd.f32 %v2321_v8, %v11256_v28  ;;  %4191 = vst.msk [vmem:[#allocation2 + $0xb0] sm:$0xff] %vm652_vm2, %v14322_v59  ;;  %4192 = vst.msk [vmem:[#allocation2 + $0xb8] sm:$0xff] %vm652_vm2, %v14322_v59 }
 0x169   : > { %v8920_v45 = vpop.f32.mrf.mxu1  ;;  %v8929_v29 = vpop.f32.mrf.mxu0  ;;  %4193 = vst.msk [vmem:[#allocation2 + $0xc0] sm:$0xff] %vm652_vm2, %v14322_v59  ;;  %4194 = vst.msk [vmem:[#allocation2 + $0xc8] sm:$0xff] %vm652_vm2, %v14322_v59 }
 0x16a   : > { %v11428_v19 = vadd.f32 %v8920_v45, %v1804_v51  ;;  %v11431_v54 = vadd.f32 %v8929_v29, %v11266_v33  ;;  %4195 = vst.msk [vmem:[#allocation2 + $0xd0] sm:$0xff] %vm652_vm2, %v14322_v59  ;;  %4196 = vst.msk [vmem:[#allocation2 + $0xd8] sm:$0xff] %vm652_vm2, %v14322_v59 }
 0x16b   : > { %v2219_v39 = vpop.f32.mrf.mxu1  ;;  %v11433_v40 = vpop.f32.mrf.mxu0  ;;  %4197 = vst.msk [vmem:[#allocation2 + $0xe0] sm:$0xff] %vm652_vm2, %v14322_v59  ;;  %4198 = vst.msk [vmem:[#allocation2 + $0xe8] sm:$0xff] %vm652_vm2, %v14322_v59 }
 0x16c   : > { %v11435_v24 = vadd.f32 %v2219_v39, %v1802_v5  ;;  %4199 = vst.msk [vmem:[#allocation2 + $0xf0] sm:$0xff] %vm652_vm2, %v14322_v59  ;;  %4200 = vst.msk [vmem:[#allocation2 + $0xf8] sm:$0xff] %vm652_vm2, %v14322_v59 }
 0x16d   : > { %v8921_v9 = vpop.f32.mrf.mxu1  ;;  %v8932_v30 = vpop.f32.mrf.mxu0  ;;  %4201 = vst.msk [vmem:[#allocation2 + $0x100] sm:$0xff] %vm652_vm2, %v14322_v59  ;;  %4202 = vst.msk [vmem:[#allocation2 + $0x108] sm:$0xff] %vm652_vm2, %v14322_v59 }
 0x16e   : > { %4203 = vst.msk [vmem:[#allocation2 + $0x110] sm:$0xff] %vm652_vm2, %v14322_v59  ;;  %4204 = vst.msk [vmem:[#allocation2 + $0x118] sm:$0xff] %vm652_vm2, %v14322_v59  ;;  %v11513_v28 = vadd.f32 %v8921_v9, %v1805_v41  ;;  %v11516_v33 = vadd.f32 %v8932_v30, %v11282_v38 }
 0x16f   : > { %4205 = vst.msk [vmem:[#allocation2 + $0x120] sm:$0xff] %vm652_vm2, %v14322_v59  ;;  %4206 = vst.msk [vmem:[#allocation2 + $0x128] sm:$0xff] %vm652_vm2, %v14322_v59  ;;  %v11518_v51 = vpop.f32.mrf.mxu1  ;;  %v2337_v5 = vpop.f32.mrf.mxu0  ;;  %v11551_v59 = vld [vmem:[#allocation2 + $0x8] sm:$0xff] }
 0x170   : > { %v11521_v3 = vadd.f32 %v2337_v5, %v11291_v37 }
 0x171   : > { %v11523_v53 = vpop.f32.mrf.mxu1  ;;  %v8933_v14 = vpop.f32.mrf.mxu0 }
 0x172   : > { %v11526_v52 = vadd.f32 %v8933_v14, %v11302_v17 }
 0x173   : > { %v11528_v22 = vpop.f32.mrf.mxu1  ;;  %v11530_v8 = vpop.f32.mrf.mxu0 }
 0x175   : > { %v11532_v41 = vpop.f32.mrf.mxu1  ;;  %v8936_v38 = vpop.f32.mrf.mxu0 }
 0x176   : > { %v11535_v45 = vadd.f32 %v8936_v38, %v11313_v31  ;;  %v11553_v31 = vld [vmem:[#allocation2 + $0x10] sm:$0xff] }
 0x177   : > { %v11537_v29 = vpop.f32.mrf.mxu1  ;;  %v2353_v37 = vpop.f32.mrf.mxu0 }
 0x178   : > { %14664 = vst [vmem:[#allocation28_spill] sm:$0xff] %v11535_v45  ;;  %v11540_v39 = vadd.f32 %v2353_v37, %v11323_v61  ;;  %v4331_v61 = vpack.c.bf16 %v11553_v31, %v11551_v59 }
 0x179   : > { %v11542_v9 = vpop.f32.mrf.mxu1  ;;  %v8937_v17 = vpop.f32.mrf.mxu0 }
 0x17a   : > { %14665 = vst [vmem:[#allocation86_spill] sm:$0xff] %v11540_v39  ;;  %v11545_v30 = vadd.f32 %v8937_v17, %v11331_v13  ;;  %v9473_v17 = vld [vmem:[%s14135_s5 + $0x8] sm:$0xff]   ;;  %9106 = vmatprep.mubr.msk.bf16.mxu1 %vm652_vm2, %v4331_v61 }
 0x17b   : > { %v11547_v5 = vpop.f32.mrf.mxu1  ;;  %v11549_v14 = vpop.f32.mrf.mxu0  ;;  %9138 = vmatprep.subr.bf16.mxu0 %v9473_v17 }
 0x17c   : > { %14666 = vst [vmem:[#allocation84_spill] sm:$0xff] %v11545_v30  ;;  %9139 = vmatpush3.bf16.msra.mxu0 %v9473_v17 }
 0x17d   : > { %v11555_v38 = vpop.f32.mrf.mxu1  ;;  %v8940_v44 = vpop.f32.mrf.mxu0 }
 0x17e   : > { %v11560_v37 = vadd.f32 %v8940_v44, %v11355_v36 }
 0x17f   : > { %v11562_v23 = vpop.f32.mrf.mxu1  ;;  %v2369_v13 = vpop.f32.mrf.mxu0 }
 0x180   : > { %14667 = vst [vmem:[#allocation85_spill] sm:$0xff] %v11560_v37  ;;  %v11569_v20 = vadd.f32 %v2369_v13, %v11359_v35  ;;  %v9475_v37 = vld [vmem:[%s14135_s5] sm:$0xff]   ;;  %v11588_v13 = vld [vmem:[%s14135_s5 + $0x28] sm:$0xff]  }
 0x181   : > { %v11571_v30 = vpop.f32.mrf.mxu1  ;;  %v8941_v39 = vpop.f32.mrf.mxu0  ;;  %14674 = vst [vmem:[#allocation89_spill] sm:$0xff] %v11588_v13  ;;  %9140 = vmatprep.subr.bf16.mxu0 %v9475_v37  ;;  %9174 = vmatprep.subr.bf16.mxu1 %v11588_v13 }
 0x182   : > { %14668 = vst [vmem:[#allocation9_spill] sm:$0xff] %v11569_v20  ;;  %14669 = vst [vmem:[#allocation8_spill] sm:$0xff] %v11571_v30  ;;  %v11574_v45 = vadd.f32 %v8941_v39, %v11365_v57  ;;  %9141 = vmatpush3.bf16.msra.mxu0 %v9475_v37 }
 0x183   : > { %v11576_v36 = vpop.f32.mrf.mxu1  ;;  %v11578_v44 = vpop.f32.mrf.mxu0 }
 0x184   : > { %14670 = vst [vmem:[#allocation87_spill] sm:$0xff] %v11574_v45  ;;  %14671 = vst [vmem:[#allocation31_spill] sm:$0xff] %v11576_v36 }
 0x185   : > { %14672 = vst [vmem:[#allocation39_spill] sm:$0xff] %v11578_v44  ;;  %v11583_v61 = vpop.f32.mrf.mxu1  ;;  %v8944_v35 = vpop.f32.mrf.mxu0 }
 0x186   : > { %14673 = vst [vmem:[#allocation88_spill] sm:$0xff] %v11583_v61  ;;  %v11591_v57 = vadd.f32 %v8944_v35, %v11376_v27 }
 0x187   : > { %v11593_v39 = vpop.f32.mrf.mxu1  ;;  %v2385_v17 = vpop.f32.mrf.mxu0 }
 0x188   : > { %14675 = vst [vmem:[#allocation90_spill] sm:$0xff] %v11591_v57  ;;  %v11597_v45 = vadd.f32 %v2385_v17, %v11379_v7 }
 0x189   : > { %v11599_v20 = vpop.f32.mrf.mxu1  ;;  %v8945_v61 = vpop.f32.mrf.mxu0 }
 0x18a   : > { %14676 = vst [vmem:[#allocation91_spill] sm:$0xff] %v11597_v45  ;;  %v11602_v44 = vadd.f32 %v8945_v61, %v11384_v56 }
 0x18b   : > { %v11604_v36 = vpop.f32.mrf.mxu1  ;;  %v11606_v30 = vpop.f32.mrf.mxu0 }
 0x18c   : > { %14677 = vst [vmem:[#allocation40_spill] sm:$0xff] %v11602_v44 }
 0x18d   : > { %v11608_v27 = vpop.f32.mrf.mxu1  ;;  %v8948_v37 = vpop.f32.mrf.mxu0 }
 0x18e   : > { %14678 = vst [vmem:[#allocation45_spill] sm:$0xff] %v11608_v27  ;;  %v11611_v35 = vadd.f32 %v8948_v37, %v11393_v11 }
 0x18f   : > { %v11613_v13 = vpop.f32.mrf.mxu1  ;;  %v2401_v7 = vpop.f32.mrf.mxu0 }
 0x190   : > { %14679 = vst [vmem:[#allocation46_spill] sm:$0xff] %v11611_v35  ;;  %v11616_v17 = vadd.f32 %v2401_v7, %v11397_v58 }
 0x191   : > { %v11618_v45 = vpop.f32.mrf.mxu1  ;;  %v8949_v56 = vpop.f32.mrf.mxu0 }
 0x192   : > { %14680 = vst [vmem:[#allocation51_spill] sm:$0xff] %v11616_v17  ;;  %v11621_v61 = vadd.f32 %v8949_v56, %v11401_v4 }
 0x193   : > { %v11623_v44 = vpop.f32.mrf.mxu1  ;;  %v11625_v57 = vpop.f32.mrf.mxu0 }
 0x194   : > { %14681 = vst [vmem:[#allocation52_spill] sm:$0xff] %v11621_v61  ;;  %14682 = vst [vmem:[#allocation92_spill] sm:$0xff] %v11625_v57 }
 0x195   : > { %v11627_v27 = vpop.f32.mrf.mxu1  ;;  %v8952_v11 = vpop.f32.mrf.mxu0 }
 0x196   : > { %14683 = vst [vmem:[#allocation93_spill] sm:$0xff] %v11627_v27  ;;  %v11630_v37 = vadd.f32 %v8952_v11, %v11411_v46 }
 0x197   : > { %v11632_v35 = vpop.f32.mrf.mxu1  ;;  %v2417_v58 = vpop.f32.mrf.mxu0 }
 0x198   : > { %14684 = vst [vmem:[#allocation94_spill] sm:$0xff] %v11630_v37  ;;  %v11635_v7 = vadd.f32 %v2417_v58, %v11416_v47 }
 0x199   : > { %v11637_v17 = vpop.f32.mrf.mxu1  ;;  %v8953_v4 = vpop.f32.mrf.mxu0 }
 0x19a   : > { %14685 = vst [vmem:[#allocation95_spill] sm:$0xff] %v11635_v7  ;;  %14686 = vst [vmem:[#allocation96_spill] sm:$0xff] %v11637_v17  ;;  %v11640_v56 = vadd.f32 %v8953_v4, %v11418_v49 }
 0x19b   : > { %v11642_v61 = vpop.f32.mrf.mxu1  ;;  %v11644_v57 = vpop.f32.mrf.mxu0 }
 0x19c   : > { %14687 = vst [vmem:[#allocation97_spill] sm:$0xff] %v11640_v56  ;;  %14688 = vst [vmem:[#allocation98_spill] sm:$0xff] %v11644_v57 }
 0x19d   : > { %v11646_v27 = vpop.f32.mrf.mxu1  ;;  %v8956_v46 = vpop.f32.mrf.mxu0 }
 0x19e   : > { %14689 = vst [vmem:[#allocation99_spill] sm:$0xff] %v11646_v27  ;;  %v11649_v11 = vadd.f32 %v8956_v46, %v11428_v19 }
 0x19f   : > { %v11651_v37 = vpop.f32.mrf.mxu1  ;;  %v2433_v47 = vpop.f32.mrf.mxu0 }
 0x1a0   : > { %14690 = vst [vmem:[#allocation100_spill] sm:$0xff] %v11649_v11  ;;  %v2476_v58 = vadd.f32 %v2433_v47, %v11435_v24 }
 0x1a1   : > { %v11654_v7 = vpop.f32.mrf.mxu1  ;;  %v8957_v17 = vpop.f32.mrf.mxu0 }
 0x1a2   : > { %14691 = vst [vmem:[#allocation101_spill] sm:$0xff] %v11654_v7  ;;  %v11657_v49 = vadd.f32 %v8957_v17, %v11513_v28 }
 0x1a3   : > { %v11659_v4 = vpop.f32.mrf.mxu1  ;;  %v11661_v56 = vpop.f32.mrf.mxu0 }
 0x1a4   : > { %14692 = vst [vmem:[#allocation102_spill] sm:$0xff] %v11657_v49  ;;  %14693 = vst [vmem:[#allocation103_spill] sm:$0xff] %v11661_v56 }
 0x1a5   : > { %v11663_v27 = vpop.f32.mrf.mxu1  ;;  %v11665_v57 = vpop.f32.mrf.mxu0 }
 0x1a6   : > { %14694 = vst [vmem:[#allocation104_spill] sm:$0xff] %v11665_v57 }
 0x1a7   : > { %v11667_v19 = vpop.f32.mrf.mxu1  ;;  %v11669_v46 = vpop.f32.mrf.mxu0 }
 0x1a8   : > { %14695 = vst [vmem:[#allocation105_spill] sm:$0xff] %v11667_v19  ;;  %14696 = vst [vmem:[#allocation106_spill] sm:$0xff] %v11669_v46  ;;  %v4946_v46 = vmul.f32 %v11551_v59, %v14613_v62 }
 0x1a9   : > { %v11671_v11 = vpop.f32.mrf.mxu1  ;;  %v11673_v24 = vpop.f32.mrf.mxu0 }
 0x1aa   : > { %14697 = vst [vmem:[#allocation107_spill] sm:$0xff] %v11671_v11  ;;  %14698 = vst [vmem:[#allocation108_spill] sm:$0xff] %v11673_v24  ;;  %v4947_v11 = vmul.f32 %v11553_v31, %v14615_v16 }
 0x1ab   : > { %v2873_v47 = vpop.f32.mrf.mxu1  ;;  %v11675_v7 = vpop.f32.mrf.mxu0 }
 0x1ac   : > { %14699 = vst [vmem:[#allocation109_spill] sm:$0xff] %v11675_v7  ;;  %v11677_v28 = vadd.f32 %v2873_v47, %v2476_v58 }
 0x1ad   : > { %v11679_v17 = vpop.f32.mrf.mxu1  ;;  %v11681_v49 = vpop.f32.mrf.mxu0 }
 0x1ae   : > { %14700 = vst [vmem:[#allocation110_spill] sm:$0xff] %v11677_v28  ;;  %14701 = vst [vmem:[#allocation111_spill] sm:$0xff] %v11679_v17  ;;  %v11699_v28 = vpack.c.bf16 %v4947_v11, %v4946_v46 }
 0x1af   : > { %14702 = vst [vmem:[#allocation112_spill] sm:$0xff] %v11681_v49  ;;  %v11683_v56 = vpop.f32.mrf.mxu1  ;;  %v11685_v57 = vpop.f32.mrf.mxu0 }
 0x1b0   : > { %14703 = vst [vmem:[#allocation113_spill] sm:$0xff] %v11683_v56  ;;  %14704 = vst [vmem:[#allocation114_spill] sm:$0xff] %v11685_v57 }
 0x1b1   : > { %v11691_v24 = vpop.f32.mrf.mxu1  ;;  %v11693_v19 = vpop.f32.mrf.mxu0 }
 0x1b2   : > { %14705 = vst [vmem:[#allocation115_spill] sm:$0xff] %v11691_v24  ;;  %14706 = vst [vmem:[#allocation116_spill] sm:$0xff] %v11693_v19 }
 0x1b3   : > { %v11695_v58 = vpop.f32.mrf.mxu1  ;;  %v11697_v47 = vpop.f32.mrf.mxu0 }
 0x1b4   : > { %14707 = vst [vmem:[#allocation117_spill] sm:$0xff] %v11695_v58  ;;  %14708 = vst [vmem:[#allocation118_spill] sm:$0xff] %v11697_v47 }
 0x1b5   : > { %v11701_v49 = vpop.f32.mrf.mxu1  ;;  %v11703_v56 = vpop.f32.mrf.mxu0 }
 0x1b6   : > { %14709 = vst [vmem:[#allocation119_spill] sm:$0xff] %v11701_v49  ;;  %14710 = vst [vmem:[#allocation120_spill] sm:$0xff] %v11703_v56  ;;  %v14728_v49 = vld [vmem:[#allocation3_spill] sm:$0xff] }
 0x1b7   : > { %v11705_v57 = vpop.f32.mrf.mxu1  ;;  %v11707_v62 = vpop.f32.mrf.mxu0 }
 0x1b8   : > { %14711 = vst [vmem:[#allocation121_spill] sm:$0xff] %v11705_v57  ;;  %14712 = vst [vmem:[#allocation122_spill] sm:$0xff] %v11707_v62  ;;  %v4239_v62 = vld [vmem:[#allocation2] sm:$0xff] }
 0x1b9   : > { %v11709_v17 = vpop.f32.mrf.mxu1  ;;  %v11711_v16 = vpop.f32.mrf.mxu0 }
 0x1ba   : > { %14713 = vst [vmem:[#allocation123_spill] sm:$0xff] %v11709_v17  ;;  %14714 = vst [vmem:[#allocation124_spill] sm:$0xff] %v11711_v16 }
 0x1bb   : > { %v11713_v24 = vpop.f32.mrf.mxu1  ;;  %v11715_v19 = vpop.f32.mrf.mxu0 }
 0x1bc   : > { %14715 = vst [vmem:[#allocation125_spill] sm:$0xff] %v11713_v24  ;;  %14716 = vst [vmem:[#allocation126_spill] sm:$0xff] %v11715_v19 }
 0x1bd   : > { %v11717_v58 = vpop.f32.mrf.mxu1  ;;  %v11719_v11 = vpop.f32.mrf.mxu0 }
 0x1be   : > { %14717 = vst [vmem:[#allocation127_spill] sm:$0xff] %v11717_v58  ;;  %14718 = vst [vmem:[#allocation128_spill] sm:$0xff] %v11719_v11  ;;  %v14727_v58 = vld [vmem:[#allocation5_spill] sm:$0xff] }
 0x1bf   : > { %v11721_v46 = vpop.f32.mrf.mxu1  ;;  %v11723_v47 = vpop.f32.mrf.mxu0  ;;  %v4278_v11 = vmul.f32 %v11551_v59, %v14727_v58  ;;  %v1193_v58 = vadd.f32 %v11154_v26, %v11089_v10  ;;  %v14739_v10 = vld [vmem:[#allocation12_spill] sm:$0xff] }
 0x1c0   : > { %14719 = vst [vmem:[#allocation129_spill] sm:$0xff] %v11721_v46  ;;  %14720 = vst [vmem:[#allocation130_spill] sm:$0xff] %v11723_v47  ;;  %v4277_v46 = vmul.f32 %v4239_v62, %v14728_v49  ;;  %v1177_v62 = vadd.f32 %v11123_v34, %v11050_v2  ;;  %v14738_v2 = vld [vmem:[#allocation13_spill] sm:$0xff]  ;;  %v2239_v26 = vadd.f32 %v11305_v63, %v14739_v10 }
 0x1c1   : > { %v11725_v56 = vpop.f32.mrf.mxu1  ;;  %v11727_v57 = vpop.f32.mrf.mxu0  ;;  %v2235_v34 = vadd.f32 %v14738_v2, %v11204_v6 }
 0x1c2   : > { %14721 = vst [vmem:[#allocation131_spill] sm:$0xff] %v11725_v56  ;;  %14722 = vst [vmem:[#allocation132_spill] sm:$0xff] %v11727_v57  ;;  %v11747_v57 = vld [vmem:[%s14135_s5 + $0x38] sm:$0xff]  }
 0x1c3   : > { %v11729_v17 = vpop.f32.mrf.mxu1  ;;  %v11731_v16 = vpop.f32.mrf.mxu0  ;;  %14731 = vst [vmem:[#allocation139_spill] sm:$0xff] %v11747_v57  ;;  %9210 = vmatprep.subr.bf16.mxu0 %v11747_v57  ;;  %v1225_v57 = vadd.f32 %v11233_v43, %v11161_v0  ;;  %v14741_v0 = vld [vmem:[#allocation21_spill] sm:$0xff] }
 0x1c4   : > { %14723 = vst [vmem:[#allocation133_spill] sm:$0xff] %v11729_v17  ;;  %14724 = vst [vmem:[#allocation134_spill] sm:$0xff] %v11731_v16  ;;  %v2247_v43 = vadd.f32 %v11367_v18, %v14741_v0  ;;  %v14755_v0 = vld [vmem:[#allocation87_spill] sm:$0xff] }
 0x1c5   : > { %v11733_v24 = vpop.f32.mrf.mxu1  ;;  %v11735_v19 = vpop.f32.mrf.mxu0  ;;  %v1803_v6 = vadd.f32 %v11414_v12, %v1225_v57  ;;  %v2891_v12 = vadd.f32 %v11532_v41, %v11431_v54 }
 0x1c6   : > { %14725 = vst [vmem:[#allocation135_spill] sm:$0xff] %v11733_v24  ;;  %14726 = vst [vmem:[#allocation136_spill] sm:$0xff] %v11735_v19  ;;  %v4310_v24 = vpack.c.bf16 %v4278_v11, %v4277_v46 }
 0x1c7   : > { %v11740_v7 = vpop.f32.mrf.mxu1  ;;  %v11742_v47 = vpop.f32.mrf.mxu0  ;;  %v2263_v18 = vadd.f32 %v11518_v51, %v1803_v6  ;;  %v14744_v51 = vld [vmem:[#allocation6_spill] sm:$0xff] }
 0x1c8   : > { %14729 = vst [vmem:[#allocation137_spill] sm:$0xff] %v11740_v7  ;;  %14730 = vst [vmem:[#allocation138_spill] sm:$0xff] %v11742_v47  ;;  %v14735_v47 = vld [vmem:[#allocation10_spill] sm:$0xff]  ;;  %v4574_v11 = vshrl.u32 %v4310_v24, 16  ;;  %v4577_v46 = vshll.u32 %v4310_v24, 16 }
 0x1c9   : > { %v11749_v17 = vpop.f32.mrf.mxu1  ;;  %v11751_v16 = vpop.f32.mrf.mxu0  ;;  %v1209_v7 = vadd.f32 %v11192_v55, %v14735_v47  ;;  %v14740_v55 = vld [vmem:[#allocation18_spill] sm:$0xff] }
 0x1ca   : > { %14732 = vst [vmem:[#allocation140_spill] sm:$0xff] %v11749_v17  ;;  %14733 = vst [vmem:[#allocation141_spill] sm:$0xff] %v11751_v16  ;;  %v1795_v16 = vadd.f32 %v11381_v60, %v1193_v58  ;;  %v2243_v47 = vadd.f32 %v11337_v42, %v14740_v55  ;;  %v2449_v58 = vadd.f32 %v11433_v40, %v2235_v34  ;;  %v14754_v55 = vld [vmem:[#allocation9_spill] sm:$0xff] }
 0x1cb   : > { %v11754_v19 = vpop.f32.mrf.mxu1  ;;  %v11756_v59 = vpop.f32.mrf.mxu0  ;;  %v2894_v40 = vadd.f32 %v11542_v9, %v11516_v33  ;;  %v14747_v33 = vld [vmem:[#allocation8_spill] sm:$0xff]  ;;  %v14749_v9 = vld [vmem:[#allocation31_spill] sm:$0xff] }
 0x1cc   : > { %14734 = vst [vmem:[#allocation142_spill] sm:$0xff] %v11756_v59  ;;  %v1791_v59 = vadd.f32 %v11362_v32, %v1177_v62  ;;  %v2255_v60 = vadd.f32 %v11404_v21, %v1795_v16  ;;  %v11796_v62 = vrot.slane %v4577_v46, 4  ;;  %v2888_v16 = vadd.f32 %v11528_v22, %v11426_v1 }
 0x1cd   : > { %v11764_v56 = vpop.f32.mrf.mxu1  ;;  %v11766_v17 = vpop.f32.mrf.mxu0  ;;  %v2453_v21 = vadd.f32 %v11530_v8, %v2239_v26  ;;  %v2892_v1 = vadd.f32 %v11547_v5, %v11521_v3  ;;  %v2457_v54 = vadd.f32 %v11549_v14, %v2243_v47  ;;  %v14746_v8 = vld [vmem:[#allocation28_spill] sm:$0xff]  ;;  %v2900_v47 = vadd.f32 %v11604_v36, %v14754_v55  ;;  %v14760_v36 = vld [vmem:[#allocation93_spill] sm:$0xff] }
 0x1ce   : > { %14736 = vst [vmem:[#allocation10_spill] sm:$0xff] %v11764_v56  ;;  %14737 = vst [vmem:[#allocation143_spill] sm:$0xff] %v11766_v17  ;;  %v1799_v17 = vadd.f32 %v11399_v25, %v1209_v7  ;;  %v2251_v32 = vadd.f32 %v11387_v48, %v1791_v59  ;;  %v11794_v7 = vrot.slane %v4574_v11, 3  ;;  %v2890_v48 = vadd.f32 %v11523_v53, %v11421_v15  ;;  %v14750_v11 = vld [vmem:[#allocation39_spill] sm:$0xff]  ;;  %v14752_v5 = vld [vmem:[#allocation88_spill] sm:$0xff] }
 0x1cf   : > { %v11779_v56 = vpop.f32.mrf.mxu1  ;;  %v11781_v24 = vpop.f32.mrf.mxu0  ;;  %14743 = vst [vmem:[#allocation12_spill] sm:$0xff] %v11796_v62  ;;  %v11815_v15 = vmul.f32 %v11553_v31, %v14744_v51  ;;  %v2895_v53 = vadd.f32 %v11555_v38, %v11526_v52  ;;  %v2893_v22 = vadd.f32 %v11562_v23, %v2453_v21  ;;  %v2898_v41 = vadd.f32 %v14747_v33, %v14746_v8  ;;  %v14751_v52 = vld [vmem:[#allocation84_spill] sm:$0xff]  ;;  %v14753_v38 = vld [vmem:[#allocation85_spill] sm:$0xff]  ;;  %v14757_v21 = vld [vmem:[#allocation90_spill] sm:$0xff] }
 0x1d0   : > { %v2259_v63 = vadd.f32 %v11423_v50, %v1799_v17  ;;  %14742 = vst [vmem:[#allocation13_spill] sm:$0xff] %v11794_v7  ;;  %v2889_v50 = vadd.f32 %v11537_v29, %v2449_v58  ;;  %v14748_v29 = vld [vmem:[#allocation86_spill] sm:$0xff]  ;;  %v2461_v46 = vadd.f32 %v14750_v11, %v2247_v43  ;;  %v2899_v14 = vadd.f32 %v14752_v5, %v14751_v52  ;;  %v14756_v43 = vld [vmem:[#allocation45_spill] sm:$0xff]  ;;  %v14764_v52 = vld [vmem:[#allocation51_spill] sm:$0xff] }
 0x1d1   : > { %v11790_v42 = vpop.f32.mrf.mxu1  ;;  %v11792_v25 = vpop.f32.mrf.mxu0  ;;  %14745 = vst [vmem:[#allocation18_spill] sm:$0xff] %v11815_v15  ;;  %v2896_v59 = vadd.f32 %v14749_v9, %v14748_v29  ;;  %v2897_v23 = vadd.f32 %v11593_v39, %v2457_v54  ;;  %v2902_v10 = vadd.f32 %v11599_v20, %v14753_v38  ;;  %v2465_v26 = vadd.f32 %v11606_v30, %v2251_v32  ;;  %v14758_v20 = vld [vmem:[#allocation91_spill] sm:$0xff]  ;;  %v14759_v32 = vld [vmem:[#allocation40_spill] sm:$0xff]  ;;  %v14762_v11 = vld [vmem:[#allocation46_spill] sm:$0xff] }
 0x1d2   : > { %v2903_v6 = vadd.f32 %v14756_v43, %v14755_v0  ;;  %v11845_v58 = vadd.f32 %v11613_v13, %v2461_v46  ;;  %v11849_v8 = vadd.f32 %v11618_v45, %v14757_v21  ;;  %v11857_v30 = vadd.f32 %v11623_v44, %v14758_v20  ;;  %v14761_v29 = vld [vmem:[#allocation92_spill] sm:$0xff]  ;;  %v14765_v38 = vld [vmem:[#allocation98_spill] sm:$0xff]  ;;  %v14767_v21 = vld [vmem:[#allocation99_spill] sm:$0xff] }
 0x1d3   : > { %v11809_v57 = vpop.f32.mrf.mxu1  ;;  %v11811_v17 = vpop.f32.mrf.mxu0  ;;  %v11861_v54 = vadd.f32 %v14760_v36, %v14759_v32  ;;  %v2469_v9 = vadd.f32 %v14761_v29, %v2255_v60  ;;  %v11865_v13 = vadd.f32 %v11632_v35, %v2465_v26  ;;  %v14763_v45 = vld [vmem:[#allocation96_spill] sm:$0xff]  ;;  %v11873_v5 = vadd.f32 %v11642_v61, %v14764_v52  ;;  %v14768_v20 = vld [vmem:[#allocation94_spill] sm:$0xff]  ;;  %v14769_v32 = vld [vmem:[#allocation101_spill] sm:$0xff] }
 0x1d4   : > { %v11869_v46 = vadd.f32 %v14763_v45, %v14762_v11  ;;  %v2473_v44 = vadd.f32 %v14765_v38, %v2259_v63  ;;  %v5004_v43 = vshll.u32 %v11699_v28, 16  ;;  %v14766_v60 = vld [vmem:[#allocation52_spill] sm:$0xff]  ;;  %v11890_v36 = vadd.f32 %v14769_v32, %v14768_v20  ;;  %v14770_v61 = vld [vmem:[#allocation95_spill] sm:$0xff]  ;;  %v14771_v29 = vld [vmem:[#allocation97_spill] sm:$0xff] }
 0x1d5   : > { %v11828_v2 = vpop.f32.mrf.mxu1  ;;  %v11830_v34 = vpop.f32.mrf.mxu0  ;;  %v11883_v35 = vadd.f32 %v14767_v21, %v14766_v60  ;;  %v11886_v26 = vadd.f32 %v11651_v37, %v2469_v9  ;;  %v11894_v63 = vadd.f32 %v11659_v4, %v14770_v61  ;;  %v11898_v11 = vadd.f32 %v11663_v27, %v14771_v29  ;;  %v14772_v45 = vld [vmem:[#allocation103_spill] sm:$0xff]  ;;  %v14773_v38 = vld [vmem:[#allocation105_spill] sm:$0xff]  ;;  %v14775_v21 = vld [vmem:[#allocation104_spill] sm:$0xff] }
 0x1d6   : > { %v2477_v52 = vadd.f32 %v14772_v45, %v2263_v18  ;;  %v11902_v60 = vadd.f32 %v14773_v38, %v2473_v44  ;;  %v3350_v37 = vadd.f32 %v14775_v21, %v2890_v48  ;;  %v14777_v20 = vld [vmem:[#allocation100_spill] sm:$0xff]  ;;  %v14778_v32 = vld [vmem:[#allocation107_spill] sm:$0xff]  ;;  %v14780_v4 = vld [vmem:[#allocation106_spill] sm:$0xff] }
 0x1d7   : > { %v11851_v33 = vpop.f32.mrf.mxu1  ;;  %v11853_v39 = vpop.f32.mrf.mxu0  ;;  %v11911_v51 = vadd.f32 %v14778_v32, %v14777_v20  ;;  %v3348_v61 = vadd.f32 %v14780_v4, %v2888_v16  ;;  %v14781_v7 = vld [vmem:[#allocation108_spill] sm:$0xff]  ;;  %v14782_v29 = vld [vmem:[#allocation109_spill] sm:$0xff]  ;;  %v14783_v18 = vld [vmem:[#allocation102_spill] sm:$0xff]  ;;  %v5006_v20 = vrot.slane %v5004_v43, 1 }
 0x1d8   : > { %14774 = vst [vmem:[#allocation21_spill] sm:$0xff] %v11902_v60  ;;  %v3351_v27 = vadd.f32 %v14781_v7, %v2891_v12  ;;  %v3349_v62 = vadd.f32 %v14782_v29, %v2889_v50  ;;  %v14784_v45 = vld [vmem:[#allocation111_spill] sm:$0xff]  ;;  %v14786_v38 = vld [vmem:[#allocation112_spill] sm:$0xff]  ;;  %v14789_v32 = vld [vmem:[#allocation113_spill] sm:$0xff] }
 0x1d9   : > { %v11876_v55 = vpop.f32.mrf.mxu1  ;;  %v11878_v0 = vpop.f32.mrf.mxu0  ;;  %14779 = vst [vmem:[#allocation8_spill] sm:$0xff] %v11911_v51  ;;  %v11918_v44 = vadd.f32 %v14784_v45, %v14783_v18  ;;  %v3354_v48 = vadd.f32 %v14786_v38, %v2894_v40  ;;  %v11927_v51 = vadd.f32 %v14789_v32, %v2477_v52  ;;  %v14790_v16 = vld [vmem:[#allocation115_spill] sm:$0xff]  ;;  %v14791_v12 = vld [vmem:[#allocation114_spill] sm:$0xff]  ;;  %v14792_v4 = vld [vmem:[#allocation116_spill] sm:$0xff] }
 0x1da   : > { %v3564_v7 = vadd.f32 %v14790_v16, %v3350_v37  ;;  %v3352_v50 = vadd.f32 %v14791_v12, %v2892_v1  ;;  %v3355_v29 = vadd.f32 %v14792_v4, %v2895_v53  ;;  %v14793_v18 = vld [vmem:[#allocation117_spill] sm:$0xff]  ;;  %v14795_v38 = vld [vmem:[#allocation118_spill] sm:$0xff]  ;;  %v14798_v37 = vld [vmem:[#allocation123_spill] sm:$0xff] }
 0x1db   : > { %v11905_v9 = vpop.f32.mrf.mxu1  ;;  %v11907_v3 = vpop.f32.mrf.mxu0  ;;  %14785 = vst [vmem:[#allocation86_spill] sm:$0xff] %v11918_v44  ;;  %v3562_v45 = vadd.f32 %v14793_v18, %v3348_v61  ;;  %v14794_v44 = vld [vmem:[#allocation119_spill] sm:$0xff]  ;;  %v14797_v52 = vld [vmem:[#allocation121_spill] sm:$0xff]  ;;  %v11944_v16 = vadd.f32 %v14798_v37, %v3354_v48  ;;  %v14799_v1 = vld [vmem:[#allocation122_spill] sm:$0xff] }
 0x1dc   : > { %14776 = vst [vmem:[#allocation28_spill] sm:$0xff] %v11907_v3  ;;  %v5002_v3 = vshrl.u32 %v11699_v28, 16  ;;  %v11934_v40 = vadd.f32 %v14794_v44, %v3351_v27  ;;  %v11941_v32 = vadd.f32 %v14797_v52, %v3349_v62  ;;  %v3356_v53 = vadd.f32 %v14799_v1, %v2896_v59  ;;  %v14800_v12 = vld [vmem:[#allocation110_spill] sm:$0xff]  ;;  %v14801_v27 = vld [vmem:[#allocation125_spill] sm:$0xff]  ;;  %v14804_v48 = vld [vmem:[#allocation127_spill] sm:$0xff] }
 0x1dd   : > { %v11921_v21 = vpop.f32.mrf.mxu1  ;;  %v11923_v15 = vpop.f32.mrf.mxu0  ;;  %v11951_v44 = vadd.f32 %v14801_v27, %v3352_v50  ;;  %v11962_v62 = vmul.f32 %v11553_v31, %v14728_v49  ;;  %v11965_v59 = vadd.f32 %v14804_v48, %v3355_v29  ;;  %v14806_v52 = vld [vmem:[#allocation129_spill] sm:$0xff]  ;;  %v14807_v37 = vld [vmem:[#allocation128_spill] sm:$0xff]  ;;  %v14808_v1 = vld [vmem:[#allocation131_spill] sm:$0xff] }
 0x1de   : > { %14787 = vst [vmem:[#allocation31_spill] sm:$0xff] %v11921_v21  ;;  %14788 = vst [vmem:[#allocation39_spill] sm:$0xff] %v11923_v15  ;;  %v3353_v21 = vadd.f32 %v14795_v38, %v2893_v22  ;;  %v14796_v15 = vld [vmem:[#allocation120_spill] sm:$0xff]  ;;  %v11958_v18 = vor.u32 %v5006_v20, %v5002_v3  ;;  %v14805_v38 = vld [vmem:[#allocation126_spill] sm:$0xff] }
 0x1df   : > { %v3358_v60 = vadd.f32 %v14796_v15, %v2898_v41  ;;  %v11938_v28 = vpop.f32.mrf.mxu1  ;;  %v3333_v43 = vpop.f32.mrf.mxu0  ;;  %v14802_v22 = vld [vmem:[#allocation124_spill] sm:$0xff]  ;;  %v14809_v27 = vld [vmem:[#allocation130_spill] sm:$0xff]  ;;  %v14810_v20 = vld [vmem:[#allocation133_spill] sm:$0xff] }
 0x1e0   : > { %v11948_v61 = vadd.f32 %v3333_v43, %v14800_v12  ;;  %v3359_v4 = vadd.f32 %v14802_v22, %v2899_v14  ;;  %14803 = vst [vmem:[#allocation84_spill] sm:$0xff] %v11958_v18  ;;  %v3357_v43 = vadd.f32 %v14805_v38, %v2897_v23  ;;  %v11969_v50 = vadd.f32 %v14806_v52, %v3353_v21  ;;  %v14811_v31 = vld [vmem:[#allocation132_spill] sm:$0xff]  ;;  %v14812_v48 = vld [vmem:[#allocation135_spill] sm:$0xff]  ;;  %v14813_v21 = vld [vmem:[#allocation134_spill] sm:$0xff] }
 0x1e1   : > { %v11954_v15 = vpop.f32.mrf.mxu1  ;;  %v11956_v41 = vpop.f32.mrf.mxu0  ;;  %v3362_v14 = vadd.f32 %v14807_v37, %v2902_v10  ;;  %v11973_v12 = vadd.f32 %v14808_v1, %v3358_v60  ;;  %v3360_v3 = vadd.f32 %v14809_v27, %v2900_v47  ;;  %v11977_v22 = vadd.f32 %v14810_v20, %v3356_v53  ;;  %v14814_v10 = vld [vmem:[#allocation137_spill] sm:$0xff]  ;;  %v14815_v60 = vld [vmem:[#allocation136_spill] sm:$0xff] }
 0x1e2   : > { %v3363_v49 = vadd.f32 %v14811_v31, %v2903_v6  ;;  %v11983_v23 = vadd.f32 %v14812_v48, %v3359_v4  ;;  %v3361_v38 = vadd.f32 %v14813_v21, %v11845_v58  ;;  %v11988_v52 = vadd.f32 %v14814_v10, %v3357_v43  ;;  %v14816_v37 = vld [vmem:[#allocation140_spill] sm:$0xff]  ;;  %v14817_v6 = vld [vmem:[#allocation138_spill] sm:$0xff]  ;;  %v14818_v4 = vld [vmem:[#allocation141_spill] sm:$0xff] }
 0x1e3   : > { %v3531_v18 = vpop.f32.mrf.mxu1  ;;  %v11980_v29 = vpop.f32.mrf.mxu0  ;;  %v3366_v47 = vadd.f32 %v14815_v60, %v11849_v8  ;;  %v11993_v53 = vadd.f32 %v14816_v37, %v3362_v14  ;;  %v3364_v1 = vadd.f32 %v14817_v6, %v11857_v30  ;;  %v11998_v27 = vadd.f32 %v11754_v19, %v3360_v3  ;;  %v12005_v43 = vld [vmem:[%s14134_s4] ss:$0 sm:$0xff]  ;;  %v14819_v8 = vld [vmem:[#allocation10_spill] sm:$0xff]  ;;  %v14821_v30 = vld [vmem:[#allocation143_spill] sm:$0xff] }
 0x1e4   : > { %v3367_v20 = vadd.f32 %v14818_v4, %v11861_v54  ;;  %v12008_v48 = vadd.f32 %v14819_v8, %v3363_v49  ;;  %v14820_v14 = vld [vmem:[#allocation142_spill] sm:$0xff]  ;;  %v3370_v19 = vadd.f32 %v14821_v30, %v11869_v46  ;;  %v12015_v10 = vadd.f32 %v11779_v56, %v3361_v38 }
 0x1e5   : > { %v9061_v31 = vpop.f32.mrf.mxu1  ;;  %v9072_v58 = vpop.f32.mrf.mxu0  ;;  %v3365_v21 = vadd.f32 %v14820_v14, %v11865_v13  ;;  %v12018_v54 = vadd.f32 %v11790_v42, %v3366_v47  ;;  %v3368_v60 = vadd.f32 %v11781_v24, %v11873_v5  ;;  %v3371_v49 = vadd.f32 %v11792_v25, %v11883_v35  ;;  %v14826_v8 = vld [vmem:[#allocation39_spill] sm:$0xff]  ;;  %v14827_v30 = vld [vmem:[#allocation86_spill] sm:$0xff] }
 0x1e6   : > { %v4004_v3 = vadd.f32 %v9072_v58, %v3564_v7  ;;  %v12025_v13 = vadd.f32 %v11809_v57, %v3364_v1  ;;  %v3369_v46 = vadd.f32 %v11811_v17, %v11886_v26  ;;  %v12031_v42 = vadd.f32 %v11828_v2, %v3367_v20  ;;  %v14824_v1 = vld [vmem:[#allocation31_spill] sm:$0xff] }
 0x1e7   : > { %v3534_v37 = vpop.f32.mrf.mxu1  ;;  %v3875_v6 = vpop.f32.mrf.mxu0  ;;  %v12034_v38 = vadd.f32 %v11851_v33, %v3365_v21  ;;  %v3374_v24 = vadd.f32 %v11830_v34, %v11890_v36  ;;  %v3372_v25 = vadd.f32 %v11853_v39, %v11894_v63  ;;  %v12041_v35 = vadd.f32 %v11876_v55, %v3370_v19  ;;  %v14823_v34 = vld [vmem:[#allocation28_spill] sm:$0xff] }
 0x1e8   : > { %v4043_v56 = vadd.f32 %v12005_v43, %v4004_v3  ;;  %v4002_v7 = vadd.f32 %v3875_v6, %v3562_v45  ;;  %v12045_v2 = vadd.f32 %v11905_v9, %v3368_v60  ;;  %v3375_v33 = vadd.f32 %v11878_v0, %v11898_v11  ;;  %v14822_v45 = vld [vmem:[#allocation21_spill] sm:$0xff]  ;;  %v14825_v9 = vld [vmem:[#allocation8_spill] sm:$0xff] }
 0x1e9   : > { %v9064_v57 = vpop.f32.mrf.mxu1  ;;  %v9073_v5 = vpop.f32.mrf.mxu0  ;;  %v3373_v36 = vadd.f32 %v14823_v34, %v14822_v45  ;;  %v12053_v55 = vadd.f32 %v14824_v1, %v3371_v49  ;;  %v12056_v58 = vadd.f32 %v11938_v28, %v3369_v46  ;;  %v3378_v14 = vadd.f32 %v14826_v8, %v14825_v9  ;;  %v14829_v1 = vld [vmem:[#allocation62_spill] sm:$0xff] }
 0x1ea   : > { %vm4075_vm5 = vcmp.gt.f32.partialorder %v4043_v56, 0.0  ;;  %v4107_v17 = vmul.f32 0.01, %v4043_v56  ;;  %v4041_v26 = vadd.f32 %v12005_v43, %v4002_v7  ;;  %v4005_v39 = vadd.f32 %v9073_v5, %v11934_v40 }
 0x1eb   : > { %v3547_v47 = vpop.f32.mrf.mxu1  ;;  %v3878_v63 = vpop.f32.mrf.mxu0  ;;  %v12064_v21 = vadd.f32 %v11954_v15, %v3374_v24  ;;  %v3379_v19 = vadd.f32 %v11956_v41, %v14827_v30  ;;  %v12069_v49 = vadd.f32 %v3531_v18, %v3372_v25  ;;  %v3377_v15 = vadd.f32 %v11980_v29, %v11927_v51  ;;  %v14831_v30 = vld [vmem:[#allocation5_spill] sm:$0xff] }
 0x1ec   : > { %v4139_v4 = vsel %vm4075_vm5, %v4043_v56, %v4107_v17  ;;  %vm4073_vm6 = vcmp.gt.f32.partialorder %v4041_v26, 0.0  ;;  %v4105_v20 = vmul.f32 0.01, %v4041_v26  ;;  %v4044_v0 = vadd.f32 %v12005_v43, %v4005_v39 }
 0x1ed   : > { %4209 = vst.msk [vmem:[#allocation2 + $0x28] sm:$0xff] %vm652_vm2, %v4139_v4  ;;  %v4003_v11 = vadd.f32 %v3878_v63, %v11941_v32  ;;  %v9076_v40 = vpop.f32.mrf.mxu0  ;;  %v9065_v60 = vpop.f32.mrf.mxu1  ;;  %v12073_v56 = vadd.f32 %v9061_v31, %v3375_v33  ;;  %v12079_v24 = vadd.f32 %v3534_v37, %v3373_v36  ;;  %v12084_v51 = vadd.f32 %v9064_v57, %v3378_v14  ;;  %v14828_v57 = vld [vmem:[#allocation15_spill] sm:$0xff] }
 0x1ee   : > { %v4137_v3 = vsel %vm4073_vm6, %v4041_v26, %v4105_v20  ;;  %v4008_v28 = vadd.f32 %v9076_v40, %v11944_v16  ;;  %vm4076_vm7 = vcmp.gt.f32.partialorder %v4044_v0, 0.0  ;;  %v4108_v6 = vmul.f32 0.01, %v4044_v0  ;;  %v14830_v40 = vld [vmem:[#allocation11_spill] sm:$0xff] }
 0x1ef   : > { %4207 = vst.msk [vmem:[#allocation2 + $0x18] sm:$0xff] %vm652_vm2, %v4137_v3  ;;  %v4042_v46 = vadd.f32 %v12005_v43, %v4003_v11  ;;  %v3891_v32 = vpop.f32.mrf.mxu0  ;;  %v3550_v5 = vpop.f32.mrf.mxu1  ;;  %v12087_v29 = vadd.f32 %v3547_v47, %v11948_v61 }
 0x1f0   : > { %v4047_v41 = vadd.f32 %v12005_v43, %v4008_v28  ;;  %v4006_v7 = vadd.f32 %v3891_v32, %v11951_v44  ;;  %v4140_v16 = vsel %vm4076_vm7, %v4044_v0, %v4108_v6  ;;  %v12089_v44 = vadd.f32 %v9065_v60, %v3379_v19 }
 0x1f1   : > { %vm4074_vm8 = vcmp.gt.f32.partialorder %v4042_v46, 0.0  ;;  %v4106_v18 = vmul.f32 0.01, %v4042_v46  ;;  %v9077_v25 = vpop.f32.mrf.mxu0  ;;  %4210 = vst.msk [vmem:[#allocation2 + $0x30] sm:$0xff] %vm652_vm2, %v4140_v16  ;;  %v12093_v63 = vadd.f32 %v3550_v5, %v3377_v15 }
 0x1f2   : > { %vm4079_vm9 = vcmp.gt.f32.partialorder %v4047_v41, 0.0  ;;  %v4111_v17 = vmul.f32 0.01, %v4047_v41  ;;  %v4045_v31 = vadd.f32 %v12005_v43, %v4006_v7  ;;  %v4009_v26 = vadd.f32 %v9077_v25, %v11965_v59  ;;  %v14833_v7 = vld [vmem:[#allocation18_spill] sm:$0xff] }
 0x1f3   : > { %v4138_v37 = vsel %vm4074_vm8, %v4042_v46, %v4106_v18  ;;  %v3894_v33 = vpop.f32.mrf.mxu0  ;;  %v14832_v46 = vld [vmem:[#allocation57_spill] sm:$0xff] }
 0x1f4   : > { %4208 = vst.msk [vmem:[#allocation2 + $0x20] sm:$0xff] %vm652_vm2, %v4138_v37  ;;  %v4143_v45 = vsel %vm4079_vm9, %v4047_v41, %v4111_v17  ;;  %vm4077_vm10 = vcmp.gt.f32.partialorder %v4045_v31, 0.0  ;;  %v4109_v34 = vmul.f32 0.01, %v4045_v31  ;;  %v4048_v36 = vadd.f32 %v12005_v43, %v4009_v26  ;;  %v4244_v39 = vld [vmem:[#allocation2 + $0x28] sm:$0xff] }
 0x1f5   : > { %4213 = vst.msk [vmem:[#allocation2 + $0x48] sm:$0xff] %vm652_vm2, %v4143_v45  ;;  %v4007_v59 = vadd.f32 %v3894_v33, %v11969_v50  ;;  %v9080_v61 = vpop.f32.mrf.mxu0  ;;  %v12098_v47 = vmul.f32 %v4244_v39, %v14828_v57  ;;  %v12101_v4 = vmul.f32 %v4244_v39, %v14829_v1  ;;  %v12109_v3 = vmul.f32 %v4244_v39, %v14830_v40 }
 0x1f6   : > { %v4141_v20 = vsel %vm4077_vm10, %v4045_v31, %v4109_v34  ;;  %vm4080_vm11 = vcmp.gt.f32.partialorder %v4048_v36, 0.0  ;;  %v4112_v9 = vmul.f32 0.01, %v4048_v36  ;;  %v4012_v8 = vadd.f32 %v9080_v61, %v11973_v12  ;;  %v4242_v14 = vld [vmem:[#allocation2 + $0x18] sm:$0xff] }
 0x1f7   : > { %4211 = vst.msk [vmem:[#allocation2 + $0x38] sm:$0xff] %vm652_vm2, %v4141_v20  ;;  %v4046_v0 = vadd.f32 %v12005_v43, %v4007_v59  ;;  %v3907_v11 = vpop.f32.mrf.mxu0  ;;  %v4280_v50 = vmul.f32 %v4242_v14, %v14830_v40  ;;  %v5387_v19 = vmul.f32 %v4242_v14, %v14831_v30  ;;  %v12114_v12 = vmul.f32 %v4242_v14, %v14832_v46 }
 0x1f8   : > { %v4144_v60 = vsel %vm4080_vm11, %v4048_v36, %v4112_v9  ;;  %v4051_v28 = vadd.f32 %v12005_v43, %v4012_v8  ;;  %v4010_v6 = vadd.f32 %v3907_v11, %v11977_v22  ;;  %v12117_v41 = vld [vmem:[#allocation2 + $0x30] sm:$0xff]  ;;  %v9476_v9 = vld [vmem:[%s14135_s5 + $0x20] sm:$0xff]  }
 0x1f9   : > { %4214 = vst.msk [vmem:[#allocation2 + $0x50] sm:$0xff] %vm652_vm2, %v4144_v60  ;;  %vm4078_vm12 = vcmp.gt.f32.partialorder %v4046_v0, 0.0  ;;  %v4110_v32 = vmul.f32 0.01, %v4046_v0  ;;  %v9081_v15 = vpop.f32.mrf.mxu0  ;;  %v4311_v16 = vpack.c.bf16 %v4280_v50, %v14833_v7  ;;  %v12121_v18 = vpack.c.bf16 %v5387_v19, %v11962_v62  ;;  %v14836_v19 = vld [vmem:[#allocation14_spill] sm:$0xff] }
 0x1fa   : > { %vm4083_vm13 = vcmp.gt.f32.partialorder %v4051_v28, 0.0  ;;  %v4115_v25 = vmul.f32 0.01, %v4051_v28  ;;  %v4049_v5 = vadd.f32 %v12005_v43, %v4010_v6  ;;  %v4013_v22 = vadd.f32 %v9081_v15, %v11983_v23 }
 0x1fb   : > { %v4142_v17 = vsel %vm4078_vm12, %v4046_v0, %v4110_v32  ;;  %v3910_v31 = vpop.f32.mrf.mxu0  ;;  %v12125_v26 = vld [vmem:[#allocation2 + $0x20] sm:$0xff]  ;;  %v12128_v37 = vpack.c.bf16 %v12117_v41, %v4244_v39  ;;  %v4582_v33 = vshrl.u32 %v4311_v16, 16  ;;  %v4585_v45 = vshll.u32 %v4311_v16, 16 }
 0x1fc   : > { %4212 = vst.msk [vmem:[#allocation2 + $0x40] sm:$0xff] %vm652_vm2, %v4142_v17  ;;  %v4147_v34 = vsel %vm4083_vm13, %v4051_v28, %v4115_v25  ;;  %vm4081_vm14 = vcmp.gt.f32.partialorder %v4049_v5, 0.0  ;;  %v4113_v62 = vmul.f32 0.01, %v4049_v5  ;;  %v4052_v36 = vadd.f32 %v12005_v43, %v4013_v22  ;;  %v14837_v28 = vld [vmem:[#allocation16_spill] sm:$0xff]  ;;  %v12158_v25 = vld [vmem:[#allocation2 + $0x48] sm:$0xff] }
 0x1fd   : > { %14834 = vst [vmem:[#allocation88_spill] sm:$0xff] %v12128_v37  ;;  %4217 = vst.msk [vmem:[#allocation2 + $0x68] sm:$0xff] %vm652_vm2, %v4147_v34  ;;  %v4011_v23 = vadd.f32 %v3910_v31, %v11988_v52  ;;  %v9084_v59 = vpop.f32.mrf.mxu0  ;;  %v12135_v61 = vpack.c.bf16 %v12125_v26, %v4242_v14  ;;  %v4584_v20 = vrot.slane %v4582_v33, 3  ;;  %v4587_v39 = vrot.slane %v4585_v45, 4  ;;  %v14839_v33 = vld [vmem:[#allocation12_spill] sm:$0xff]  ;;  %v14840_v45 = vld [vmem:[#allocation13_spill] sm:$0xff] }
 0x1fe   : > { %v4145_v8 = vsel %vm4081_vm14, %v4049_v5, %v4113_v62  ;;  %vm4084_vm15 = vcmp.gt.f32.partialorder %v4052_v36, 0.0  ;;  %v4116_v0 = vmul.f32 0.01, %v4052_v36  ;;  %v4016_v11 = vadd.f32 %v9084_v59, %v11993_v53  ;;  %v14838_v53 = vld [vmem:[#allocation89_spill] sm:$0xff]  ;;  %v12156_v16 = vld [vmem:[#allocation2 + $0x38] sm:$0xff] }
 0x1ff   : > { %14835 = vst [vmem:[#allocation85_spill] sm:$0xff] %v12135_v61  ;;  %4215 = vst.msk [vmem:[#allocation2 + $0x58] sm:$0xff] %vm652_vm2, %v4145_v8  ;;  %v4050_v50 = vadd.f32 %v12005_v43, %v4011_v23  ;;  %9107 = vmatmul.mubr.msk.bf16.vlgmr.msra.gmra.mxu1 %vm652_vm2, %v12135_v61  ;;  %v3923_v52 = vpop.f32.mrf.mxu0  ;;  %v12145_v14 = vor.u32 %v4587_v39, %v4584_v20  ;;  %v4281_v60 = vmul.f32 %v12125_v26, %v14836_v19  ;;  %v14866_v61 = vld [vmem:[#allocation42_spill] sm:$0xff] }
 0x200   : > { %v4283_v6 = vmul.f32 %v12117_v41, %v14837_v28  ;;  %v4148_v32 = vsel %vm4084_vm15, %v4052_v36, %v4116_v0  ;;  %v4055_v15 = vadd.f32 %v12005_v43, %v4016_v11  ;;  %9110 = vmatprep.mubr.msk.bf16.mxu1 %vm652_vm2, %v12128_v37  ;;  %9175 = vmatpush3.bf16.msra.mxu1 %v14838_v53  ;;  %v12160_v5 = vld [vmem:[#allocation2 + $0x50] sm:$0xff]  ;;  %v12176_v36 = vld [vmem:[%s14135_s5 + $0x48] sm:$0xff]   ;;  %v14844_v53 = vld [vmem:[#allocation20_spill] sm:$0xff] }
 0x201   : > { %v4014_v7 = vadd.f32 %v3923_v52, %v11998_v27  ;;  %4218 = vst.msk [vmem:[#allocation2 + $0x70] sm:$0xff] %vm652_vm2, %v4148_v32  ;;  %vm4082_vm0 = vcmp.gt.f32.partialorder %v4050_v50, 0.0  ;;  %v4114_v17 = vmul.f32 0.01, %v4050_v50  ;;  %v9085_v31 = vpop.f32.mrf.mxu0  ;;  %v14841_v34 = vor.u32 %v14839_v33, %v14840_v45  ;;  %9176 = vmatprep.subr.bf16.mxu1 %v9476_v9  ;;  %v14843_v52 = vld [vmem:[#allocation17_spill] sm:$0xff] }
 0x202   : > { %v12171_v27 = vpack.c.bf16 %v12160_v5, %v12158_v25  ;;  %vm4087_vm1 = vcmp.gt.f32.partialorder %v4055_v15, 0.0  ;;  %v4119_v23 = vmul.f32 0.01, %v4055_v15  ;;  %v4017_v20 = vadd.f32 %v9085_v31, %v12008_v48 }
 0x203   : > { %v4589_v62 = vsel %vm862_vm3, %v14841_v34, %v12145_v14  ;;  %v4053_v59 = vadd.f32 %v12005_v43, %v4014_v7  ;;  %v4146_v39 = vsel %vm4082_vm0, %v4050_v50, %v4114_v17  ;;  %v3926_v8 = vpop.f32.mrf.mxu0  ;;  %v12181_v0 = vld [vmem:[#allocation2 + $0x40] sm:$0xff]  ;;  %v4312_v11 = vpack.c.bf16 %v12098_v47, %v4281_v60 }
 0x204   : > { %14842 = vst [vmem:[#allocation9_spill] sm:$0xff] %v12171_v27  ;;  %9142 = vmatprep.mubr.msk.bf16.mxu0 %vm652_vm2, %v4589_v62  ;;  %v4284_v32 = vmul.f32 %v12156_v16, %v14843_v52  ;;  %v12188_v33 = vmul.f32 %v12158_v25, %v14844_v53  ;;  %4216 = vst.msk [vmem:[#allocation2 + $0x60] sm:$0xff] %vm652_vm2, %v4146_v39  ;;  %v4151_v7 = vsel %vm4087_vm1, %v4055_v15, %v4119_v23 }
 0x205   : > { %vm4085_vm5 = vcmp.gt.f32.partialorder %v4053_v59, 0.0  ;;  %v4117_v48 = vmul.f32 0.01, %v4053_v59  ;;  %v4056_v31 = vadd.f32 %v12005_v43, %v4017_v20  ;;  %9177 = vmatpush3.bf16.msra.mxu1 %v9476_v9  ;;  %4221 = vst.msk [vmem:[#allocation2 + $0x88] sm:$0xff] %vm652_vm2, %v4151_v7  ;;  %v4015_v50 = vadd.f32 %v3926_v8, %v12015_v10  ;;  %v9088_v47 = vpop.f32.mrf.mxu0 }
 0x206   : > { %v12196_v60 = vpack.c.bf16 %v12181_v0, %v12156_v16  ;;  %v4591_v17 = vshrl.u32 %v4312_v11, 16  ;;  %v4594_v45 = vshll.u32 %v4312_v11, 16  ;;  %9246 = vmatprep.subr.bf16.mxu1 %v12176_v36  ;;  %v4020_v62 = vadd.f32 %v9088_v47, %v12018_v54  ;;  %v14846_v54 = vld [vmem:[#allocation19_spill] sm:$0xff] }
 0x207   : > { %v4149_v34 = vsel %vm4085_vm5, %v4053_v59, %v4117_v48  ;;  %vm4088_vm6 = vcmp.gt.f32.partialorder %v4056_v31, 0.0  ;;  %v4120_v15 = vmul.f32 0.01, %v4056_v31  ;;  %v4054_v9 = vadd.f32 %v12005_v43, %v4015_v50  ;;  %v3939_v20 = vpop.f32.mrf.mxu0 }
 0x208   : > { %14845 = vst [vmem:[#allocation87_spill] sm:$0xff] %v12196_v60  ;;  %4219 = vst.msk [vmem:[#allocation2 + $0x78] sm:$0xff] %vm652_vm2, %v4149_v34  ;;  %9111 = vmatmul.mubr.msk.bf16.gmra.mxu1 %vm652_vm2, %v12196_v60  ;;  %v4593_v10 = vrot.slane %v4591_v17, 3  ;;  %v4596_v23 = vrot.slane %v4594_v45, 4  ;;  %v4313_v39 = vpack.c.bf16 %v4284_v32, %v4283_v6  ;;  %v4059_v11 = vadd.f32 %v12005_v43, %v4020_v62  ;;  %v12213_v45 = vld [vmem:[#allocation2 + $0x70] sm:$0xff]  ;;  %v14857_v60 = vld [vmem:[#allocation36_spill] sm:$0xff] }
 0x209   : > { %v4152_v8 = vsel %vm4088_vm6, %v4056_v31, %v4120_v15  ;;  %9114 = vmatprep.mubr.msk.bf16.mxu1 %vm652_vm2, %v12171_v27  ;;  %v4018_v59 = vadd.f32 %v3939_v20, %v12025_v13  ;;  %v4285_v7 = vmul.f32 %v12181_v0, %v14846_v54  ;;  %vm4086_vm7 = vcmp.gt.f32.partialorder %v4054_v9, 0.0  ;;  %v9089_v47 = vpop.f32.mrf.mxu0  ;;  %v9479_v13 = vld [vmem:[%s14135_s5 + $0x30] sm:$0xff]  }
 0x20a   : > { %4222 = vst.msk [vmem:[#allocation2 + $0x90] sm:$0xff] %vm652_vm2, %v4152_v8  ;;  %v4118_v48 = vmul.f32 0.01, %v4054_v9  ;;  %v4597_v50 = vor.u32 %v4596_v23, %v4593_v10  ;;  %v4600_v17 = vshrl.u32 %v4313_v39, 16  ;;  %vm4091_vm8 = vcmp.gt.f32.partialorder %v4059_v11, 0.0 }
 0x20b   : > { %v4123_v6 = vmul.f32 0.01, %v4059_v11  ;;  %v4057_v32 = vadd.f32 %v12005_v43, %v4018_v59  ;;  %v4021_v31 = vadd.f32 %v9089_v47, %v12031_v42  ;;  %v4603_v10 = vshll.u32 %v4313_v39, 16  ;;  %v3942_v23 = vpop.f32.mrf.mxu0  ;;  %v12220_v20 = vld [vmem:[#allocation2 + $0x60] sm:$0xff]  ;;  %v12225_v47 = vld [vmem:[#allocation2 + $0x58] sm:$0xff] }
 0x20c   : > { %v4150_v34 = vsel %vm4086_vm7, %v4054_v9, %v4118_v48  ;;  %v4598_v15 = vsel %vm862_vm3, %v12145_v14, %v4597_v50  ;;  %v4602_v62 = vrot.slane %v4600_v17, 3  ;;  %v12227_v9 = vld [vmem:[#allocation2 + $0x68] sm:$0xff]  ;;  %v4019_v39 = vadd.f32 %v3942_v23, %v12034_v38  ;;  %v12244_v38 = vld [vmem:[%s14135_s5 + $0x58] sm:$0xff]  }
 0x20d   : > { %4220 = vst.msk [vmem:[#allocation2 + $0x80] sm:$0xff] %vm652_vm2, %v4150_v34  ;;  %v4155_v8 = vsel %vm4091_vm8, %v4059_v11, %v4123_v6  ;;  %9143 = vmatmul.mubr.msk.bf16.vlgmr.msra.gmra.mxu0 %vm652_vm2, %v4598_v15  ;;  %vm4089_vm9 = vcmp.gt.f32.partialorder %v4057_v32, 0.0  ;;  %v4121_v42 = vmul.f32 0.01, %v4057_v32  ;;  %v4060_v59 = vadd.f32 %v12005_v43, %v4021_v31  ;;  %v9092_v48 = vpop.f32.mrf.mxu0  ;;  %v14849_v6 = vld [vmem:[#allocation139_spill] sm:$0xff] }
 0x20e   : > { %4225 = vst.msk [vmem:[#allocation2 + $0xa8] sm:$0xff] %vm652_vm2, %v4155_v8  ;;  %v4605_v14 = vrot.slane %v4603_v10, 4  ;;  %v12233_v17 = vpack.c.bf16 %v12220_v20, %v12225_v47  ;;  %v12237_v11 = vpack.c.bf16 %v12213_v45, %v12227_v9  ;;  %9211 = vmatpush3.bf16.msra.mxu0 %v14849_v6  ;;  %v4024_v15 = vadd.f32 %v9092_v48, %v12041_v35 }
 0x20f   : > { %v4153_v31 = vsel %vm4089_vm9, %v4057_v32, %v4121_v42  ;;  %vm4092_vm10 = vcmp.gt.f32.partialorder %v4060_v59, 0.0  ;;  %v4124_v34 = vmul.f32 0.01, %v4060_v59  ;;  %9212 = vmatprep.subr.bf16.mxu0 %v9479_v13  ;;  %v4058_v23 = vadd.f32 %v12005_v43, %v4019_v39  ;;  %v3955_v8 = vpop.f32.mrf.mxu0  ;;  %v14850_v42 = vld [vmem:[#allocation22_spill] sm:$0xff] }
 0x210   : > { %14847 = vst [vmem:[#allocation45_spill] sm:$0xff] %v12233_v17  ;;  %14848 = vst [vmem:[#allocation90_spill] sm:$0xff] %v12237_v11  ;;  %v4606_v10 = vor.u32 %v4605_v14, %v4602_v62  ;;  %9115 = vmatmul.mubr.msk.bf16.gmra.mxu1 %vm652_vm2, %v12233_v17  ;;  %v4314_v32 = vpack.c.bf16 %v12188_v33, %v4285_v7  ;;  %v4287_v35 = vmul.f32 %v12160_v5, %v14850_v42  ;;  %v14851_v62 = vld [vmem:[#allocation23_spill] sm:$0xff] }
 0x211   : > { %4223 = vst.msk [vmem:[#allocation2 + $0x98] sm:$0xff] %vm652_vm2, %v4153_v31  ;;  %v4156_v48 = vsel %vm4092_vm10, %v4060_v59, %v4124_v34  ;;  %v4063_v6 = vadd.f32 %v12005_v43, %v4024_v15  ;;  %9118 = vmatprep.mubr.msk.bf16.mxu1 %vm652_vm2, %v12237_v11  ;;  %v4022_v31 = vadd.f32 %v3955_v8, %v12045_v2  ;;  %vm4090_vm11 = vcmp.gt.f32.partialorder %v4058_v23, 0.0  ;;  %v9093_v22 = vpop.f32.mrf.mxu0 }
 0x212   : > { %v4288_v14 = vmul.f32 %v12225_v47, %v14851_v62  ;;  %4226 = vst.msk [vmem:[#allocation2 + $0xb0] sm:$0xff] %vm652_vm2, %v4156_v48  ;;  %v4607_v39 = vsel %vm862_vm3, %v4597_v50, %v4606_v10  ;;  %v4122_v33 = vmul.f32 0.01, %v4058_v23  ;;  %v4609_v7 = vshrl.u32 %v4314_v32, 16  ;;  %9213 = vmatpush3.bf16.msra.mxu0 %v9479_v13 }
 0x213   : > { %9146 = vmatprep.mubr.msk.bf16.mxu0 %vm652_vm2, %v4607_v39  ;;  %vm4095_vm12 = vcmp.gt.f32.partialorder %v4063_v6, 0.0  ;;  %v4127_v59 = vmul.f32 0.01, %v4063_v6  ;;  %v4612_v34 = vshll.u32 %v4314_v32, 16  ;;  %v4061_v15 = vadd.f32 %v12005_v43, %v4022_v31  ;;  %9282 = vmatprep.subr.bf16.mxu0 %v12244_v38  ;;  %v3958_v50 = vpop.f32.mrf.mxu0 }
 0x214   : > { %v4154_v2 = vsel %vm4090_vm11, %v4058_v23, %v4122_v33  ;;  %v4611_v8 = vrot.slane %v4609_v7, 3  ;;  %v4025_v48 = vadd.f32 %v9093_v22, %v12053_v55  ;;  %v4315_v30 = vpack.c.bf16 %v4288_v14, %v4287_v35  ;;  %v12265_v40 = vld [vmem:[#allocation2 + $0x80] sm:$0xff]  ;;  %v12271_v55 = vld [vmem:[#allocation2 + $0x78] sm:$0xff]  ;;  %v12273_v22 = vld [vmem:[#allocation2 + $0x90] sm:$0xff] }
 0x215   : > { %4224 = vst.msk [vmem:[#allocation2 + $0xa0] sm:$0xff] %vm652_vm2, %v4154_v2  ;;  %v4159_v13 = vsel %vm4095_vm12, %v4063_v6, %v4127_v59  ;;  %v4614_v11 = vrot.slane %v4612_v34, 4  ;;  %vm4093_vm13 = vcmp.gt.f32.partialorder %v4061_v15, 0.0  ;;  %v4125_v39 = vmul.f32 0.01, %v4061_v15  ;;  %v9096_v33 = vpop.f32.mrf.mxu0 }
 0x216   : > { %4229 = vst.msk [vmem:[#allocation2 + $0xc8] sm:$0xff] %vm652_vm2, %v4159_v13  ;;  %v4064_v32 = vadd.f32 %v12005_v43, %v4025_v48  ;;  %v4618_v31 = vshrl.u32 %v4315_v30, 16  ;;  %v4621_v17 = vshll.u32 %v4315_v30, 16  ;;  %v4023_v23 = vadd.f32 %v3958_v50, %v12056_v58  ;;  %v12281_v58 = vld [vmem:[#allocation2 + $0x88] sm:$0xff]  ;;  %v14854_v50 = vld [vmem:[#allocation29_spill] sm:$0xff] }
 0x217   : > { %v4615_v35 = vor.u32 %v4614_v11, %v4611_v8  ;;  %v4157_v14 = vsel %vm4093_vm13, %v4061_v15, %v4125_v39  ;;  %v4028_v6 = vadd.f32 %v9096_v33, %v12064_v21  ;;  %v12278_v7 = vpack.c.bf16 %v12265_v40, %v12271_v55  ;;  %v3971_v2 = vpop.f32.mrf.mxu0  ;;  %v14855_v39 = vld [vmem:[#allocation30_spill] sm:$0xff] }
 0x218   : > { %4227 = vst.msk [vmem:[#allocation2 + $0xb8] sm:$0xff] %vm652_vm2, %v4157_v14  ;;  %vm4096_vm14 = vcmp.gt.f32.partialorder %v4064_v32, 0.0  ;;  %v4128_v59 = vmul.f32 0.01, %v4064_v32  ;;  %v4620_v30 = vrot.slane %v4618_v31, 3  ;;  %v4623_v34 = vrot.slane %v4621_v17, 4 }
 0x219   : > { %14852 = vst [vmem:[#allocation91_spill] sm:$0xff] %v12278_v7  ;;  %v4616_v48 = vsel %vm862_vm3, %v4606_v10, %v4615_v35  ;;  %v4062_v11 = vadd.f32 %v12005_v43, %v4023_v23  ;;  %v4067_v15 = vadd.f32 %v12005_v43, %v4028_v6  ;;  %9119 = vmatmul.mubr.msk.bf16.gmra.mxu1 %vm652_vm2, %v12278_v7  ;;  %v9097_v31 = vpop.f32.mrf.mxu0  ;;  %v14856_v7 = vld [vmem:[#allocation35_spill] sm:$0xff]  ;;  %vm7805_vm12 = vcmask 15360  }
 0x21a   : > { %v12290_v21 = vpack.c.bf16 %v12273_v22, %v12281_v58  ;;  %9147 = vmatmul.mubr.msk.bf16.gmra.mxu0 %vm652_vm2, %v4616_v48  ;;  %v4160_v8 = vsel %vm4096_vm14, %v4064_v32, %v4128_v59  ;;  %v4624_v17 = vor.u32 %v4623_v34, %v4620_v30  ;;  %v4289_v13 = vmul.f32 %v12220_v20, %v14854_v50 }
 0x21b   : > { %v4290_v10 = vmul.f32 %v12227_v9, %v14855_v39  ;;  %4230 = vst.msk [vmem:[#allocation2 + $0xd0] sm:$0xff] %vm652_vm2, %v4160_v8  ;;  %vm4094_vm15 = vcmp.gt.f32.partialorder %v4062_v11, 0.0  ;;  %v4126_v23 = vmul.f32 0.01, %v4062_v11  ;;  %vm4099_vm0 = vcmp.gt.f32.partialorder %v4067_v15, 0.0  ;;  %v3974_v30 = vpop.f32.mrf.mxu0 }
 0x21c   : > { %14853 = vst [vmem:[#allocation40_spill] sm:$0xff] %v12290_v21  ;;  %v4131_v33 = vmul.f32 0.01, %v4067_v15  ;;  %9122 = vmatprep.mubr.msk.bf16.mxu1 %vm652_vm2, %v12290_v21  ;;  %v4625_v14 = vsel %vm862_vm3, %v4615_v35, %v4624_v17  ;;  %v4026_v6 = vadd.f32 %v3971_v2, %v12069_v49  ;;  %v4029_v59 = vadd.f32 %v9097_v31, %v12073_v56  ;;  %v12303_v34 = vld [vmem:[#allocation2 + $0xa0] sm:$0xff] }
 0x21d   : > { %v4316_v32 = vpack.c.bf16 %v4290_v10, %v4289_v13  ;;  %9150 = vmatprep.mubr.msk.bf16.mxu0 %vm652_vm2, %v4625_v14  ;;  %v4158_v48 = vsel %vm4094_vm15, %v4062_v11, %v4126_v23  ;;  %v4291_v27 = vmul.f32 %v12213_v45, %v14856_v7  ;;  %v4292_v21 = vmul.f32 %v12271_v55, %v14857_v60  ;;  %v9100_v13 = vpop.f32.mrf.mxu0  ;;  %v12314_v10 = vld [vmem:[#allocation2 + $0x98] sm:$0xff] }
 0x21e   : > { %v4163_v8 = vsel %vm4099_vm0, %v4067_v15, %v4131_v33  ;;  %4228 = vst.msk [vmem:[#allocation2 + $0xc0] sm:$0xff] %vm652_vm2, %v4158_v48  ;;  %v4065_v56 = vadd.f32 %v12005_v43, %v4026_v6  ;;  %v4068_v2 = vadd.f32 %v12005_v43, %v4029_v59  ;;  %v4027_v15 = vadd.f32 %v3974_v30, %v12079_v24  ;;  %v12322_v48 = vld [vmem:[#allocation2 + $0xb0] sm:$0xff]  ;;  %v12328_v30 = vld [vmem:[#allocation2 + $0xa8] sm:$0xff] }
 0x21f   : > { %4233 = vst.msk [vmem:[#allocation2 + $0xe8] sm:$0xff] %vm652_vm2, %v4163_v8  ;;  %v4627_v49 = vshrl.u32 %v4316_v32, 16  ;;  %v4630_v35 = vshll.u32 %v4316_v32, 16  ;;  %v4317_v11 = vpack.c.bf16 %v4292_v21, %v4291_v27  ;;  %v4032_v31 = vadd.f32 %v9100_v13, %v12084_v51  ;;  %14859 = vst [vmem:[#allocation92_spill] sm:$0xff] %v12322_v48  ;;  %v3987_v6 = vpop.f32.mrf.mxu0 }
 0x220   : > { %v12320_v23 = vpack.c.bf16 %v12303_v34, %v12314_v10  ;;  %vm4097_vm1 = vcmp.gt.f32.partialorder %v4065_v56, 0.0  ;;  %v4129_v32 = vmul.f32 0.01, %v4065_v56  ;;  %vm4100_vm5 = vcmp.gt.f32.partialorder %v4068_v2, 0.0 }
 0x221   : > { %v4629_v33 = vrot.slane %v4627_v49, 3  ;;  %v4632_v14 = vrot.slane %v4630_v35, 4  ;;  %v4132_v59 = vmul.f32 0.01, %v4068_v2  ;;  %v4636_v8 = vshrl.u32 %v4317_v11, 16  ;;  %v9101_v49 = vpop.f32.mrf.mxu0 }
 0x222   : > { %14858 = vst [vmem:[#allocation93_spill] sm:$0xff] %v12320_v23  ;;  %v4639_v37 = vshll.u32 %v4317_v11, 16  ;;  %9123 = vmatmul.mubr.msk.bf16.gmra.mxu1 %vm652_vm2, %v12320_v23  ;;  %v4161_v51 = vsel %vm4097_vm1, %v4065_v56, %v4129_v32  ;;  %v4066_v27 = vadd.f32 %v12005_v43, %v4027_v15  ;;  %v4071_v21 = vadd.f32 %v12005_v43, %v4032_v31 }
 0x223   : > { %v4633_v24 = vor.u32 %v4632_v14, %v4629_v33  ;;  %4231 = vst.msk [vmem:[#allocation2 + $0xd8] sm:$0xff] %vm652_vm2, %v4161_v51  ;;  %v4164_v35 = vsel %vm4100_vm5, %v4068_v2, %v4132_v59  ;;  %v4638_v13 = vrot.slane %v4636_v8, 3  ;;  %v12333_v11 = vpack.c.bf16 %v12322_v48, %v12328_v30  ;;  %v14861_v2 = vld [vmem:[#allocation37_spill] sm:$0xff]  ;;  %v14862_v33 = vld [vmem:[#allocation38_spill] sm:$0xff]  ;;  %v3990_v32 = vpop.f32.mrf.mxu0 }
 0x224   : > { %v4641_v1 = vrot.slane %v4639_v37, 4  ;;  %4234 = vst.msk [vmem:[#allocation2 + $0xf0] sm:$0xff] %vm652_vm2, %v4164_v35  ;;  %vm4098_vm6 = vcmp.gt.f32.partialorder %v4066_v27, 0.0  ;;  %v4130_v56 = vmul.f32 0.01, %v4066_v27  ;;  %vm4103_vm7 = vcmp.gt.f32.partialorder %v4071_v21, 0.0 }
 0x225   : > { %14860 = vst [vmem:[#allocation46_spill] sm:$0xff] %v12333_v11  ;;  %v4634_v23 = vsel %vm862_vm3, %v4624_v17, %v4633_v24  ;;  %v4135_v31 = vmul.f32 0.01, %v4071_v21  ;;  %9126 = vmatprep.mubr.msk.bf16.mxu1 %vm652_vm2, %v12333_v11  ;;  %v4293_v37 = vmul.f32 %v12265_v40, %v14861_v2  ;;  %v4294_v14 = vmul.f32 %v12281_v58, %v14862_v33  ;;  %v12344_v17 = vld [vmem:[#allocation2 + $0xc0] sm:$0xff]  ;;  %v12350_v35 = vld [vmem:[#allocation2 + $0xd0] sm:$0xff] }
 0x226   : > { %9151 = vmatmul.mubr.msk.bf16.gmra.mxu0 %vm652_vm2, %v4634_v23  ;;  %v4642_v15 = vor.u32 %v4641_v1, %v4638_v13  ;;  %14863 = vst [vmem:[#allocation96_spill] sm:$0xff] %v12344_v17  ;;  %v4162_v59 = vsel %vm4098_vm6, %v4066_v27, %v4130_v56  ;;  %v4030_v8 = vadd.f32 %v3987_v6, %v12087_v29  ;;  %v14864_v23 = vld [vmem:[#allocation41_spill] sm:$0xff]  ;;  %14865 = vst [vmem:[#allocation51_spill] sm:$0xff] %v12350_v35  ;;  %v12357_v27 = vld [vmem:[#allocation2 + $0xb8] sm:$0xff] }
 0x227   : > { %v4033_v51 = vadd.f32 %v9101_v49, %v12089_v44  ;;  %v4295_v1 = vmul.f32 %v12273_v22, %v14864_v23  ;;  %4232 = vst.msk [vmem:[#allocation2 + $0xe0] sm:$0xff] %vm652_vm2, %v4162_v59  ;;  %v4167_v11 = vsel %vm4103_vm7, %v4071_v21, %v4135_v31  ;;  %v4318_v46 = vpack.c.bf16 %v4294_v14, %v4293_v37  ;;  %v12368_v21 = vld [vmem:[#allocation2 + $0xc8] sm:$0xff] }
 0x228   : > { %v4643_v13 = vsel %vm862_vm3, %v4633_v24, %v4642_v15  ;;  %v4296_v33 = vmul.f32 %v12314_v10, %v14866_v61  ;;  %14867 = vst [vmem:[#allocation98_spill] sm:$0xff] %v12357_v27  ;;  %4237 = vst.msk [vmem:[#allocation2 + $0x108] sm:$0xff] %vm652_vm2, %v4167_v11  ;;  %v4069_v29 = vadd.f32 %v12005_v43, %v4030_v8 }
 0x229   : > { %9154 = vmatprep.mubr.msk.bf16.mxu0 %vm652_vm2, %v4643_v13  ;;  %v4072_v44 = vadd.f32 %v12005_v43, %v4033_v51  ;;  %v4031_v6 = vadd.f32 %v3990_v32, %v12093_v63  ;;  %v12366_v24 = vpack.c.bf16 %v12344_v17, %v12357_v27  ;;  %14869 = vst [vmem:[#allocation99_spill] sm:$0xff] %v12368_v21  ;;  %v4645_v49 = vshrl.u32 %v4318_v46, 16 }
 0x22a   : > { %v4648_v56 = vshll.u32 %v4318_v46, 16  ;;  %v4319_v31 = vpack.c.bf16 %v4296_v33, %v4295_v1  ;;  %v12372_v37 = vpack.c.bf16 %v12350_v35, %v12368_v21  ;;  %vm4101_vm8 = vcmp.gt.f32.partialorder %v4069_v29, 0.0  ;;  %v14871_v1 = vld [vmem:[#allocation43_spill] sm:$0xff] }
 0x22b   : > { %14868 = vst [vmem:[#allocation52_spill] sm:$0xff] %v12366_v24  ;;  %v4133_v11 = vmul.f32 0.01, %v4069_v29  ;;  %vm4104_vm9 = vcmp.gt.f32.partialorder %v4072_v44, 0.0  ;;  %v4136_v14 = vmul.f32 0.01, %v4072_v44  ;;  %9127 = vmatmul.mubr.msk.bf16.gmra.mxu1 %vm652_vm2, %v12366_v24  ;;  %v4070_v51 = vadd.f32 %v12005_v43, %v4031_v6 }
 0x22c   : > { %14870 = vst [vmem:[#allocation94_spill] sm:$0xff] %v12372_v37  ;;  %v4647_v63 = vrot.slane %v4645_v49, 3  ;;  %v4650_v32 = vrot.slane %v4648_v56, 4  ;;  %v4654_v59 = vshrl.u32 %v4319_v31, 16  ;;  %v4657_v8 = vshll.u32 %v4319_v31, 16  ;;  %9130 = vmatprep.mubr.msk.bf16.mxu1 %vm652_vm2, %v12372_v37  ;;  %v14872_v56 = vld [vmem:[#allocation44_spill] sm:$0xff] }
 0x22d   : > { %v4165_v46 = vsel %vm4101_vm8, %v4069_v29, %v4133_v11  ;;  %v4168_v33 = vsel %vm4104_vm9, %v4072_v44, %v4136_v14  ;;  %v4297_v13 = vmul.f32 %v12303_v34, %v14871_v1  ;;  %v4298_v31 = vmul.f32 %v12328_v30, %v14872_v56  ;;  %v12385_v23 = vld [vmem:[#allocation2 + $0xf0] sm:$0xff]  ;;  %v14874_v6 = vld [vmem:[#allocation48_spill] sm:$0xff]  ;;  %v14878_v56 = vld [vmem:[#allocation49_spill] sm:$0xff] }
 0x22e   : > { %v4651_v61 = vor.u32 %v4650_v32, %v4647_v63  ;;  %4235 = vst.msk [vmem:[#allocation2 + $0xf8] sm:$0xff] %vm652_vm2, %v4165_v46  ;;  %4238 = vst.msk [vmem:[#allocation2 + $0x110] sm:$0xff] %vm652_vm2, %v4168_v33  ;;  %v4656_v24 = vrot.slane %v4654_v59, 3  ;;  %v4659_v49 = vrot.slane %v4657_v8, 4  ;;  %vm4102_vm10 = vcmp.gt.f32.partialorder %v4070_v51, 0.0  ;;  %v14873_v44 = vld [vmem:[#allocation47_spill] sm:$0xff] }
 0x22f   : > { %v4134_v29 = vmul.f32 0.01, %v4070_v51  ;;  %v4299_v43 = vmul.f32 %v12322_v48, %v14873_v44  ;;  %v4300_v11 = vmul.f32 %v12357_v27, %v14874_v6  ;;  %v12391_v14 = vld [vmem:[#allocation2 + $0xd8] sm:$0xff]  ;;  %v12393_v63 = vld [vmem:[#allocation2 + $0xe0] sm:$0xff]  ;;  %v4320_v8 = vpack.c.bf16 %v4298_v31, %v4297_v13  ;;  %v12400_v33 = vld [vmem:[#allocation2 + $0xe8] sm:$0xff] }
 0x230   : > { %14875 = vst [vmem:[#allocation101_spill] sm:$0xff] %v12391_v14  ;;  %v4652_v32 = vsel %vm862_vm3, %v4642_v15, %v4651_v61  ;;  %v4660_v59 = vor.u32 %v4659_v49, %v4656_v24  ;;  %v12398_v46 = vpack.c.bf16 %v12393_v63, %v12391_v14  ;;  %v12405_v6 = vpack.c.bf16 %v12385_v23, %v12400_v33  ;;  %v14879_v49 = vld [vmem:[#allocation50_spill] sm:$0xff] }
 0x231   : > { %9155 = vmatmul.mubr.msk.bf16.gmra.mxu0 %vm652_vm2, %v4652_v32  ;;  %v4166_v37 = vsel %vm4102_vm10, %v4070_v51, %v4134_v29  ;;  %v4321_v44 = vpack.c.bf16 %v4300_v11, %v4299_v43  ;;  %v4301_v1 = vmul.f32 %v12344_v17, %v14878_v56  ;;  %v4663_v24 = vshrl.u32 %v4320_v8, 16  ;;  %v14880_v43 = vld [vmem:[#allocation53_spill] sm:$0xff]  ;;  %v14881_v32 = vld [vmem:[#allocation54_spill] sm:$0xff]  ;;  %v14883_v17 = vld [vmem:[#allocation56_spill] sm:$0xff] }
 0x232   : > { %14876 = vst [vmem:[#allocation95_spill] sm:$0xff] %v12398_v46  ;;  %14877 = vst [vmem:[#allocation97_spill] sm:$0xff] %v12405_v6  ;;  %v4661_v15 = vsel %vm862_vm3, %v4651_v61, %v4660_v59  ;;  %v4666_v13 = vshll.u32 %v4320_v8, 16  ;;  %v4302_v31 = vmul.f32 %v12368_v21, %v14879_v49  ;;  %v4303_v11 = vmul.f32 %v12350_v35, %v14880_v43  ;;  %v14882_v49 = vld [vmem:[#allocation55_spill] sm:$0xff]  ;;  %v14884_v48 = vld [vmem:[#allocation58_spill] sm:$0xff] }
 0x233   : > { %4236 = vst.msk [vmem:[#allocation2 + $0x100] sm:$0xff] %vm652_vm2, %v4166_v37  ;;  %9158 = vmatprep.mubr.msk.bf16.mxu0 %vm652_vm2, %v4661_v15  ;;  %v4672_v51 = vshrl.u32 %v4321_v44, 16  ;;  %v4675_v29 = vshll.u32 %v4321_v44, 16  ;;  %9131 = vmatmul.mubr.msk.bf16.gmra.mxu1 %vm652_vm2, %v12398_v46  ;;  %v4304_v61 = vmul.f32 %v12391_v14, %v14881_v32  ;;  %v4665_v56 = vrot.slane %v4663_v24, 3 }
 0x234   : > { %v4668_v37 = vrot.slane %v4666_v13, 4  ;;  %9134 = vmatprep.mubr.msk.bf16.mxu1 %vm652_vm2, %v12405_v6  ;;  %v4322_v8 = vpack.c.bf16 %v4302_v31, %v4301_v1  ;;  %v4305_v15 = vmul.f32 %v12393_v63, %v14882_v49  ;;  %v4306_v46 = vmul.f32 %v12400_v33, %v14883_v17 }
 0x235   : > { %v4674_v21 = vrot.slane %v4672_v51, 3  ;;  %v4677_v44 = vrot.slane %v4675_v29, 4  ;;  %v4323_v2 = vpack.c.bf16 %v4304_v61, %v4303_v11  ;;  %v4949_v24 = vmul.f32 %v12125_v26, %v14884_v48  ;;  %v12432_v61 = vld [vmem:[#allocation2 + $0xf8] sm:$0xff] }
 0x236   : > { %v4669_v27 = vor.u32 %v4668_v37, %v4665_v56  ;;  %v4681_v43 = vshrl.u32 %v4322_v8, 16  ;;  %v4684_v35 = vshll.u32 %v4322_v8, 16  ;;  %v4324_v6 = vpack.c.bf16 %v4306_v46, %v4305_v15 }
 0x237   : > { %v4678_v13 = vor.u32 %v4677_v44, %v4674_v21  ;;  %v4690_v32 = vshrl.u32 %v4323_v2, 16  ;;  %v4693_v14 = vshll.u32 %v4323_v2, 16  ;;  %v4980_v51 = vpack.c.bf16 %v4949_v24, %v12114_v12 }
 0x238   : > { %v4670_v1 = vsel %vm862_vm3, %v4660_v59, %v4669_v27  ;;  %v4683_v31 = vrot.slane %v4681_v43, 3  ;;  %v4686_v49 = vrot.slane %v4684_v35, 4  ;;  %v4699_v21 = vshrl.u32 %v4324_v6, 16 }
 0x239   : > { %9159 = vmatmul.mubr.msk.bf16.gmra.mxu0 %vm652_vm2, %v4670_v1  ;;  %v4679_v29 = vsel %vm862_vm3, %v4669_v27, %v4678_v13  ;;  %v4692_v56 = vrot.slane %v4690_v32, 3  ;;  %v4695_v11 = vrot.slane %v4693_v14, 4  ;;  %v4702_v35 = vshll.u32 %v4324_v6, 16  ;;  %v14887_v27 = vld [vmem:[#allocation60_spill] sm:$0xff]  ;;  %v14889_v6 = vld [vmem:[#allocation63_spill] sm:$0xff] }
 0x23a   : > { %v12434_v37 = vld [vmem:[#allocation2 + $0x100] sm:$0xff]  ;;  %9162 = vmatprep.mubr.msk.bf16.mxu0 %vm652_vm2, %v4679_v29  ;;  %v4687_v2 = vor.u32 %v4686_v49, %v4683_v31  ;;  %v5009_v12 = vshll.u32 %v4980_v51, 16  ;;  %v4701_v43 = vrot.slane %v4699_v21, 3  ;;  %v5013_v8 = vshrl.u32 %v4980_v51, 16  ;;  %v14890_v29 = vld [vmem:[#allocation59_spill] sm:$0xff]  ;;  %v14892_v21 = vld [vmem:[#allocation84_spill] sm:$0xff] }
 0x23b   : > { %14885 = vst [vmem:[#allocation103_spill] sm:$0xff] %v12434_v37  ;;  %v12439_v59 = vpack.c.bf16 %v12434_v37, %v12432_v61  ;;  %v4696_v46 = vor.u32 %v4695_v11, %v4692_v56  ;;  %v4307_v14 = vmul.f32 %v12385_v23, %v14887_v27  ;;  %v4704_v15 = vrot.slane %v4702_v35, 4  ;;  %v14888_v49 = vld [vmem:[#allocation61_spill] sm:$0xff]  ;;  %v14891_v56 = vld [vmem:[#allocation64_spill] sm:$0xff]  ;;  %v14894_v27 = vld [vmem:[#allocation6_spill] sm:$0xff] }
 0x23c   : > { %v4688_v32 = vsel %vm862_vm3, %v4678_v13, %v4687_v2  ;;  %v5011_v44 = vrot.slane %v5009_v12, 1  ;;  %v4308_v24 = vmul.f32 %v12432_v61, %v14888_v49  ;;  %v4951_v31 = vmul.f32 %v12117_v41, %v14889_v6  ;;  %v14893_v49 = vld [vmem:[#allocation65_spill] sm:$0xff] }
 0x23d   : > { %14886 = vst [vmem:[#allocation105_spill] sm:$0xff] %v12439_v59  ;;  %9135 = vmatmul.mubr.msk.bf16.gmra.mxu1 %vm652_vm2, %v12439_v59  ;;  %v4697_v1 = vsel %vm862_vm3, %v4687_v2, %v4696_v46  ;;  %v4309_v51 = vmul.f32 %v12434_v37, %v14890_v29  ;;  %v4952_v11 = vmul.f32 %v12156_v16, %v14891_v56 }
 0x23e   : > { %v4705_v13 = vor.u32 %v4704_v15, %v4701_v43  ;;  %v5012_v59 = vsel %vm1420_vm4, %v14892_v21, %v5011_v44  ;;  %v5015_v35 = vor.u32 %v5013_v8, %v5011_v44  ;;  %v4325_v12 = vpack.c.bf16 %v4308_v24, %v4307_v14 }
 0x23f   : > { %9178 = vmatprep.mubr.msk.bf16.mxu1 %vm652_vm2, %v5012_v59  ;;  %v4981_v48 = vpack.c.bf16 %v4951_v31, %v12101_v4  ;;  %v4326_v2 = vpack.c.bf16 %v4309_v51, %v4309_v51  ;;  %v4953_v6 = vmul.f32 %v12181_v0, %v14893_v49  ;;  %v5388_v29 = vmul.f32 %v12125_v26, %v14894_v27 }
 0x240   : > { %v4706_v17 = vsel %vm862_vm3, %v4696_v46, %v4705_v13  ;;  %v4708_v56 = vshrl.u32 %v4325_v12, 16  ;;  %v4711_v43 = vshll.u32 %v4325_v12, 16  ;;  %v14895_v15 = vshrl.u32 %v12121_v18, 16 }
 0x241   : > { %9163 = vmatmul.mubr.msk.bf16.gmra.mxu0 %vm652_vm2, %v4688_v32  ;;  %v5017_v8 = vshll.u32 %v4981_v48, 16  ;;  %v4717_v59 = vshrl.u32 %v4326_v2, 16  ;;  %v4720_v14 = vshll.u32 %v4326_v2, 16  ;;  %v4982_v4 = vpack.c.bf16 %v4953_v6, %v4952_v11  ;;  %v9480_v6 = vld [vmem:[%s14135_s5 + $0x40] sm:$0xff]  }
 0x242   : > { %v5444_v21 = vrot.slane %v14895_v15, 3  ;;  %9166 = vmatprep.mubr.msk.bf16.mxu0 %vm652_vm2, %v4697_v1  ;;  %v4710_v44 = vrot.slane %v4708_v56, 3  ;;  %v4713_v24 = vrot.slane %v4711_v43, 4  ;;  %v5021_v31 = vshrl.u32 %v4981_v48, 16 }
 0x243   : > { %v5420_v26 = vpack.c.bf16 %v12109_v3, %v5388_v29  ;;  %v5019_v51 = vrot.slane %v5017_v8, 1  ;;  %v4719_v46 = vrot.slane %v4717_v59, 3  ;;  %v4722_v27 = vrot.slane %v4720_v14, 4  ;;  %v14896_v14 = vld [vmem:[#allocation66_spill] sm:$0xff] }
 0x244   : > { %v5025_v12 = vshll.u32 %v4982_v4, 16  ;;  %v4714_v49 = vor.u32 %v4713_v24, %v4710_v44  ;;  %v5029_v37 = vshrl.u32 %v4982_v4, 16  ;;  %v5445_v15 = vshll.u32 %v12121_v18, 16  ;;  %v14898_v24 = vld [vmem:[#allocation68_spill] sm:$0xff] }
 0x245   : > { %v5450_v32 = vshrl.u32 %v5420_v26, 16  ;;  %v5020_v1 = vsel %vm1420_vm4, %v5015_v35, %v5019_v51  ;;  %v4723_v56 = vor.u32 %v4722_v27, %v4719_v46  ;;  %v5023_v11 = vor.u32 %v5021_v31, %v5019_v51 }
 0x246   : > { %v5027_v48 = vrot.slane %v5025_v12, 1  ;;  %v4715_v3 = vsel %vm862_vm3, %v4705_v13, %v4714_v49  ;;  %9179 = vmatmul.mubr.msk.bf16.vlgmr.msra.gmra.mxu1 %vm652_vm2, %v5020_v1  ;;  %v5447_v29 = vrot.slane %v5445_v15, 4  ;;  %v5453_v43 = vshll.u32 %v5420_v26, 16  ;;  %v14897_v13 = vld [vmem:[#allocation67_spill] sm:$0xff] }
 0x247   : > { %v5452_v2 = vrot.slane %v5450_v32, 3  ;;  %v4724_v8 = vsel %vm862_vm3, %v4714_v49, %v4723_v56  ;;  %9247 = vmatpush3.bf16.msra.mxu1 %v12176_v36  ;;  %v4954_v35 = vmul.f32 %v12158_v25, %v14896_v14  ;;  %v4955_v44 = vmul.f32 %v12160_v5, %v14897_v13  ;;  %v14899_v36 = vld [vmem:[#allocation69_spill] sm:$0xff] }
 0x248   : > { %v5028_v18 = vsel %vm1420_vm4, %v5023_v11, %v5027_v48  ;;  %v5031_v59 = vor.u32 %v5029_v37, %v5027_v48  ;;  %v5448_v27 = vor.u32 %v5447_v29, %v5444_v21  ;;  %v5455_v4 = vrot.slane %v5453_v43, 4  ;;  %9248 = vmatprep.subr.bf16.mxu1 %v9480_v6  ;;  %v12489_v37 = vld [vmem:[%s14135_s5 + $0x68] sm:$0xff]   ;;  %v14901_v11 = vld [vmem:[#allocation71_spill] sm:$0xff]  ;;  %v14902_v48 = vld [vmem:[#allocation72_spill] sm:$0xff] }
 0x249   : > { %9182 = vmatprep.mubr.msk.bf16.mxu1 %vm652_vm2, %v5028_v18  ;;  %v4956_v31 = vmul.f32 %v12225_v47, %v14898_v24  ;;  %9167 = vmatmul.mubr.msk.bf16.gmra.mxu0 %vm652_vm2, %v4706_v17  ;;  %v4957_v49 = vmul.f32 %v12220_v20, %v14899_v36  ;;  %v5390_v21 = vmul.f32 %v12117_v41, %v14836_v19  ;;  %v14900_v17 = vld [vmem:[#allocation70_spill] sm:$0xff] }
 0x24a   : > { %v5391_v26 = vmul.f32 %v12156_v16, %v14828_v57  ;;  %v5392_v51 = vmul.f32 %v12181_v0, %v14837_v28  ;;  %9170 = vmatprep.mubr.msk.bf16.mxu0 %vm652_vm2, %v4715_v3  ;;  %v5456_v46 = vor.u32 %v5455_v4, %v5452_v2  ;;  %v4983_v12 = vpack.c.bf16 %v4955_v44, %v4954_v35  ;;  %v14903_v57 = vld [vmem:[#allocation73_spill] sm:$0xff] }
 0x24b   : > { %v5393_v15 = vmul.f32 %v12158_v25, %v14843_v52  ;;  %v4958_v32 = vmul.f32 %v12227_v9, %v14900_v17  ;;  %v4984_v1 = vpack.c.bf16 %v4957_v49, %v4956_v31  ;;  %v4959_v41 = vmul.f32 %v12213_v45, %v14901_v11  ;;  %9249 = vmatpush3.bf16.msra.mxu1 %v9480_v6 }
 0x24c   : > { %v5421_v56 = vpack.c.bf16 %v5391_v26, %v5390_v21  ;;  %v4960_v16 = vmul.f32 %v12271_v55, %v14902_v48  ;;  %v5457_v0 = vsel %vm862_vm3, %v5448_v27, %v5456_v46  ;;  %v5033_v3 = vshll.u32 %v4983_v12, 16  ;;  %9318 = vmatprep.subr.bf16.mxu1 %v12489_v37 }
 0x24d   : > { %v5037_v29 = vshrl.u32 %v4983_v12, 16  ;;  %v5422_v2 = vpack.c.bf16 %v5393_v15, %v5392_v51  ;;  %v5041_v25 = vshll.u32 %v4984_v1, 16  ;;  %v5045_v43 = vshrl.u32 %v4984_v1, 16 }
 0x24e   : > { %v5459_v18 = vshrl.u32 %v5421_v56, 16  ;;  %v5462_v35 = vshll.u32 %v5421_v56, 16  ;;  %v5035_v4 = vrot.slane %v5033_v3, 1  ;;  %v4985_v49 = vpack.c.bf16 %v4959_v41, %v4958_v32 }
 0x24f   : > { %v5468_v44 = vshrl.u32 %v5422_v2, 16  ;;  %v5471_v31 = vshll.u32 %v5422_v2, 16  ;;  %v5043_v21 = vrot.slane %v5041_v25, 1  ;;  %v4961_v6 = vmul.f32 %v12265_v40, %v14903_v57 }
 0x250   : > { %v5461_v26 = vrot.slane %v5459_v18, 3  ;;  %v5464_v28 = vrot.slane %v5462_v35, 4  ;;  %v5036_v27 = vsel %vm1420_vm4, %v5031_v59, %v5035_v4  ;;  %v5039_v12 = vor.u32 %v5037_v29, %v5035_v4 }
 0x251   : > { %v5470_v51 = vrot.slane %v5468_v44, 3  ;;  %v5473_v15 = vrot.slane %v5471_v31, 4  ;;  %9171 = vmatmul.mubr.msk.bf16.gmra.mxu0 %vm652_vm2, %v4724_v8  ;;  %9183 = vmatmul.mubr.msk.bf16.gmra.mxu1 %vm652_vm2, %v5036_v27  ;;  %v5047_v1 = vor.u32 %v5045_v43, %v5043_v21  ;;  %v5049_v3 = vshll.u32 %v4985_v49, 16  ;;  %v14904_v31 = vld [vmem:[#allocation74_spill] sm:$0xff]  ;;  %v14906_v27 = vld [vmem:[#allocation24_spill] sm:$0xff] }
 0x252   : > { %v5465_v56 = vor.u32 %v5464_v28, %v5461_v26  ;;  %v4986_v2 = vpack.c.bf16 %v4961_v6, %v4960_v16  ;;  %9214 = vmatprep.mubr.msk.bf16.mxu0 %vm652_vm2, %v5457_v0  ;;  %v5044_v32 = vsel %vm1420_vm4, %v5039_v12, %v5043_v21  ;;  %v5053_v25 = vshrl.u32 %v4985_v49, 16  ;;  %v14905_v26 = vld [vmem:[#allocation27_spill] sm:$0xff] }
 0x253   : > { %v5474_v41 = vor.u32 %v5473_v15, %v5470_v51  ;;  %v5394_v59 = vmul.f32 %v12160_v5, %v14846_v54  ;;  %9186 = vmatprep.mubr.msk.bf16.mxu1 %vm652_vm2, %v5044_v32  ;;  %v5051_v8 = vrot.slane %v5049_v3, 1  ;;  %v5395_v16 = vmul.f32 %v12225_v47, %v14844_v53  ;;  %v14907_v51 = vld [vmem:[#allocation75_spill] sm:$0xff] }
 0x254   : > { %v5466_v29 = vsel %vm862_vm3, %v5456_v46, %v5465_v56  ;;  %v5057_v18 = vshll.u32 %v4986_v2, 16  ;;  %v5061_v35 = vshrl.u32 %v4986_v2, 16  ;;  %v5396_v0 = vmul.f32 %v12220_v20, %v14850_v42  ;;  %v9483_v32 = vld [vmem:[%s14135_s5 + $0x50] sm:$0xff]   ;;  %v14937_v42 = vld [vmem:[#allocation53_spill] sm:$0xff] }
 0x255   : > { %v5475_v28 = vsel %vm862_vm3, %v5465_v56, %v5474_v41  ;;  %v5397_v43 = vmul.f32 %v12227_v9, %v14851_v62  ;;  %v5052_v5 = vsel %vm1420_vm4, %v5047_v1, %v5051_v8  ;;  %v5055_v4 = vor.u32 %v5053_v25, %v5051_v8 }
 0x256   : > { %v5059_v44 = vrot.slane %v5057_v18, 1  ;;  %v4962_v46 = vmul.f32 %v12281_v58, %v14904_v31  ;;  %v5423_v49 = vpack.c.bf16 %v5395_v16, %v5394_v59  ;;  %v4963_v6 = vmul.f32 %v12273_v22, %v14905_v26 }
 0x257   : > { %v5424_v21 = vpack.c.bf16 %v5397_v43, %v5396_v0  ;;  %v4964_v47 = vmul.f32 %v12314_v10, %v14906_v27  ;;  %v4965_v9 = vmul.f32 %v12303_v34, %v14907_v51  ;;  %v5398_v15 = vmul.f32 %v12213_v45, %v14854_v50  ;;  %v12625_v50 = vld [vmem:[#allocation2 + $0x108] sm:$0xff] }
 0x258   : > { %v5060_v20 = vsel %vm1420_vm4, %v5055_v4, %v5059_v44  ;;  %v5063_v12 = vor.u32 %v5061_v35, %v5059_v44  ;;  %v5477_v1 = vshrl.u32 %v5423_v49, 16  ;;  %v5480_v56 = vshll.u32 %v5423_v49, 16 }
 0x259   : > { %v5486_v3 = vshrl.u32 %v5424_v21, 16  ;;  %v5489_v2 = vshll.u32 %v5424_v21, 16  ;;  %9215 = vmatmul.mubr.msk.bf16.vlgmr.msra.gmra.mxu0 %vm652_vm2, %v5466_v29  ;;  %9187 = vmatmul.mubr.msk.bf16.gmra.mxu1 %vm652_vm2, %v5052_v5  ;;  %v4987_v25 = vpack.c.bf16 %v4963_v6, %v4962_v46  ;;  %v4988_v59 = vpack.c.bf16 %v4965_v9, %v4964_v47  ;;  %v14908_v47 = vld [vmem:[#allocation25_spill] sm:$0xff] }
 0x25a   : > { %v5399_v8 = vmul.f32 %v12271_v55, %v14855_v39  ;;  %9218 = vmatprep.mubr.msk.bf16.mxu0 %vm652_vm2, %v5475_v28  ;;  %9190 = vmatprep.mubr.msk.bf16.mxu1 %vm652_vm2, %v5060_v20  ;;  %v5479_v45 = vrot.slane %v5477_v1, 3  ;;  %v5482_v18 = vrot.slane %v5480_v56, 4  ;;  %v5400_v55 = vmul.f32 %v12265_v40, %v14856_v7  ;;  %v12556_v28 = vld [vmem:[%s14135_s5 + $0x78] sm:$0xff]  }
 0x25b   : > { %v5488_v35 = vrot.slane %v5486_v3, 3  ;;  %v5491_v16 = vrot.slane %v5489_v2, 4  ;;  %v5065_v0 = vshll.u32 %v4987_v25, 16  ;;  %v5069_v43 = vshrl.u32 %v4987_v25, 16  ;;  %9283 = vmatpush3.bf16.msra.mxu0 %v12244_v38 }
 0x25c   : > { %v5073_v4 = vshll.u32 %v4988_v59, 16  ;;  %v5077_v44 = vshrl.u32 %v4988_v59, 16  ;;  %v5483_v29 = vor.u32 %v5482_v18, %v5479_v45  ;;  %v5425_v46 = vpack.c.bf16 %v5399_v8, %v5398_v15  ;;  %9284 = vmatprep.subr.bf16.mxu0 %v9483_v32  ;;  %v14909_v8 = vld [vmem:[#allocation26_spill] sm:$0xff]  ;;  %v14910_v45 = vld [vmem:[#allocation92_spill] sm:$0xff] }
 0x25d   : > { %v5492_v5 = vor.u32 %v5491_v16, %v5488_v35  ;;  %v5067_v49 = vrot.slane %v5065_v0, 1  ;;  %v5401_v6 = vmul.f32 %v12281_v58, %v14857_v60  ;;  %v4966_v38 = vmul.f32 %v12328_v30, %v14908_v47  ;;  %v14911_v18 = vld [vmem:[#allocation32_spill] sm:$0xff]  ;;  %v14912_v35 = vld [vmem:[#allocation98_spill] sm:$0xff] }
 0x25e   : > { %v5075_v21 = vrot.slane %v5073_v4, 1  ;;  %v5484_v20 = vsel %vm862_vm3, %v5474_v41, %v5483_v29  ;;  %v5495_v15 = vshrl.u32 %v5425_v46, 16  ;;  %v5498_v40 = vshll.u32 %v5425_v46, 16  ;;  %v14915_v46 = vld [vmem:[#allocation37_spill] sm:$0xff] }
 0x25f   : > { %v5493_v9 = vsel %vm862_vm3, %v5483_v29, %v5492_v5  ;;  %v5068_v1 = vsel %vm1420_vm4, %v5063_v12, %v5067_v49  ;;  %v5071_v56 = vor.u32 %v5069_v43, %v5067_v49  ;;  %v5426_v2 = vpack.c.bf16 %v5401_v6, %v5400_v55  ;;  %9285 = vmatpush3.bf16.msra.mxu0 %v9483_v32  ;;  %v14913_v43 = vld [vmem:[#allocation33_spill] sm:$0xff]  ;;  %v14914_v32 = vld [vmem:[#allocation96_spill] sm:$0xff] }
 0x260   : > { %v5079_v3 = vor.u32 %v5077_v44, %v5075_v21  ;;  %v5497_v25 = vrot.slane %v5495_v15, 3  ;;  %v5500_v59 = vrot.slane %v5498_v40, 4  ;;  %v4967_v58 = vmul.f32 %v14910_v45, %v14909_v8  ;;  %9354 = vmatprep.subr.bf16.mxu0 %v12556_v28  ;;  %v14916_v15 = vld [vmem:[#allocation38_spill] sm:$0xff] }
 0x261   : > { %v4968_v16 = vmul.f32 %v14912_v35, %v14911_v18  ;;  %9219 = vmatmul.mubr.msk.bf16.gmra.mxu0 %vm652_vm2, %v5484_v20  ;;  %9191 = vmatmul.mubr.msk.bf16.gmra.mxu1 %vm652_vm2, %v5068_v1  ;;  %v5076_v41 = vsel %vm1420_vm4, %v5071_v56, %v5075_v21  ;;  %v5504_v12 = vshrl.u32 %v5426_v2, 16  ;;  %v5507_v0 = vshll.u32 %v5426_v2, 16  ;;  %v14917_v2 = vld [vmem:[#allocation41_spill] sm:$0xff] }
 0x262   : > { %v4969_v4 = vmul.f32 %v14914_v32, %v14913_v43  ;;  %9222 = vmatprep.mubr.msk.bf16.mxu0 %vm652_vm2, %v5493_v9  ;;  %9194 = vmatprep.mubr.msk.bf16.mxu1 %vm652_vm2, %v5076_v41  ;;  %v5501_v44 = vor.u32 %v5500_v59, %v5497_v25  ;;  %v4989_v29 = vpack.c.bf16 %v4967_v58, %v4966_v38  ;;  %v14918_v58 = vld [vmem:[#allocation42_spill] sm:$0xff] }
 0x263   : > { %v5402_v55 = vmul.f32 %v12273_v22, %v14915_v46  ;;  %v5506_v49 = vrot.slane %v5504_v12, 3  ;;  %v5509_v6 = vrot.slane %v5507_v0, 4  ;;  %v5403_v21 = vmul.f32 %v12314_v10, %v14916_v15  ;;  %v14919_v12 = vld [vmem:[#allocation34_spill] sm:$0xff]  ;;  %v14922_v10 = vld [vmem:[#allocation51_spill] sm:$0xff] }
 0x264   : > { %v4990_v20 = vpack.c.bf16 %v4969_v4, %v4968_v16  ;;  %v5502_v40 = vsel %vm862_vm3, %v5492_v5, %v5501_v44  ;;  %v5081_v1 = vshll.u32 %v4989_v29, 16  ;;  %v5085_v56 = vshrl.u32 %v4989_v29, 16  ;;  %v14920_v16 = vld [vmem:[#allocation99_spill] sm:$0xff]  ;;  %v14921_v4 = vld [vmem:[#allocation76_spill] sm:$0xff] }
 0x265   : > { %v5404_v9 = vmul.f32 %v12303_v34, %v14917_v2  ;;  %v5510_v7 = vor.u32 %v5509_v6, %v5506_v49  ;;  %v5427_v38 = vpack.c.bf16 %v5403_v21, %v5402_v55  ;;  %v5405_v22 = vmul.f32 %v12328_v30, %v14918_v58  ;;  %v14924_v2 = vld [vmem:[#allocation101_spill] sm:$0xff] }
 0x266   : > { %v5089_v41 = vshll.u32 %v4990_v20, 16  ;;  %v5093_v25 = vshrl.u32 %v4990_v20, 16  ;;  %v5083_v59 = vrot.slane %v5081_v1, 1  ;;  %v4970_v0 = vmul.f32 %v14920_v16, %v14919_v12  ;;  %v14923_v1 = vld [vmem:[#allocation77_spill] sm:$0xff] }
 0x267   : > { %v4971_v15 = vmul.f32 %v14922_v10, %v14921_v4  ;;  %v5511_v5 = vsel %vm862_vm3, %v5501_v44, %v5510_v7  ;;  %v5513_v46 = vshrl.u32 %v5427_v38, 16  ;;  %v5516_v60 = vshll.u32 %v5427_v38, 16 }
 0x268   : > { %v5091_v29 = vrot.slane %v5089_v41, 1  ;;  %v5084_v34 = vsel %vm1420_vm4, %v5079_v3, %v5083_v59  ;;  %v5087_v49 = vor.u32 %v5085_v56, %v5083_v59  ;;  %v5428_v6 = vpack.c.bf16 %v5405_v22, %v5404_v9  ;;  %v14925_v56 = vld [vmem:[#allocation78_spill] sm:$0xff] }
 0x269   : > { %v4991_v55 = vpack.c.bf16 %v4971_v15, %v4970_v0  ;;  %9223 = vmatmul.mubr.msk.bf16.gmra.mxu0 %vm652_vm2, %v5502_v40  ;;  %9195 = vmatmul.mubr.msk.bf16.gmra.mxu1 %vm652_vm2, %v5084_v34  ;;  %v5515_v20 = vrot.slane %v5513_v46, 3  ;;  %v5518_v21 = vrot.slane %v5516_v60, 4  ;;  %v4972_v58 = vmul.f32 %v14924_v2, %v14923_v1  ;;  %v14927_v0 = vld [vmem:[#allocation44_spill] sm:$0xff] }
 0x26a   : > { %v5095_v30 = vor.u32 %v5093_v25, %v5091_v29  ;;  %9226 = vmatprep.mubr.msk.bf16.mxu0 %vm652_vm2, %v5511_v5  ;;  %v5092_v44 = vsel %vm1420_vm4, %v5087_v49, %v5091_v29  ;;  %v5522_v41 = vshrl.u32 %v5428_v6, 16  ;;  %v5525_v38 = vshll.u32 %v5428_v6, 16  ;;  %v14926_v25 = vld [vmem:[#allocation43_spill] sm:$0xff] }
 0x26b   : > { %v5097_v3 = vshll.u32 %v4991_v55, 16  ;;  %9198 = vmatprep.mubr.msk.bf16.mxu1 %vm652_vm2, %v5092_v44  ;;  %v5519_v15 = vor.u32 %v5518_v21, %v5515_v20  ;;  %v4973_v40 = vmul.f32 %v12393_v63, %v14925_v56  ;;  %v5101_v9 = vshrl.u32 %v4991_v55, 16  ;;  %v14928_v49 = vld [vmem:[#allocation47_spill] sm:$0xff]  ;;  %v14929_v20 = vld [vmem:[#allocation48_spill] sm:$0xff] }
 0x26c   : > { %v5406_v60 = vmul.f32 %v14910_v45, %v14926_v25  ;;  %v5524_v46 = vrot.slane %v5522_v41, 3  ;;  %v5527_v59 = vrot.slane %v5525_v38, 4  ;;  %v5407_v5 = vmul.f32 %v14912_v35, %v14927_v0  ;;  %v14930_v25 = vld [vmem:[#allocation79_spill] sm:$0xff]  ;;  %v14931_v0 = vld [vmem:[#allocation80_spill] sm:$0xff] }
 0x26d   : > { %v5099_v22 = vrot.slane %v5097_v3, 1  ;;  %v5520_v29 = vsel %vm862_vm3, %v5510_v7, %v5519_v15  ;;  %v4992_v34 = vpack.c.bf16 %v4973_v40, %v4972_v58  ;;  %v5408_v6 = vmul.f32 %v14914_v32, %v14928_v49 }
 0x26e   : > { %v5409_v21 = vmul.f32 %v14920_v16, %v14929_v20  ;;  %v5528_v44 = vor.u32 %v5527_v59, %v5524_v46  ;;  %v5429_v45 = vpack.c.bf16 %v5407_v5, %v5406_v60  ;;  %v4974_v35 = vmul.f32 %v12400_v33, %v14930_v25  ;;  %v14932_v60 = vld [vmem:[#allocation82_spill] sm:$0xff]  ;;  %v14933_v5 = vld [vmem:[#allocation83_spill] sm:$0xff] }
 0x26f   : > { %v5100_v55 = vsel %vm1420_vm4, %v5095_v30, %v5099_v22  ;;  %v5103_v39 = vor.u32 %v5101_v9, %v5099_v22  ;;  %v5105_v41 = vshll.u32 %v4992_v34, 16  ;;  %v5109_v38 = vshrl.u32 %v4992_v34, 16  ;;  %v14934_v34 = vld [vmem:[#allocation103_spill] sm:$0xff] }
 0x270   : > { %v5430_v3 = vpack.c.bf16 %v5409_v21, %v5408_v6  ;;  %v5529_v7 = vsel %vm862_vm3, %v5519_v15, %v5528_v44  ;;  %v5531_v58 = vshrl.u32 %v5429_v45, 16  ;;  %v5534_v40 = vshll.u32 %v5429_v45, 16 }
 0x271   : > { %v4975_v32 = vmul.f32 %v12385_v23, %v14931_v0  ;;  %9227 = vmatmul.mubr.msk.bf16.gmra.mxu0 %vm652_vm2, %v5520_v29  ;;  %9199 = vmatmul.mubr.msk.bf16.gmra.mxu1 %vm652_vm2, %v5100_v55  ;;  %v5107_v16 = vrot.slane %v5105_v41, 1  ;;  %v4976_v46 = vmul.f32 %v12432_v61, %v14932_v60  ;;  %v4977_v6 = vmul.f32 %v14934_v34, %v14933_v5 }
 0x272   : > { %v5540_v30 = vshrl.u32 %v5430_v3, 16  ;;  %v5543_v9 = vshll.u32 %v5430_v3, 16  ;;  %9230 = vmatprep.mubr.msk.bf16.mxu0 %vm652_vm2, %v5529_v7  ;;  %v5533_v59 = vrot.slane %v5531_v58, 3  ;;  %v5536_v22 = vrot.slane %v5534_v40, 4  ;;  %v14935_v58 = vld [vmem:[#allocation49_spill] sm:$0xff]  ;;  %v14936_v40 = vld [vmem:[#allocation50_spill] sm:$0xff] }
 0x273   : > { %v4993_v15 = vpack.c.bf16 %v4975_v32, %v4974_v35  ;;  %v5108_v21 = vsel %vm1420_vm4, %v5103_v39, %v5107_v16  ;;  %v5111_v45 = vor.u32 %v5109_v38, %v5107_v16  ;;  %v4994_v3 = vpack.c.bf16 %v4977_v6, %v4976_v46 }
 0x274   : > { %v5542_v29 = vrot.slane %v5540_v30, 3  ;;  %v5545_v49 = vrot.slane %v5543_v9, 4  ;;  %9202 = vmatprep.mubr.msk.bf16.mxu1 %vm652_vm2, %v5108_v21  ;;  %v5537_v55 = vor.u32 %v5536_v22, %v5533_v59  ;;  %v5410_v35 = vmul.f32 %v14922_v10, %v14935_v58  ;;  %v14938_v22 = vld [vmem:[#allocation54_spill] sm:$0xff] }
 0x275   : > { %v5113_v41 = vshll.u32 %v4993_v15, 16  ;;  %v5117_v20 = vshrl.u32 %v4993_v15, 16  ;;  %v5411_v32 = vmul.f32 %v14924_v2, %v14936_v40  ;;  %v5412_v39 = vmul.f32 %v12393_v63, %v14937_v42  ;;  %v14939_v15 = vld [vmem:[#allocation81_spill] sm:$0xff]  ;;  %v14940_v40 = vld [vmem:[#allocation55_spill] sm:$0xff] }
 0x276   : > { %v5546_v7 = vor.u32 %v5545_v49, %v5542_v29  ;;  %v5538_v38 = vsel %vm862_vm3, %v5528_v44, %v5537_v55  ;;  %v5121_v30 = vshll.u32 %v4994_v3, 16  ;;  %v5125_v9 = vshrl.u32 %v4994_v3, 16 }
 0x277   : > { %v5115_v16 = vrot.slane %v5113_v41, 1  ;;  %v5431_v59 = vpack.c.bf16 %v5411_v32, %v5410_v35  ;;  %v5413_v49 = vmul.f32 %v12400_v33, %v14938_v22  ;;  %v4978_v10 = vmul.f32 %v12625_v50, %v14939_v15  ;;  %v12644_v35 = vld [vmem:[#allocation2 + $0x110] sm:$0xff]  ;;  %v12657_v22 = vld [vmem:[#allocation2 + $0x20] sm:$0xff] }
 0x278   : > { %v5547_v46 = vsel %vm862_vm3, %v5537_v55, %v5546_v7  ;;  %v5123_v29 = vrot.slane %v5121_v30, 1  ;;  %v5414_v42 = vmul.f32 %v12385_v23, %v14940_v40  ;;  %v14944_v40 = vld [vmem:[#allocation59_spill] sm:$0xff] }
 0x279   : > { %v5116_v6 = vsel %vm1420_vm4, %v5111_v45, %v5115_v16  ;;  %v5119_v21 = vor.u32 %v5117_v20, %v5115_v16  ;;  %9231 = vmatmul.mubr.msk.bf16.gmra.mxu0 %vm652_vm2, %v5538_v38  ;;  %v5549_v44 = vshrl.u32 %v5431_v59, 16  ;;  %v5552_v55 = vshll.u32 %v5431_v59, 16  ;;  %v14941_v20 = vld [vmem:[#allocation56_spill] sm:$0xff] }
 0x27a   : > { %9203 = vmatmul.mubr.msk.bf16.gmra.mxu1 %vm652_vm2, %v5116_v6  ;;  %v5432_v41 = vpack.c.bf16 %v5413_v49, %v5412_v39  ;;  %v4995_v3 = vpack.c.bf16 %v4978_v10, %v4978_v10  ;;  %9234 = vmatprep.mubr.msk.bf16.mxu0 %vm652_vm2, %v5547_v46  ;;  %v5127_v45 = vor.u32 %v5125_v9, %v5123_v29  ;;  %v14942_v16 = vld [vmem:[#allocation60_spill] sm:$0xff]  ;;  %v14943_v6 = vld [vmem:[#allocation61_spill] sm:$0xff] }
 0x27b   : > { %v5124_v33 = vsel %vm1420_vm4, %v5119_v21, %v5123_v29  ;;  %v5415_v32 = vmul.f32 %v12432_v61, %v14941_v20  ;;  %v5416_v23 = vmul.f32 %v14934_v34, %v14942_v16  ;;  %v5551_v38 = vrot.slane %v5549_v44, 3  ;;  %v14945_v16 = vld [vmem:[#allocation7_spill] sm:$0xff] }
 0x27c   : > { %9206 = vmatprep.mubr.msk.bf16.mxu1 %vm652_vm2, %v5124_v33  ;;  %v5554_v30 = vrot.slane %v5552_v55, 4  ;;  %v5558_v59 = vshrl.u32 %v5432_v41, 16  ;;  %v5561_v39 = vshll.u32 %v5432_v41, 16  ;;  %v5129_v49 = vshll.u32 %v4995_v3, 16 }
 0x27d   : > { %v5433_v10 = vpack.c.bf16 %v5415_v32, %v5414_v42  ;;  %v5417_v46 = vmul.f32 %v12625_v50, %v14943_v6  ;;  %v5418_v9 = vmul.f32 %v12644_v35, %v14944_v40  ;;  %v6061_v33 = vmul.f32 %v12657_v22, %v14945_v16  ;;  %v9545_v32 = vld [vmem:[#allocation2 + $0x18] sm:$0xff] }
 0x27e   : > { %v5555_v21 = vor.u32 %v5554_v30, %v5551_v38  ;;  %v5560_v29 = vrot.slane %v5558_v59, 3  ;;  %v5563_v20 = vrot.slane %v5561_v39, 4  ;;  %v5131_v44 = vrot.slane %v5129_v49, 1  ;;  %v14946_v6 = vld [vmem:[#allocation4_spill] sm:$0xff] }
 0x27f   : > { %v5567_v55 = vshrl.u32 %v5433_v10, 16  ;;  %v5570_v58 = vshll.u32 %v5433_v10, 16  ;;  %v5434_v41 = vpack.c.bf16 %v5417_v46, %v5416_v23  ;;  %v6060_v15 = vmul.f32 %v9545_v32, %v14946_v6  ;;  %v14947_v23 = vld [vmem:[#allocation85_spill] sm:$0xff]  ;;  %v12698_v6 = vld [vmem:[#allocation2 + $0x50] sm:$0xff] }
 0x280   : > { %v5556_v42 = vsel %vm862_vm3, %v5546_v7, %v5555_v21  ;;  %v5564_v3 = vor.u32 %v5563_v20, %v5560_v29  ;;  %v5132_v40 = vsel %vm1420_vm4, %v5127_v45, %v5131_v44  ;;  %v5435_v20 = vpack.c.bf16 %v5418_v9, %v5418_v9  ;;  %v12670_v45 = vld [vmem:[#allocation2 + $0x30] sm:$0xff]  ;;  %v12678_v32 = vld [vmem:[#allocation2 + $0x40] sm:$0xff] }
 0x281   : > { %v5569_v38 = vrot.slane %v5567_v55, 3  ;;  %v5572_v30 = vrot.slane %v5570_v58, 4  ;;  %v5576_v59 = vshrl.u32 %v5434_v41, 16  ;;  %9235 = vmatmul.mubr.msk.bf16.gmra.mxu0 %vm652_vm2, %v5556_v42  ;;  %v5579_v49 = vshll.u32 %v5434_v41, 16  ;;  %v14948_v58 = vld [vmem:[#allocation58_spill] sm:$0xff] }
 0x282   : > { %v5565_v39 = vsel %vm862_vm3, %v5555_v21, %v5564_v3  ;;  %9207 = vmatmul.mubr.msk.bf16.gmra.mxu1 %vm652_vm2, %v5132_v40  ;;  %v6093_v10 = vpack.c.bf16 %v6061_v33, %v6060_v15  ;;  %v6063_v29 = vmul.f32 %v12670_v45, %v14948_v58  ;;  %v12674_v21 = vld [vmem:[#allocation2 + $0x28] sm:$0xff]  ;;  %v14949_v40 = vld [vmem:[#allocation57_spill] sm:$0xff]  ;;  %v5585_v15 = vshrl.u32 %v5435_v20, 16 }
 0x283   : > { %9238 = vmatprep.mubr.msk.bf16.mxu0 %vm652_vm2, %v5565_v39  ;;  %9250 = vmatprep.mubr.msk.bf16.mxu1 %vm652_vm2, %v14947_v23  ;;  %v5578_v7 = vrot.slane %v5576_v59, 3  ;;  %v5581_v46 = vrot.slane %v5579_v49, 4  ;;  %v5573_v44 = vor.u32 %v5572_v30, %v5569_v38  ;;  %v6062_v41 = vmul.f32 %v12674_v21, %v14949_v40  ;;  %v14950_v39 = vld [vmem:[#allocation63_spill] sm:$0xff]  ;;  %v12682_v49 = vld [vmem:[#allocation2 + $0x38] sm:$0xff]  ;;  %v14951_v23 = vld [vmem:[#allocation62_spill] sm:$0xff] }
 0x284   : > { %v6118_v42 = vshll.u32 %v6093_v10, 16  ;;  %v6065_v9 = vmul.f32 %v12678_v32, %v14950_v39  ;;  %v5588_v33 = vshll.u32 %v5435_v20, 16  ;;  %v6064_v38 = vmul.f32 %v12682_v49, %v14951_v23  ;;  %v14952_v40 = vld [vmem:[#allocation88_spill] sm:$0xff]  ;;  %v14953_v23 = vld [vmem:[#allocation87_spill] sm:$0xff] }
 0x285   : > { %v5582_v55 = vor.u32 %v5581_v46, %v5578_v7  ;;  %v6094_v59 = vpack.c.bf16 %v6063_v29, %v6062_v41  ;;  %v5574_v30 = vsel %vm862_vm3, %v5564_v3, %v5573_v44  ;;  %v9484_v7 = vld [vmem:[%s14135_s5 + $0x60] sm:$0xff]   ;;  %v5587_v41 = vrot.slane %v5585_v15, 3 }
 0x286   : > { %v6120_v20 = vrot.slane %v6118_v42, 1  ;;  %v6095_v29 = vpack.c.bf16 %v6065_v9, %v6064_v38  ;;  %v5590_v39 = vrot.slane %v5588_v33, 4  ;;  %v6116_v3 = vshrl.u32 %v6093_v10, 16  ;;  %v12705_v42 = vld [vmem:[%s14135_s5 + $0x88] sm:$0xff]   ;;  %v14955_v38 = vld [vmem:[#allocation64_spill] sm:$0xff]  ;;  %v12711_v10 = vld [vmem:[#allocation2 + $0x60] sm:$0xff] }
 0x287   : > { %v5583_v46 = vsel %vm862_vm3, %v5573_v44, %v5582_v55  ;;  %v6123_v58 = vshll.u32 %v6094_v59, 16  ;;  %v12707_v33 = vld [vmem:[#allocation2 + $0x48] sm:$0xff] }
 0x288   : > { %v6121_v9 = vor.u32 %v6120_v20, %v6116_v3  ;;  %v6131_v15 = vshll.u32 %v6095_v29, 16  ;;  %v5591_v16 = vor.u32 %v5590_v39, %v5587_v41  ;;  %v14957_v41 = vld [vmem:[#allocation45_spill] sm:$0xff] }
 0x289   : > { %9239 = vmatmul.mubr.msk.bf16.gmra.mxu0 %vm652_vm2, %v5574_v30  ;;  %v14954_v30 = vld [vmem:[#allocation65_spill] sm:$0xff] }
 0x28a   : > { %9251 = vmatmul.mubr.msk.bf16.vlgmr.msra.gmra.mxu1 %vm652_vm2, %v14952_v40  ;;  %9242 = vmatprep.mubr.msk.bf16.mxu0 %vm652_vm2, %v5583_v46  ;;  %v6067_v44 = vmul.f32 %v12698_v6, %v14954_v30  ;;  %v6069_v46 = vmul.f32 %v12711_v10, %v14897_v13  ;;  %v6125_v30 = vrot.slane %v6123_v58, 1  ;;  %v12715_v40 = vld [vmem:[#allocation2 + $0x58] sm:$0xff]  ;;  %v5592_v20 = vsel %vm862_vm3, %v5582_v55, %v5591_v16 }
 0x28b   : > { %9254 = vmatprep.mubr.msk.bf16.mxu1 %vm652_vm2, %v14953_v23  ;;  %9319 = vmatpush3.bf16.msra.mxu1 %v12489_v37  ;;  %v6066_v37 = vmul.f32 %v12707_v33, %v14955_v38  ;;  %v6068_v53 = vmul.f32 %v12715_v40, %v14896_v14  ;;  %v14956_v38 = vld [vmem:[#allocation9_spill] sm:$0xff]  ;;  %v6133_v39 = vrot.slane %v6131_v15, 1  ;;  %v6127_v55 = vshrl.u32 %v6094_v59, 16  ;;  %v12732_v14 = vld [vmem:[#allocation2 + $0x68] sm:$0xff] }
 0x28c   : > { %9320 = vmatprep.subr.bf16.mxu1 %v9484_v7  ;;  %v6126_v3 = vsel %vm1420_vm4, %v6121_v9, %v6125_v30  ;;  %v12736_v15 = vld [vmem:[#allocation2 + $0x80] sm:$0xff] }
 0x28d   : > { %v6096_v23 = vpack.c.bf16 %v6067_v44, %v6066_v37  ;;  %v6097_v58 = vpack.c.bf16 %v6069_v46, %v6068_v53  ;;  %v6135_v44 = vshrl.u32 %v6095_v29, 16  ;;  %v12728_v37 = vld [vmem:[#allocation2 + $0x70] sm:$0xff]  ;;  %v6070_v53 = vmul.f32 %v12732_v14, %v14898_v24 }
 0x28e   : > { %v6071_v16 = vmul.f32 %v12728_v37, %v14899_v36  ;;  %v6073_v46 = vmul.f32 %v12736_v15, %v14901_v11  ;;  %v6129_v29 = vor.u32 %v6127_v55, %v6125_v30  ;;  %v9487_v36 = vld [vmem:[%s14135_s5 + $0x70] sm:$0xff]  }
 0x28f   : > { %9321 = vmatpush3.bf16.msra.mxu1 %v9484_v7  ;;  %v6139_v7 = vshll.u32 %v6096_v23, 16  ;;  %v6147_v9 = vshll.u32 %v6097_v58, 16  ;;  %v6151_v55 = vshrl.u32 %v6097_v58, 16 }
 0x290   : > { %9390 = vmatprep.subr.bf16.mxu1 %v12705_v42  ;;  %v6098_v13 = vpack.c.bf16 %v6071_v16, %v6070_v53  ;;  %v14959_v16 = vld [vmem:[#allocation91_spill] sm:$0xff] }
 0x291   : > { %9243 = vmatmul.mubr.msk.bf16.gmra.mxu0 %vm652_vm2, %v5592_v20  ;;  %v6137_v20 = vor.u32 %v6135_v44, %v6133_v39  ;;  %v6134_v44 = vsel %vm1420_vm4, %v6129_v29, %v6133_v39  ;;  %v6149_v30 = vrot.slane %v6147_v9, 1  ;;  %v12755_v53 = vld [vmem:[#allocation2 + $0x90] sm:$0xff]  ;;  %v12760_v9 = vld [vmem:[#allocation2 + $0x88] sm:$0xff] }
 0x292   : > { %9255 = vmatmul.mubr.msk.bf16.gmra.mxu1 %vm652_vm2, %v14956_v38  ;;  %9286 = vmatprep.mubr.msk.bf16.mxu0 %vm652_vm2, %v6126_v3  ;;  %v6141_v3 = vrot.slane %v6139_v7, 1  ;;  %v14958_v38 = vld [vmem:[#allocation90_spill] sm:$0xff]  ;;  %v6155_v39 = vshll.u32 %v6098_v13, 16  ;;  %v6075_v29 = vmul.f32 %v12755_v53, %v14903_v57  ;;  %v12768_v57 = vld [vmem:[#allocation2 + $0x98] sm:$0xff] }
 0x293   : > { %9258 = vmatprep.mubr.msk.bf16.mxu1 %vm652_vm2, %v14957_v41  ;;  %v12740_v41 = vld [vmem:[#allocation2 + $0x78] sm:$0xff] }
 0x294   : > { %v6072_v59 = vmul.f32 %v12740_v41, %v14900_v17  ;;  %v6142_v24 = vsel %vm1420_vm4, %v6137_v20, %v6141_v3  ;;  %v6143_v20 = vshrl.u32 %v6096_v23, 16  ;;  %v6157_v11 = vrot.slane %v6155_v39, 1 }
 0x296   : > { %v6099_v7 = vpack.c.bf16 %v6073_v46, %v6072_v59  ;;  %v12764_v46 = vld [vmem:[#allocation2 + $0xa0] sm:$0xff]  ;;  %v6145_v59 = vor.u32 %v6143_v20, %v6141_v3 }
 0x297   : > { %v6077_v58 = vmul.f32 %v12764_v46, %v14905_v26 }
 0x298   : > { %v6163_v17 = vshll.u32 %v6099_v7, 16  ;;  %v6150_v23 = vsel %vm1420_vm4, %v6145_v59, %v6149_v30  ;;  %v6167_v20 = vshrl.u32 %v6099_v7, 16  ;;  %v6159_v59 = vshrl.u32 %v6098_v13, 16 }
 0x299   : > { %9287 = vmatmul.mubr.msk.bf16.vlgmr.msra.gmra.mxu0 %vm652_vm2, %v6134_v44  ;;  %v6153_v44 = vor.u32 %v6151_v55, %v6149_v30  ;;  %v14960_v55 = vmov 0.0  }
 0x29a   : > { %9259 = vmatmul.mubr.msk.bf16.gmra.mxu1 %vm652_vm2, %v14958_v38  ;;  %9290 = vmatprep.mubr.msk.bf16.mxu0 %vm652_vm2, %v6142_v24  ;;  %v6074_v24 = vmul.f32 %v12760_v9, %v14902_v48  ;;  %v14961_v38 = vld [vmem:[#allocation40_spill] sm:$0xff]  ;;  %v6165_v3 = vrot.slane %v6163_v17, 1  ;;  %v6161_v7 = vor.u32 %v6159_v59, %v6157_v11 }
 0x29b   : > { %9262 = vmatprep.mubr.msk.bf16.mxu1 %vm652_vm2, %v14959_v16  ;;  %9355 = vmatpush3.bf16.msra.mxu0 %v12556_v28  ;;  %v6076_v28 = vmul.f32 %v12768_v57, %v14904_v31  ;;  %v6158_v48 = vsel %vm1420_vm4, %v6153_v44, %v6157_v11  ;;  %v12793_v31 = vld [vmem:[#allocation2 + $0xb8] sm:$0xff] }
 0x29c   : > { %9356 = vmatprep.subr.bf16.mxu0 %v9487_v36  ;;  %v6100_v16 = vpack.c.bf16 %v6075_v29, %v6074_v24  ;;  %v14962_v29 = vld [vmem:[#allocation93_spill] sm:$0xff]  ;;  %v12781_v24 = vld [vmem:[#allocation2 + $0xb0] sm:$0xff]  ;;  %v6169_v17 = vor.u32 %v6167_v20, %v6165_v3  ;;  %14964 = vst [vmem:[#allocation100_spill] sm:$0xff] %v12793_v31  ;;  %v6080_v26 = vmul.f32 %v12793_v31, %v14908_v47 }
 0x29d   : > { %v6101_v39 = vpack.c.bf16 %v6077_v58, %v6076_v28  ;;  %v6079_v30 = vmul.f32 %v12781_v24, %v14907_v51  ;;  %v12789_v28 = vld [vmem:[#allocation2 + $0xa8] sm:$0xff] }
 0x29f   : > { %9357 = vmatpush3.bf16.msra.mxu0 %v9487_v36  ;;  %v6171_v36 = vshll.u32 %v6100_v16, 16  ;;  %v6179_v58 = vshll.u32 %v6101_v39, 16 }
 0x2a0   : > { %9426 = vmatprep.subr.mxu0 %v14960_v55  ;;  %v12824_v55 = vld [vmem:[#allocation2 + $0xf0] sm:$0xff] }
 0x2a1   : > { %9291 = vmatmul.mubr.msk.bf16.gmra.mxu0 %vm652_vm2, %v6150_v23  ;;  %v12785_v23 = vld [vmem:[#allocation2 + $0xc0] sm:$0xff]  ;;  %v6173_v51 = vrot.slane %v6171_v36, 1  ;;  %v14967_v36 = vld [vmem:[#allocation52_spill] sm:$0xff]  ;;  %14972 = vst [vmem:[#allocation108_spill] sm:$0xff] %v12824_v55 }
 0x2a2   : > { %9263 = vmatmul.mubr.msk.bf16.gmra.mxu1 %vm652_vm2, %v14961_v38  ;;  %9294 = vmatprep.mubr.msk.bf16.mxu0 %vm652_vm2, %v6158_v48  ;;  %14963 = vst [vmem:[#allocation104_spill] sm:$0xff] %v12785_v23  ;;  %v6081_v44 = vmul.f32 %v12785_v23, %v14909_v8  ;;  %v6078_v48 = vmul.f32 %v12789_v28, %v14906_v27  ;;  %v14965_v8 = vld [vmem:[#allocation46_spill] sm:$0xff]  ;;  %v6181_v23 = vrot.slane %v6179_v58, 1  ;;  %v12802_v27 = vld [vmem:[#allocation2 + $0xd0] sm:$0xff] }
 0x2a3   : > { %9266 = vmatprep.mubr.msk.bf16.mxu1 %vm652_vm2, %v14962_v29  ;;  %v6166_v29 = vsel %vm1420_vm4, %v6161_v7, %v6165_v3  ;;  %v6174_v20 = vsel %vm1420_vm4, %v6169_v17, %v6173_v51  ;;  %14966 = vst [vmem:[#allocation107_spill] sm:$0xff] %v12802_v27  ;;  %v6083_v11 = vmul.f32 %v12802_v27, %v14913_v43  ;;  %v6183_v3 = vshrl.u32 %v6101_v39, 16  ;;  %v14970_v39 = vld [vmem:[#allocation3_spill] sm:$0xff] }
 0x2a4   : > { %v6102_v13 = vpack.c.bf16 %v6079_v30, %v6078_v48  ;;  %v6103_v38 = vpack.c.bf16 %v6081_v44, %v6080_v26  ;;  %v6085_v26 = vmul.f32 %v12393_v63, %v14921_v4  ;;  %v12811_v30 = vld [vmem:[#allocation2 + $0xc8] sm:$0xff]  ;;  %v6175_v44 = vshrl.u32 %v6100_v16, 16 }
 0x2a5   : > { %14968 = vst [vmem:[#allocation106_spill] sm:$0xff] %v12811_v30  ;;  %v6082_v59 = vmul.f32 %v12811_v30, %v14911_v18  ;;  %v6084_v58 = vmul.f32 %v14924_v2, %v14919_v12  ;;  %v6185_v48 = vor.u32 %v6183_v3, %v6181_v23  ;;  %v6500_v4 = vmul.f32 %v12657_v22, %v14970_v39 }
 0x2a6   : > { %v6195_v17 = vshll.u32 %v6103_v38, 16  ;;  %v6177_v47 = vor.u32 %v6175_v44, %v6173_v51  ;;  %v6191_v18 = vshrl.u32 %v6102_v13, 16  ;;  %v6087_v2 = vmul.f32 %v12824_v55, %v14925_v56 }
 0x2a7   : > { %v6104_v7 = vpack.c.bf16 %v6083_v11, %v6082_v59  ;;  %v14973_v11 = vld [vmem:[#allocation94_spill] sm:$0xff]  ;;  %v6089_v44 = vmul.f32 %v14934_v34, %v14931_v0  ;;  %v14992_v56 = vmov 0.0  }
 0x2a8   : > { %v6182_v16 = vsel %vm1420_vm4, %v6177_v47, %v6181_v23  ;;  %v6197_v30 = vrot.slane %v6195_v17, 1  ;;  %v14975_v47 = vld [vmem:[#allocation95_spill] sm:$0xff]  ;;  %v6199_v23 = vshrl.u32 %v6103_v38, 16  ;;  %v6504_v38 = vmul.f32 %v12678_v32, %v14836_v19  ;;  %v14985_v0 = vld [vmem:[#allocation30_spill] sm:$0xff] }
 0x2a9   : > { %9295 = vmatmul.mubr.msk.bf16.gmra.mxu0 %vm652_vm2, %v6166_v29  ;;  %v6187_v29 = vshll.u32 %v6102_v13, 16  ;;  %v6203_v22 = vshll.u32 %v6104_v7, 16 }
 0x2aa   : > { %9267 = vmatmul.mubr.msk.bf16.gmra.mxu1 %vm652_vm2, %v14965_v8  ;;  %9298 = vmatprep.mubr.msk.bf16.mxu0 %vm652_vm2, %v6174_v20  ;;  %v14969_v20 = vld [vmem:[#allocation11_spill] sm:$0xff]  ;;  %v14971_v8 = vld [vmem:[#allocation6_spill] sm:$0xff] }
 0x2ab   : > { %9270 = vmatprep.mubr.msk.bf16.mxu1 %vm652_vm2, %v14967_v36  ;;  %v6503_v43 = vmul.f32 %v12682_v49, %v14969_v20  ;;  %v6105_v36 = vpack.c.bf16 %v6085_v26, %v6084_v58  ;;  %v6189_v63 = vrot.slane %v6187_v29, 1  ;;  %v6502_v27 = vmul.f32 %v12670_v45, %v14971_v8  ;;  %v14974_v26 = vld [vmem:[#allocation5_spill] sm:$0xff]  ;;  %v12837_v29 = vld [vmem:[#allocation2 + $0xe8] sm:$0xff]  ;;  %v15001_v12 = vld [vmem:[#allocation107_spill] sm:$0xff] }
 0x2ac   : > { %v6501_v8 = vmul.f32 %v12674_v21, %v14974_v26  ;;  %14976 = vst [vmem:[#allocation109_spill] sm:$0xff] %v12837_v29  ;;  %v6086_v59 = vmul.f32 %v12837_v29, %v14923_v1  ;;  %v6207_v58 = vshrl.u32 %v6104_v7, 16  ;;  %v6201_v20 = vor.u32 %v6199_v23, %v6197_v30  ;;  %v14977_v7 = vld [vmem:[#allocation15_spill] sm:$0xff] }
 0x2ad   : > { %v6190_v51 = vsel %vm1420_vm4, %v6185_v48, %v6189_v63  ;;  %v6534_v3 = vpack.c.bf16 %v6503_v43, %v6502_v27  ;;  %v6211_v13 = vshll.u32 %v6105_v36, 16  ;;  %v6193_v17 = vor.u32 %v6191_v18, %v6189_v63 }
 0x2ae   : > { %v6533_v48 = vpack.c.bf16 %v6501_v8, %v6500_v4  ;;  %v12843_v27 = vpack.c.bf16 %v6087_v2, %v6086_v59  ;;  %v6088_v43 = vmul.f32 %v12432_v61, %v14930_v25  ;;  %v6205_v39 = vrot.slane %v6203_v22, 1  ;;  %v14978_v8 = vld [vmem:[#allocation16_spill] sm:$0xff] }
 0x2af   : > { %v6507_v26 = vmul.f32 %v12715_v40, %v14843_v52  ;;  %v6213_v1 = vrot.slane %v6211_v13, 1  ;;  %v6215_v34 = vshrl.u32 %v6105_v36, 16  ;;  %v6505_v4 = vmul.f32 %v12707_v33, %v14977_v7  ;;  %v14979_v36 = vld [vmem:[#allocation97_spill] sm:$0xff] }
 0x2b0   : > { %v6107_v18 = vpack.c.bf16 %v6089_v44, %v6088_v43  ;;  %v6556_v63 = vshrl.u32 %v6533_v48, 16  ;;  %v6559_v2 = vshll.u32 %v6533_v48, 16  ;;  %v6091_v61 = vmul.f32 %v12644_v35, %v14933_v5 }
 0x2b1   : > { %9299 = vmatmul.mubr.msk.bf16.gmra.mxu0 %vm652_vm2, %v6182_v16  ;;  %v6564_v16 = vshrl.u32 %v6534_v3, 16  ;;  %v6506_v19 = vmul.f32 %v12698_v6, %v14978_v8  ;;  %v6198_v22 = vsel %vm1420_vm4, %v6193_v17, %v6197_v30  ;;  %v6219_v52 = vshll.u32 %v12843_v27, 16  ;;  %v14980_v30 = vld [vmem:[#allocation105_spill] sm:$0xff] }
 0x2b2   : > { %9271 = vmatmul.mubr.msk.bf16.gmra.mxu1 %vm652_vm2, %v14973_v11  ;;  %9302 = vmatprep.mubr.msk.bf16.mxu0 %vm652_vm2, %v6190_v51  ;;  %v6567_v51 = vshll.u32 %v6534_v3, 16  ;;  %v6206_v3 = vsel %vm1420_vm4, %v6201_v20, %v6205_v39  ;;  %v6535_v23 = vpack.c.bf16 %v6505_v4, %v6504_v38  ;;  %v6090_v44 = vmul.f32 %v12625_v50, %v14932_v60 }
 0x2b3   : > { %9274 = vmatprep.mubr.msk.bf16.mxu1 %vm652_vm2, %v14975_v47  ;;  %v6566_v13 = vrot.slane %v6564_v16, 3  ;;  %v6536_v48 = vpack.c.bf16 %v6507_v26, %v6506_v19  ;;  %v6209_v43 = vor.u32 %v6207_v58, %v6205_v39  ;;  %v6217_v17 = vor.u32 %v6215_v34, %v6213_v1 }
 0x2b4   : > { %v6569_v59 = vrot.slane %v6567_v51, 4  ;;  %v12870_v20 = vpack.c.bf16 %v12644_v35, %v12625_v50  ;;  %v6227_v38 = vshll.u32 %v6107_v18, 16  ;;  %v6223_v7 = vshrl.u32 %v12843_v27, 16 }
 0x2b5   : > { %v6558_v16 = vrot.slane %v6556_v63, 3  ;;  %v6561_v51 = vrot.slane %v6559_v2, 4  ;;  %v12873_v4 = vpack.c.bf16 %v6091_v61, %v6090_v44  ;;  %v6221_v8 = vrot.slane %v6219_v52, 1  ;;  %v12881_v2 = vld [vmem:[#allocation2 + $0x118] sm:$0xff] }
 0x2b6   : > { %v6573_v26 = vshrl.u32 %v6535_v23, 16  ;;  %v6576_v58 = vshll.u32 %v6535_v23, 16  ;;  %v6508_v39 = vmul.f32 %v12711_v10, %v14846_v54  ;;  %v6570_v19 = vor.u32 %v6569_v59, %v6566_v13  ;;  %v14981_v61 = vld [vmem:[#allocation20_spill] sm:$0xff]  ;;  %v14982_v54 = vld [vmem:[#allocation81_spill] sm:$0xff]  ;;  %v14983_v59 = vld [vmem:[#allocation22_spill] sm:$0xff] }
 0x2b7   : > { %v6585_v34 = vshll.u32 %v6536_v48, 16  ;;  %v6214_v5 = vsel %vm1420_vm4, %v6209_v43, %v6213_v1  ;;  %v6222_v27 = vsel %vm1420_vm4, %v6217_v17, %v6221_v8  ;;  %v6229_v63 = vrot.slane %v6227_v38, 1 }
 0x2b8   : > { %v6509_v52 = vmul.f32 %v12732_v14, %v14981_v61  ;;  %v6562_v23 = vor.u32 %v6561_v51, %v6558_v16  ;;  %v6235_v44 = vshll.u32 %v12873_v4, 16  ;;  %v6092_v13 = vmul.f32 %v12881_v2, %v14982_v54 }
 0x2b9   : > { %9303 = vmatmul.mubr.msk.bf16.gmra.mxu0 %vm652_vm2, %v6198_v22  ;;  %v6582_v22 = vshrl.u32 %v6536_v48, 16  ;;  %v6510_v48 = vmul.f32 %v12728_v37, %v14983_v59  ;;  %v6575_v60 = vrot.slane %v6573_v26, 3  ;;  %v6578_v1 = vrot.slane %v6576_v58, 4 }
 0x2ba   : > { %9275 = vmatmul.mubr.msk.bf16.gmra.mxu1 %vm652_vm2, %v14979_v36  ;;  %9306 = vmatprep.mubr.msk.bf16.mxu0 %vm652_vm2, %v6206_v3  ;;  %v6511_v3 = vmul.f32 %v12740_v41, %v14851_v62  ;;  %v6231_v62 = vshrl.u32 %v6107_v18, 16  ;;  %v6537_v43 = vpack.c.bf16 %v6509_v52, %v6508_v39  ;;  %v6571_v17 = vsel %vm862_vm3, %v6562_v23, %v6570_v19 }
 0x2bb   : > { %9278 = vmatprep.mubr.msk.bf16.mxu1 %vm652_vm2, %v14980_v30  ;;  %v6584_v16 = vrot.slane %v6582_v22, 3  ;;  %v6587_v51 = vrot.slane %v6585_v34, 4  ;;  %v6225_v25 = vor.u32 %v6223_v7, %v6221_v8  ;;  %v6237_v26 = vrot.slane %v6235_v44, 1 }
 0x2bc   : > { %v6538_v61 = vpack.c.bf16 %v6511_v3, %v6510_v48  ;;  %v6233_v18 = vor.u32 %v6231_v62, %v6229_v63  ;;  %v6109_v58 = vpack.c.bf16 %v6092_v13, %v6092_v13  ;;  %v6579_v59 = vor.u32 %v6578_v1, %v6575_v60  ;;  %v14987_v1 = vld [vmem:[#allocation35_spill] sm:$0xff] }
 0x2bd   : > { %v6591_v54 = vshrl.u32 %v6537_v43, 16  ;;  %v6594_v23 = vshll.u32 %v6537_v43, 16  ;;  %v6513_v22 = vmul.f32 %v12760_v9, %v14985_v0  ;;  %v6588_v34 = vor.u32 %v6587_v51, %v6584_v16 }
 0x2be   : > { %v6600_v8 = vshrl.u32 %v6538_v61, 16  ;;  %v6603_v3 = vshll.u32 %v6538_v61, 16  ;;  %v6230_v44 = vsel %vm1420_vm4, %v6225_v25, %v6229_v63  ;;  %v6238_v13 = vsel %vm1420_vm4, %v6233_v18, %v6237_v26 }
 0x2bf   : > { %v9108_v38 = vpop.f32.mrf.mxu1  ;;  %v6239_v62 = vshrl.u32 %v12873_v4, 16  ;;  %v6514_v43 = vmul.f32 %v12755_v53, %v14987_v1  ;;  %v6580_v0 = vsel %vm862_vm3, %v6570_v19, %v6579_v59  ;;  %v6243_v16 = vshll.u32 %v6109_v58, 16  ;;  %v14989_v1 = vld [vmem:[#allocation42_spill] sm:$0xff] }
 0x2c0   : > { %v6593_v51 = vrot.slane %v6591_v54, 3  ;;  %v6596_v61 = vrot.slane %v6594_v23, 4  ;;  %v6589_v25 = vsel %vm862_vm3, %v6579_v59, %v6588_v34  ;;  %v6602_v63 = vrot.slane %v6600_v8, 3 }
 0x2c1   : > { %9307 = vmatmul.mubr.msk.bf16.gmra.mxu0 %vm652_vm2, %v6214_v5  ;;  %v12896_v39 = vpop.f32.mrf.mxu1  ;;  %v14984_v5 = vld [vmem:[#allocation29_spill] sm:$0xff]  ;;  %v6605_v18 = vrot.slane %v6603_v3, 4  ;;  %v6241_v19 = vor.u32 %v6239_v62, %v6237_v26  ;;  %v6519_v8 = vmul.f32 %v12793_v31, %v14989_v1 }
 0x2c2   : > { %9279 = vmatmul.mubr.msk.bf16.gmra.mxu1 %vm652_vm2, %v12870_v20  ;;  %9310 = vmatprep.mubr.msk.bf16.mxu0 %vm652_vm2, %v6222_v27  ;;  %v6512_v52 = vmul.f32 %v12736_v15, %v14984_v5  ;;  %v14986_v27 = vld [vmem:[#allocation36_spill] sm:$0xff]  ;;  %v9488_v5 = vld [vmem:[%s14135_s5 + $0x80] sm:$0xff]  }
 0x2c3   : > { %9322 = vmatprep.mubr.msk.bf16.mxu1 %vm652_vm2, %v6571_v17  ;;  %v9109_v7 = vpop.f32.mrf.mxu1  ;;  %v6515_v48 = vmul.f32 %v12768_v57, %v14986_v27  ;;  %v6597_v27 = vor.u32 %v6596_v61, %v6593_v51  ;;  %v6606_v3 = vor.u32 %v6605_v18, %v6602_v63 }
 0x2c4   : > { %v6539_v60 = vpack.c.bf16 %v6513_v22, %v6512_v52  ;;  %v6245_v22 = vrot.slane %v6243_v16, 1 }
 0x2c5   : > { %v12907_v17 = vpop.f32.mrf.mxu1  ;;  %v6540_v52 = vpack.c.bf16 %v6515_v48, %v6514_v43  ;;  %v6598_v18 = vsel %vm862_vm3, %v6588_v34, %v6597_v27 }
 0x2c6   : > { %v6609_v58 = vshrl.u32 %v6539_v60, 16  ;;  %v6612_v23 = vshll.u32 %v6539_v60, 16  ;;  %v6246_v63 = vsel %vm1420_vm4, %v6241_v19, %v6245_v22 }
 0x2c7   : > { %v6621_v26 = vshll.u32 %v6540_v52, 16 }
 0x2c8   : > { %v12918_v4 = vpop.f32.mrf.mxu1  ;;  %v6611_v61 = vrot.slane %v6609_v58, 3 }
 0x2c9   : > { %9311 = vmatmul.mubr.msk.bf16.gmra.mxu0 %vm652_vm2, %v6230_v44  ;;  %v14988_v44 = vld [vmem:[#allocation37_spill] sm:$0xff]  ;;  %v6623_v19 = vrot.slane %v6621_v26, 4  ;;  %v14997_v26 = vld [vmem:[#allocation106_spill] sm:$0xff] }
 0x2ca   : > { %9323 = vmatmul.mubr.msk.bf16.vlgmr.msra.gmra.mxu1 %vm652_vm2, %v6580_v0  ;;  %9314 = vmatprep.mubr.msk.bf16.mxu0 %vm652_vm2, %v6238_v13  ;;  %v12923_v54 = vpop.f32.mrf.mxu1  ;;  %v6516_v59 = vmul.f32 %v12764_v46, %v14988_v44  ;;  %v6618_v13 = vshrl.u32 %v6540_v52, 16  ;;  %v14991_v0 = vld [vmem:[#allocation41_spill] sm:$0xff] }
 0x2cb   : > { %9326 = vmatprep.mubr.msk.bf16.mxu1 %vm652_vm2, %v6589_v25  ;;  %9391 = vmatpush3.bf16.msra.mxu1 %v12705_v42  ;;  %v14990_v42 = vld [vmem:[#allocation38_spill] sm:$0xff]  ;;  %v6518_v60 = vmul.f32 %v12781_v24, %v14991_v0  ;;  %v6614_v25 = vrot.slane %v6612_v23, 4  ;;  %v14993_v23 = vld [vmem:[#allocation88_spill] sm:$0xff] }
 0x2cc   : > { %9392 = vmatprep.subr.bf16.mxu1 %v9488_v5  ;;  %v12929_v48 = vpop.f32.mrf.mxu1  ;;  %v6517_v43 = vmul.f32 %v12789_v28, %v14990_v42  ;;  %v14994_v42 = vld [vmem:[#allocation43_spill] sm:$0xff] }
 0x2cd   : > { %v9144_v62 = vpop.f32.mrf.mxu0  ;;  %v6542_v1 = vpack.c.bf16 %v6519_v8, %v6518_v60 }
 0x2ce   : > { %v12935_v16 = vadd.f32 %v9144_v62, %v9108_v38  ;;  %v12937_v51 = vpop.f32.mrf.mxu1  ;;  %v6541_v52 = vpack.c.bf16 %v6517_v43, %v6516_v59  ;;  %v6607_v38 = vsel %vm862_vm3, %v6597_v27, %v6606_v3  ;;  %v6615_v59 = vor.u32 %v6614_v25, %v6611_v61  ;;  %v14995_v27 = vld [vmem:[#allocation104_spill] sm:$0xff] }
 0x2cf   : > { %9393 = vmatpush3.bf16.msra.mxu1 %v9488_v5  ;;  %v4819_v44 = vpop.f32.mrf.mxu0  ;;  %v6620_v5 = vrot.slane %v6618_v13, 3  ;;  %v6520_v43 = vmul.f32 %v14995_v27, %v14994_v42  ;;  %v14996_v13 = vld [vmem:[#allocation44_spill] sm:$0xff] }
 0x2d0   : > { %9437 = vmatprep.subr.mxu1 %v14992_v56  ;;  %v12946_v62 = vadd.f32 %v4819_v44, %v12896_v39  ;;  %v12948_v58 = vpop.f32.mrf.mxu1  ;;  %v6627_v0 = vshrl.u32 %v6541_v52, 16  ;;  %v6630_v60 = vshll.u32 %v6541_v52, 16  ;;  %v12966_v61 = vld [vmem:[#allocation2 + $0xd8] sm:$0xff]  ;;  %v15000_v52 = vld [vmem:[#allocation47_spill] sm:$0xff] }
 0x2d1   : > { %9315 = vmatmul.mubr.msk.bf16.gmra.mxu0 %vm652_vm2, %v6246_v63  ;;  %v9145_v34 = vpop.f32.mrf.mxu0  ;;  %v6636_v63 = vshrl.u32 %v6542_v1, 16  ;;  %14998 = vst [vmem:[#allocation102_spill] sm:$0xff] %v12966_v61  ;;  %v14999_v25 = vld [vmem:[#allocation48_spill] sm:$0xff]  ;;  %v6522_v31 = vmul.f32 %v15001_v12, %v15000_v52  ;;  %v15008_v12 = vld [vmem:[#allocation54_spill] sm:$0xff] }
 0x2d2   : > { %9327 = vmatmul.mubr.msk.bf16.gmra.mxu1 %vm652_vm2, %v6598_v18  ;;  %9358 = vmatprep.mubr.msk.bf16.mxu0 %vm652_vm2, %v14993_v23  ;;  %v12953_v22 = vadd.f32 %v9145_v34, %v9109_v7  ;;  %v12955_v8 = vpop.f32.mrf.mxu1  ;;  %v6521_v18 = vmul.f32 %v14997_v26, %v14996_v13  ;;  %v6639_v7 = vshll.u32 %v6542_v1, 16  ;;  %v6523_v34 = vmul.f32 %v12966_v61, %v14999_v25  ;;  %v15003_v61 = vld [vmem:[#allocation9_spill] sm:$0xff] }
 0x2d3   : > { %9330 = vmatprep.mubr.msk.bf16.mxu1 %vm652_vm2, %v6607_v38  ;;  %v4822_v39 = vpop.f32.mrf.mxu0  ;;  %v6624_v38 = vor.u32 %v6623_v19, %v6620_v5  ;;  %v6616_v13 = vsel %vm862_vm3, %v6606_v3, %v6615_v59  ;;  %v6629_v26 = vrot.slane %v6627_v0, 3  ;;  %v6638_v5 = vrot.slane %v6636_v63, 3  ;;  %v15006_v63 = vld [vmem:[#allocation49_spill] sm:$0xff] }
 0x2d4   : > { %v12962_v44 = vadd.f32 %v4822_v39, %v12907_v17  ;;  %v12964_v23 = vpop.f32.mrf.mxu1  ;;  %v6543_v56 = vpack.c.bf16 %v6521_v18, %v6520_v43  ;;  %v6632_v17 = vrot.slane %v6630_v60, 4  ;;  %v15002_v39 = vld [vmem:[#allocation87_spill] sm:$0xff]  ;;  %v6641_v19 = vrot.slane %v6639_v7, 4 }
 0x2d5   : > { %v6625_v1 = vsel %vm862_vm3, %v6615_v59, %v6624_v38  ;;  %v6544_v25 = vpack.c.bf16 %v6523_v34, %v6522_v31  ;;  %v12989_v59 = vld [vmem:[#allocation2 + $0xe0] sm:$0xff] }
 0x2d6   : > { %v12970_v42 = vpop.f32.mrf.mxu1  ;;  %v6645_v0 = vshrl.u32 %v6543_v56, 16  ;;  %v6633_v18 = vor.u32 %v6632_v17, %v6629_v26  ;;  %15005 = vst [vmem:[#allocation112_spill] sm:$0xff] %v12989_v59  ;;  %v6524_v31 = vmul.f32 %v12989_v59, %v15006_v63  ;;  %v15010_v63 = vld [vmem:[#allocation53_spill] sm:$0xff] }
 0x2d7   : > { %v6654_v34 = vshrl.u32 %v6544_v25, 16 }
 0x2d9   : > { %9359 = vmatmul.mubr.msk.bf16.vlgmr.msra.gmra.mxu0 %vm652_vm2, %v15002_v39  ;;  %v12982_v43 = vpop.f32.mrf.mxu1  ;;  %v6657_v39 = vshll.u32 %v6544_v25, 16  ;;  %v6634_v25 = vsel %vm862_vm3, %v6624_v38, %v6633_v18 }
 0x2da   : > { %9331 = vmatmul.mubr.msk.bf16.gmra.mxu1 %vm652_vm2, %v6616_v13  ;;  %9362 = vmatprep.mubr.msk.bf16.mxu0 %vm652_vm2, %v15003_v61  ;;  %v9148_v3 = vpop.f32.mrf.mxu0  ;;  %v6648_v13 = vshll.u32 %v6543_v56, 16  ;;  %v6642_v61 = vor.u32 %v6641_v19, %v6638_v5  ;;  %v15009_v56 = vld [vmem:[#allocation50_spill] sm:$0xff]  ;;  %v6526_v5 = vmul.f32 %v12824_v55, %v15010_v63 }
 0x2db   : > { %9334 = vmatprep.mubr.msk.bf16.mxu1 %vm652_vm2, %v6625_v1  ;;  %v12985_v60 = vadd.f32 %v9148_v3, %v12918_v4  ;;  %v12987_v52 = vpop.f32.mrf.mxu1  ;;  %v12993_v1 = vld [vmem:[#allocation2 + $0xf8] sm:$0xff]  ;;  %v6525_v17 = vmul.f32 %v12837_v29, %v15009_v56  ;;  %v6656_v56 = vrot.slane %v6654_v34, 3  ;;  %v6659_v29 = vrot.slane %v6657_v39, 4  ;;  %v15013_v55 = vld [vmem:[#allocation90_spill] sm:$0xff] }
 0x2dc   : > { %v4835_v7 = vpop.f32.mrf.mxu0  ;;  %15007 = vst [vmem:[#allocation113_spill] sm:$0xff] %v12993_v1  ;;  %v6527_v27 = vmul.f32 %v12993_v1, %v15008_v12  ;;  %v6650_v12 = vrot.slane %v6648_v13, 4 }
 0x2dd   : > { %15004 = vst [vmem:[#allocation111_spill] sm:$0xff] %v12985_v60  ;;  %v12998_v4 = vadd.f32 %v4835_v7, %v12923_v54  ;;  %v13000_v26 = vpop.f32.mrf.mxu1  ;;  %v6647_v60 = vrot.slane %v6645_v0, 3  ;;  %v6545_v54 = vpack.c.bf16 %v6525_v17, %v6524_v31  ;;  %v15012_v7 = vld [vmem:[#allocation45_spill] sm:$0xff]  ;;  %v6643_v0 = vsel %vm862_vm3, %v6633_v18, %v6642_v61  ;;  %v15017_v18 = vld [vmem:[#allocation55_spill] sm:$0xff] }
 0x2de   : > { %v9149_v3 = vpop.f32.mrf.mxu0  ;;  %v6546_v63 = vpack.c.bf16 %v6527_v27, %v6526_v5  ;;  %v6660_v34 = vor.u32 %v6659_v29, %v6656_v56 }
 0x2df   : > { %v13007_v19 = vadd.f32 %v9149_v3, %v12929_v48  ;;  %v13010_v59 = vpop.f32.mrf.mxu1  ;;  %v6651_v13 = vor.u32 %v6650_v12, %v6647_v60  ;;  %v6663_v17 = vshrl.u32 %v6545_v54, 16  ;;  %v6666_v3 = vshll.u32 %v6545_v54, 16  ;;  %v15019_v12 = vld [vmem:[#allocation60_spill] sm:$0xff] }
 0x2e0   : > { %v4838_v1 = vpop.f32.mrf.mxu0  ;;  %v6672_v39 = vshrl.u32 %v6546_v63, 16  ;;  %v6530_v54 = vmul.f32 %v12644_v35, %v15019_v12 }
 0x2e1   : > { %15011 = vst [vmem:[#allocation115_spill] sm:$0xff] %v13007_v19  ;;  %9363 = vmatmul.mubr.msk.bf16.gmra.mxu0 %vm652_vm2, %v15012_v7  ;;  %v13019_v48 = vadd.f32 %v4838_v1, %v12937_v51  ;;  %v15018_v1 = vld [vmem:[#allocation56_spill] sm:$0xff]  ;;  %v6652_v29 = vsel %vm862_vm3, %v6642_v61, %v6651_v13  ;;  %v15021_v19 = vld [vmem:[#allocation91_spill] sm:$0xff]  ;;  %v6661_v35 = vsel %vm862_vm3, %v6651_v13, %v6660_v34 }
 0x2e2   : > { %9335 = vmatmul.mubr.msk.bf16.gmra.mxu1 %vm652_vm2, %v6634_v25  ;;  %9366 = vmatprep.mubr.msk.bf16.mxu0 %vm652_vm2, %v15013_v55  ;;  %v13022_v38 = vpop.f32.mrf.mxu1  ;;  %v13026_v25 = vld [vmem:[#allocation2 + $0x100] sm:$0xff]  ;;  %v6675_v55 = vshll.u32 %v6546_v63, 16  ;;  %v6529_v7 = vmul.f32 %v12625_v50, %v15018_v1  ;;  %v6665_v63 = vrot.slane %v6663_v17, 3  ;;  %v15023_v61 = vld [vmem:[#allocation40_spill] sm:$0xff] }
 0x2e3   : > { %15014 = vst [vmem:[#allocation114_spill] sm:$0xff] %v13019_v48  ;;  %9338 = vmatprep.mubr.msk.bf16.mxu1 %vm652_vm2, %v6643_v0  ;;  %15016 = vst [vmem:[#allocation117_spill] sm:$0xff] %v13026_v25  ;;  %v6528_v27 = vmul.f32 %v13026_v25, %v15017_v18  ;;  %v15020_v0 = vld [vmem:[#allocation61_spill] sm:$0xff]  ;;  %v6668_v18 = vrot.slane %v6666_v3, 4 }
 0x2e4   : > { %v13024_v31 = vpop.f32.mrf.mxu1  ;;  %v13051_v1 = vld [vmem:[#allocation2 + $0x120] sm:$0xff] }
 0x2e5   : > { %15015 = vst [vmem:[#allocation116_spill] sm:$0xff] %v13024_v31  ;;  %v6531_v31 = vmul.f32 %v12881_v2, %v15020_v0  ;;  %v6547_v25 = vpack.c.bf16 %v6529_v7, %v6528_v27  ;;  %v6669_v27 = vor.u32 %v6668_v18, %v6665_v63 }
 0x2e6   : > { %v9152_v5 = vpop.f32.mrf.mxu0  ;;  %v13030_v51 = vpop.f32.mrf.mxu1 }
 0x2e7   : > { %v13035_v60 = vadd.f32 %v9152_v5, %v12948_v58  ;;  %v6674_v58 = vrot.slane %v6672_v39, 3  ;;  %v6677_v5 = vrot.slane %v6675_v55, 4  ;;  %v6681_v7 = vshrl.u32 %v6547_v25, 16  ;;  %v15025_v39 = vld [vmem:[#allocation59_spill] sm:$0xff] }
 0x2e8   : > { %v4851_v48 = vpop.f32.mrf.mxu0  ;;  %v13042_v56 = vpop.f32.mrf.mxu1  ;;  %v6684_v13 = vshll.u32 %v6547_v25, 16  ;;  %v6532_v55 = vmul.f32 %v13051_v1, %v15025_v39  ;;  %v15028_v39 = vld [vmem:[#allocation93_spill] sm:$0xff] }
 0x2e9   : > { %9367 = vmatmul.mubr.msk.bf16.gmra.mxu0 %vm652_vm2, %v15021_v19  ;;  %v13047_v50 = vadd.f32 %v4851_v48, %v12955_v8  ;;  %v6548_v8 = vpack.c.bf16 %v6531_v31, %v6530_v54  ;;  %v6678_v0 = vor.u32 %v6677_v5, %v6674_v58  ;;  %v6670_v54 = vsel %vm862_vm3, %v6660_v34, %v6669_v27  ;;  %v15029_v5 = vld [vmem:[#allocation4_spill] sm:$0xff] }
 0x2ea   : > { %9339 = vmatmul.mubr.msk.bf16.gmra.mxu1 %vm652_vm2, %v6652_v29  ;;  %9370 = vmatprep.mubr.msk.bf16.mxu0 %vm652_vm2, %v15023_v61  ;;  %v9153_v17 = vpop.f32.mrf.mxu0  ;;  %v6683_v63 = vrot.slane %v6681_v7, 3  ;;  %v6686_v25 = vrot.slane %v6684_v13, 4  ;;  %v6549_v18 = vpack.c.bf16 %v6532_v55, %v6532_v55  ;;  %v15032_v7 = vld [vmem:[#allocation46_spill] sm:$0xff] }
 0x2eb   : > { %15022 = vst [vmem:[#allocation119_spill] sm:$0xff] %v13047_v50  ;;  %9342 = vmatprep.mubr.msk.bf16.mxu1 %vm652_vm2, %v6661_v35  ;;  %v13057_v3 = vadd.f32 %v9153_v17, %v12964_v23  ;;  %v13059_v19 = vpop.f32.mrf.mxu1  ;;  %v6690_v23 = vshrl.u32 %v6548_v8, 16  ;;  %v6693_v61 = vshll.u32 %v6548_v8, 16  ;;  %v15027_v17 = vld [vmem:[#allocation7_spill] sm:$0xff]  ;;  %v7174_v8 = vmul.f32 %v12674_v21, %v15029_v5 }
 0x2ec   : > { %v4854_v48 = vpop.f32.mrf.mxu0  ;;  %v7175_v31 = vmul.f32 %v12670_v45, %v15027_v17 }
 0x2ed   : > { %15024 = vst [vmem:[#allocation118_spill] sm:$0xff] %v13057_v3  ;;  %v13064_v12 = vadd.f32 %v4854_v48, %v12970_v42  ;;  %v13066_v29 = vpop.f32.mrf.mxu1  ;;  %v6679_v42 = vsel %vm862_vm3, %v6669_v27, %v6678_v0  ;;  %v15030_v48 = vld [vmem:[#allocation58_spill] sm:$0xff]  ;;  %v6692_v27 = vrot.slane %v6690_v23, 3  ;;  %v6695_v17 = vrot.slane %v6693_v61, 4 }
 0x2ee   : > { %v7177_v45 = vmul.f32 %v12678_v32, %v15030_v48  ;;  %v7207_v21 = vpack.c.bf16 %v7175_v31, %v7174_v8  ;;  %v6687_v32 = vor.u32 %v6686_v25, %v6683_v63 }
 0x2ef   : > { %15026 = vst [vmem:[#allocation120_spill] sm:$0xff] %v13064_v12  ;;  %v13068_v35 = vpop.f32.mrf.mxu1  ;;  %v6696_v23 = vor.u32 %v6695_v17, %v6692_v27  ;;  %v15036_v17 = vld [vmem:[#allocation62_spill] sm:$0xff] }
 0x2f0   : > { %v7232_v50 = vshll.u32 %v7207_v21, 16  ;;  %v6688_v63 = vsel %vm862_vm3, %v6678_v0, %v6687_v32 }
 0x2f1   : > { %v9156_v3 = vpop.f32.mrf.mxu0  ;;  %9371 = vmatmul.mubr.msk.bf16.gmra.mxu0 %vm652_vm2, %v15028_v39  ;;  %v13077_v58 = vpop.f32.mrf.mxu1 }
 0x2f2   : > { %9343 = vmatmul.mubr.msk.bf16.gmra.mxu1 %vm652_vm2, %v6670_v54  ;;  %v13084_v34 = vadd.f32 %v9156_v3, %v12982_v43  ;;  %9374 = vmatprep.mubr.msk.bf16.mxu0 %vm652_vm2, %v15032_v7  ;;  %v15033_v54 = vld [vmem:[#allocation57_spill] sm:$0xff]  ;;  %v6699_v43 = vshrl.u32 %v6549_v18, 16  ;;  %v6702_v3 = vshll.u32 %v6549_v18, 16 }
 0x2f3   : > { %9346 = vmatprep.mubr.msk.bf16.mxu1 %vm652_vm2, %v6679_v42  ;;  %v4867_v13 = vpop.f32.mrf.mxu0  ;;  %v13089_v55 = vpop.f32.mrf.mxu1  ;;  %v7176_v39 = vmul.f32 %v12682_v49, %v15033_v54  ;;  %v15034_v49 = vld [vmem:[#allocation63_spill] sm:$0xff] }
 0x2f4   : > { %15031 = vst [vmem:[#allocation121_spill] sm:$0xff] %v13084_v34  ;;  %v13094_v5 = vadd.f32 %v4867_v13, %v12987_v52  ;;  %v7179_v31 = vmul.f32 %v12698_v6, %v15034_v49  ;;  %v6701_v25 = vrot.slane %v6699_v43, 3  ;;  %v6704_v18 = vrot.slane %v6702_v3, 4  ;;  %v15038_v43 = vld [vmem:[#allocation64_spill] sm:$0xff] }
 0x2f5   : > { %v9157_v48 = vpop.f32.mrf.mxu0  ;;  %v13096_v34 = vpop.f32.mrf.mxu1  ;;  %v7208_v7 = vpack.c.bf16 %v7177_v45, %v7176_v39  ;;  %v15035_v45 = vld [vmem:[#allocation52_spill] sm:$0xff]  ;;  %v7178_v6 = vmul.f32 %v12707_v33, %v15036_v17  ;;  %v7234_v39 = vrot.slane %v7232_v50, 1  ;;  %v7180_v3 = vmul.f32 %v12715_v40, %v15038_v43 }
 0x2f6   : > { %v13099_v42 = vadd.f32 %v9157_v48, %v13000_v26  ;;  %v6697_v26 = vsel %vm862_vm3, %v6687_v32, %v6696_v23  ;;  %v6705_v33 = vor.u32 %v6704_v18, %v6701_v25 }
 0x2f7   : > { %v4870_v12 = vpop.f32.mrf.mxu0  ;;  %v13101_v61 = vpop.f32.mrf.mxu1  ;;  %v7237_v27 = vshll.u32 %v7208_v7, 16  ;;  %v7209_v32 = vpack.c.bf16 %v7179_v31, %v7178_v6  ;;  %v15039_v31 = vld [vmem:[#allocation67_spill] sm:$0xff]  ;;  %v15040_v6 = vld [vmem:[#allocation66_spill] sm:$0xff] }
 0x2f8   : > { %v13106_v52 = vadd.f32 %v4870_v12, %v13010_v59  ;;  %v15037_v59 = vld [vmem:[#allocation65_spill] sm:$0xff]  ;;  %v7183_v17 = vmul.f32 %v12728_v37, %v15039_v31  ;;  %v6706_v25 = vsel %vm862_vm3, %v6696_v23, %v6705_v33  ;;  %v7182_v37 = vmul.f32 %v12732_v14, %v15040_v6  ;;  %v15042_v33 = vld [vmem:[#allocation68_spill] sm:$0xff] }
 0x2f9   : > { %v9160_v8 = vpop.f32.mrf.mxu0  ;;  %9375 = vmatmul.mubr.msk.bf16.gmra.mxu0 %vm652_vm2, %v15035_v45  ;;  %v13113_v13 = vpop.f32.mrf.mxu1  ;;  %v7181_v12 = vmul.f32 %v12711_v10, %v15037_v59  ;;  %v7230_v10 = vshrl.u32 %v7207_v21, 16  ;;  %v7245_v50 = vshll.u32 %v7209_v32, 16  ;;  %v15041_v59 = vld [vmem:[#allocation69_spill] sm:$0xff]  ;;  %v7184_v14 = vmul.f32 %v12740_v41, %v15042_v33  ;;  %v15043_v41 = vld [vmem:[#allocation71_spill] sm:$0xff] }
 0x2fa   : > { %9347 = vmatmul.mubr.msk.bf16.gmra.mxu1 %vm652_vm2, %v6688_v63  ;;  %v13120_v0 = vadd.f32 %v9160_v8, %v13022_v38  ;;  %9378 = vmatprep.mubr.msk.bf16.mxu0 %vm652_vm2, %v14973_v11  ;;  %v7239_v63 = vrot.slane %v7237_v27, 1  ;;  %vm9617_vm3 = vmmov 0  }
 0x2fb   : > { %9350 = vmatprep.mubr.msk.bf16.mxu1 %vm652_vm2, %v6697_v26  ;;  %v13125_v54 = vpop.f32.mrf.mxu0  ;;  %v13131_v38 = vpack.c.bf16 %v7181_v12, %v7180_v3  ;;  %v7235_v26 = vor.u32 %v7234_v39, %v7230_v10  ;;  %v7241_v12 = vshrl.u32 %v7208_v7, 16  ;;  %v7247_v43 = vrot.slane %v7245_v50, 1 }
 0x2fc   : > { %v7211_v3 = vpack.c.bf16 %v7183_v17, %v7182_v37  ;;  %v7249_v10 = vshrl.u32 %v7209_v32, 16 }
 0x2fd   : > { %v13129_v48 = vpop.f32.mrf.mxu1  ;;  %v9161_v49 = vpop.f32.mrf.mxu0  ;;  %v7253_v27 = vshll.u32 %v13131_v38, 16 }
 0x2fe   : > { %v13134_v8 = vadd.f32 %v9161_v49, %v13030_v51  ;;  %v7240_v51 = vsel %vm1420_vm4, %v7235_v26, %v7239_v63  ;;  %v7251_v17 = vor.u32 %v7249_v10, %v7247_v43 }
 0x2ff   : > { %v13136_v11 = vpop.f32.mrf.mxu1  ;;  %v4886_v45 = vpop.f32.mrf.mxu0 }
 0x300   : > { %v13141_v40 = vadd.f32 %v4886_v45, %v13042_v56  ;;  %v7185_v56 = vmul.f32 %v12736_v15, %v15041_v59  ;;  %v7243_v15 = vor.u32 %v7241_v12, %v7239_v63  ;;  %v7255_v45 = vrot.slane %v7253_v27, 1 }
 0x301   : > { %v13144_v21 = vpop.f32.mrf.mxu1  ;;  %v9164_v18 = vpop.f32.mrf.mxu0  ;;  %9379 = vmatmul.mubr.msk.bf16.gmra.mxu0 %vm652_vm2, %v14975_v47 }
 0x302   : > { %9351 = vmatmul.mubr.msk.bf16.gmra.mxu1 %vm652_vm2, %v6706_v25  ;;  %v13156_v23 = vadd.f32 %v9164_v18, %v13059_v19  ;;  %9382 = vmatprep.mubr.msk.bf16.mxu0 %vm652_vm2, %v14979_v36  ;;  %v13168_v26 = vpack.c.bf16 %v7185_v56, %v7184_v14  ;;  %v7261_v25 = vshll.u32 %v7211_v3, 16  ;;  %v7248_v32 = vsel %vm1420_vm4, %v7243_v15, %v7247_v43  ;;  %v15046_v43 = vld [vmem:[#allocation72_spill] sm:$0xff] }
 0x303   : > { %9394 = vmatprep.mubr.msk.bf16.mxu1 %vm652_vm2, %v7240_v51  ;;  %v13161_v47 = vpop.f32.mrf.mxu1  ;;  %v4899_v39 = vpop.f32.mrf.mxu0  ;;  %v15044_v51 = vld [vmem:[#allocation70_spill] sm:$0xff] }
 0x304   : > { %v13166_v49 = vadd.f32 %v4899_v39, %v13066_v29  ;;  %v7187_v29 = vmul.f32 %v12755_v53, %v15043_v41  ;;  %v7269_v53 = vshll.u32 %v13168_v26, 16  ;;  %v7263_v12 = vrot.slane %v7261_v25, 1 }
 0x305   : > { %v9165_v19 = vpop.f32.mrf.mxu0 }
 0x306   : > { %v13171_v36 = vadd.f32 %v9165_v19, %v13068_v35  ;;  %v9180_v7 = vpop.f32.mrf.mxu1  ;;  %v7186_v35 = vmul.f32 %v12760_v9, %v15044_v51  ;;  %v7257_v9 = vshrl.u32 %v13131_v38, 16  ;;  %v7265_v19 = vshrl.u32 %v7211_v3, 16  ;;  %v15049_v51 = vld [vmem:[#allocation75_spill] sm:$0xff] }
 0x307   : > { %v4902_v31 = vpop.f32.mrf.mxu0  ;;  %v13174_v50 = vadd.f32 %v9180_v7, %v12935_v16  ;;  %v7256_v16 = vsel %vm1420_vm4, %v7251_v17, %v7255_v45 }
 0x308   : > { %v13179_v63 = vadd.f32 %v4902_v31, %v13077_v58  ;;  %v5227_v18 = vpop.f32.mrf.mxu1  ;;  %v15045_v58 = vld [vmem:[#allocation73_spill] sm:$0xff]  ;;  %v7213_v39 = vpack.c.bf16 %v7187_v29, %v7186_v35  ;;  %v7259_v33 = vor.u32 %v7257_v9, %v7255_v45  ;;  %v15050_v35 = vld [vmem:[#allocation104_spill] sm:$0xff] }
 0x309   : > { %v9168_v27 = vpop.f32.mrf.mxu0  ;;  %9383 = vmatmul.mubr.msk.bf16.gmra.mxu0 %vm652_vm2, %v14980_v30  ;;  %v13189_v6 = vadd.f32 %v5227_v18, %v12946_v62  ;;  %v7189_v37 = vmul.f32 %v12764_v46, %v15045_v58  ;;  %v7188_v46 = vmul.f32 %v12768_v57, %v15046_v43  ;;  %v7267_v57 = vor.u32 %v7265_v19, %v7263_v12 }
 0x30a   : > { %9395 = vmatmul.mubr.msk.bf16.vlgmr.msra.gmra.mxu1 %vm652_vm2, %v7248_v32  ;;  %v13195_v59 = vadd.f32 %v9168_v27, %v13089_v55  ;;  %9386 = vmatprep.mubr.msk.bf16.mxu0 %vm652_vm2, %v12870_v20  ;;  %v9181_v30 = vpop.f32.mrf.mxu1  ;;  %v6960_v20 = vpack.c.bf16 %v13051_v1, %v12881_v2  ;;  %v7277_v17 = vshll.u32 %v7213_v39, 16  ;;  %v7264_v45 = vsel %vm1420_vm4, %v7259_v33, %v7263_v12  ;;  %v15048_v32 = vld [vmem:[#allocation74_spill] sm:$0xff]  ;;  %v15051_v27 = vld [vmem:[#allocation111_spill] sm:$0xff]  ;;  %v15053_v12 = vld [vmem:[#allocation100_spill] sm:$0xff] }
 0x30b   : > { %9398 = vmatprep.mubr.msk.bf16.mxu1 %vm652_vm2, %v7256_v16  ;;  %v4915_v56 = vpop.f32.mrf.mxu0  ;;  %v13202_v62 = vadd.f32 %v9181_v30, %v12953_v22  ;;  %v7271_v22 = vrot.slane %v7269_v53, 1  ;;  %v7214_v10 = vpack.c.bf16 %v7189_v37, %v7188_v46  ;;  %v7190_v18 = vmul.f32 %v12789_v28, %v15048_v32 }
 0x30c   : > { %v13207_v55 = vadd.f32 %v4915_v56, %v13096_v34  ;;  %v5230_v38 = vpop.f32.mrf.mxu1  ;;  %v15047_v34 = vld [vmem:[#allocation27_spill] sm:$0xff]  ;;  %v7273_v53 = vshrl.u32 %v13168_v26, 16  ;;  %v7279_v9 = vrot.slane %v7277_v17, 1  ;;  %v15052_v56 = vld [vmem:[#allocation24_spill] sm:$0xff] }
 0x30d   : > { %v9169_v14 = vpop.f32.mrf.mxu0  ;;  %v13212_v15 = vadd.f32 %v5230_v38, %v12962_v44  ;;  %v7191_v25 = vmul.f32 %v12781_v24, %v15047_v34  ;;  %v7285_v3 = vshll.u32 %v7214_v10, 16  ;;  %v7193_v24 = vmul.f32 %v15050_v35, %v15049_v51  ;;  %v15058_v51 = vld [vmem:[#allocation25_spill] sm:$0xff]  ;;  %v15059_v35 = vld [vmem:[#allocation106_spill] sm:$0xff] }
 0x30e   : > { %v13215_v7 = vadd.f32 %v9169_v14, %v13101_v61  ;;  %v7272_v61 = vsel %vm1420_vm4, %v7267_v57, %v7271_v22  ;;  %v7192_v28 = vmul.f32 %v15053_v12, %v15052_v56  ;;  %v7275_v46 = vor.u32 %v7273_v53, %v7271_v22  ;;  %v15055_v22 = vld [vmem:[#allocation26_spill] sm:$0xff]  ;;  %v15061_v53 = vld [vmem:[#allocation112_spill] sm:$0xff] }
 0x30f   : > { %v4918_v31 = vpop.f32.mrf.mxu0  ;;  %v7215_v30 = vpack.c.bf16 %v7191_v25, %v7190_v18  ;;  %v7281_v38 = vshrl.u32 %v7213_v39, 16  ;;  %v7287_v26 = vrot.slane %v7285_v3, 1  ;;  %v15057_v39 = vld [vmem:[#allocation114_spill] sm:$0xff] }
 0x310   : > { %v13220_v41 = vadd.f32 %v4918_v31, %v13113_v13  ;;  %v13246_v14 = vpack.c.bf16 %v7193_v24, %v7192_v28  ;;  %v15054_v31 = vld [vmem:[#allocation115_spill] sm:$0xff]  ;;  %v7194_v24 = vmul.f32 %v15059_v35, %v15058_v51 }
 0x311   : > { %v9172_v29 = vpop.f32.mrf.mxu0  ;;  %9387 = vmatmul.mubr.msk.bf16.gmra.mxu0 %vm652_vm2, %v6960_v20  ;;  %v9184_v44 = vpop.f32.mrf.mxu1  ;;  %v7293_v25 = vshll.u32 %v7215_v30, 16 }
 0x312   : > { %9399 = vmatmul.mubr.msk.bf16.gmra.mxu1 %vm652_vm2, %v7264_v45  ;;  %v13231_v13 = vadd.f32 %v9172_v29, %v13129_v48  ;;  %v13234_v16 = vadd.f32 %v9184_v44, %v15051_v27  ;;  %v15056_v45 = vld [vmem:[#allocation107_spill] sm:$0xff]  ;;  %v7301_v18 = vshll.u32 %v13246_v14, 16  ;;  %v15060_v27 = vld [vmem:[#allocation33_spill] sm:$0xff] }
 0x313   : > { %9402 = vmatprep.mubr.msk.bf16.mxu1 %vm652_vm2, %v7272_v61  ;;  %v4931_v58 = vpop.f32.mrf.mxu0  ;;  %v5243_v37 = vpop.f32.mrf.mxu1  ;;  %v7280_v61 = vsel %vm1420_vm4, %v7275_v46, %v7279_v9  ;;  %v7295_v28 = vrot.slane %v7293_v25, 1  ;;  %v15065_v25 = vld [vmem:[#allocation118_spill] sm:$0xff] }
 0x314   : > { %v13241_v43 = vadd.f32 %v4931_v58, %v13136_v11  ;;  %v13244_v48 = vadd.f32 %v5243_v37, %v12998_v4  ;;  %v7283_v11 = vor.u32 %v7281_v38, %v7279_v9  ;;  %v7195_v4 = vmul.f32 %v15056_v45, %v15055_v22 }
 0x315   : > { %v9173_v20 = vpop.f32.mrf.mxu0  ;;  %v9185_v33 = vpop.f32.mrf.mxu1  ;;  %v7289_v9 = vshrl.u32 %v7214_v10, 16  ;;  %v7297_v22 = vshrl.u32 %v7215_v30, 16  ;;  %v7303_v10 = vrot.slane %v7301_v18, 1  ;;  %v15068_v30 = vld [vmem:[#allocation120_spill] sm:$0xff] }
 0x316   : > { %v13249_v19 = vadd.f32 %v9173_v20, %v13144_v21  ;;  %v13252_v57 = vadd.f32 %v9185_v33, %v15054_v31  ;;  %v7288_v32 = vsel %vm1420_vm4, %v7283_v11, %v7287_v26  ;;  %v7217_v46 = vpack.c.bf16 %v7195_v4, %v7194_v24  ;;  %v15062_v20 = vld [vmem:[#allocation32_spill] sm:$0xff]  ;;  %v15063_v33 = vld [vmem:[#allocation102_spill] sm:$0xff] }
 0x317   : > { %v4934_v17 = vpop.f32.mrf.mxu0  ;;  %v5246_v34 = vpop.f32.mrf.mxu1  ;;  %v7196_v38 = vmul.f32 %v15063_v33, %v15062_v20  ;;  %v15071_v20 = vld [vmem:[#allocation78_spill] sm:$0xff]  ;;  %v15072_v33 = vld [vmem:[#allocation117_spill] sm:$0xff] }
 0x318   : > { %v13257_v29 = vadd.f32 %v4934_v17, %v13161_v47  ;;  %v13260_v44 = vadd.f32 %v5246_v34, %v15057_v39  ;;  %v7197_v47 = vmul.f32 %v15061_v53, %v15060_v27  ;;  %v7291_v17 = vor.u32 %v7289_v9, %v7287_v26  ;;  %v15064_v34 = vld [vmem:[#allocation119_spill] sm:$0xff]  ;;  %v15066_v26 = vld [vmem:[#allocation76_spill] sm:$0xff]  ;;  %v15069_v9 = vld [vmem:[#allocation34_spill] sm:$0xff] }
 0x319   : > { %v9216_v21 = vpop.f32.mrf.mxu0  ;;  %v9188_v3 = vpop.f32.mrf.mxu1 }
 0x31a   : > { %9403 = vmatmul.mubr.msk.bf16.gmra.mxu1 %vm652_vm2, %v7280_v61  ;;  %v13271_v58 = vadd.f32 %v9216_v21, %v13174_v50  ;;  %v13274_v37 = vadd.f32 %v9188_v3, %v13035_v60  ;;  %v13285_v45 = vpack.c.bf16 %v7197_v47, %v7196_v38  ;;  %v7309_v3 = vshll.u32 %v7217_v46, 16 }
 0x31b   : > { %9406 = vmatprep.mubr.msk.bf16.mxu1 %vm652_vm2, %v7288_v32  ;;  %v5687_v56 = vpop.f32.mrf.mxu0  ;;  %v5259_v12 = vpop.f32.mrf.mxu1  ;;  %v15067_v32 = vld [vmem:[#allocation108_spill] sm:$0xff]  ;;  %v7296_v24 = vsel %vm1420_vm4, %v7291_v17, %v7295_v28 }
 0x31c   : > { %v13280_v31 = vadd.f32 %v5687_v56, %v13189_v6  ;;  %v13283_v50 = vadd.f32 %v5259_v12, %v15064_v34  ;;  %v7299_v6 = vor.u32 %v7297_v22, %v7295_v28  ;;  %v7199_v51 = vmul.f32 %v15067_v32, %v15066_v26  ;;  %v15070_v56 = vld [vmem:[#allocation109_spill] sm:$0xff] }
 0x31d   : > { %v9217_v11 = vpop.f32.mrf.mxu0  ;;  %v9189_v60 = vpop.f32.mrf.mxu1  ;;  %v7317_v47 = vshll.u32 %v13285_v45, 16  ;;  %v7198_v12 = vmul.f32 %v15070_v56, %v15069_v9  ;;  %v15073_v34 = vld [vmem:[#allocation121_spill] sm:$0xff]  ;;  %v7305_v28 = vshrl.u32 %v13246_v14, 16  ;;  %v7311_v22 = vrot.slane %v7309_v3, 1  ;;  %v15076_v9 = vld [vmem:[#allocation80_spill] sm:$0xff] }
 0x31e   : > { %v13288_v39 = vadd.f32 %v9217_v11, %v13202_v62  ;;  %v13291_v4 = vadd.f32 %v9189_v60, %v15065_v25  ;;  %v7304_v53 = vsel %vm1420_vm4, %v7299_v6, %v7303_v10 }
 0x31f   : > { %v5690_v61 = vpop.f32.mrf.mxu0  ;;  %v5262_v21 = vpop.f32.mrf.mxu1  ;;  %v7219_v25 = vpack.c.bf16 %v7199_v51, %v7198_v12  ;;  %v7307_v32 = vor.u32 %v7305_v28, %v7303_v10  ;;  %v7319_v14 = vrot.slane %v7317_v47, 1 }
 0x320   : > { %v13296_v35 = vadd.f32 %v5690_v61, %v13212_v15  ;;  %v13299_v18 = vadd.f32 %v5262_v21, %v15068_v30  ;;  %v7201_v15 = vmul.f32 %v15072_v33, %v15071_v20  ;;  %v15074_v61 = vld [vmem:[#allocation77_spill] sm:$0xff]  ;;  %v9575_v20 = vld [vmem:[#allocation2 + $0x108] sm:$0xff]  ;;  %v15077_v33 = vld [vmem:[#allocation79_spill] sm:$0xff] }
 0x321   : > { %v9220_v62 = vpop.f32.mrf.mxu0  ;;  %v9192_v27 = vpop.f32.mrf.mxu1  ;;  %v15075_v21 = vld [vmem:[#allocation113_spill] sm:$0xff] }
 0x322   : > { %9407 = vmatmul.mubr.msk.bf16.gmra.mxu1 %vm652_vm2, %v7296_v24  ;;  %v13310_v38 = vadd.f32 %v9220_v62, %v13234_v16  ;;  %v13313_v11 = vadd.f32 %v9192_v27, %v15073_v34  ;;  %v7200_v6 = vmul.f32 %v15075_v21, %v15074_v61  ;;  %v7313_v62 = vshrl.u32 %v7217_v46, 16 }
 0x323   : > { %9410 = vmatprep.mubr.msk.bf16.mxu1 %vm652_vm2, %v7304_v53  ;;  %v5703_v17 = vpop.f32.mrf.mxu0  ;;  %v5275_v60 = vpop.f32.mrf.mxu1  ;;  %v9574_v53 = vld [vmem:[#allocation2 + $0x110] sm:$0xff]  ;;  %v7202_v34 = vmul.f32 %v9575_v20, %v15077_v33  ;;  %v15080_v20 = vld [vmem:[#allocation81_spill] sm:$0xff] }
 0x324   : > { %v13320_v26 = vadd.f32 %v5703_v17, %v13244_v48  ;;  %v13323_v16 = vadd.f32 %v5275_v60, %v13094_v5  ;;  %v13325_v27 = vpack.c.bf16 %v7201_v15, %v7200_v6  ;;  %v7203_v3 = vmul.f32 %v9574_v53, %v15076_v9  ;;  %v15079_v6 = vld [vmem:[#allocation83_spill] sm:$0xff] }
 0x325   : > { %v9221_v30 = vpop.f32.mrf.mxu0  ;;  %v9193_v24 = vpop.f32.mrf.mxu1  ;;  %v7315_v12 = vor.u32 %v7313_v62, %v7311_v22  ;;  %v7325_v5 = vshll.u32 %v7219_v25, 16  ;;  %v7312_v15 = vsel %vm1420_vm4, %v7307_v32, %v7311_v22  ;;  %v7321_v32 = vshrl.u32 %v13285_v45, 16 }
 0x326   : > { %v13329_v51 = vadd.f32 %v9221_v30, %v13252_v57  ;;  %v13332_v56 = vadd.f32 %v9193_v24, %v13099_v42  ;;  %v15078_v57 = vld [vmem:[#allocation82_spill] sm:$0xff]  ;;  %v7333_v61 = vshll.u32 %v13325_v27, 16  ;;  %v7221_v21 = vpack.c.bf16 %v7203_v3, %v7202_v34 }
 0x327   : > { %v5706_v48 = vpop.f32.mrf.mxu0  ;;  %v5278_v10 = vpop.f32.mrf.mxu1  ;;  %v7204_v28 = vmul.f32 %v12881_v2, %v15078_v57  ;;  %v7320_v60 = vsel %vm1420_vm4, %v7315_v12, %v7319_v14  ;;  %v4276_v2 = vld [vmem:[#allocation2 + $0x128] sm:$0xff]  ;;  %v7327_v62 = vrot.slane %v7325_v5, 1  ;;  %v7323_v9 = vor.u32 %v7321_v32, %v7319_v14 }
 0x328   : > { %v13336_v46 = vadd.f32 %v5706_v48, %v13260_v44  ;;  %v13339_v47 = vadd.f32 %v5278_v10, %v13106_v52  ;;  %v7205_v44 = vmul.f32 %v13051_v1, %v15079_v6  ;;  %v7329_v3 = vshrl.u32 %v7219_v25, 16 }
 0x329   : > { %v9224_v42 = vpop.f32.mrf.mxu0  ;;  %v9196_v17 = vpop.f32.mrf.mxu1  ;;  %v7335_v10 = vrot.slane %v7333_v61, 1  ;;  %v7328_v14 = vsel %vm1420_vm4, %v7323_v9, %v7327_v62 }
 0x32a   : > { %9411 = vmatmul.mubr.msk.bf16.gmra.mxu1 %vm652_vm2, %v7312_v15  ;;  %v13350_v52 = vadd.f32 %v9224_v42, %v13274_v37  ;;  %v5372_v22 = vadd.f32 %v9196_v17, %v13120_v0  ;;  %v7341_v37 = vshll.u32 %v7221_v21, 16  ;;  %v7222_v12 = vpack.c.bf16 %v7205_v44, %v7204_v28 }
 0x32b   : > { %9414 = vmatprep.mubr.msk.bf16.mxu1 %vm652_vm2, %v7320_v60  ;;  %v5719_v30 = vpop.f32.mrf.mxu0  ;;  %v5291_v24 = vpop.f32.mrf.mxu1  ;;  %v7206_v0 = vmul.f32 %v4276_v2, %v15080_v20  ;;  %v7331_v5 = vor.u32 %v7329_v3, %v7327_v62  ;;  %v7345_v44 = vshrl.u32 %v7221_v21, 16  ;;  %v15081_v21 = vld [vmem:[#allocation116_spill] sm:$0xff] }
 0x32c   : > { %v13356_v53 = vadd.f32 %v5719_v30, %v13283_v50  ;;  %v7349_v17 = vshll.u32 %v7222_v12, 16 }
 0x32d   : > { %v9225_v48 = vpop.f32.mrf.mxu0  ;;  %v9197_v1 = vpop.f32.mrf.mxu1  ;;  %v7336_v28 = vsel %vm1420_vm4, %v7331_v5, %v7335_v10  ;;  %v7223_v60 = vpack.c.bf16 %v7206_v0, %v7206_v0 }
 0x32e   : > { %v13360_v45 = vadd.f32 %v9225_v48, %v13291_v4  ;;  %v5373_v33 = vadd.f32 %v9197_v1, %v13134_v8  ;;  %v7343_v4 = vrot.slane %v7341_v37, 1  ;;  %v7353_v1 = vshrl.u32 %v7222_v12, 16 }
 0x32f   : > { %v5722_v34 = vpop.f32.mrf.mxu0  ;;  %v5294_v15 = vpop.f32.mrf.mxu1  ;;  %v7357_v48 = vshll.u32 %v7223_v60, 16 }
 0x330   : > { %v13364_v50 = vadd.f32 %v5722_v34, %v13299_v18  ;;  %v5371_v25 = vadd.f32 %v5294_v15, %v13141_v40  ;;  %v7337_v18 = vshrl.u32 %v13325_v27, 16  ;;  %v7347_v3 = vor.u32 %v7345_v44, %v7343_v4 }
 0x331   : > { %v9228_v57 = vpop.f32.mrf.mxu0  ;;  %v9200_v42 = vpop.f32.mrf.mxu1 }
 0x332   : > { %9415 = vmatmul.mubr.msk.bf16.gmra.mxu1 %vm652_vm2, %v7328_v14  ;;  %v13371_v8 = vadd.f32 %v9228_v57, %v13313_v11  ;;  %v5376_v61 = vadd.f32 %v9200_v42, %v13156_v23  ;;  %v7339_v2 = vor.u32 %v7337_v18, %v7335_v10  ;;  %v7351_v11 = vrot.slane %v7349_v17, 1 }
 0x333   : > { %9418 = vmatprep.mubr.msk.bf16.mxu1 %vm652_vm2, %v7336_v28  ;;  %v5735_v40 = vpop.f32.mrf.mxu0  ;;  %v5307_v6 = vpop.f32.mrf.mxu1 }
 0x334   : > { %v13377_v32 = vadd.f32 %v5735_v40, %v13323_v16  ;;  %v5374_v30 = vadd.f32 %v5307_v6, %v13166_v49  ;;  %v4884_v16 = vadd.f32 %v13125_v54, %v15081_v21  ;;  %v7344_v0 = vsel %vm1420_vm4, %v7339_v2, %v7343_v4 }
 0x335   : > { %v9229_v62 = vpop.f32.mrf.mxu0  ;;  %v9201_v9 = vpop.f32.mrf.mxu1  ;;  %v7355_v54 = vor.u32 %v7353_v1, %v7351_v11 }
 0x336   : > { %v13381_v23 = vadd.f32 %v9229_v62, %v13332_v56  ;;  %v5377_v27 = vadd.f32 %v9201_v9, %v13171_v36  ;;  %v7352_v56 = vsel %vm1420_vm4, %v7347_v3, %v7351_v11  ;;  %v7359_v36 = vrot.slane %v7357_v48, 1 }
 0x337   : > { %v5738_v37 = vpop.f32.mrf.mxu0  ;;  %v5310_v20 = vpop.f32.mrf.mxu1  ;;  %v5370_v12 = vadd.f32 %v5291_v24, %v4884_v16 }
 0x338   : > { %v13387_v10 = vadd.f32 %v5738_v37, %v13339_v47  ;;  %v5375_v49 = vadd.f32 %v5310_v20, %v13179_v63 }
 0x339   : > { %v9232_v34 = vpop.f32.mrf.mxu0 }
 0x33a   : > { %v9204_v15 = vpop.f32.mrf.mxu1  ;;  %9419 = vmatmul.mubr.msk.bf16.gmra.mxu1 %vm652_vm2, %v7344_v0  ;;  %v13393_v5 = vadd.f32 %v9232_v34, %v5372_v22  ;;  %v7360_v22 = vsel %vm1420_vm4, %v7355_v54, %v7359_v36  ;;  %vm7809_vm4 = vcmask 1041408  }
 0x33b   : > { %v5380_v14 = vadd.f32 %v9204_v15, %v13195_v59  ;;  %9422 = vmatprep.mubr.msk.bf16.mxu1 %vm652_vm2, %v7352_v56  ;;  %v5751_v47 = vpop.f32.mrf.mxu0 }
 0x33c   : > { %v5323_v57 = vpop.f32.mrf.mxu1  ;;  %v13397_v63 = vadd.f32 %v5751_v47, %v5370_v12 }
 0x33d   : > { %v5378_v42 = vadd.f32 %v5323_v57, %v13207_v55  ;;  %v9233_v28 = vpop.f32.mrf.mxu0 }
 0x33e   : > { %v9205_v4 = vpop.f32.mrf.mxu1  ;;  %v13400_v17 = vadd.f32 %v9233_v28, %v5373_v33 }
 0x33f   : > { %v5381_v60 = vadd.f32 %v9205_v4, %v13215_v7  ;;  %v5754_v24 = vpop.f32.mrf.mxu0 }
 0x340   : > { %v5326_v18 = vpop.f32.mrf.mxu1  ;;  %v13404_v59 = vadd.f32 %v5754_v24, %v5371_v25 }
 0x341   : > { %v5379_v40 = vadd.f32 %v5326_v18, %v13220_v41  ;;  %v9236_v6 = vpop.f32.mrf.mxu0 }
 0x342   : > { %v9208_v44 = vpop.f32.mrf.mxu1  ;;  %9423 = vmatmul.mubr.msk.bf16.gmra.mxu1 %vm652_vm2, %v7360_v22  ;;  %v13408_v2 = vadd.f32 %v9236_v6, %v5376_v61 }
 0x343   : > { %v5384_v55 = vadd.f32 %v9208_v44, %v13231_v13  ;;  %v5767_v33 = vpop.f32.mrf.mxu0 }
 0x344   : > { %v5339_v62 = vpop.f32.mrf.mxu1  ;;  %v13411_v9 = vadd.f32 %v5767_v33, %v5374_v30 }
 0x345   : > { %v5382_v7 = vadd.f32 %v5339_v62, %v13241_v43  ;;  %v9237_v3 = vpop.f32.mrf.mxu0 }
 0x346   : > { %v9209_v11 = vpop.f32.mrf.mxu1  ;;  %v13414_v25 = vadd.f32 %v9237_v3, %v5377_v27 }
 0x347   : > { %v5385_v41 = vadd.f32 %v9209_v11, %v13249_v19  ;;  %v5770_v48 = vpop.f32.mrf.mxu0 }
 0x348   : > { %v5342_v1 = vpop.f32.mrf.mxu1  ;;  %v13417_v37 = vadd.f32 %v5770_v48, %v5375_v49 }
 0x349   : > { %v5383_v61 = vadd.f32 %v5342_v1, %v13257_v29  ;;  %v9240_v20 = vpop.f32.mrf.mxu0 }
 0x34a   : > { %v9252_v13 = vpop.f32.mrf.mxu1  ;;  %v13420_v21 = vadd.f32 %v9240_v20, %v5380_v14 }
 0x34b   : > { %v6030_v30 = vadd.f32 %v9252_v13, %v13271_v58  ;;  %v5783_v16 = vpop.f32.mrf.mxu0 }
 0x34c   : > { %v5901_v43 = vpop.f32.mrf.mxu1  ;;  %v13423_v0 = vadd.f32 %v5783_v16, %v5378_v42 }
 0x34d   : > { %v6028_v27 = vadd.f32 %v5901_v43, %v13280_v31  ;;  %v9241_v34 = vpop.f32.mrf.mxu0 }
 0x34e   : > { %v9253_v19 = vpop.f32.mrf.mxu1  ;;  %v13426_v15 = vadd.f32 %v9241_v34, %v5381_v60 }
 0x34f   : > { %v6031_v49 = vadd.f32 %v9253_v19, %v13288_v39  ;;  %v5786_v56 = vpop.f32.mrf.mxu0 }
 0x350   : > { %v5904_v29 = vpop.f32.mrf.mxu1  ;;  %v13429_v36 = vadd.f32 %v5786_v56, %v5379_v40 }
 0x351   : > { %v13432_v12 = vadd.f32 %v5904_v29, %v13296_v35  ;;  %v9244_v58 = vpop.f32.mrf.mxu0  ;;  %v15082_v29 = vmov 0.0  }
 0x352   : > { %v9256_v14 = vpop.f32.mrf.mxu1  ;;  %v13434_v54 = vadd.f32 %v9244_v58, %v5384_v55  ;;  %9434 = vmatprep.mubr.msk.f32.mxu0 %vm9617_vm3, %v15082_v29  ;;  %9439 = vmatprep.mubr.msk.f32.mxu1 %vm9617_vm3, %v15082_v29 }
 0x353   : > { %v6034_v47 = vadd.f32 %v9256_v14, %v13310_v38  ;;  %v5799_v31 = vpop.f32.mrf.mxu0 }
 0x354   : > { %v5917_v57 = vpop.f32.mrf.mxu1  ;;  %v13437_v42 = vadd.f32 %v5799_v31, %v5382_v7 }
 0x355   : > { %v13440_v28 = vadd.f32 %v5917_v57, %v13320_v26  ;;  %v9245_v39 = vpop.f32.mrf.mxu0 }
 0x356   : > { %v9257_v4 = vpop.f32.mrf.mxu1  ;;  %v13442_v60 = vadd.f32 %v9245_v39, %v5385_v41 }
 0x357   : > { %v6035_v35 = vadd.f32 %v9257_v4, %v13329_v51  ;;  %v5802_v22 = vpop.f32.mrf.mxu0 }
 0x358   : > { %v5920_v24 = vpop.f32.mrf.mxu1  ;;  %v13445_v18 = vadd.f32 %v5802_v22, %v5383_v61 }
 0x359   : > { %v13448_v40 = vadd.f32 %v5920_v24, %v13336_v46  ;;  %v9288_v38 = vpop.f32.mrf.mxu0 }
 0x35a   : > { %v9260_v6 = vpop.f32.mrf.mxu1  ;;  %v13450_v44 = vadd.f32 %v9288_v38, %v6030_v30 }
 0x35b   : > { %v6038_v26 = vadd.f32 %v9260_v6, %v13350_v52  ;;  %v6341_v55 = vpop.f32.mrf.mxu0 }
 0x35c   : > { %v5933_v33 = vpop.f32.mrf.mxu1  ;;  %v13453_v62 = vadd.f32 %v6341_v55, %v6028_v27 }
 0x35d   : > { %v13456_v7 = vadd.f32 %v5933_v33, %v13356_v53  ;;  %v9289_v51 = vpop.f32.mrf.mxu0 }
 0x35e   : > { %v9261_v3 = vpop.f32.mrf.mxu1  ;;  %v13458_v11 = vadd.f32 %v9289_v51, %v6031_v49  ;;  %v7727_v49 = vld [vmem:[%s14137_s7 + $0x18] sm:$0xff] }
 0x35f   : > { %v6039_v46 = vadd.f32 %v9261_v3, %v13360_v45  ;;  %v13461_v41 = vpop.f32.mrf.mxu0  ;;  %9427 = vmatpush3.msra.mxu0 %v7727_v49 }
 0x360   : > { %v5936_v48 = vpop.f32.mrf.mxu1  ;;  %9428 = vmatprep.subr.mxu0 %v15082_v29 }
 0x361   : > { %v13464_v1 = vadd.f32 %v5936_v48, %v13364_v50  ;;  %v9292_v52 = vpop.f32.mrf.mxu0 }
 0x362   : > { %v9264_v61 = vpop.f32.mrf.mxu1  ;;  %v13466_v20 = vadd.f32 %v9292_v52, %v6034_v47  ;;  %v7726_v52 = vld [vmem:[%s14137_s7 + $0x10] sm:$0xff] }
 0x363   : > { %v6042_v13 = vadd.f32 %v9264_v61, %v13371_v8  ;;  %v13469_v53 = vpop.f32.mrf.mxu0  ;;  %9429 = vmatpush3.msra.mxu0 %v7726_v52 }
 0x364   : > { %v5949_v30 = vpop.f32.mrf.mxu1  ;;  %9430 = vmatprep.subr.mxu0 %v15082_v29 }
 0x365   : > { %v13472_v16 = vadd.f32 %v5949_v30, %v13377_v32  ;;  %v9293_v43 = vpop.f32.mrf.mxu0 }
 0x366   : > { %v9265_v45 = vpop.f32.mrf.mxu1  ;;  %v13474_v27 = vadd.f32 %v9293_v43, %v6035_v35 }
 0x367   : > { %v6043_v34 = vadd.f32 %v9265_v45, %v13381_v23  ;;  %v13477_v50 = vpop.f32.mrf.mxu0 }
 0x368   : > { %v5952_v19 = vpop.f32.mrf.mxu1 }
 0x369   : > { %v13483_v8 = vadd.f32 %v5952_v19, %v13387_v10  ;;  %v9296_v56 = vpop.f32.mrf.mxu0 }
 0x36a   : > { %v9268_v32 = vpop.f32.mrf.mxu1  ;;  %v13486_v58 = vadd.f32 %v9296_v56, %v6038_v26 }
 0x36b   : > { %v6046_v14 = vadd.f32 %v9268_v32, %v13393_v5  ;;  %v13489_v23 = vpop.f32.mrf.mxu0 }
 0x36c   : > { %v5965_v47 = vpop.f32.mrf.mxu1 }
 0x36d   : > { %v13492_v31 = vadd.f32 %v5965_v47, %v13397_v63  ;;  %v9297_v57 = vpop.f32.mrf.mxu0 }
 0x36e   : > { %v9269_v39 = vpop.f32.mrf.mxu1  ;;  %v13494_v4 = vadd.f32 %v9297_v57, %v6039_v46 }
 0x36f   : > { %v6047_v10 = vadd.f32 %v9269_v39, %v13400_v17  ;;  %v13497_v35 = vpop.f32.mrf.mxu0 }
 0x370   : > { %v5968_v22 = vpop.f32.mrf.mxu1 }
 0x371   : > { %v13500_v24 = vadd.f32 %v5968_v22, %v13404_v59  ;;  %v9300_v38 = vpop.f32.mrf.mxu0 }
 0x372   : > { %v9272_v5 = vpop.f32.mrf.mxu1  ;;  %v13502_v6 = vadd.f32 %v9300_v38, %v6042_v13 }
 0x373   : > { %v6050_v26 = vadd.f32 %v9272_v5, %v13408_v2  ;;  %v13505_v63 = vpop.f32.mrf.mxu0 }
 0x374   : > { %v5981_v55 = vpop.f32.mrf.mxu1 }
 0x375   : > { %v13508_v33 = vadd.f32 %v5981_v55, %v13411_v9  ;;  %v9301_v51 = vpop.f32.mrf.mxu0 }
 0x376   : > { %v9273_v17 = vpop.f32.mrf.mxu1  ;;  %v13510_v3 = vadd.f32 %v9301_v51, %v6043_v34 }
 0x377   : > { %15083 = vst [vmem:[#allocation123_spill] sm:$0xff] %v13508_v33  ;;  %v6051_v46 = vadd.f32 %v9273_v17, %v13414_v25  ;;  %v13513_v59 = vpop.f32.mrf.mxu0 }
 0x378   : > { %v5984_v48 = vpop.f32.mrf.mxu1 }
 0x379   : > { %v13519_v2 = vadd.f32 %v5984_v48, %v13417_v37  ;;  %v9304_v61 = vpop.f32.mrf.mxu0 }
 0x37a   : > { %v9276_v9 = vpop.f32.mrf.mxu1  ;;  %v13522_v13 = vadd.f32 %v9304_v61, %v6046_v14 }
 0x37b   : > { %15084 = vst [vmem:[#allocation122_spill] sm:$0xff] %v13519_v2  ;;  %v6054_v30 = vadd.f32 %v9276_v9, %v13420_v21  ;;  %v13525_v25 = vpop.f32.mrf.mxu0 }
 0x37c   : > { %v5997_v43 = vpop.f32.mrf.mxu1 }
 0x37d   : > { %v13528_v45 = vadd.f32 %v5997_v43, %v13423_v0  ;;  %v9305_v34 = vpop.f32.mrf.mxu0 }
 0x37e   : > { %v9277_v19 = vpop.f32.mrf.mxu1  ;;  %v13530_v49 = vadd.f32 %v9305_v34, %v6047_v10 }
 0x37f   : > { %15085 = vst [vmem:[#allocation110_spill] sm:$0xff] %v13528_v45  ;;  %v6055_v37 = vadd.f32 %v9277_v19, %v13426_v15  ;;  %v13533_v56 = vpop.f32.mrf.mxu0 }
 0x380   : > { %v6000_v32 = vpop.f32.mrf.mxu1 }
 0x381   : > { %v13536_v14 = vadd.f32 %v6000_v32, %v13429_v36  ;;  %v9308_v47 = vpop.f32.mrf.mxu0 }
 0x382   : > { %v9280_v21 = vpop.f32.mrf.mxu1  ;;  %v13538_v57 = vadd.f32 %v9308_v47, %v6050_v26  ;;  %v7725_v26 = vld [vmem:[%s14137_s7 + $0x8] sm:$0xff] }
 0x383   : > { %15086 = vst [vmem:[#allocation125_spill] sm:$0xff] %v13536_v14  ;;  %v6058_v39 = vadd.f32 %v9280_v21, %v13434_v54  ;;  %v13541_v0 = vpop.f32.mrf.mxu0  ;;  %9431 = vmatpush3.msra.mxu0 %v7725_v26 }
 0x384   : > { %15087 = vst [vmem:[#allocation124_spill] sm:$0xff] %v13541_v0  ;;  %v6013_v22 = vpop.f32.mrf.mxu1  ;;  %9432 = vmatprep.subr.mxu0 %v15082_v29 }
 0x385   : > { %v13544_v10 = vadd.f32 %v6013_v22, %v13437_v42  ;;  %v9309_v38 = vpop.f32.mrf.mxu0 }
 0x386   : > { %v9281_v15 = vpop.f32.mrf.mxu1  ;;  %v13546_v5 = vadd.f32 %v9309_v38, %v6051_v46 }
 0x387   : > { %15088 = vst [vmem:[#allocation127_spill] sm:$0xff] %v13544_v10  ;;  %v6059_v55 = vadd.f32 %v9281_v15, %v13442_v60  ;;  %v13549_v36 = vpop.f32.mrf.mxu0 }
 0x388   : > { %15089 = vst [vmem:[#allocation126_spill] sm:$0xff] %v13549_v36  ;;  %v6016_v51 = vpop.f32.mrf.mxu1 }
 0x389   : > { %v13555_v54 = vadd.f32 %v6016_v51, %v13445_v18  ;;  %v9312_v17 = vpop.f32.mrf.mxu0 }
 0x38a   : > { %v9324_v42 = vpop.f32.mrf.mxu1  ;;  %v13558_v48 = vadd.f32 %v9312_v17, %v6054_v30 }
 0x38b   : > { %15090 = vst [vmem:[#allocation129_spill] sm:$0xff] %v13555_v54  ;;  %v13561_v46 = vadd.f32 %v9324_v42, %v13450_v44  ;;  %v13563_v60 = vpop.f32.mrf.mxu0 }
 0x38c   : > { %15091 = vst [vmem:[#allocation128_spill] sm:$0xff] %v13563_v60  ;;  %v6801_v52 = vpop.f32.mrf.mxu1 }
 0x38d   : > { %v13566_v61 = vadd.f32 %v6801_v52, %v13453_v62  ;;  %v9313_v9 = vpop.f32.mrf.mxu0 }
 0x38e   : > { %v9325_v43 = vpop.f32.mrf.mxu1  ;;  %v13568_v18 = vadd.f32 %v9313_v9, %v6055_v37 }
 0x38f   : > { %v13571_v34 = vadd.f32 %v9325_v43, %v13458_v11  ;;  %v13573_v19 = vpop.f32.mrf.mxu0 }
 0x390   : > { %15092 = vst [vmem:[#allocation131_spill] sm:$0xff] %v13573_v19  ;;  %v13575_v30 = vpop.f32.mrf.mxu1 }
 0x391   : > { %v9316_v32 = vpop.f32.mrf.mxu0 }
 0x392   : > { %v9328_v44 = vpop.f32.mrf.mxu1  ;;  %v13577_v47 = vadd.f32 %v9316_v32, %v6058_v39 }
 0x393   : > { %v13580_v21 = vadd.f32 %v9328_v44, %v13466_v20  ;;  %v13582_v62 = vpop.f32.mrf.mxu0  ;;  %v7724_v44 = vld [vmem:[%s14137_s7] sm:$0xff] }
 0x394   : > { %15093 = vst [vmem:[#allocation130_spill] sm:$0xff] %v13582_v62  ;;  %v13584_v22 = vpop.f32.mrf.mxu1  ;;  %9433 = vmatpush3.msra.mxu0 %v7724_v44 }
 0x395   : > { %v9317_v37 = vpop.f32.mrf.mxu0 }
 0x396   : > { %v9329_v38 = vpop.f32.mrf.mxu1  ;;  %v6499_v15 = vadd.f32 %v9317_v37, %v6059_v55 }
 0x397   : > { %v13587_v11 = vadd.f32 %v9329_v38, %v13474_v27  ;;  %v13589_v51 = vpop.f32.mrf.mxu0 }
 0x398   : > { %15094 = vst [vmem:[#allocation133_spill] sm:$0xff] %v13589_v51  ;;  %v13591_v26 = vpop.f32.mrf.mxu1 }
 0x399   : > { %v13593_v17 = vpop.f32.mrf.mxu0 }
 0x39a   : > { %v9332_v39 = vpop.f32.mrf.mxu1 }
 0x39b   : > { %v13596_v20 = vadd.f32 %v9332_v39, %v13486_v58  ;;  %v7015_v42 = vpop.f32.mrf.mxu0 }
 0x39c   : > { %v13598_v52 = vpop.f32.mrf.mxu1 }
 0x39d   : > { %v13600_v9 = vpop.f32.mrf.mxu0 }
 0x39e   : > { %v9333_v43 = vpop.f32.mrf.mxu1 }
 0x39f   : > { %v13603_v55 = vadd.f32 %v9333_v43, %v13494_v4  ;;  %v13605_v27 = vpop.f32.mrf.mxu0  ;;  %v7804_v4 = vld [vmem:[%s14138_s8] sm:$0x3] }
 0x3a0   : > { %v13607_v32 = vpop.f32.mrf.mxu1  ;;  %9438 = vmatpush3.msk.msra.mxu1 %vm7809_vm4, %v7804_v4 }
 0x3a1   : > { %v13613_v58 = vpop.f32.mrf.mxu0 }
 0x3a2   : > { %v9336_v37 = vpop.f32.mrf.mxu1 }
 0x3a3   : > { %v13620_v38 = vadd.f32 %v9336_v37, %v13502_v6  ;;  %v7031_v39 = vpop.f32.mrf.mxu0 }
 0x3a4   : > { %v13622_v43 = vpop.f32.mrf.mxu1 }
 0x3a5   : > { %v13624_v44 = vpop.f32.mrf.mxu0 }
 0x3a6   : > { %v9337_v51 = vpop.f32.mrf.mxu1 }
 0x3a7   : > { %v13627_v54 = vadd.f32 %v9337_v51, %v13510_v3  ;;  %v13629_v62 = vpop.f32.mrf.mxu0 }
 0x3a8   : > { %v13631_v10 = vpop.f32.mrf.mxu1 }
 0x3a9   : > { %v13633_v19 = vpop.f32.mrf.mxu0 }
 0x3aa   : > { %v9340_v29 = vpop.f32.mrf.mxu1 }
 0x3ab   : > { %v13636_v6 = vadd.f32 %v9340_v29, %v13522_v13  ;;  %v13638_v37 = vpop.f32.mrf.mxu0 }
 0x3ac   : > { %v13640_v4 = vpop.f32.mrf.mxu1 }
 0x3ad   : > { %15095 = vst [vmem:[#allocation132_spill] sm:$0xff] %v13636_v6  ;;  %v13645_v3 = vpop.f32.mrf.mxu0 }
 0x3ae   : > { %v9341_v14 = vpop.f32.mrf.mxu1 }
 0x3af   : > { %v13643_v60 = vadd.f32 %v9341_v14, %v13530_v49  ;;  %v13652_v2 = vpop.f32.mrf.mxu0 }
 0x3b0   : > { %v13647_v51 = vpop.f32.mrf.mxu1 }
 0x3b1   : > { %15096 = vst [vmem:[#allocation135_spill] sm:$0xff] %v13643_v60  ;;  %15097 = vst [vmem:[#allocation134_spill] sm:$0xff] %v13647_v51  ;;  %v13659_v33 = vpop.f32.mrf.mxu0 }
 0x3b2   : > { %v9344_v45 = vpop.f32.mrf.mxu1 }
 0x3b3   : > { %v13650_v36 = vadd.f32 %v9344_v45, %v13538_v57  ;;  %v13666_v6 = vpop.f32.mrf.mxu0 }
 0x3b4   : > { %v13654_v13 = vpop.f32.mrf.mxu1 }
 0x3b5   : > { %15098 = vst [vmem:[#allocation137_spill] sm:$0xff] %v13650_v36  ;;  %15099 = vst [vmem:[#allocation136_spill] sm:$0xff] %v13654_v13  ;;  %v13673_v13 = vpop.f32.mrf.mxu0 }
 0x3b6   : > { %v9345_v29 = vpop.f32.mrf.mxu1 }
 0x3b7   : > { %v13657_v0 = vadd.f32 %v9345_v29, %v13546_v5 }
 0x3b8   : > { %v13661_v49 = vpop.f32.mrf.mxu1 }
 0x3b9   : > { %15100 = vst [vmem:[#allocation140_spill] sm:$0xff] %v13657_v0  ;;  %15101 = vst [vmem:[#allocation138_spill] sm:$0xff] %v13661_v49  ;;  %v13680_v49 = vpop.f32.mrf.mxu0 }
 0x3ba   : > { %v9348_v14 = vpop.f32.mrf.mxu1 }
 0x3bb   : > { %v13664_v60 = vadd.f32 %v9348_v14, %v13558_v48 }
 0x3bc   : > { %v13668_v45 = vpop.f32.mrf.mxu1 }
 0x3bd   : > { %15102 = vst [vmem:[#allocation141_spill] sm:$0xff] %v13664_v60  ;;  %15103 = vst [vmem:[#allocation10_spill] sm:$0xff] %v13668_v45  ;;  %v13686_v45 = vpop.f32.mrf.mxu0 }
 0x3be   : > { %v9349_v57 = vpop.f32.mrf.mxu1 }
 0x3bf   : > { %v13671_v36 = vadd.f32 %v9349_v57, %v13568_v18  ;;  %v6469_v57 = vadd.f32 %v13461_v41, %v13432_v12 }
 0x3c0   : > { %v13675_v5 = vpop.f32.mrf.mxu1 }
 0x3c1   : > { %15104 = vst [vmem:[#allocation142_spill] sm:$0xff] %v13671_v36  ;;  %15105 = vst [vmem:[#allocation143_spill] sm:$0xff] %v13675_v5  ;;  %v7142_v36 = vadd.f32 %v7015_v42, %v13566_v61  ;;  %v13693_v5 = vpop.f32.mrf.mxu0 }
 0x3c2   : > { %v9352_v29 = vpop.f32.mrf.mxu1 }
 0x3c3   : > { %v13678_v0 = vadd.f32 %v9352_v29, %v13577_v47  ;;  %v6929_v29 = vadd.f32 %v13575_v30, %v6469_v57  ;;  %v13703_v61 = vpop.f32.mrf.mxu0  ;;  %v13708_v30 = vld [vmem:[%s14136_s6] ss:$0 sm:$0xff] }
 0x3c4   : > { %v13682_v48 = vpop.f32.mrf.mxu1 }
 0x3c5   : > { %15106 = vst [vmem:[#allocation21_spill] sm:$0xff] %v13678_v0  ;;  %v7144_v0 = vadd.f32 %v13593_v17, %v13561_v46  ;;  %v7143_v12 = vadd.f32 %v13605_v27, %v6929_v29 }
 0x3c6   : > { %v9353_v14 = vpop.f32.mrf.mxu1 }
 0x3c7   : > { %v13684_v60 = vadd.f32 %v9353_v14, %v6499_v15 }
 0x3c8   : > { %v13688_v51 = vpop.f32.mrf.mxu1 }
 0x3c9   : > { %15107 = vst [vmem:[#allocation28_spill] sm:$0xff] %v13684_v60  ;;  %15108 = vst [vmem:[#allocation31_spill] sm:$0xff] %v13688_v51  ;;  %v6472_v60 = vadd.f32 %v13469_v53, %v13440_v28  ;;  %v7145_v51 = vadd.f32 %v13600_v9, %v13571_v34  ;;  %v6473_v34 = vadd.f32 %v13477_v50, %v13448_v40 }
 0x3ca   : > { %v9396_v18 = vpop.f32.mrf.mxu1 }
 0x3cb   : > { %v7584_v41 = vadd.f32 %v9396_v18, %v7144_v0  ;;  %v6933_v18 = vadd.f32 %v13591_v26, %v6473_v34  ;;  %v7149_v26 = vadd.f32 %v13624_v44, %v13587_v11 }
 0x3cc   : > { %v7455_v47 = vpop.f32.mrf.mxu1 }
 0x3cd   : > { %v7582_v15 = vadd.f32 %v7455_v47, %v7142_v36  ;;  %v6932_v36 = vadd.f32 %v13584_v22, %v6472_v60  ;;  %v13717_v9 = vadd.f32 %v13708_v30, %v7584_v41  ;;  %v7148_v60 = vadd.f32 %v13613_v58, %v13580_v21  ;;  %v13725_v22 = vpop.f32.mrf.mxu0 }
 0x3ce   : > { %v9397_v14 = vpop.f32.mrf.mxu1  ;;  %v6476_v47 = vadd.f32 %v13489_v23, %v13456_v7  ;;  %v7147_v29 = vadd.f32 %v13629_v62, %v6933_v18  ;;  %v6477_v62 = vadd.f32 %v13497_v35, %v13464_v1  ;;  %v7152_v1 = vadd.f32 %v13633_v19, %v13596_v20 }
 0x3cf   : > { %v13712_v46 = vadd.f32 %v13708_v30, %v7582_v15  ;;  %v7585_v28 = vadd.f32 %v9397_v14, %v7145_v51  ;;  %v7146_v0 = vadd.f32 %v7031_v39, %v6932_v36  ;;  %v7656_v15 = vsel %vm652_vm2, %v13717_v9, 0.0  ;;  %v13744_v41 = vpop.f32.mrf.mxu0 }
 0x3d0   : > { %v7458_v42 = vpop.f32.mrf.mxu1  ;;  %v6936_v7 = vadd.f32 %v13598_v52, %v6476_v47  ;;  %v6937_v18 = vadd.f32 %v13607_v32, %v6477_v62  ;;  %v7153_v32 = vadd.f32 %v13645_v3, %v13603_v55 }
 0x3d1   : > { %v7583_v53 = vadd.f32 %v7458_v42, %v7143_v12  ;;  %v7653_v57 = vsel %vm652_vm2, %v13712_v46, 0.0  ;;  %v13730_v40 = vadd.f32 %v13708_v30, %v7585_v28 }
 0x3d2   : > { %v9400_v17 = vpop.f32.mrf.mxu1  ;;  %v7150_v34 = vadd.f32 %v13638_v37, %v6936_v7 }
 0x3d3   : > { %v13720_v27 = vadd.f32 %v13708_v30, %v7583_v53  ;;  %v7588_v14 = vadd.f32 %v9400_v17, %v7148_v60  ;;  %v7658_v23 = vsel %vm652_vm2, %v13730_v40, 0.0  ;;  %v13761_v60 = vpop.f32.mrf.mxu0 }
 0x3d4   : > { %v7471_v51 = vpop.f32.mrf.mxu1 }
 0x3d5   : > { %v7654_v50 = vsel %vm652_vm2, %v13720_v27, 0.0  ;;  %v7586_v39 = vadd.f32 %v7471_v51, %v7146_v0  ;;  %v13753_v17 = vadd.f32 %v13708_v30, %v7588_v14 }
 0x3d6   : > { %v7655_v21 = vadd.f32 %v7654_v50, %v7653_v57  ;;  %v9401_v58 = vpop.f32.mrf.mxu1 }
 0x3d7   : > { %v13742_v12 = vadd.f32 %v13708_v30, %v7586_v39  ;;  %v7589_v11 = vadd.f32 %v9401_v58, %v7149_v26  ;;  %v6480_v39 = vadd.f32 %v13505_v63, %v13472_v16  ;;  %v7664_v19 = vsel %vm652_vm2, %v13753_v17, 0.0 }
 0x3d8   : > { %v7657_v42 = vadd.f32 %v7656_v15, %v7655_v21  ;;  %v7474_v36 = vpop.f32.mrf.mxu1  ;;  %v7151_v21 = vadd.f32 %v13652_v2, %v6937_v18  ;;  %v6481_v2 = vadd.f32 %v13513_v59, %v13483_v8  ;;  %v7156_v8 = vadd.f32 %v13659_v33, %v13620_v38 }
 0x3d9   : > { %v7587_v44 = vadd.f32 %v7474_v36, %v7147_v29  ;;  %v7660_v0 = vsel %vm652_vm2, %v13742_v12, 0.0  ;;  %v13766_v35 = vadd.f32 %v13708_v30, %v7589_v11  ;;  %v13780_v29 = vpop.f32.mrf.mxu0  ;;  %v6940_v16 = vadd.f32 %v13622_v43, %v6480_v39 }
 0x3da   : > { %v7659_v28 = vadd.f32 %v7658_v23, %v7657_v42  ;;  %v9404_v53 = vpop.f32.mrf.mxu1 }
 0x3db   : > { %v13758_v52 = vadd.f32 %v13708_v30, %v7587_v44  ;;  %v7592_v20 = vadd.f32 %v9404_v53, %v7152_v1  ;;  %v7666_v63 = vsel %vm652_vm2, %v13766_v35, 0.0  ;;  %v7154_v7 = vadd.f32 %v13666_v6, %v6940_v16  ;;  %v13797_v62 = vpop.f32.mrf.mxu0 }
 0x3dc   : > { %v7661_v51 = vadd.f32 %v7660_v0, %v7659_v28  ;;  %v7487_v57 = vpop.f32.mrf.mxu1  ;;  %v6941_v44 = vadd.f32 %v13631_v10, %v6481_v2  ;;  %v6484_v0 = vadd.f32 %v13525_v25, %v13492_v31  ;;  %v7157_v10 = vadd.f32 %v13673_v13, %v13627_v54  ;;  %v15111_v2 = vld [vmem:[#allocation123_spill] sm:$0xff] }
 0x3dd   : > { %v7662_v37 = vsel %vm652_vm2, %v13758_v52, 0.0  ;;  %v7590_v50 = vadd.f32 %v7487_v57, %v7150_v34  ;;  %v13789_v23 = vadd.f32 %v13708_v30, %v7592_v20  ;;  %v15109_v20 = vld [vmem:[#allocation134_spill] sm:$0xff] }
 0x3de   : > { %v7663_v47 = vadd.f32 %v7662_v37, %v7661_v51  ;;  %v9405_v26 = vpop.f32.mrf.mxu1  ;;  %v7155_v57 = vadd.f32 %v13680_v49, %v6941_v44  ;;  %v13816_v37 = vpop.f32.mrf.mxu0  ;;  %v6944_v31 = vadd.f32 %v13640_v4, %v6484_v0  ;;  %v6485_v49 = vadd.f32 %v13533_v56, %v13500_v24 }
 0x3df   : > { %v13778_v58 = vadd.f32 %v13708_v30, %v7590_v50  ;;  %v7593_v55 = vadd.f32 %v9405_v26, %v7153_v32  ;;  %v7672_v33 = vsel %vm652_vm2, %v13789_v23, 0.0 }
 0x3e0   : > { %v7665_v15 = vadd.f32 %v7664_v19, %v7663_v47  ;;  %v7490_v14 = vpop.f32.mrf.mxu1  ;;  %v7158_v26 = vadd.f32 %v13693_v5, %v6944_v31 }
 0x3e1   : > { %v7591_v3 = vadd.f32 %v7490_v14, %v7151_v21  ;;  %v7668_v11 = vsel %vm652_vm2, %v13778_v58, 0.0  ;;  %v13802_v59 = vadd.f32 %v13708_v30, %v7593_v55  ;;  %v7111_v14 = vpop.f32.mrf.mxu0  ;;  %v15110_v55 = vld [vmem:[#allocation132_spill] sm:$0xff] }
 0x3e2   : > { %v7667_v42 = vadd.f32 %v7666_v63, %v7665_v15  ;;  %v9408_v36 = vpop.f32.mrf.mxu1  ;;  %v6945_v15 = vadd.f32 %v15109_v20, %v6485_v49  ;;  %v7160_v24 = vadd.f32 %v13686_v45, %v15110_v55 }
 0x3e3   : > { %v13794_v43 = vadd.f32 %v13708_v30, %v7591_v3  ;;  %v7596_v38 = vadd.f32 %v9408_v36, %v7156_v8  ;;  %v7674_v25 = vsel %vm652_vm2, %v13802_v59, 0.0 }
 0x3e4   : > { %v7669_v28 = vadd.f32 %v7668_v11, %v7667_v42  ;;  %v7503_v53 = vpop.f32.mrf.mxu1  ;;  %v15112_v42 = vld [vmem:[#allocation124_spill] sm:$0xff] }
 0x3e5   : > { %v7670_v6 = vsel %vm652_vm2, %v13794_v43, 0.0  ;;  %v7594_v34 = vadd.f32 %v7503_v53, %v7154_v7  ;;  %v13825_v21 = vadd.f32 %v13708_v30, %v7596_v38  ;;  %v6488_v36 = vadd.f32 %v15112_v42, %v15111_v2  ;;  %v15113_v7 = vld [vmem:[#allocation135_spill] sm:$0xff]  ;;  %v15115_v38 = vld [vmem:[#allocation122_spill] sm:$0xff]  ;;  %v15121_v2 = vld [vmem:[#allocation140_spill] sm:$0xff] }
 0x3e6   : > { %v7671_v18 = vadd.f32 %v7670_v6, %v7669_v28  ;;  %v9409_v51 = vpop.f32.mrf.mxu1  ;;  %v7161_v11 = vadd.f32 %v13703_v61, %v15113_v7  ;;  %v7159_v53 = vadd.f32 %v13725_v22, %v6945_v15  ;;  %v15118_v15 = vld [vmem:[#allocation137_spill] sm:$0xff]  ;;  %v7165_v42 = vadd.f32 %v13780_v29, %v15121_v2 }
 0x3e7   : > { %v13814_v1 = vadd.f32 %v13708_v30, %v7594_v34  ;;  %v7597_v54 = vadd.f32 %v9409_v51, %v7157_v10  ;;  %v7680_v45 = vsel %vm652_vm2, %v13825_v21, 0.0  ;;  %v9385_v34 = vpop.f32.mrf.mxu0 }
 0x3e8   : > { %v7673_v50 = vadd.f32 %v7672_v33, %v7671_v18  ;;  %v7506_v39 = vpop.f32.mrf.mxu1  ;;  %v15114_v18 = vld [vmem:[#allocation136_spill] sm:$0xff] }
 0x3e9   : > { %v7595_v13 = vadd.f32 %v7506_v39, %v7155_v57  ;;  %v7676_v19 = vsel %vm652_vm2, %v13814_v1, 0.0  ;;  %v13836_v56 = vadd.f32 %v13708_v30, %v7597_v54  ;;  %v6948_v51 = vadd.f32 %v15114_v18, %v6488_v36 }
 0x3ea   : > { %v7675_v32 = vadd.f32 %v7674_v25, %v7673_v50  ;;  %v9412_v47 = vpop.f32.mrf.mxu1  ;;  %v15116_v50 = vld [vmem:[#allocation126_spill] sm:$0xff] }
 0x3eb   : > { %v13830_v4 = vadd.f32 %v13708_v30, %v7595_v13  ;;  %v7600_v8 = vadd.f32 %v9412_v47, %v7160_v24  ;;  %v7682_v57 = vsel %vm652_vm2, %v13836_v56, 0.0  ;;  %v6489_v22 = vadd.f32 %v15116_v50, %v15115_v38  ;;  %v15119_v24 = vld [vmem:[#allocation110_spill] sm:$0xff] }
 0x3ec   : > { %v7677_v16 = vadd.f32 %v7676_v19, %v7675_v32  ;;  %v7519_v63 = vpop.f32.mrf.mxu1  ;;  %v7162_v25 = vadd.f32 %v13761_v60, %v6948_v51  ;;  %v15117_v32 = vld [vmem:[#allocation138_spill] sm:$0xff] }
 0x3ed   : > { %v7678_v5 = vsel %vm652_vm2, %v13830_v4, 0.0  ;;  %v7598_v3 = vadd.f32 %v7519_v63, %v7158_v26  ;;  %v13857_v54 = vadd.f32 %v13708_v30, %v7600_v8  ;;  %v6949_v47 = vadd.f32 %v15117_v32, %v6489_v22  ;;  %v7114_v26 = vpop.f32.mrf.mxu0 }
 0x3ee   : > { %v7679_v44 = vadd.f32 %v7678_v5, %v7677_v16  ;;  %v9413_v28 = vpop.f32.mrf.mxu1  ;;  %v7164_v16 = vadd.f32 %v13744_v41, %v15118_v15  ;;  %v15120_v5 = vld [vmem:[#allocation128_spill] sm:$0xff] }
 0x3ef   : > { %v13848_v6 = vadd.f32 %v13708_v30, %v7598_v3  ;;  %v7601_v61 = vadd.f32 %v9413_v28, %v7161_v11  ;;  %v6492_v3 = vadd.f32 %v15120_v5, %v15119_v24  ;;  %v7163_v11 = vadd.f32 %v13797_v62, %v6949_v47  ;;  %v15128_v24 = vld [vmem:[#allocation130_spill] sm:$0xff] }
 0x3f0   : > { %v7681_v0 = vadd.f32 %v7680_v45, %v7679_v44  ;;  %v7522_v10 = vpop.f32.mrf.mxu1  ;;  %v7688_v41 = vsel %vm652_vm2, %v13857_v54, 0.0 }
 0x3f1   : > { %v7599_v33 = vadd.f32 %v7522_v10, %v7159_v53  ;;  %v7684_v13 = vsel %vm652_vm2, %v13848_v6, 0.0  ;;  %v13868_v63 = vadd.f32 %v13708_v30, %v7601_v61  ;;  %v9388_v53 = vpop.f32.mrf.mxu0  ;;  %v15124_v61 = vld [vmem:[#allocation131_spill] sm:$0xff] }
 0x3f2   : > { %v7683_v39 = vadd.f32 %v7682_v57, %v7681_v0  ;;  %v9416_v31 = vpop.f32.mrf.mxu1  ;;  %v15122_v0 = vld [vmem:[#allocation10_spill] sm:$0xff]  ;;  %v15123_v57 = vld [vmem:[#allocation125_spill] sm:$0xff] }
 0x3f3   : > { %v13862_v49 = vadd.f32 %v13708_v30, %v7599_v33  ;;  %v7604_v44 = vadd.f32 %v9416_v31, %v7164_v16  ;;  %v6952_v10 = vadd.f32 %v15122_v0, %v6492_v3  ;;  %v7690_v18 = vsel %vm652_vm2, %v13868_v63, 0.0  ;;  %v7127_v32 = vpop.f32.mrf.mxu0  ;;  %v15129_v3 = vld [vmem:[#allocation142_spill] sm:$0xff] }
 0x3f4   : > { %v7685_v19 = vadd.f32 %v7684_v13, %v7683_v39  ;;  %v7535_v20 = vpop.f32.mrf.mxu1  ;;  %v6493_v62 = vadd.f32 %v15124_v61, %v15123_v57  ;;  %v7169_v2 = vadd.f32 %v9385_v34, %v15129_v3 }
 0x3f5   : > { %v7686_v60 = vsel %vm652_vm2, %v13862_v49, 0.0  ;;  %v7602_v55 = vadd.f32 %v7535_v20, %v7162_v25  ;;  %v7166_v50 = vadd.f32 %v7111_v14, %v6952_v10  ;;  %v13888_v22 = vadd.f32 %v13708_v30, %v7604_v44  ;;  %v15125_v25 = vld [vmem:[#allocation143_spill] sm:$0xff]  ;;  %v15126_v20 = vld [vmem:[#allocation141_spill] sm:$0xff]  ;;  %v9389_v44 = vpop.f32.mrf.mxu0 }
 0x3f6   : > { %v7687_v36 = vadd.f32 %v7686_v60, %v7685_v19  ;;  %v9417_v7 = vpop.f32.mrf.mxu1  ;;  %v6953_v13 = vadd.f32 %v15125_v25, %v6493_v62  ;;  %v7168_v15 = vadd.f32 %v13816_v37, %v15126_v20 }
 0x3f7   : > { %v13880_v28 = vadd.f32 %v13708_v30, %v7602_v55  ;;  %v7605_v29 = vadd.f32 %v9417_v7, %v7165_v42  ;;  %v15127_v55 = vld [vmem:[#allocation127_spill] sm:$0xff]  ;;  %v7130_v25 = vpop.f32.mrf.mxu0 }
 0x3f8   : > { %v7689_v45 = vadd.f32 %v7688_v41, %v7687_v36  ;;  %v7538_v8 = vpop.f32.mrf.mxu1  ;;  %v6496_v5 = vadd.f32 %v15128_v24, %v15127_v55  ;;  %v7167_v7 = vadd.f32 %v7114_v26, %v6953_v13 }
 0x3f9   : > { %v7603_v51 = vadd.f32 %v7538_v8, %v7163_v11  ;;  %v7692_v39 = vsel %vm652_vm2, %v13880_v28, 0.0  ;;  %v13899_v16 = vadd.f32 %v13708_v30, %v7605_v29  ;;  %v7696_v11 = vsel %vm652_vm2, %v13888_v22, 0.0  ;;  %v15130_v29 = vld [vmem:[#allocation129_spill] sm:$0xff] }
 0x3fa   : > { %v7691_v33 = vadd.f32 %v7690_v18, %v7689_v45  ;;  %v9420_v38 = vpop.f32.mrf.mxu1  ;;  %v6956_v0 = vadd.f32 %v13682_v48, %v6496_v5  ;;  %v15132_v48 = vld [vmem:[#allocation31_spill] sm:$0xff] }
 0x3fb   : > { %v13893_v31 = vadd.f32 %v13708_v30, %v7603_v51  ;;  %v7608_v41 = vadd.f32 %v9420_v38, %v7168_v15  ;;  %v7698_v10 = vsel %vm652_vm2, %v13899_v16, 0.0  ;;  %v15131_v51 = vld [vmem:[#allocation133_spill] sm:$0xff] }
 0x3fc   : > { %v7693_v47 = vadd.f32 %v7692_v39, %v7691_v33  ;;  %v7551_v19 = vpop.f32.mrf.mxu1  ;;  %v6497_v26 = vadd.f32 %v15131_v51, %v15130_v29  ;;  %v7170_v62 = vadd.f32 %v7127_v32, %v6956_v0 }
 0x3fd   : > { %v7694_v14 = vsel %vm652_vm2, %v13893_v31, 0.0  ;;  %v7606_v60 = vadd.f32 %v7551_v19, %v7166_v50  ;;  %v13917_v33 = vadd.f32 %v13708_v30, %v7608_v41  ;;  %v15133_v19 = vld [vmem:[#allocation21_spill] sm:$0xff] }
 0x3fe   : > { %v7695_v42 = vadd.f32 %v7694_v14, %v7693_v47  ;;  %v9421_v36 = vpop.f32.mrf.mxu1  ;;  %v6957_v39 = vadd.f32 %v15132_v48, %v6497_v26  ;;  %v7172_v20 = vadd.f32 %v9388_v53, %v15133_v19 }
 0x3ff   : > { %v13909_v37 = vadd.f32 %v13708_v30, %v7606_v60  ;;  %v7609_v18 = vadd.f32 %v9421_v36, %v7169_v2  ;;  %v15134_v60 = vld [vmem:[#allocation28_spill] sm:$0xff]  ;;  %v7704_v2 = vsel %vm652_vm2, %v13917_v33, 0.0 }
 0x400   : > { %v7697_v45 = vadd.f32 %v7696_v11, %v7695_v42  ;;  %v7554_v8 = vpop.f32.mrf.mxu1  ;;  %v7173_v55 = vadd.f32 %v9389_v44, %v15134_v60  ;;  %v7171_v3 = vadd.f32 %v7130_v25, %v6957_v39 }
 0x401   : > { %v7607_v34 = vadd.f32 %v7554_v8, %v7167_v7  ;;  %v7700_v38 = vsel %vm652_vm2, %v13909_v37, 0.0  ;;  %v13927_v15 = vadd.f32 %v13708_v30, %v7609_v18 }
 0x402   : > { %v7699_v57 = vadd.f32 %v7698_v10, %v7697_v45  ;;  %v9424_v61 = vpop.f32.mrf.mxu1 }
 0x403   : > { %v13922_v50 = vadd.f32 %v13708_v30, %v7607_v34  ;;  %v7612_v42 = vadd.f32 %v9424_v61, %v7172_v20  ;;  %v7706_v11 = vsel %vm652_vm2, %v13927_v15, 0.0 }
 0x404   : > { %v7701_v13 = vadd.f32 %v7700_v38, %v7699_v57  ;;  %v7567_v47 = vpop.f32.mrf.mxu1 }
 0x405   : > { %v7702_v32 = vsel %vm652_vm2, %v13922_v50, 0.0  ;;  %v7610_v14 = vadd.f32 %v7567_v47, %v7170_v62  ;;  %v13940_v44 = vadd.f32 %v13708_v30, %v7612_v42  ;;  %v7888_v42 = vlaneseq }
 0x406   : > { %v7703_v24 = vadd.f32 %v7702_v32, %v7701_v13  ;;  %v9425_v5 = vpop.f32.mrf.mxu1 }
 0x407   : > { %v13935_v36 = vadd.f32 %v13708_v30, %v7610_v14  ;;  %v7613_v41 = vadd.f32 %v9425_v5, %v7173_v55  ;;  %v7712_v26 = vsel %vm652_vm2, %v13940_v44, 0.0 }
 0x408   : > { %v7705_v53 = vadd.f32 %v7704_v2, %v7703_v24  ;;  %v7570_v7 = vpop.f32.mrf.mxu1 }
 0x409   : > { %v7611_v45 = vadd.f32 %v7570_v7, %v7171_v3  ;;  %v7708_v0 = vsel %vm652_vm2, %v13935_v36, 0.0  ;;  %v13948_v34 = vadd.f32 %v13708_v30, %v7613_v41 }
 0x40a   : > { %v7707_v8 = vadd.f32 %v7706_v11, %v7705_v53  ;;  %v7889_v53 = vshrl.u32 %v7888_v42, 7 }
 0x40b   : > { %v13945_v10 = vadd.f32 %v13708_v30, %v7611_v45  ;;  %v7714_v61 = vsel %vm652_vm2, %v13948_v34, 0.0 }
 0x40c   : > { %v7709_v18 = vadd.f32 %v7708_v0, %v7707_v8  ;;  %v7890_v7 = vsub.s32 0, %v7889_v53  ;;  %v9590_v53 = vld [vmem:[%s9723_s11 + $0x88] sm:$0xff] }
 0x40d   : > { %v7710_v29 = vsel %vm652_vm2, %v13945_v10, 0.0 }
 0x40e   : > { %v7711_v51 = vadd.f32 %v7710_v29, %v7709_v18 }
 0x410   : > { %v7713_v57 = vadd.f32 %v7712_v26, %v7711_v51 }
 0x412   : > { %v7715_v62 = vadd.f32 %v7714_v61, %v7713_v57 }
 0x414   : > { %v7716_v38 = vrot.slane %v7715_v62, 4 }
 0x416   : > { %v7717_v48 = vadd.f32 %v7716_v38, %v7715_v62  ;;  %v9580_v38 = vld [vmem:[%s9723_s11 + $0x38] sm:$0xff] }
 0x418   : > { %v7718_v39 = vrot.slane %v7717_v48, 2 }
 0x41a   : > { %v7719_v25 = vadd.f32 %v7718_v39, %v7717_v48  ;;  %v9581_v48 = vld [vmem:[%s9723_s11 + $0x40] sm:$0xff]  ;;  %v9582_v39 = vld [vmem:[%s9723_s11 + $0x48] sm:$0xff] }
 0x41c   : > { %v7720_v13 = vrot.slane %v7719_v25, 1 }
 0x41e   : > { %v7721_v47 = vadd.f32 %v7720_v13, %v7719_v25  ;;  %v9583_v13 = vld [vmem:[%s9723_s11 + $0x50] sm:$0xff] }
 0x420   : > { %v7723_v30 = vmul.f32 0.00390625, %v7721_v47 }
 0x422   : > { %9435 = vmatmul.mubr.msk.f32.vlgmr.msra.gmra.mxu0 %vm652_vm2, %v7723_v30  ;;  %v9584_v30 = vld [vmem:[%s9723_s11 + $0x58] sm:$0xff] }
 0x4e2   : > { %v7797_v19 = vpop.f32.mrf.mxu0 }
 0x4e3   : > { %vm7801_vm11 = vcmp.gt.f32.partialorder %v7797_v19, 0.0  ;;  %v7802_v20 = vmul.f32 0.01, %v7797_v19 }
 0x4e4   : > { %v9436_v32 = vpop.f32.mrf.mxu0 }
 0x4e5   : > { %v7803_v14 = vsel %vm7801_vm11, %v7797_v19, %v7802_v20  ;;  %v9585_v20 = vld [vmem:[%s9723_s11 + $0x60] sm:$0xff] }
 0x4e6   : > { %9440 = vmatmul.mubr.msk.f32.vlgmr.msra.gmra.mxu1 %vm7805_vm12, %v7803_v14  ;;  %v9586_v14 = vld [vmem:[%s9723_s11 + $0x68] sm:$0xff] }
 0x5a6   : > { %v7879_v60 = vpop.f32.mrf.mxu1 }
 0x5a7   : > { %v7883_v55 = vsub.f32 0.0, %v7879_v60 }
 0x5a8   : > { %v9441_v24 = vpop.f32.mrf.mxu1 }
 0x5a9   : > { %v7884_v5 = vmul.f32 1.442695, %v7883_v55  ;;  %v9587_v55 = vld [vmem:[%s9723_s11 + $0x70] sm:$0xff] }
 0x5ab   : > { %9489 = vpow2.f32 %v7884_v5  ;;  %v9588_v5 = vld [vmem:[%s9723_s11 + $0x78] sm:$0xff] }
 0x5b8   : > { %v9490_v3 = vpop.eup %9489 }
 0x5b9   : > { %v7886_v2 = vadd.f32 1.0, %v9490_v3 }
 0x5bb   : > { %9491 = vrcp.f32 %v7886_v2  ;;  %v9589_v2 = vld [vmem:[%s9723_s11 + $0x80] sm:$0xff] }
 0x5c8   : > { %v9492_v11 = vpop.eup %9491 }
 0x5c9   : > { %v7891_v41 = vrot.slane %v9492_v11, %v7890_v7  ;;  %v9591_v11 = vld [vmem:[%s9723_s11 + $0x90] sm:$0xff] }
 0x5cb   : > { %v7892_v45 = vmul.f32 %v7891_v41, %v13712_v46  ;;  %v7893_v8 = vmul.f32 %v7891_v41, %v13720_v27  ;;  %v7894_v0 = vmul.f32 %v7891_v41, %v13717_v9  ;;  %v7895_v18 = vmul.f32 %v7891_v41, %v13730_v40 }
 0x5cc   : > { %v7896_v29 = vmul.f32 %v7891_v41, %v13742_v12  ;;  %v7897_v51 = vmul.f32 %v7891_v41, %v13758_v52  ;;  %v7898_v26 = vmul.f32 %v7891_v41, %v13753_v17  ;;  %v7899_v57 = vmul.f32 %v7891_v41, %v13766_v35 }
 0x5cd   : > { %v7900_v61 = vmul.f32 %v7891_v41, %v13778_v58  ;;  %v7901_v62 = vmul.f32 %v7891_v41, %v13794_v43  ;;  %v7902_v46 = vmul.f32 %v7891_v41, %v13789_v23  ;;  %v7903_v27 = vmul.f32 %v7891_v41, %v13802_v59 }
 0x5ce   : > { %v7904_v9 = vmul.f32 %v7891_v41, %v13814_v1  ;;  %v7905_v40 = vmul.f32 %v7891_v41, %v13830_v4  ;;  %v7906_v12 = vmul.f32 %v7891_v41, %v13825_v21  ;;  %v7907_v52 = vmul.f32 %v7891_v41, %v13836_v56 }
 0x5cf   : > { %v7908_v17 = vmul.f32 %v7891_v41, %v13848_v6  ;;  %v7909_v35 = vmul.f32 %v7891_v41, %v13862_v49  ;;  %v7910_v58 = vmul.f32 %v7891_v41, %v13857_v54  ;;  %v7911_v23 = vmul.f32 %v7891_v41, %v13868_v63 }
 0x5d0   : > { %v13979_v43 = vmul.f32 %v7891_v41, %v13880_v28  ;;  %v13982_v59 = vmul.f32 %v7891_v41, %v13893_v31  ;;  %v13985_v1 = vmul.f32 %v7891_v41, %v13888_v22  ;;  %v13988_v21 = vmul.f32 %v7891_v41, %v13899_v16  ;;  %v9576_v31 = vld [vmem:[%s9723_s11 + $0x18] sm:$0xff] }
 0x5d1   : > { %v13991_v4 = vmul.f32 %v7891_v41, %v13909_v37  ;;  %v13994_v56 = vmul.f32 %v7891_v41, %v13922_v50  ;;  %v13997_v6 = vmul.f32 %v7891_v41, %v13917_v33  ;;  %v14000_v54 = vmul.f32 %v7891_v41, %v13927_v15  ;;  %v9577_v37 = vld [vmem:[%s9723_s11 + $0x20] sm:$0xff]  ;;  %v9578_v50 = vld [vmem:[%s9723_s11 + $0x28] sm:$0xff] }
 0x5d2   : > { %v14008_v49 = vmul.f32 %v7891_v41, %v13935_v36  ;;  %v14011_v63 = vmul.f32 %v7891_v41, %v13945_v10  ;;  %v14014_v28 = vmul.f32 %v7891_v41, %v13940_v44  ;;  %v14017_v22 = vmul.f32 %v7891_v41, %v13948_v34  ;;  %v9579_v36 = vld [vmem:[%s9723_s11 + $0x30] sm:$0xff] }
 0x5d3   : > { %v7924_v16 = vadd.f32 %v9576_v31, %v7892_v45  ;;  %v7925_v33 = vadd.f32 %v9577_v37, %v7893_v8  ;;  %v7926_v15 = vadd.f32 %v9578_v50, %v7894_v0  ;;  %v7927_v10 = vadd.f32 %v9579_v36, %v7895_v18  ;;  %v9592_v45 = vld [vmem:[%s9723_s11 + $0x98] sm:$0xff]  ;;  %v9593_v0 = vld [vmem:[%s9723_s11 + $0xa0] sm:$0xff]  ;;  %v9606_v31 = vld [vmem:[%s9723_s11 + $0x108] sm:$0xff] }
 0x5d4   : > { %v7928_v44 = vadd.f32 %v9580_v38, %v7896_v29  ;;  %v7929_v34 = vadd.f32 %v9581_v48, %v7897_v51  ;;  %v7930_v25 = vadd.f32 %v9582_v39, %v7898_v26  ;;  %v7931_v47 = vadd.f32 %v9583_v13, %v7899_v57  ;;  %v9594_v29 = vld [vmem:[%s9723_s11 + $0xa8] sm:$0xff]  ;;  %v9595_v26 = vld [vmem:[%s9723_s11 + $0xb0] sm:$0xff] }
 0x5d5   : > { %v7932_v19 = vadd.f32 %v9584_v30, %v7900_v61  ;;  %v7933_v32 = vadd.f32 %v9585_v20, %v7901_v62  ;;  %v7934_v60 = vadd.f32 %v9586_v14, %v7902_v46  ;;  %v7935_v24 = vadd.f32 %v9587_v55, %v7903_v27  ;;  %7956 = vst.msk [vmem:[%s14005_s14] sm:$0xff] %vm652_vm2, %v7924_v16  ;;  %v9596_v61 = vld [vmem:[%s9723_s11 + $0xb8] sm:$0xff]  ;;  %v9597_v46 = vld [vmem:[%s9723_s11 + $0xc0] sm:$0xff]  ;;  %v9607_v37 = vld [vmem:[%s9723_s11 + $0x110] sm:$0xff] }
 0x5d6   : > { %7957 = vst.msk [vmem:[%s14005_s14 + $0x8] sm:$0xff] %vm652_vm2, %v7925_v33  ;;  %7958 = vst.msk [vmem:[%s14005_s14 + $0x10] sm:$0xff] %vm652_vm2, %v7926_v15  ;;  %v7936_v3 = vadd.f32 %v9588_v5, %v7904_v9  ;;  %v7937_v42 = vadd.f32 %v9589_v2, %v7905_v40  ;;  %v7938_v7 = vadd.f32 %v9590_v53, %v7906_v12  ;;  %v9598_v9 = vld [vmem:[%s9723_s11 + $0xc8] sm:$0xff]  ;;  %v9599_v12 = vld [vmem:[%s9723_s11 + $0xd0] sm:$0xff] }
 0x5d7   : > { %7959 = vst.msk [vmem:[%s14005_s14 + $0x18] sm:$0xff] %vm652_vm2, %v7927_v10  ;;  %v7939_v41 = vadd.f32 %v9591_v11, %v7907_v52  ;;  %7960 = vst.msk [vmem:[%s14005_s14 + $0x20] sm:$0xff] %vm652_vm2, %v7928_v44  ;;  %v7940_v8 = vadd.f32 %v9592_v45, %v7908_v17  ;;  %v7941_v18 = vadd.f32 %v9593_v0, %v7909_v35  ;;  %v9600_v17 = vld [vmem:[%s9723_s11 + $0xd8] sm:$0xff] }
 0x5d8   : > { %7961 = vst.msk [vmem:[%s14005_s14 + $0x28] sm:$0xff] %vm652_vm2, %v7929_v34  ;;  %7962 = vst.msk [vmem:[%s14005_s14 + $0x30] sm:$0xff] %vm652_vm2, %v7930_v25  ;;  %v7942_v51 = vadd.f32 %v9594_v29, %v7910_v58  ;;  %v7943_v57 = vadd.f32 %v9595_v26, %v7911_v23  ;;  %v7944_v62 = vadd.f32 %v9596_v61, %v13979_v43  ;;  %v9601_v58 = vld [vmem:[%s9723_s11 + $0xe0] sm:$0xff]  ;;  %v9602_v43 = vld [vmem:[%s9723_s11 + $0xe8] sm:$0xff] }
 0x5d9   : > { %7963 = vst.msk [vmem:[%s14005_s14 + $0x38] sm:$0xff] %vm652_vm2, %v7931_v47  ;;  %7964 = vst.msk [vmem:[%s14005_s14 + $0x40] sm:$0xff] %vm652_vm2, %v7932_v19  ;;  %v7945_v27 = vadd.f32 %v9597_v46, %v13982_v59  ;;  %v7946_v40 = vadd.f32 %v9598_v9, %v13985_v1  ;;  %v7947_v52 = vadd.f32 %v9599_v12, %v13988_v21  ;;  %v9603_v1 = vld [vmem:[%s9723_s11 + $0xf0] sm:$0xff] }
 0x5da   : > { %7965 = vst.msk [vmem:[%s14005_s14 + $0x48] sm:$0xff] %vm652_vm2, %v7933_v32  ;;  %7966 = vst.msk [vmem:[%s14005_s14 + $0x50] sm:$0xff] %vm652_vm2, %v7934_v60  ;;  %v7948_v35 = vadd.f32 %v9600_v17, %v13991_v4  ;;  %v7949_v23 = vadd.f32 %v9601_v58, %v13994_v56  ;;  %v7950_v59 = vadd.f32 %v9602_v43, %v13997_v6  ;;  %v9604_v4 = vld [vmem:[%s9723_s11 + $0xf8] sm:$0xff]  ;;  %v9605_v6 = vld [vmem:[%s9723_s11 + $0x100] sm:$0xff] }
 0x5db   : > { %7967 = vst.msk [vmem:[%s14005_s14 + $0x58] sm:$0xff] %vm652_vm2, %v7935_v24  ;;  %7968 = vst.msk [vmem:[%s14005_s14 + $0x60] sm:$0xff] %vm652_vm2, %v7936_v3  ;;  %v7951_v21 = vadd.f32 %v9603_v1, %v14000_v54  ;;  %v7952_v56 = vadd.f32 %v9604_v4, %v14008_v49  ;;  %v7953_v54 = vadd.f32 %v9605_v6, %v14011_v63 }
 0x5dc   : > { %7969 = vst.msk [vmem:[%s14005_s14 + $0x68] sm:$0xff] %vm652_vm2, %v7937_v42  ;;  %7970 = vst.msk [vmem:[%s14005_s14 + $0x70] sm:$0xff] %vm652_vm2, %v7938_v7  ;;  %v7954_v16 = vadd.f32 %v9606_v31, %v14014_v28  ;;  %v7955_v33 = vadd.f32 %v9607_v37, %v14017_v22 }
 0x5dd   : > { %7971 = vst.msk [vmem:[%s14005_s14 + $0x78] sm:$0xff] %vm652_vm2, %v7939_v41  ;;  %7972 = vst.msk [vmem:[%s14005_s14 + $0x80] sm:$0xff] %vm652_vm2, %v7940_v8 }
 0x5de   : > { %7973 = vst.msk [vmem:[%s14005_s14 + $0x88] sm:$0xff] %vm652_vm2, %v7941_v18  ;;  %7974 = vst.msk [vmem:[%s14005_s14 + $0x90] sm:$0xff] %vm652_vm2, %v7942_v51 }
 0x5df   : > { %7975 = vst.msk [vmem:[%s14005_s14 + $0x98] sm:$0xff] %vm652_vm2, %v7943_v57  ;;  %7976 = vst.msk [vmem:[%s14005_s14 + $0xa0] sm:$0xff] %vm652_vm2, %v7944_v62 }
 0x5e0   : > { %7977 = vst.msk [vmem:[%s14005_s14 + $0xa8] sm:$0xff] %vm652_vm2, %v7945_v27  ;;  %7978 = vst.msk [vmem:[%s14005_s14 + $0xb0] sm:$0xff] %vm652_vm2, %v7946_v40 }
 0x5e1   : > { %7979 = vst.msk [vmem:[%s14005_s14 + $0xb8] sm:$0xff] %vm652_vm2, %v7947_v52  ;;  %7980 = vst.msk [vmem:[%s14005_s14 + $0xc0] sm:$0xff] %vm652_vm2, %v7948_v35 }
 0x5e2   : > { %7981 = vst.msk [vmem:[%s14005_s14 + $0xc8] sm:$0xff] %vm652_vm2, %v7949_v23  ;;  %7982 = vst.msk [vmem:[%s14005_s14 + $0xd0] sm:$0xff] %vm652_vm2, %v7950_v59 }
 0x5e3   : > { %7983 = vst.msk [vmem:[%s14005_s14 + $0xd8] sm:$0xff] %vm652_vm2, %v7951_v21  ;;  %7984 = vst.msk [vmem:[%s14005_s14 + $0xe0] sm:$0xff] %vm652_vm2, %v7952_v56 }
 0x5e4   : > { %7985 = vst.msk [vmem:[%s14005_s14 + $0xe8] sm:$0xff] %vm652_vm2, %v7953_v54  ;;  %7986 = vst.msk [vmem:[%s14005_s14 + $0xf0] sm:$0xff] %vm652_vm2, %v7954_v16 }
 0x5e5   : > { %7987 = vst.msk [vmem:[%s14005_s14 + $0xf8] sm:$0xff] %vm652_vm2, %v7955_v33 }
 0x5e6 PF: > { %s19_s30 = sadd.s32 1, %s9614_s30  }
 0x5e7   : > { %p16_p4 = scmp.ge.s32.totalorder %s19_s30, 4  }
 0x5e9   :  { %18 = sbr.rel (!%p16_p4) target bundleno = 1 (0x1), region = 102 }

</bundles_post_ra>
